<compile_context>
chip_gen: v5e
topology: v5e:2x2
jax: 0.10.0
libtpu: 0.0.40
codegen_flags: <defaults>
</compile_context>

<pallas_src>
import functools

import jax
import jax.numpy as jnp
from jax import lax
from jax.experimental import pallas as pl
from jax.experimental.pallas import tpu as pltpu

K = 4        # all convs in this UNet use kernel_size=4
STRIDE = 2   # stride=2
PAD = 1      # padding=1


def _round_up(x, m):
    return (x + m - 1) // m * m


# ----------------------------------------------------------------------------
# Pallas kernels
# ----------------------------------------------------------------------------
def _matmul_act_kernel(a_ref, w_ref, b_ref, o_ref, acc_ref, *, pre_act, post_act):
    """Tiled: o = post_act(pre_act(A) @ W + b), f32 accumulate, bf16 operands.

    pre_act is applied to the im2col patch tile; relu(0)=leaky_relu(0)=0 so it
    is exactly equivalent to activating the conv input before padding.
    """
    @pl.when(pl.program_id(2) == 0)
    def _init():
        acc_ref[...] = jnp.zeros_like(acc_ref)

    a = a_ref[...]
    if pre_act == "leaky_relu":                      # nn.LeakyReLU(0.2)
        a32 = a.astype(jnp.float32)
        a = jnp.where(a32 >= 0, a32, 0.2 * a32).astype(jnp.bfloat16)
    elif pre_act == "relu":                          # nn.ReLU (exact on bf16)
        a = jnp.maximum(a, 0)

    acc_ref[...] += jnp.dot(a, w_ref[...], preferred_element_type=jnp.float32)

    @pl.when(pl.program_id(2) == pl.num_programs(2) - 1)
    def _finalize():
        y = acc_ref[...] + b_ref[...]                # f32 epilogue
        if post_act == "tanh":
            y = jnp.tanh(y)                          # nn.Tanh
        o_ref[...] = y.astype(o_ref.dtype)


def matmul_act(a, w, b, pre_act="none", post_act="none"):
    """A:(M,Kd) f32, W:(Kd,N) f32, b:(N,) f32 -> (M,N) f32.

    Pads to lane-dense tiles, casts operands to bf16, runs a tiled/pipelined
    MXU matmul with an f32 accumulator, slices padding off afterwards.
    """
    M, Kd = a.shape
    _, N = w.shape

    tm = min(512, _round_up(M, 16))
    tn = min(256, _round_up(N, 128))
    tk = min(1024, _round_up(Kd, 128))
    Mp, Np, Kp = _round_up(M, tm), _round_up(N, tn), _round_up(Kd, tk)

    a_p = jnp.pad(a.astype(jnp.bfloat16), ((0, Mp - M), (0, Kp - Kd)))
    w_p = jnp.pad(w.astype(jnp.bfloat16), ((0, Kp - Kd), (0, Np - N)))
    b_p = jnp.pad(b.astype(jnp.float32).reshape(1, N), ((0, 0), (0, Np - N)))

    grid = (Mp // tm, Np // tn, Kp // tk)
    kern = functools.partial(_matmul_act_kernel, pre_act=pre_act, post_act=post_act)

    out = pl.pallas_call(
        kern,
        grid=grid,
        in_specs=[
            pl.BlockSpec((tm, tk), lambda i, j, k: (i, k)),
            pl.BlockSpec((tk, tn), lambda i, j, k: (k, j)),
            pl.BlockSpec((1, tn), lambda i, j, k: (0, j)),
        ],
        out_specs=pl.BlockSpec((tm, tn), lambda i, j, k: (i, j)),
        out_shape=jax.ShapeDtypeStruct((Mp, Np), jnp.float32),
        scratch_shapes=[pltpu.VMEM((tm, tn), jnp.float32)],
        compiler_params=pltpu.CompilerParams(
            dimension_semantics=("parallel", "parallel", "arbitrary"),
            vmem_limit_bytes=48 * 1024 * 1024,
        ),
        cost_estimate=pl.CostEstimate(
            flops=2 * M * N * Kd,
            transcendentals=(M * N if post_act == "tanh" else 0),
            bytes_accessed=Mp * Kp * 2 + Kp * Np * 2 + Np * 4 + Mp * Np * 4,
        ),
    )(a_p, w_p, b_p)
    return out[:M, :N]


def _bn_stats_kernel(x_ref, s_ref, q_ref):
    # Row-tiled accumulation of per-channel sum / sum-of-squares; the (1, C)
    # outputs stay resident in VMEM across the grid (same block index).
    @pl.when(pl.program_id(0) == 0)
    def _init():
        s_ref[...] = jnp.zeros_like(s_ref)
        q_ref[...] = jnp.zeros_like(q_ref)

    x = x_ref[...]
    s_ref[...] += jnp.sum(x, axis=0, keepdims=True)
    q_ref[...] += jnp.sum(x * x, axis=0, keepdims=True)


def _bn_apply_kernel(x_ref, s_ref, q_ref, o_ref, *, n_rows):
    # nn.BatchNorm2d (training mode, fresh gamma=1/beta=0):
    #   y = (x - mean) / sqrt(var + 1e-5), biased variance over (N, H, W).
    # TODO(synk): running-stat buffer updates are training-side state and do
    # not affect the forward output; not reproduced here.
    x = x_ref[...]
    inv_n = 1.0 / n_rows
    mean = s_ref[...] * inv_n
    var = q_ref[...] * inv_n - mean * mean
    o_ref[...] = ((x - mean) * lax.rsqrt(var + 1e-5)).astype(o_ref.dtype)


def batchnorm2d(x_nhwc):
    B, H, W_, C = x_nhwc.shape
    rows = B * H * W_
    flat = x_nhwc.reshape(rows, C).astype(jnp.float32)

    tr = min(1024, _round_up(rows, 8))
    Rp = _round_up(rows, tr)
    flat_p = jnp.pad(flat, ((0, Rp - rows), (0, 0)))   # zero rows: sums unchanged
    grid = (Rp // tr,)

    s, q = pl.pallas_call(
        _bn_stats_kernel,
        grid=grid,
        in_specs=[pl.BlockSpec((tr, C), lambda i: (i, 0))],
        out_specs=[pl.BlockSpec((1, C), lambda i: (0, 0)),
                   pl.BlockSpec((1, C), lambda i: (0, 0))],
        out_shape=[jax.ShapeDtypeStruct((1, C), jnp.float32),
                   jax.ShapeDtypeStruct((1, C), jnp.float32)],
        compiler_params=pltpu.CompilerParams(dimension_semantics=("arbitrary",)),
    )(flat_p)

    out = pl.pallas_call(
        functools.partial(_bn_apply_kernel, n_rows=float(rows)),
        grid=grid,
        in_specs=[pl.BlockSpec((tr, C), lambda i: (i, 0)),
                  pl.BlockSpec((1, C), lambda i: (0, 0)),
                  pl.BlockSpec((1, C), lambda i: (0, 0))],
        out_specs=pl.BlockSpec((tr, C), lambda i: (i, 0)),
        out_shape=jax.ShapeDtypeStruct((Rp, C), jnp.float32),
        compiler_params=pltpu.CompilerParams(dimension_semantics=("parallel",)),
    )(flat_p, s, q)
    return out[:rows].reshape(B, H, W_, C)


# ----------------------------------------------------------------------------
# Conv wrappers (patch extraction in JAX, matmul + activations in Pallas)
# ----------------------------------------------------------------------------
def conv2d_down(x, w, bias=None, pre_act="none"):
    """nn.Conv2d(Cin, Cout, 4, stride=2, padding=1).  x: NHWC, w: (Cout,Cin,4,4)."""
    B, H, W_, Cin = x.shape
    Cout = w.shape[0]
    Ho = (H + 2 * PAD - K) // STRIDE + 1
    Wo = (W_ + 2 * PAD - K) // STRIDE + 1
    xp = jnp.pad(x, ((0, 0), (PAD, PAD), (PAD, PAD), (0, 0)))
    cols = [xp[:, kh:kh + STRIDE * Ho:STRIDE, kw:kw + STRIDE * Wo:STRIDE, :]
            for kh in range(K) for kw in range(K)]
    patches = jnp.stack(cols, axis=3).reshape(B * Ho * Wo, K * K * Cin)
    wmat = jnp.transpose(w, (2, 3, 1, 0)).reshape(K * K * Cin, Cout)
    b = bias if bias is not None else jnp.zeros((Cout,), jnp.float32)
    y = matmul_act(patches, wmat, b, pre_act=pre_act)
    return y.reshape(B, Ho, Wo, Cout)


# ConvTranspose2d(k=4, s=2, p=1) sub-pixel decomposition.
# output[2j + ry] gets contributions from input rows j+dy with kernel tap kh:
#   ry=0: (dy=-1, kh=3), (dy=0, kh=1);   ry=1: (dy=0, kh=2), (dy=+1, kh=0)
_PHASE_TAPS = {0: ((-1, 3), (0, 1)), 1: ((0, 2), (1, 0))}


def conv_transpose2d_up(x, wt, bias=None, pre_act="relu", post_act="none"):
    """nn.ConvTranspose2d(Cin, Cout, 4, stride=2, padding=1).
    x: NHWC, wt: (Cin, Cout, 4, 4).  Each of the 4 output phases (oy%2, ox%2)
    is a 2x2 convolution of the (un-dilated) input with a sub-kernel; results
    are interleaved.  No zero-insertion -> 4x fewer MACs / patch bytes."""
    B, H, W_, Cin = x.shape
    Cout = wt.shape[1]
    xp = jnp.pad(x, ((0, 0), (1, 1), (1, 1), (0, 0)))
    b = bias if bias is not None else jnp.zeros((Cout,), jnp.float32)

    phase_rows = []
    for ry in (0, 1):
        phase_cols = []
        for rx in (0, 1):
            cols, wcols = [], []
            for dy, kh in _PHASE_TAPS[ry]:
                for dx, kw in _PHASE_TAPS[rx]:
                    cols.append(xp[:, 1 + dy:1 + dy + H, 1 + dx:1 + dx + W_, :])
                    wcols.append(wt[:, :, kh, kw])          # (Cin, Cout)
            patches = jnp.concatenate(cols, axis=-1).reshape(B * H * W_, 4 * Cin)
            wmat = jnp.concatenate(wcols, axis=0)           # (4*Cin, Cout)
            y = matmul_act(patches, wmat, b, pre_act=pre_act, post_act=post_act)
            phase_cols.append(y.reshape(B, H, W_, Cout))
        phase_rows.append(jnp.stack(phase_cols, axis=3))     # (B, H, W, 2, Cout)
    y = jnp.stack(phase_rows, axis=2)                        # (B, H, 2, W, 2, Cout)
    return y.reshape(B, 2 * H, 2 * W_, Cout)


# ----------------------------------------------------------------------------
# Parameters (deterministic synthetic init) and recursive forward
# ----------------------------------------------------------------------------
def build_channel_plan(input_nc, output_nc, num_downs, ngf):
    # outer-to-inner list of (input_nc, inner_nc, outer_nc), mirroring
    # UNetGenerator's construction.
    plan = [(input_nc, ngf, output_nc),
            (ngf, ngf * 2, ngf),
            (ngf * 2, ngf * 4, ngf * 2),
            (ngf * 4, ngf * 8, ngf * 4)]
    for _ in range(num_downs - 5):
        plan.append((ngf * 8, ngf * 8, ngf * 8))
    plan.append((ngf * 8, ngf * 8, ngf * 8))  # innermost
    return plan


def init_params(key, input_nc, output_nc, num_downs, ngf, embedding_dim):
    plan = build_channel_plan(input_nc, output_nc, num_downs, ngf)
    down_w, up_w = [], []
    for i, (in_c, inner_c, outer_c) in enumerate(plan):
        key, k1, k2 = jax.random.split(key, 3)
        # downconv: Conv2d(in_c -> inner_c), weight (Cout, Cin, 4, 4), bias=False (BN)
        down_w.append(jax.random.normal(k1, (inner_c, in_c, K, K), jnp.float32) * 0.02)
        # upconv: ConvTranspose2d, weight (Cin, Cout, 4, 4)
        up_in = inner_c + embedding_dim if i == len(plan) - 1 else inner_c * 2
        up_w.append(jax.random.normal(k2, (up_in, outer_c, K, K), jnp.float32) * 0.02)
    up_b0 = jnp.zeros((plan[0][2],), jnp.float32)  # only the outermost upconv has a bias
    return {"down_w": down_w, "up_w": up_w, "up_b0": up_b0}


def unet_forward(params, x_nchw, style_encoding):
    """Forward pass of UNetGenerator(x, style_encoding).

    Returns (dec, encode) exactly like the PyTorch module:
      dec    : NCHW, tanh output of the outermost up path
      encode : (B, ngf*8) flattened bottleneck encoding
    """
    D = len(params["down_w"])
    x = jnp.transpose(x_nchw, (0, 2, 3, 1)).astype(jnp.float32)  # NCHW -> NHWC

    def block(i, xin):
        if i == D - 1:  # innermost: down=[lrelu, conv]; up=[relu, convT, BN]
            encode = conv2d_down(xin, params["down_w"][i], pre_act="leaky_relu")
            B = xin.shape[0]
            style_map = style_encoding.reshape(B, 1, 1, -1).astype(jnp.float32)
            enc = jnp.concatenate([style_map, encode], axis=-1)  # cat([style, encode], C)
            dec = batchnorm2d(conv_transpose2d_up(enc, params["up_w"][i], pre_act="relu"))
            return jnp.concatenate([xin, dec], axis=-1), encode.reshape(B, -1)
        # middle: down=[lrelu, conv, BN]; up=[relu, convT, BN]
        enc = batchnorm2d(conv2d_down(xin, params["down_w"][i], pre_act="leaky_relu"))
        sub, encode = block(i + 1, enc)
        dec = batchnorm2d(conv_transpose2d_up(sub, params["up_w"][i], pre_act="relu"))
        # TODO(synk): skip concat could be fused into the producer kernels'
        # out_specs (channel-offset writes) to avoid an extra HBM copy.
        return jnp.concatenate([xin, dec], axis=-1), encode

    # outermost: down=[conv]; up=[relu, convT(bias), tanh]
    enc0 = conv2d_down(x, params["down_w"][0], pre_act="none")
    sub, encode = block(1, enc0)
    dec = conv_transpose2d_up(sub, params["up_w"][0], bias=params["up_b0"],
                              pre_act="relu", post_act="tanh")
    return jnp.transpose(dec, (0, 3, 1, 2)), encode  # back to NCHW


# ----------------------------------------------------------------------------
if __name__ == "__main__":
    # Small shapes consistent with the module: num_downs=5 => 32x32 input
    # reaches 1x1 at the bottleneck (same recursion structure as num_downs=8
    # on 256x256), ngf=16, embedding_dim=16.
    B, input_nc, output_nc = 2, 3, 3
    num_downs, ngf, embedding_dim = 5, 16, 16
    H = W = 2 ** num_downs  # 32

    key = jax.random.PRNGKey(0)
    k_params, k_x, k_style = jax.random.split(key, 3)
    params = init_params(k_params, input_nc, output_nc, num_downs, ngf, embedding_dim)

    x = jax.random.normal(k_x, (B, input_nc, H, W), jnp.float32)            # NCHW
    style = jax.random.normal(k_style, (B, embedding_dim), jnp.float32)     # (B, emb)

    fwd = jax.jit(unet_forward)
    dec, encode = fwd(params, x, style)
    jax.block_until_ready((dec, encode))

    assert dec.shape == (B, output_nc, H, W), dec.shape
    assert encode.shape == (B, ngf * 8), encode.shape
    assert bool(jnp.all(jnp.isfinite(dec))) and bool(jnp.all(jnp.isfinite(encode)))
    print("KERNEL_OK")
</pallas_src>

<mosaic_0001>
module attributes {stable_mosaic.version = 11 : i64} {
  func.func @_matmul_act_kernel(%arg0: i32, %arg1: i32, %arg2: i32, %arg3: memref<512x128xbf16, #tpu.memory_space<vmem>>, %arg4: memref<128x128xbf16, #tpu.memory_space<vmem>>, %arg5: memref<1x128xf32, #tpu.memory_space<vmem>>, %arg6: memref<512x128xf32, #tpu.memory_space<vmem>>, %arg7: memref<512x128xf32, #tpu.memory_space<vmem>>) attributes {dimension_semantics = [#tpu.dimension_semantics<parallel>, #tpu.dimension_semantics<parallel>, #tpu.dimension_semantics<arbitrary>], iteration_bounds = array<i64: 1, 1, 1>, scalar_prefetch = 0 : i64, scratch_operands = 1 : i64, tpu.core_type = #tpu.core_type<tc>, window_params = [{transform_indices = @transform_0, window_bounds = array<i64: 512, 128>}, {transform_indices = @transform_1, window_bounds = array<i64: 128, 128>}, {transform_indices = @transform_2, window_bounds = array<i64: 1, 128>}, {transform_indices = @transform_3, window_bounds = array<i64: 512, 128>}]} {
    %c0_i32 = arith.constant 0 : i32
    %0 = arith.cmpi eq, %arg2, %c0_i32 : i32
    %1 = arith.extui %0 : i1 to i32
    %c0_i32_0 = arith.constant 0 : i32
    %2 = arith.cmpi ne, %1, %c0_i32_0 : i32
    scf.if %2 {
      %cst_10 = arith.constant 0.000000e+00 : f32
      %12 = vector.broadcast %cst_10 : f32 to vector<512x128xf32>
      %c0_11 = arith.constant 0 : index
      %c0_12 = arith.constant 0 : index
      %13 = vector.load %arg7[%c0_11, %c0_12] : memref<512x128xf32, #tpu.memory_space<vmem>>, vector<512x128xf32>
      tpu.vector_store %arg7[%c0_11, %c0_12], %12 {strides = array<i32>} : memref<512x128xf32, #tpu.memory_space<vmem>>, vector<512x128xf32>,
    } else {
    }
    %c0 = arith.constant 0 : index
    %c0_1 = arith.constant 0 : index
    %3 = vector.load %arg3[%c0, %c0_1] : memref<512x128xbf16, #tpu.memory_space<vmem>>, vector<512x128xbf16>
    %c0_2 = arith.constant 0 : index
    %c0_3 = arith.constant 0 : index
    %4 = vector.load %arg7[%c0_2, %c0_3] : memref<512x128xf32, #tpu.memory_space<vmem>>, vector<512x128xf32>
    %c0_4 = arith.constant 0 : index
    %c0_5 = arith.constant 0 : index
    %5 = vector.load %arg4[%c0_4, %c0_5] : memref<128x128xbf16, #tpu.memory_space<vmem>>, vector<128x128xbf16>
    %cst = arith.constant dense<0.000000e+00> : vector<512x128xf32>
    %6 = tpu.matmul %3, %5, %cst {dimension_numbers = #tpu.dot_dimension_numbers<[1], [0], [0], [1], [0, 0, 1, 1], [], []>} : vector<512x128xbf16>, vector<128x128xbf16>, vector<512x128xf32> -> vector<512x128xf32>
    %7 = arith.addf %4, %6 : vector<512x128xf32>
    %c0_6 = arith.constant 0 : index
    %c0_7 = arith.constant 0 : index
    %8 = vector.load %arg7[%c0_6, %c0_7] : memref<512x128xf32, #tpu.memory_space<vmem>>, vector<512x128xf32>
    tpu.vector_store %arg7[%c0_6, %c0_7], %7 {strides = array<i32>} : memref<512x128xf32, #tpu.memory_space<vmem>>, vector<512x128xf32>,
    %c0_i32_8 = arith.constant 0 : i32
    %9 = arith.cmpi eq, %arg2, %c0_i32_8 : i32
    %10 = arith.extui %9 : i1 to i32
    %c0_i32_9 = arith.constant 0 : i32
    %11 = arith.cmpi ne, %10, %c0_i32_9 : i32
    scf.if %11 {
      %c0_10 = arith.constant 0 : index
      %c0_11 = arith.constant 0 : index
      %12 = vector.load %arg7[%c0_10, %c0_11] : memref<512x128xf32, #tpu.memory_space<vmem>>, vector<512x128xf32>
      %c0_12 = arith.constant 0 : index
      %c0_13 = arith.constant 0 : index
      %13 = vector.load %arg5[%c0_12, %c0_13] : memref<1x128xf32, #tpu.memory_space<vmem>>, vector<1x128xf32>
      %14 = vector.broadcast %13 : vector<1x128xf32> to vector<512x128xf32>
      %15 = arith.addf %12, %14 : vector<512x128xf32>
      %c0_14 = arith.constant 0 : index
      %c0_15 = arith.constant 0 : index
      %16 = vector.load %arg6[%c0_14, %c0_15] : memref<512x128xf32, #tpu.memory_space<vmem>>, vector<512x128xf32>
      tpu.vector_store %arg6[%c0_14, %c0_15], %15 {strides = array<i32>} : memref<512x128xf32, #tpu.memory_space<vmem>>, vector<512x128xf32>,
    } else {
    }
    return
  }
  func.func @transform_0(%arg0: i32, %arg1: i32, %arg2: i32) -> (i32, i32) {
    %c0_i32 = arith.constant 0 : i32
    return %arg0, %arg2 : i32, i32
  }
  func.func @transform_1(%arg0: i32, %arg1: i32, %arg2: i32) -> (i32, i32) {
    %c0_i32 = arith.constant 0 : i32
    return %arg2, %arg1 : i32, i32
  }
  func.func @transform_2(%arg0: i32, %arg1: i32, %arg2: i32) -> (i32, i32) {
    %c0_i32 = arith.constant 0 : i32
    %c0_i32_0 = arith.constant 0 : i32
    return %c0_i32, %arg1 : i32, i32
  }
  func.func @transform_3(%arg0: i32, %arg1: i32, %arg2: i32) -> (i32, i32) {
    %c0_i32 = arith.constant 0 : i32
    return %arg0, %arg1 : i32, i32
  }
}

module attributes {stable_mosaic.version = 11 : i64} {
  func.func @_matmul_act_kernel(%arg0: i32, %arg1: i32, %arg2: i32, %arg3: memref<128x256xbf16, #tpu.memory_space<vmem>>, %arg4: memref<256x128xbf16, #tpu.memory_space<vmem>>, %arg5: memref<1x128xf32, #tpu.memory_space<vmem>>, %arg6: memref<128x128xf32, #tpu.memory_space<vmem>>, %arg7: memref<128x128xf32, #tpu.memory_space<vmem>>) attributes {dimension_semantics = [#tpu.dimension_semantics<parallel>, #tpu.dimension_semantics<parallel>, #tpu.dimension_semantics<arbitrary>], iteration_bounds = array<i64: 1, 1, 1>, scalar_prefetch = 0 : i64, scratch_operands = 1 : i64, tpu.core_type = #tpu.core_type<tc>, window_params = [{transform_indices = @transform_0, window_bounds = array<i64: 128, 256>}, {transform_indices = @transform_1, window_bounds = array<i64: 256, 128>}, {transform_indices = @transform_2, window_bounds = array<i64: 1, 128>}, {transform_indices = @transform_3, window_bounds = array<i64: 128, 128>}]} {
    %c0_i32 = arith.constant 0 : i32
    %0 = arith.cmpi eq, %arg2, %c0_i32 : i32
    %1 = arith.extui %0 : i1 to i32
    %c0_i32_0 = arith.constant 0 : i32
    %2 = arith.cmpi ne, %1, %c0_i32_0 : i32
    scf.if %2 {
      %cst_12 = arith.constant 0.000000e+00 : f32
      %19 = vector.broadcast %cst_12 : f32 to vector<128x128xf32>
      %c0_13 = arith.constant 0 : index
      %c0_14 = arith.constant 0 : index
      %20 = vector.load %arg7[%c0_13, %c0_14] : memref<128x128xf32, #tpu.memory_space<vmem>>, vector<128x128xf32>
      tpu.vector_store %arg7[%c0_13, %c0_14], %19 {strides = array<i32>} : memref<128x128xf32, #tpu.memory_space<vmem>>, vector<128x128xf32>,
    } else {
    }
    %c0 = arith.constant 0 : index
    %c0_1 = arith.constant 0 : index
    %3 = vector.load %arg3[%c0, %c0_1] : memref<128x256xbf16, #tpu.memory_space<vmem>>, vector<128x256xbf16>
    %4 = arith.extf %3 : vector<128x256xbf16> to vector<128x256xf32>
    %cst = arith.constant 0.000000e+00 : f32
    %5 = vector.broadcast %cst : f32 to vector<128x256xf32>
    %6 = arith.cmpf oge, %4, %5 : vector<128x256xf32>
    %cst_2 = arith.constant 2.000000e-01 : f32
    %7 = vector.broadcast %cst_2 : f32 to vector<128x256xf32>
    %8 = arith.mulf %7, %4 : vector<128x256xf32>
    %9 = arith.select %6, %4, %8 : vector<128x256xi1>, vector<128x256xf32>
    %10 = arith.truncf %9 : vector<128x256xf32> to vector<128x256xbf16>
    %c0_3 = arith.constant 0 : index
    %c0_4 = arith.constant 0 : index
    %11 = vector.load %arg7[%c0_3, %c0_4] : memref<128x128xf32, #tpu.memory_space<vmem>>, vector<128x128xf32>
    %c0_5 = arith.constant 0 : index
    %c0_6 = arith.constant 0 : index
    %12 = vector.load %arg4[%c0_5, %c0_6] : memref<256x128xbf16, #tpu.memory_space<vmem>>, vector<256x128xbf16>
    %cst_7 = arith.constant dense<0.000000e+00> : vector<128x128xf32>
    %13 = tpu.matmul %10, %12, %cst_7 {dimension_numbers = #tpu.dot_dimension_numbers<[1], [0], [0], [1], [0, 0, 1, 1], [], []>} : vector<128x256xbf16>, vector<256x128xbf16>, vector<128x128xf32> -> vector<128x128xf32>
    %14 = arith.addf %11, %13 : vector<128x128xf32>
    %c0_8 = arith.constant 0 : index
    %c0_9 = arith.constant 0 : index
    %15 = vector.load %arg7[%c0_8, %c0_9] : memref<128x128xf32, #tpu.memory_space<vmem>>, vector<128x128xf32>
    tpu.vector_store %arg7[%c0_8, %c0_9], %14 {strides = array<i32>} : memref<128x128xf32, #tpu.memory_space<vmem>>, vector<128x128xf32>,
    %c0_i32_10 = arith.constant 0 : i32
    %16 = arith.cmpi eq, %arg2, %c0_i32_10 : i32
    %17 = arith.extui %16 : i1 to i32
    %c0_i32_11 = arith.constant 0 : i32
    %18 = arith.cmpi ne, %17, %c0_i32_11 : i32
    scf.if %18 {
      %c0_12 = arith.constant 0 : index
      %c0_13 = arith.constant 0 : index
      %19 = vector.load %arg7[%c0_12, %c0_13] : memref<128x128xf32, #tpu.memory_space<vmem>>, vector<128x128xf32>
      %c0_14 = arith.constant 0 : index
      %c0_15 = arith.constant 0 : index
      %20 = vector.load %arg5[%c0_14, %c0_15] : memref<1x128xf32, #tpu.memory_space<vmem>>, vector<1x128xf32>
      %21 = vector.broadcast %20 : vector<1x128xf32> to vector<128x128xf32>
      %22 = arith.addf %19, %21 : vector<128x128xf32>
      %c0_16 = arith.constant 0 : index
      %c0_17 = arith.constant 0 : index
      %23 = vector.load %arg6[%c0_16, %c0_17] : memref<128x128xf32, #tpu.memory_space<vmem>>, vector<128x128xf32>
      tpu.vector_store %arg6[%c0_16, %c0_17], %22 {strides = array<i32>} : memref<128x128xf32, #tpu.memory_space<vmem>>, vector<128x128xf32>,
    } else {
    }
    return
  }
  func.func @transform_0(%arg0: i32, %arg1: i32, %arg2: i32) -> (i32, i32) {
    %c0_i32 = arith.constant 0 : i32
    return %arg0, %arg2 : i32, i32
  }
  func.func @transform_1(%arg0: i32, %arg1: i32, %arg2: i32) -> (i32, i32) {
    %c0_i32 = arith.constant 0 : i32
    return %arg2, %arg1 : i32, i32
  }
  func.func @transform_2(%arg0: i32, %arg1: i32, %arg2: i32) -> (i32, i32) {
    %c0_i32 = arith.constant 0 : i32
    %c0_i32_0 = arith.constant 0 : i32
    return %c0_i32, %arg1 : i32, i32
  }
  func.func @transform_3(%arg0: i32, %arg1: i32, %arg2: i32) -> (i32, i32) {
    %c0_i32 = arith.constant 0 : i32
    return %arg0, %arg1 : i32, i32
  }
}

module attributes {stable_mosaic.version = 11 : i64} {
  func.func @_bn_stats_kernel(%arg0: i32, %arg1: memref<128x32xf32, #tpu.memory_space<vmem>>, %arg2: memref<1x32xf32, #tpu.memory_space<vmem>>, %arg3: memref<1x32xf32, #tpu.memory_space<vmem>>) attributes {dimension_semantics = [#tpu.dimension_semantics<arbitrary>], iteration_bounds = array<i64: 1>, scalar_prefetch = 0 : i64, scratch_operands = 0 : i64, tpu.core_type = #tpu.core_type<tc>, window_params = [{transform_indices = @transform_0, window_bounds = array<i64: 128, 32>}, {pipeline_mode = #tpu.pipeline_mode<synchronous>, transform_indices = @transform_1, window_bounds = array<i64: 1, 32>}, {pipeline_mode = #tpu.pipeline_mode<synchronous>, transform_indices = @transform_2, window_bounds = array<i64: 1, 32>}]} {
    %c0_i32 = arith.constant 0 : i32
    %0 = arith.cmpi eq, %arg0, %c0_i32 : i32
    %1 = arith.extui %0 : i1 to i32
    %c0_i32_0 = arith.constant 0 : i32
    %2 = arith.cmpi ne, %1, %c0_i32_0 : i32
    scf.if %2 {
      %cst_11 = arith.constant 0.000000e+00 : f32
      %15 = vector.broadcast %cst_11 : f32 to vector<1x32xf32>
      %c0_12 = arith.constant 0 : index
      %c0_13 = arith.constant 0 : index
      %16 = vector.load %arg2[%c0_12, %c0_13] : memref<1x32xf32, #tpu.memory_space<vmem>>, vector<1x32xf32>
      tpu.vector_store %arg2[%c0_12, %c0_13], %15 {strides = array<i32>} : memref<1x32xf32, #tpu.memory_space<vmem>>, vector<1x32xf32>,
      %cst_14 = arith.constant 0.000000e+00 : f32
      %17 = vector.broadcast %cst_14 : f32 to vector<1x32xf32>
      %c0_15 = arith.constant 0 : index
      %c0_16 = arith.constant 0 : index
      %18 = vector.load %arg3[%c0_15, %c0_16] : memref<1x32xf32, #tpu.memory_space<vmem>>, vector<1x32xf32>
      tpu.vector_store %arg3[%c0_15, %c0_16], %17 {strides = array<i32>} : memref<1x32xf32, #tpu.memory_space<vmem>>, vector<1x32xf32>,
    } else {
    }
    %c0 = arith.constant 0 : index
    %c0_1 = arith.constant 0 : index
    %3 = vector.load %arg1[%c0, %c0_1] : memref<128x32xf32, #tpu.memory_space<vmem>>, vector<128x32xf32>
    %c0_2 = arith.constant 0 : index
    %c0_3 = arith.constant 0 : index
    %4 = vector.load %arg2[%c0_2, %c0_3] : memref<1x32xf32, #tpu.memory_space<vmem>>, vector<1x32xf32>
    %cst = arith.constant dense<0.000000e+00> : vector<32xf32>
    %5 = vector.multi_reduction <add>, %3, %cst [0] : vector<128x32xf32> to vector<32xf32>
    %6 = vector.shape_cast %5 : vector<32xf32> to vector<1x32xf32>
    %7 = arith.addf %4, %6 : vector<1x32xf32>
    %c0_4 = arith.constant 0 : index
    %c0_5 = arith.constant 0 : index
    %8 = vector.load %arg2[%c0_4, %c0_5] : memref<1x32xf32, #tpu.memory_space<vmem>>, vector<1x32xf32>
    tpu.vector_store %arg2[%c0_4, %c0_5], %7 {strides = array<i32>} : memref<1x32xf32, #tpu.memory_space<vmem>>, vector<1x32xf32>,
    %c0_6 = arith.constant 0 : index
    %c0_7 = arith.constant 0 : index
    %9 = vector.load %arg3[%c0_6, %c0_7] : memref<1x32xf32, #tpu.memory_space<vmem>>, vector<1x32xf32>
    %10 = arith.mulf %3, %3 : vector<128x32xf32>
    %cst_8 = arith.constant dense<0.000000e+00> : vector<32xf32>
    %11 = vector.multi_reduction <add>, %10, %cst_8 [0] : vector<128x32xf32> to vector<32xf32>
    %12 = vector.shape_cast %11 : vector<32xf32> to vector<1x32xf32>
    %13 = arith.addf %9, %12 : vector<1x32xf32>
    %c0_9 = arith.constant 0 : index
    %c0_10 = arith.constant 0 : index
    %14 = vector.load %arg3[%c0_9, %c0_10] : memref<1x32xf32, #tpu.memory_space<vmem>>, vector<1x32xf32>
    tpu.vector_store %arg3[%c0_9, %c0_10], %13 {strides = array<i32>} : memref<1x32xf32, #tpu.memory_space<vmem>>, vector<1x32xf32>,
    return
  }
  func.func @transform_0(%arg0: i32) -> (i32, i32) {
    %c0_i32 = arith.constant 0 : i32
    %c0_i32_0 = arith.constant 0 : i32
    return %arg0, %c0_i32 : i32, i32
  }
  func.func @transform_1(%arg0: i32) -> (i32, i32) {
    %c0_i32 = arith.constant 0 : i32
    %c0_i32_0 = arith.constant 0 : i32
    %c0_i32_1 = arith.constant 0 : i32
    return %c0_i32, %c0_i32_0 : i32, i32
  }
  func.func @transform_2(%arg0: i32) -> (i32, i32) {
    %c0_i32 = arith.constant 0 : i32
    %c0_i32_0 = arith.constant 0 : i32
    %c0_i32_1 = arith.constant 0 : i32
    return %c0_i32, %c0_i32_0 : i32, i32
  }
}

module attributes {stable_mosaic.version = 11 : i64} {
  func.func @_bn_apply_kernel(%arg0: i32, %arg1: memref<128x32xf32, #tpu.memory_space<vmem>>, %arg2: memref<1x32xf32, #tpu.memory_space<vmem>>, %arg3: memref<1x32xf32, #tpu.memory_space<vmem>>, %arg4: memref<128x32xf32, #tpu.memory_space<vmem>>) attributes {dimension_semantics = [#tpu.dimension_semantics<parallel>], iteration_bounds = array<i64: 1>, scalar_prefetch = 0 : i64, scratch_operands = 0 : i64, tpu.core_type = #tpu.core_type<tc>, window_params = [{transform_indices = @transform_0, window_bounds = array<i64: 128, 32>}, {pipeline_mode = #tpu.pipeline_mode<synchronous>, transform_indices = @transform_1, window_bounds = array<i64: 1, 32>}, {pipeline_mode = #tpu.pipeline_mode<synchronous>, transform_indices = @transform_2, window_bounds = array<i64: 1, 32>}, {transform_indices = @transform_3, window_bounds = array<i64: 128, 32>}]} {
    %c0 = arith.constant 0 : index
    %c0_0 = arith.constant 0 : index
    %0 = vector.load %arg1[%c0, %c0_0] : memref<128x32xf32, #tpu.memory_space<vmem>>, vector<128x32xf32>
    %c0_1 = arith.constant 0 : index
    %c0_2 = arith.constant 0 : index
    %1 = vector.load %arg2[%c0_1, %c0_2] : memref<1x32xf32, #tpu.memory_space<vmem>>, vector<1x32xf32>
    %cst = arith.constant 7.812500e-03 : f32
    %2 = vector.broadcast %cst : f32 to vector<1x32xf32>
    %3 = arith.mulf %1, %2 : vector<1x32xf32>
    %c0_3 = arith.constant 0 : index
    %c0_4 = arith.constant 0 : index
    %4 = vector.load %arg3[%c0_3, %c0_4] : memref<1x32xf32, #tpu.memory_space<vmem>>, vector<1x32xf32>
    %cst_5 = arith.constant 7.812500e-03 : f32
    %5 = vector.broadcast %cst_5 : f32 to vector<1x32xf32>
    %6 = arith.mulf %4, %5 : vector<1x32xf32>
    %7 = arith.mulf %3, %3 : vector<1x32xf32>
    %8 = arith.subf %6, %7 : vector<1x32xf32>
    %9 = vector.broadcast %3 : vector<1x32xf32> to vector<128x32xf32>
    %10 = arith.subf %0, %9 : vector<128x32xf32>
    %cst_6 = arith.constant 9.99999974E-6 : f32
    %11 = vector.broadcast %cst_6 : f32 to vector<1x32xf32>
    %12 = arith.addf %8, %11 : vector<1x32xf32>
    %13 = math.rsqrt %12 : vector<1x32xf32>
    %14 = vector.broadcast %13 : vector<1x32xf32> to vector<128x32xf32>
    %15 = arith.mulf %10, %14 : vector<128x32xf32>
    %c0_7 = arith.constant 0 : index
    %c0_8 = arith.constant 0 : index
    %16 = vector.load %arg4[%c0_7, %c0_8] : memref<128x32xf32, #tpu.memory_space<vmem>>, vector<128x32xf32>
    tpu.vector_store %arg4[%c0_7, %c0_8], %15 {strides = array<i32>} : memref<128x32xf32, #tpu.memory_space<vmem>>, vector<128x32xf32>,
    return
  }
  func.func @transform_0(%arg0: i32) -> (i32, i32) {
    %c0_i32 = arith.constant 0 : i32
    %c0_i32_0 = arith.constant 0 : i32
    return %arg0, %c0_i32 : i32, i32
  }
  func.func @transform_1(%arg0: i32) -> (i32, i32) {
    %c0_i32 = arith.constant 0 : i32
    %c0_i32_0 = arith.constant 0 : i32
    %c0_i32_1 = arith.constant 0 : i32
    return %c0_i32, %c0_i32_0 : i32, i32
  }
  func.func @transform_2(%arg0: i32) -> (i32, i32) {
    %c0_i32 = arith.constant 0 : i32
    %c0_i32_0 = arith.constant 0 : i32
    %c0_i32_1 = arith.constant 0 : i32
    return %c0_i32, %c0_i32_0 : i32, i32
  }
  func.func @transform_3(%arg0: i32) -> (i32, i32) {
    %c0_i32 = arith.constant 0 : i32
    %c0_i32_0 = arith.constant 0 : i32
    return %arg0, %c0_i32 : i32, i32
  }
}

module attributes {stable_mosaic.version = 11 : i64} {
  func.func @_bn_stats_kernel(%arg0: i32, %arg1: memref<32x64xf32, #tpu.memory_space<vmem>>, %arg2: memref<1x64xf32, #tpu.memory_space<vmem>>, %arg3: memref<1x64xf32, #tpu.memory_space<vmem>>) attributes {dimension_semantics = [#tpu.dimension_semantics<arbitrary>], iteration_bounds = array<i64: 1>, scalar_prefetch = 0 : i64, scratch_operands = 0 : i64, tpu.core_type = #tpu.core_type<tc>, window_params = [{transform_indices = @transform_0, window_bounds = array<i64: 32, 64>}, {pipeline_mode = #tpu.pipeline_mode<synchronous>, transform_indices = @transform_1, window_bounds = array<i64: 1, 64>}, {pipeline_mode = #tpu.pipeline_mode<synchronous>, transform_indices = @transform_2, window_bounds = array<i64: 1, 64>}]} {
    %c0_i32 = arith.constant 0 : i32
    %0 = arith.cmpi eq, %arg0, %c0_i32 : i32
    %1 = arith.extui %0 : i1 to i32
    %c0_i32_0 = arith.constant 0 : i32
    %2 = arith.cmpi ne, %1, %c0_i32_0 : i32
    scf.if %2 {
      %cst_11 = arith.constant 0.000000e+00 : f32
      %15 = vector.broadcast %cst_11 : f32 to vector<1x64xf32>
      %c0_12 = arith.constant 0 : index
      %c0_13 = arith.constant 0 : index
      %16 = vector.load %arg2[%c0_12, %c0_13] : memref<1x64xf32, #tpu.memory_space<vmem>>, vector<1x64xf32>
      tpu.vector_store %arg2[%c0_12, %c0_13], %15 {strides = array<i32>} : memref<1x64xf32, #tpu.memory_space<vmem>>, vector<1x64xf32>,
      %cst_14 = arith.constant 0.000000e+00 : f32
      %17 = vector.broadcast %cst_14 : f32 to vector<1x64xf32>
      %c0_15 = arith.constant 0 : index
      %c0_16 = arith.constant 0 : index
      %18 = vector.load %arg3[%c0_15, %c0_16] : memref<1x64xf32, #tpu.memory_space<vmem>>, vector<1x64xf32>
      tpu.vector_store %arg3[%c0_15, %c0_16], %17 {strides = array<i32>} : memref<1x64xf32, #tpu.memory_space<vmem>>, vector<1x64xf32>,
    } else {
    }
    %c0 = arith.constant 0 : index
    %c0_1 = arith.constant 0 : index
    %3 = vector.load %arg1[%c0, %c0_1] : memref<32x64xf32, #tpu.memory_space<vmem>>, vector<32x64xf32>
    %c0_2 = arith.constant 0 : index
    %c0_3 = arith.constant 0 : index
    %4 = vector.load %arg2[%c0_2, %c0_3] : memref<1x64xf32, #tpu.memory_space<vmem>>, vector<1x64xf32>
    %cst = arith.constant dense<0.000000e+00> : vector<64xf32>
    %5 = vector.multi_reduction <add>, %3, %cst [0] : vector<32x64xf32> to vector<64xf32>
    %6 = vector.shape_cast %5 : vector<64xf32> to vector<1x64xf32>
    %7 = arith.addf %4, %6 : vector<1x64xf32>
    %c0_4 = arith.constant 0 : index
    %c0_5 = arith.constant 0 : index
    %8 = vector.load %arg2[%c0_4, %c0_5] : memref<1x64xf32, #tpu.memory_space<vmem>>, vector<1x64xf32>
    tpu.vector_store %arg2[%c0_4, %c0_5], %7 {strides = array<i32>} : memref<1x64xf32, #tpu.memory_space<vmem>>, vector<1x64xf32>,
    %c0_6 = arith.constant 0 : index
    %c0_7 = arith.constant 0 : index
    %9 = vector.load %arg3[%c0_6, %c0_7] : memref<1x64xf32, #tpu.memory_space<vmem>>, vector<1x64xf32>
    %10 = arith.mulf %3, %3 : vector<32x64xf32>
    %cst_8 = arith.constant dense<0.000000e+00> : vector<64xf32>
    %11 = vector.multi_reduction <add>, %10, %cst_8 [0] : vector<32x64xf32> to vector<64xf32>
    %12 = vector.shape_cast %11 : vector<64xf32> to vector<1x64xf32>
    %13 = arith.addf %9, %12 : vector<1x64xf32>
    %c0_9 = arith.constant 0 : index
    %c0_10 = arith.constant 0 : index
    %14 = vector.load %arg3[%c0_9, %c0_10] : memref<1x64xf32, #tpu.memory_space<vmem>>, vector<1x64xf32>
    tpu.vector_store %arg3[%c0_9, %c0_10], %13 {strides = array<i32>} : memref<1x64xf32, #tpu.memory_space<vmem>>, vector<1x64xf32>,
    return
  }
  func.func @transform_0(%arg0: i32) -> (i32, i32) {
    %c0_i32 = arith.constant 0 : i32
    %c0_i32_0 = arith.constant 0 : i32
    return %arg0, %c0_i32 : i32, i32
  }
  func.func @transform_1(%arg0: i32) -> (i32, i32) {
    %c0_i32 = arith.constant 0 : i32
    %c0_i32_0 = arith.constant 0 : i32
    %c0_i32_1 = arith.constant 0 : i32
    return %c0_i32, %c0_i32_0 : i32, i32
  }
  func.func @transform_2(%arg0: i32) -> (i32, i32) {
    %c0_i32 = arith.constant 0 : i32
    %c0_i32_0 = arith.constant 0 : i32
    %c0_i32_1 = arith.constant 0 : i32
    return %c0_i32, %c0_i32_0 : i32, i32
  }
}

module attributes {stable_mosaic.version = 11 : i64} {
  func.func @_bn_apply_kernel(%arg0: i32, %arg1: memref<32x64xf32, #tpu.memory_space<vmem>>, %arg2: memref<1x64xf32, #tpu.memory_space<vmem>>, %arg3: memref<1x64xf32, #tpu.memory_space<vmem>>, %arg4: memref<32x64xf32, #tpu.memory_space<vmem>>) attributes {dimension_semantics = [#tpu.dimension_semantics<parallel>], iteration_bounds = array<i64: 1>, scalar_prefetch = 0 : i64, scratch_operands = 0 : i64, tpu.core_type = #tpu.core_type<tc>, window_params = [{transform_indices = @transform_0, window_bounds = array<i64: 32, 64>}, {pipeline_mode = #tpu.pipeline_mode<synchronous>, transform_indices = @transform_1, window_bounds = array<i64: 1, 64>}, {pipeline_mode = #tpu.pipeline_mode<synchronous>, transform_indices = @transform_2, window_bounds = array<i64: 1, 64>}, {transform_indices = @transform_3, window_bounds = array<i64: 32, 64>}]} {
    %c0 = arith.constant 0 : index
    %c0_0 = arith.constant 0 : index
    %0 = vector.load %arg1[%c0, %c0_0] : memref<32x64xf32, #tpu.memory_space<vmem>>, vector<32x64xf32>
    %c0_1 = arith.constant 0 : index
    %c0_2 = arith.constant 0 : index
    %1 = vector.load %arg2[%c0_1, %c0_2] : memref<1x64xf32, #tpu.memory_space<vmem>>, vector<1x64xf32>
    %cst = arith.constant 3.125000e-02 : f32
    %2 = vector.broadcast %cst : f32 to vector<1x64xf32>
    %3 = arith.mulf %1, %2 : vector<1x64xf32>
    %c0_3 = arith.constant 0 : index
    %c0_4 = arith.constant 0 : index
    %4 = vector.load %arg3[%c0_3, %c0_4] : memref<1x64xf32, #tpu.memory_space<vmem>>, vector<1x64xf32>
    %cst_5 = arith.constant 3.125000e-02 : f32
    %5 = vector.broadcast %cst_5 : f32 to vector<1x64xf32>
    %6 = arith.mulf %4, %5 : vector<1x64xf32>
    %7 = arith.mulf %3, %3 : vector<1x64xf32>
    %8 = arith.subf %6, %7 : vector<1x64xf32>
    %9 = vector.broadcast %3 : vector<1x64xf32> to vector<32x64xf32>
    %10 = arith.subf %0, %9 : vector<32x64xf32>
    %cst_6 = arith.constant 9.99999974E-6 : f32
    %11 = vector.broadcast %cst_6 : f32 to vector<1x64xf32>
    %12 = arith.addf %8, %11 : vector<1x64xf32>
    %13 = math.rsqrt %12 : vector<1x64xf32>
    %14 = vector.broadcast %13 : vector<1x64xf32> to vector<32x64xf32>
    %15 = arith.mulf %10, %14 : vector<32x64xf32>
    %c0_7 = arith.constant 0 : index
    %c0_8 = arith.constant 0 : index
    %16 = vector.load %arg4[%c0_7, %c0_8] : memref<32x64xf32, #tpu.memory_space<vmem>>, vector<32x64xf32>
    tpu.vector_store %arg4[%c0_7, %c0_8], %15 {strides = array<i32>} : memref<32x64xf32, #tpu.memory_space<vmem>>, vector<32x64xf32>,
    return
  }
  func.func @transform_0(%arg0: i32) -> (i32, i32) {
    %c0_i32 = arith.constant 0 : i32
    %c0_i32_0 = arith.constant 0 : i32
    return %arg0, %c0_i32 : i32, i32
  }
  func.func @transform_1(%arg0: i32) -> (i32, i32) {
    %c0_i32 = arith.constant 0 : i32
    %c0_i32_0 = arith.constant 0 : i32
    %c0_i32_1 = arith.constant 0 : i32
    return %c0_i32, %c0_i32_0 : i32, i32
  }
  func.func @transform_2(%arg0: i32) -> (i32, i32) {
    %c0_i32 = arith.constant 0 : i32
    %c0_i32_0 = arith.constant 0 : i32
    %c0_i32_1 = arith.constant 0 : i32
    return %c0_i32, %c0_i32_0 : i32, i32
  }
  func.func @transform_3(%arg0: i32) -> (i32, i32) {
    %c0_i32 = arith.constant 0 : i32
    %c0_i32_0 = arith.constant 0 : i32
    return %arg0, %c0_i32 : i32, i32
  }
}

module attributes {stable_mosaic.version = 11 : i64} {
  func.func @_matmul_act_kernel(%arg0: i32, %arg1: i32, %arg2: i32, %arg3: memref<32x512xbf16, #tpu.memory_space<vmem>>, %arg4: memref<512x128xbf16, #tpu.memory_space<vmem>>, %arg5: memref<1x128xf32, #tpu.memory_space<vmem>>, %arg6: memref<32x128xf32, #tpu.memory_space<vmem>>, %arg7: memref<32x128xf32, #tpu.memory_space<vmem>>) attributes {dimension_semantics = [#tpu.dimension_semantics<parallel>, #tpu.dimension_semantics<parallel>, #tpu.dimension_semantics<arbitrary>], iteration_bounds = array<i64: 1, 1, 1>, scalar_prefetch = 0 : i64, scratch_operands = 1 : i64, tpu.core_type = #tpu.core_type<tc>, window_params = [{transform_indices = @transform_0, window_bounds = array<i64: 32, 512>}, {transform_indices = @transform_1, window_bounds = array<i64: 512, 128>}, {transform_indices = @transform_2, window_bounds = array<i64: 1, 128>}, {transform_indices = @transform_3, window_bounds = array<i64: 32, 128>}]} {
    %c0_i32 = arith.constant 0 : i32
    %0 = arith.cmpi eq, %arg2, %c0_i32 : i32
    %1 = arith.extui %0 : i1 to i32
    %c0_i32_0 = arith.constant 0 : i32
    %2 = arith.cmpi ne, %1, %c0_i32_0 : i32
    scf.if %2 {
      %cst_12 = arith.constant 0.000000e+00 : f32
      %19 = vector.broadcast %cst_12 : f32 to vector<32x128xf32>
      %c0_13 = arith.constant 0 : index
      %c0_14 = arith.constant 0 : index
      %20 = vector.load %arg7[%c0_13, %c0_14] : memref<32x128xf32, #tpu.memory_space<vmem>>, vector<32x128xf32>
      tpu.vector_store %arg7[%c0_13, %c0_14], %19 {strides = array<i32>} : memref<32x128xf32, #tpu.memory_space<vmem>>, vector<32x128xf32>,
    } else {
    }
    %c0 = arith.constant 0 : index
    %c0_1 = arith.constant 0 : index
    %3 = vector.load %arg3[%c0, %c0_1] : memref<32x512xbf16, #tpu.memory_space<vmem>>, vector<32x512xbf16>
    %4 = arith.extf %3 : vector<32x512xbf16> to vector<32x512xf32>
    %cst = arith.constant 0.000000e+00 : f32
    %5 = vector.broadcast %cst : f32 to vector<32x512xf32>
    %6 = arith.cmpf oge, %4, %5 : vector<32x512xf32>
    %cst_2 = arith.constant 2.000000e-01 : f32
    %7 = vector.broadcast %cst_2 : f32 to vector<32x512xf32>
    %8 = arith.mulf %7, %4 : vector<32x512xf32>
    %9 = arith.select %6, %4, %8 : vector<32x512xi1>, vector<32x512xf32>
    %10 = arith.truncf %9 : vector<32x512xf32> to vector<32x512xbf16>
    %c0_3 = arith.constant 0 : index
    %c0_4 = arith.constant 0 : index
    %11 = vector.load %arg7[%c0_3, %c0_4] : memref<32x128xf32, #tpu.memory_space<vmem>>, vector<32x128xf32>
    %c0_5 = arith.constant 0 : index
    %c0_6 = arith.constant 0 : index
    %12 = vector.load %arg4[%c0_5, %c0_6] : memref<512x128xbf16, #tpu.memory_space<vmem>>, vector<512x128xbf16>
    %cst_7 = arith.constant dense<0.000000e+00> : vector<32x128xf32>
    %13 = tpu.matmul %10, %12, %cst_7 {dimension_numbers = #tpu.dot_dimension_numbers<[1], [0], [0], [1], [0, 0, 1, 1], [], []>} : vector<32x512xbf16>, vector<512x128xbf16>, vector<32x128xf32> -> vector<32x128xf32>
    %14 = arith.addf %11, %13 : vector<32x128xf32>
    %c0_8 = arith.constant 0 : index
    %c0_9 = arith.constant 0 : index
    %15 = vector.load %arg7[%c0_8, %c0_9] : memref<32x128xf32, #tpu.memory_space<vmem>>, vector<32x128xf32>
    tpu.vector_store %arg7[%c0_8, %c0_9], %14 {strides = array<i32>} : memref<32x128xf32, #tpu.memory_space<vmem>>, vector<32x128xf32>,
    %c0_i32_10 = arith.constant 0 : i32
    %16 = arith.cmpi eq, %arg2, %c0_i32_10 : i32
    %17 = arith.extui %16 : i1 to i32
    %c0_i32_11 = arith.constant 0 : i32
    %18 = arith.cmpi ne, %17, %c0_i32_11 : i32
    scf.if %18 {
      %c0_12 = arith.constant 0 : index
      %c0_13 = arith.constant 0 : index
      %19 = vector.load %arg7[%c0_12, %c0_13] : memref<32x128xf32, #tpu.memory_space<vmem>>, vector<32x128xf32>
      %c0_14 = arith.constant 0 : index
      %c0_15 = arith.constant 0 : index
      %20 = vector.load %arg5[%c0_14, %c0_15] : memref<1x128xf32, #tpu.memory_space<vmem>>, vector<1x128xf32>
      %21 = vector.broadcast %20 : vector<1x128xf32> to vector<32x128xf32>
      %22 = arith.addf %19, %21 : vector<32x128xf32>
      %c0_16 = arith.constant 0 : index
      %c0_17 = arith.constant 0 : index
      %23 = vector.load %arg6[%c0_16, %c0_17] : memref<32x128xf32, #tpu.memory_space<vmem>>, vector<32x128xf32>
      tpu.vector_store %arg6[%c0_16, %c0_17], %22 {strides = array<i32>} : memref<32x128xf32, #tpu.memory_space<vmem>>, vector<32x128xf32>,
    } else {
    }
    return
  }
  func.func @transform_0(%arg0: i32, %arg1: i32, %arg2: i32) -> (i32, i32) {
    %c0_i32 = arith.constant 0 : i32
    return %arg0, %arg2 : i32, i32
  }
  func.func @transform_1(%arg0: i32, %arg1: i32, %arg2: i32) -> (i32, i32) {
    %c0_i32 = arith.constant 0 : i32
    return %arg2, %arg1 : i32, i32
  }
  func.func @transform_2(%arg0: i32, %arg1: i32, %arg2: i32) -> (i32, i32) {
    %c0_i32 = arith.constant 0 : i32
    %c0_i32_0 = arith.constant 0 : i32
    return %c0_i32, %arg1 : i32, i32
  }
  func.func @transform_3(%arg0: i32, %arg1: i32, %arg2: i32) -> (i32, i32) {
    %c0_i32 = arith.constant 0 : i32
    return %arg0, %arg1 : i32, i32
  }
}

module attributes {stable_mosaic.version = 11 : i64} {
  func.func @_matmul_act_kernel(%arg0: i32, %arg1: i32, %arg2: i32, %arg3: memref<16x1024xbf16, #tpu.memory_space<vmem>>, %arg4: memref<1024x128xbf16, #tpu.memory_space<vmem>>, %arg5: memref<1x128xf32, #tpu.memory_space<vmem>>, %arg6: memref<16x128xf32, #tpu.memory_space<vmem>>, %arg7: memref<16x128xf32, #tpu.memory_space<vmem>>) attributes {dimension_semantics = [#tpu.dimension_semantics<parallel>, #tpu.dimension_semantics<parallel>, #tpu.dimension_semantics<arbitrary>], iteration_bounds = array<i64: 1, 1, 1>, scalar_prefetch = 0 : i64, scratch_operands = 1 : i64, tpu.core_type = #tpu.core_type<tc>, window_params = [{transform_indices = @transform_0, window_bounds = array<i64: 16, 1024>}, {transform_indices = @transform_1, window_bounds = array<i64: 1024, 128>}, {transform_indices = @transform_2, window_bounds = array<i64: 1, 128>}, {transform_indices = @transform_3, window_bounds = array<i64: 16, 128>}]} {
    %c0_i32 = arith.constant 0 : i32
    %0 = arith.cmpi eq, %arg2, %c0_i32 : i32
    %1 = arith.extui %0 : i1 to i32
    %c0_i32_0 = arith.constant 0 : i32
    %2 = arith.cmpi ne, %1, %c0_i32_0 : i32
    scf.if %2 {
      %cst_12 = arith.constant 0.000000e+00 : f32
      %19 = vector.broadcast %cst_12 : f32 to vector<16x128xf32>
      %c0_13 = arith.constant 0 : index
      %c0_14 = arith.constant 0 : index
      %20 = vector.load %arg7[%c0_13, %c0_14] : memref<16x128xf32, #tpu.memory_space<vmem>>, vector<16x128xf32>
      tpu.vector_store %arg7[%c0_13, %c0_14], %19 {strides = array<i32>} : memref<16x128xf32, #tpu.memory_space<vmem>>, vector<16x128xf32>,
    } else {
    }
    %c0 = arith.constant 0 : index
    %c0_1 = arith.constant 0 : index
    %3 = vector.load %arg3[%c0, %c0_1] : memref<16x1024xbf16, #tpu.memory_space<vmem>>, vector<16x1024xbf16>
    %4 = arith.extf %3 : vector<16x1024xbf16> to vector<16x1024xf32>
    %cst = arith.constant 0.000000e+00 : f32
    %5 = vector.broadcast %cst : f32 to vector<16x1024xf32>
    %6 = arith.cmpf oge, %4, %5 : vector<16x1024xf32>
    %cst_2 = arith.constant 2.000000e-01 : f32
    %7 = vector.broadcast %cst_2 : f32 to vector<16x1024xf32>
    %8 = arith.mulf %7, %4 : vector<16x1024xf32>
    %9 = arith.select %6, %4, %8 : vector<16x1024xi1>, vector<16x1024xf32>
    %10 = arith.truncf %9 : vector<16x1024xf32> to vector<16x1024xbf16>
    %c0_3 = arith.constant 0 : index
    %c0_4 = arith.constant 0 : index
    %11 = vector.load %arg7[%c0_3, %c0_4] : memref<16x128xf32, #tpu.memory_space<vmem>>, vector<16x128xf32>
    %c0_5 = arith.constant 0 : index
    %c0_6 = arith.constant 0 : index
    %12 = vector.load %arg4[%c0_5, %c0_6] : memref<1024x128xbf16, #tpu.memory_space<vmem>>, vector<1024x128xbf16>
    %cst_7 = arith.constant dense<0.000000e+00> : vector<16x128xf32>
    %13 = tpu.matmul %10, %12, %cst_7 {dimension_numbers = #tpu.dot_dimension_numbers<[1], [0], [0], [1], [0, 0, 1, 1], [], []>} : vector<16x1024xbf16>, vector<1024x128xbf16>, vector<16x128xf32> -> vector<16x128xf32>
    %14 = arith.addf %11, %13 : vector<16x128xf32>
    %c0_8 = arith.constant 0 : index
    %c0_9 = arith.constant 0 : index
    %15 = vector.load %arg7[%c0_8, %c0_9] : memref<16x128xf32, #tpu.memory_space<vmem>>, vector<16x128xf32>
    tpu.vector_store %arg7[%c0_8, %c0_9], %14 {strides = array<i32>} : memref<16x128xf32, #tpu.memory_space<vmem>>, vector<16x128xf32>,
    %c0_i32_10 = arith.constant 0 : i32
    %16 = arith.cmpi eq, %arg2, %c0_i32_10 : i32
    %17 = arith.extui %16 : i1 to i32
    %c0_i32_11 = arith.constant 0 : i32
    %18 = arith.cmpi ne, %17, %c0_i32_11 : i32
    scf.if %18 {
      %c0_12 = arith.constant 0 : index
      %c0_13 = arith.constant 0 : index
      %19 = vector.load %arg7[%c0_12, %c0_13] : memref<16x128xf32, #tpu.memory_space<vmem>>, vector<16x128xf32>
      %c0_14 = arith.constant 0 : index
      %c0_15 = arith.constant 0 : index
      %20 = vector.load %arg5[%c0_14, %c0_15] : memref<1x128xf32, #tpu.memory_space<vmem>>, vector<1x128xf32>
      %21 = vector.broadcast %20 : vector<1x128xf32> to vector<16x128xf32>
      %22 = arith.addf %19, %21 : vector<16x128xf32>
      %c0_16 = arith.constant 0 : index
      %c0_17 = arith.constant 0 : index
      %23 = vector.load %arg6[%c0_16, %c0_17] : memref<16x128xf32, #tpu.memory_space<vmem>>, vector<16x128xf32>
      tpu.vector_store %arg6[%c0_16, %c0_17], %22 {strides = array<i32>} : memref<16x128xf32, #tpu.memory_space<vmem>>, vector<16x128xf32>,
    } else {
    }
    return
  }
  func.func @transform_0(%arg0: i32, %arg1: i32, %arg2: i32) -> (i32, i32) {
    %c0_i32 = arith.constant 0 : i32
    return %arg0, %arg2 : i32, i32
  }
  func.func @transform_1(%arg0: i32, %arg1: i32, %arg2: i32) -> (i32, i32) {
    %c0_i32 = arith.constant 0 : i32
    return %arg2, %arg1 : i32, i32
  }
  func.func @transform_2(%arg0: i32, %arg1: i32, %arg2: i32) -> (i32, i32) {
    %c0_i32 = arith.constant 0 : i32
    %c0_i32_0 = arith.constant 0 : i32
    return %c0_i32, %arg1 : i32, i32
  }
  func.func @transform_3(%arg0: i32, %arg1: i32, %arg2: i32) -> (i32, i32) {
    %c0_i32 = arith.constant 0 : i32
    return %arg0, %arg1 : i32, i32
  }
}

module attributes {stable_mosaic.version = 11 : i64} {
  func.func @_bn_apply_kernel(%arg0: i32, %arg1: memref<8x128xf32, #tpu.memory_space<vmem>>, %arg2: memref<1x128xf32, #tpu.memory_space<vmem>>, %arg3: memref<1x128xf32, #tpu.memory_space<vmem>>, %arg4: memref<8x128xf32, #tpu.memory_space<vmem>>) attributes {dimension_semantics = [#tpu.dimension_semantics<parallel>], iteration_bounds = array<i64: 1>, scalar_prefetch = 0 : i64, scratch_operands = 0 : i64, tpu.core_type = #tpu.core_type<tc>, window_params = [{transform_indices = @transform_0, window_bounds = array<i64: 8, 128>}, {pipeline_mode = #tpu.pipeline_mode<synchronous>, transform_indices = @transform_1, window_bounds = array<i64: 1, 128>}, {pipeline_mode = #tpu.pipeline_mode<synchronous>, transform_indices = @transform_2, window_bounds = array<i64: 1, 128>}, {transform_indices = @transform_3, window_bounds = array<i64: 8, 128>}]} {
    %c0 = arith.constant 0 : index
    %c0_0 = arith.constant 0 : index
    %0 = vector.load %arg1[%c0, %c0_0] : memref<8x128xf32, #tpu.memory_space<vmem>>, vector<8x128xf32>
    %c0_1 = arith.constant 0 : index
    %c0_2 = arith.constant 0 : index
    %1 = vector.load %arg2[%c0_1, %c0_2] : memref<1x128xf32, #tpu.memory_space<vmem>>, vector<1x128xf32>
    %cst = arith.constant 1.250000e-01 : f32
    %2 = vector.broadcast %cst : f32 to vector<1x128xf32>
    %3 = arith.mulf %1, %2 : vector<1x128xf32>
    %c0_3 = arith.constant 0 : index
    %c0_4 = arith.constant 0 : index
    %4 = vector.load %arg3[%c0_3, %c0_4] : memref<1x128xf32, #tpu.memory_space<vmem>>, vector<1x128xf32>
    %cst_5 = arith.constant 1.250000e-01 : f32
    %5 = vector.broadcast %cst_5 : f32 to vector<1x128xf32>
    %6 = arith.mulf %4, %5 : vector<1x128xf32>
    %7 = arith.mulf %3, %3 : vector<1x128xf32>
    %8 = arith.subf %6, %7 : vector<1x128xf32>
    %9 = vector.broadcast %3 : vector<1x128xf32> to vector<8x128xf32>
    %10 = arith.subf %0, %9 : vector<8x128xf32>
    %cst_6 = arith.constant 9.99999974E-6 : f32
    %11 = vector.broadcast %cst_6 : f32 to vector<1x128xf32>
    %12 = arith.addf %8, %11 : vector<1x128xf32>
    %13 = math.rsqrt %12 : vector<1x128xf32>
    %14 = vector.broadcast %13 : vector<1x128xf32> to vector<8x128xf32>
    %15 = arith.mulf %10, %14 : vector<8x128xf32>
    %c0_7 = arith.constant 0 : index
    %c0_8 = arith.constant 0 : index
    %16 = vector.load %arg4[%c0_7, %c0_8] : memref<8x128xf32, #tpu.memory_space<vmem>>, vector<8x128xf32>
    tpu.vector_store %arg4[%c0_7, %c0_8], %15 {strides = array<i32>} : memref<8x128xf32, #tpu.memory_space<vmem>>, vector<8x128xf32>,
    return
  }
  func.func @transform_0(%arg0: i32) -> (i32, i32) {
    %c0_i32 = arith.constant 0 : i32
    %c0_i32_0 = arith.constant 0 : i32
    return %arg0, %c0_i32 : i32, i32
  }
  func.func @transform_1(%arg0: i32) -> (i32, i32) {
    %c0_i32 = arith.constant 0 : i32
    %c0_i32_0 = arith.constant 0 : i32
    %c0_i32_1 = arith.constant 0 : i32
    return %c0_i32, %c0_i32_0 : i32, i32
  }
  func.func @transform_2(%arg0: i32) -> (i32, i32) {
    %c0_i32 = arith.constant 0 : i32
    %c0_i32_0 = arith.constant 0 : i32
    %c0_i32_1 = arith.constant 0 : i32
    return %c0_i32, %c0_i32_0 : i32, i32
  }
  func.func @transform_3(%arg0: i32) -> (i32, i32) {
    %c0_i32 = arith.constant 0 : i32
    %c0_i32_0 = arith.constant 0 : i32
    return %arg0, %c0_i32 : i32, i32
  }
}

module attributes {stable_mosaic.version = 11 : i64} {
  func.func @_bn_stats_kernel(%arg0: i32, %arg1: memref<8x128xf32, #tpu.memory_space<vmem>>, %arg2: memref<1x128xf32, #tpu.memory_space<vmem>>, %arg3: memref<1x128xf32, #tpu.memory_space<vmem>>) attributes {dimension_semantics = [#tpu.dimension_semantics<arbitrary>], iteration_bounds = array<i64: 1>, scalar_prefetch = 0 : i64, scratch_operands = 0 : i64, tpu.core_type = #tpu.core_type<tc>, window_params = [{transform_indices = @transform_0, window_bounds = array<i64: 8, 128>}, {pipeline_mode = #tpu.pipeline_mode<synchronous>, transform_indices = @transform_1, window_bounds = array<i64: 1, 128>}, {pipeline_mode = #tpu.pipeline_mode<synchronous>, transform_indices = @transform_2, window_bounds = array<i64: 1, 128>}]} {
    %c0_i32 = arith.constant 0 : i32
    %0 = arith.cmpi eq, %arg0, %c0_i32 : i32
    %1 = arith.extui %0 : i1 to i32
    %c0_i32_0 = arith.constant 0 : i32
    %2 = arith.cmpi ne, %1, %c0_i32_0 : i32
    scf.if %2 {
      %cst_11 = arith.constant 0.000000e+00 : f32
      %15 = vector.broadcast %cst_11 : f32 to vector<1x128xf32>
      %c0_12 = arith.constant 0 : index
      %c0_13 = arith.constant 0 : index
      %16 = vector.load %arg2[%c0_12, %c0_13] : memref<1x128xf32, #tpu.memory_space<vmem>>, vector<1x128xf32>
      tpu.vector_store %arg2[%c0_12, %c0_13], %15 {strides = array<i32>} : memref<1x128xf32, #tpu.memory_space<vmem>>, vector<1x128xf32>,
      %cst_14 = arith.constant 0.000000e+00 : f32
      %17 = vector.broadcast %cst_14 : f32 to vector<1x128xf32>
      %c0_15 = arith.constant 0 : index
      %c0_16 = arith.constant 0 : index
      %18 = vector.load %arg3[%c0_15, %c0_16] : memref<1x128xf32, #tpu.memory_space<vmem>>, vector<1x128xf32>
      tpu.vector_store %arg3[%c0_15, %c0_16], %17 {strides = array<i32>} : memref<1x128xf32, #tpu.memory_space<vmem>>, vector<1x128xf32>,
    } else {
    }
    %c0 = arith.constant 0 : index
    %c0_1 = arith.constant 0 : index
    %3 = vector.load %arg1[%c0, %c0_1] : memref<8x128xf32, #tpu.memory_space<vmem>>, vector<8x128xf32>
    %c0_2 = arith.constant 0 : index
    %c0_3 = arith.constant 0 : index
    %4 = vector.load %arg2[%c0_2, %c0_3] : memref<1x128xf32, #tpu.memory_space<vmem>>, vector<1x128xf32>
    %cst = arith.constant dense<0.000000e+00> : vector<128xf32>
    %5 = vector.multi_reduction <add>, %3, %cst [0] : vector<8x128xf32> to vector<128xf32>
    %6 = vector.shape_cast %5 : vector<128xf32> to vector<1x128xf32>
    %7 = arith.addf %4, %6 : vector<1x128xf32>
    %c0_4 = arith.constant 0 : index
    %c0_5 = arith.constant 0 : index
    %8 = vector.load %arg2[%c0_4, %c0_5] : memref<1x128xf32, #tpu.memory_space<vmem>>, vector<1x128xf32>
    tpu.vector_store %arg2[%c0_4, %c0_5], %7 {strides = array<i32>} : memref<1x128xf32, #tpu.memory_space<vmem>>, vector<1x128xf32>,
    %c0_6 = arith.constant 0 : index
    %c0_7 = arith.constant 0 : index
    %9 = vector.load %arg3[%c0_6, %c0_7] : memref<1x128xf32, #tpu.memory_space<vmem>>, vector<1x128xf32>
    %10 = arith.mulf %3, %3 : vector<8x128xf32>
    %cst_8 = arith.constant dense<0.000000e+00> : vector<128xf32>
    %11 = vector.multi_reduction <add>, %10, %cst_8 [0] : vector<8x128xf32> to vector<128xf32>
    %12 = vector.shape_cast %11 : vector<128xf32> to vector<1x128xf32>
    %13 = arith.addf %9, %12 : vector<1x128xf32>
    %c0_9 = arith.constant 0 : index
    %c0_10 = arith.constant 0 : index
    %14 = vector.load %arg3[%c0_9, %c0_10] : memref<1x128xf32, #tpu.memory_space<vmem>>, vector<1x128xf32>
    tpu.vector_store %arg3[%c0_9, %c0_10], %13 {strides = array<i32>} : memref<1x128xf32, #tpu.memory_space<vmem>>, vector<1x128xf32>,
    return
  }
  func.func @transform_0(%arg0: i32) -> (i32, i32) {
    %c0_i32 = arith.constant 0 : i32
    %c0_i32_0 = arith.constant 0 : i32
    return %arg0, %c0_i32 : i32, i32
  }
  func.func @transform_1(%arg0: i32) -> (i32, i32) {
    %c0_i32 = arith.constant 0 : i32
    %c0_i32_0 = arith.constant 0 : i32
    %c0_i32_1 = arith.constant 0 : i32
    return %c0_i32, %c0_i32_0 : i32, i32
  }
  func.func @transform_2(%arg0: i32) -> (i32, i32) {
    %c0_i32 = arith.constant 0 : i32
    %c0_i32_0 = arith.constant 0 : i32
    %c0_i32_1 = arith.constant 0 : i32
    return %c0_i32, %c0_i32_0 : i32, i32
  }
}

module attributes {stable_mosaic.version = 11 : i64} {
  func.func @_matmul_act_kernel(%arg0: i32, %arg1: i32, %arg2: i32, %arg3: memref<16x1024xbf16, #tpu.memory_space<vmem>>, %arg4: memref<1024x128xbf16, #tpu.memory_space<vmem>>, %arg5: memref<1x128xf32, #tpu.memory_space<vmem>>, %arg6: memref<16x128xf32, #tpu.memory_space<vmem>>, %arg7: memref<16x128xf32, #tpu.memory_space<vmem>>) attributes {dimension_semantics = [#tpu.dimension_semantics<parallel>, #tpu.dimension_semantics<parallel>, #tpu.dimension_semantics<arbitrary>], iteration_bounds = array<i64: 1, 1, 2>, scalar_prefetch = 0 : i64, scratch_operands = 1 : i64, tpu.core_type = #tpu.core_type<tc>, window_params = [{transform_indices = @transform_0, window_bounds = array<i64: 16, 1024>}, {transform_indices = @transform_1, window_bounds = array<i64: 1024, 128>}, {transform_indices = @transform_2, window_bounds = array<i64: 1, 128>}, {transform_indices = @transform_3, window_bounds = array<i64: 16, 128>}]} {
    %c0_i32 = arith.constant 0 : i32
    %0 = arith.cmpi eq, %arg2, %c0_i32 : i32
    %1 = arith.extui %0 : i1 to i32
    %c0_i32_0 = arith.constant 0 : i32
    %2 = arith.cmpi ne, %1, %c0_i32_0 : i32
    scf.if %2 {
      %cst_11 = arith.constant 0.000000e+00 : f32
      %19 = vector.broadcast %cst_11 : f32 to vector<16x128xf32>
      %c0_12 = arith.constant 0 : index
      %c0_13 = arith.constant 0 : index
      %20 = vector.load %arg7[%c0_12, %c0_13] : memref<16x128xf32, #tpu.memory_space<vmem>>, vector<16x128xf32>
      tpu.vector_store %arg7[%c0_12, %c0_13], %19 {strides = array<i32>} : memref<16x128xf32, #tpu.memory_space<vmem>>, vector<16x128xf32>,
    } else {
    }
    %c0 = arith.constant 0 : index
    %c0_1 = arith.constant 0 : index
    %3 = vector.load %arg3[%c0, %c0_1] : memref<16x1024xbf16, #tpu.memory_space<vmem>>, vector<16x1024xbf16>
    %4 = arith.extf %3 : vector<16x1024xbf16> to vector<16x1024xf32>
    %cst = arith.constant 0.000000e+00 : f32
    %5 = vector.broadcast %cst : f32 to vector<16x1024xf32>
    %6 = arith.cmpf oge, %4, %5 : vector<16x1024xf32>
    %cst_2 = arith.constant 2.000000e-01 : f32
    %7 = vector.broadcast %cst_2 : f32 to vector<16x1024xf32>
    %8 = arith.mulf %7, %4 : vector<16x1024xf32>
    %9 = arith.select %6, %4, %8 : vector<16x1024xi1>, vector<16x1024xf32>
    %10 = arith.truncf %9 : vector<16x1024xf32> to vector<16x1024xbf16>
    %c0_3 = arith.constant 0 : index
    %c0_4 = arith.constant 0 : index
    %11 = vector.load %arg7[%c0_3, %c0_4] : memref<16x128xf32, #tpu.memory_space<vmem>>, vector<16x128xf32>
    %c0_5 = arith.constant 0 : index
    %c0_6 = arith.constant 0 : index
    %12 = vector.load %arg4[%c0_5, %c0_6] : memref<1024x128xbf16, #tpu.memory_space<vmem>>, vector<1024x128xbf16>
    %cst_7 = arith.constant dense<0.000000e+00> : vector<16x128xf32>
    %13 = tpu.matmul %10, %12, %cst_7 {dimension_numbers = #tpu.dot_dimension_numbers<[1], [0], [0], [1], [0, 0, 1, 1], [], []>} : vector<16x1024xbf16>, vector<1024x128xbf16>, vector<16x128xf32> -> vector<16x128xf32>
    %14 = arith.addf %11, %13 : vector<16x128xf32>
    %c0_8 = arith.constant 0 : index
    %c0_9 = arith.constant 0 : index
    %15 = vector.load %arg7[%c0_8, %c0_9] : memref<16x128xf32, #tpu.memory_space<vmem>>, vector<16x128xf32>
    tpu.vector_store %arg7[%c0_8, %c0_9], %14 {strides = array<i32>} : memref<16x128xf32, #tpu.memory_space<vmem>>, vector<16x128xf32>,
    %c1_i32 = arith.constant 1 : i32
    %16 = arith.cmpi eq, %arg2, %c1_i32 : i32
    %17 = arith.extui %16 : i1 to i32
    %c0_i32_10 = arith.constant 0 : i32
    %18 = arith.cmpi ne, %17, %c0_i32_10 : i32
    scf.if %18 {
      %c0_11 = arith.constant 0 : index
      %c0_12 = arith.constant 0 : index
      %19 = vector.load %arg7[%c0_11, %c0_12] : memref<16x128xf32, #tpu.memory_space<vmem>>, vector<16x128xf32>
      %c0_13 = arith.constant 0 : index
      %c0_14 = arith.constant 0 : index
      %20 = vector.load %arg5[%c0_13, %c0_14] : memref<1x128xf32, #tpu.memory_space<vmem>>, vector<1x128xf32>
      %21 = vector.broadcast %20 : vector<1x128xf32> to vector<16x128xf32>
      %22 = arith.addf %19, %21 : vector<16x128xf32>
      %c0_15 = arith.constant 0 : index
      %c0_16 = arith.constant 0 : index
      %23 = vector.load %arg6[%c0_15, %c0_16] : memref<16x128xf32, #tpu.memory_space<vmem>>, vector<16x128xf32>
      tpu.vector_store %arg6[%c0_15, %c0_16], %22 {strides = array<i32>} : memref<16x128xf32, #tpu.memory_space<vmem>>, vector<16x128xf32>,
    } else {
    }
    return
  }
  func.func @transform_0(%arg0: i32, %arg1: i32, %arg2: i32) -> (i32, i32) {
    %c0_i32 = arith.constant 0 : i32
    return %arg0, %arg2 : i32, i32
  }
  func.func @transform_1(%arg0: i32, %arg1: i32, %arg2: i32) -> (i32, i32) {
    %c0_i32 = arith.constant 0 : i32
    return %arg2, %arg1 : i32, i32
  }
  func.func @transform_2(%arg0: i32, %arg1: i32, %arg2: i32) -> (i32, i32) {
    %c0_i32 = arith.constant 0 : i32
    %c0_i32_0 = arith.constant 0 : i32
    return %c0_i32, %arg1 : i32, i32
  }
  func.func @transform_3(%arg0: i32, %arg1: i32, %arg2: i32) -> (i32, i32) {
    %c0_i32 = arith.constant 0 : i32
    return %arg0, %arg1 : i32, i32
  }
}

module attributes {stable_mosaic.version = 11 : i64} {
  func.func @_matmul_act_kernel(%arg0: i32, %arg1: i32, %arg2: i32, %arg3: memref<16x640xbf16, #tpu.memory_space<vmem>>, %arg4: memref<640x128xbf16, #tpu.memory_space<vmem>>, %arg5: memref<1x128xf32, #tpu.memory_space<vmem>>, %arg6: memref<16x128xf32, #tpu.memory_space<vmem>>, %arg7: memref<16x128xf32, #tpu.memory_space<vmem>>) attributes {dimension_semantics = [#tpu.dimension_semantics<parallel>, #tpu.dimension_semantics<parallel>, #tpu.dimension_semantics<arbitrary>], iteration_bounds = array<i64: 1, 1, 1>, scalar_prefetch = 0 : i64, scratch_operands = 1 : i64, tpu.core_type = #tpu.core_type<tc>, window_params = [{transform_indices = @transform_0, window_bounds = array<i64: 16, 640>}, {transform_indices = @transform_1, window_bounds = array<i64: 640, 128>}, {transform_indices = @transform_2, window_bounds = array<i64: 1, 128>}, {transform_indices = @transform_3, window_bounds = array<i64: 16, 128>}]} {
    %c0_i32 = arith.constant 0 : i32
    %0 = arith.cmpi eq, %arg2, %c0_i32 : i32
    %1 = arith.extui %0 : i1 to i32
    %c0_i32_0 = arith.constant 0 : i32
    %2 = arith.cmpi ne, %1, %c0_i32_0 : i32
    scf.if %2 {
      %cst_11 = arith.constant 0.000000e+00 : f32
      %14 = vector.broadcast %cst_11 : f32 to vector<16x128xf32>
      %c0_12 = arith.constant 0 : index
      %c0_13 = arith.constant 0 : index
      %15 = vector.load %arg7[%c0_12, %c0_13] : memref<16x128xf32, #tpu.memory_space<vmem>>, vector<16x128xf32>
      tpu.vector_store %arg7[%c0_12, %c0_13], %14 {strides = array<i32>} : memref<16x128xf32, #tpu.memory_space<vmem>>, vector<16x128xf32>,
    } else {
    }
    %c0 = arith.constant 0 : index
    %c0_1 = arith.constant 0 : index
    %3 = vector.load %arg3[%c0, %c0_1] : memref<16x640xbf16, #tpu.memory_space<vmem>>, vector<16x640xbf16>
    %cst = arith.constant 0.000000e+00 : bf16
    %4 = vector.broadcast %cst : bf16 to vector<16x640xbf16>
    %5 = arith.maximumf %3, %4 : vector<16x640xbf16>
    %c0_2 = arith.constant 0 : index
    %c0_3 = arith.constant 0 : index
    %6 = vector.load %arg7[%c0_2, %c0_3] : memref<16x128xf32, #tpu.memory_space<vmem>>, vector<16x128xf32>
    %c0_4 = arith.constant 0 : index
    %c0_5 = arith.constant 0 : index
    %7 = vector.load %arg4[%c0_4, %c0_5] : memref<640x128xbf16, #tpu.memory_space<vmem>>, vector<640x128xbf16>
    %cst_6 = arith.constant dense<0.000000e+00> : vector<16x128xf32>
    %8 = tpu.matmul %5, %7, %cst_6 {dimension_numbers = #tpu.dot_dimension_numbers<[1], [0], [0], [1], [0, 0, 1, 1], [], []>} : vector<16x640xbf16>, vector<640x128xbf16>, vector<16x128xf32> -> vector<16x128xf32>
    %9 = arith.addf %6, %8 : vector<16x128xf32>
    %c0_7 = arith.constant 0 : index
    %c0_8 = arith.constant 0 : index
    %10 = vector.load %arg7[%c0_7, %c0_8] : memref<16x128xf32, #tpu.memory_space<vmem>>, vector<16x128xf32>
    tpu.vector_store %arg7[%c0_7, %c0_8], %9 {strides = array<i32>} : memref<16x128xf32, #tpu.memory_space<vmem>>, vector<16x128xf32>,
    %c0_i32_9 = arith.constant 0 : i32
    %11 = arith.cmpi eq, %arg2, %c0_i32_9 : i32
    %12 = arith.extui %11 : i1 to i32
    %c0_i32_10 = arith.constant 0 : i32
    %13 = arith.cmpi ne, %12, %c0_i32_10 : i32
    scf.if %13 {
      %c0_11 = arith.constant 0 : index
      %c0_12 = arith.constant 0 : index
      %14 = vector.load %arg7[%c0_11, %c0_12] : memref<16x128xf32, #tpu.memory_space<vmem>>, vector<16x128xf32>
      %c0_13 = arith.constant 0 : index
      %c0_14 = arith.constant 0 : index
      %15 = vector.load %arg5[%c0_13, %c0_14] : memref<1x128xf32, #tpu.memory_space<vmem>>, vector<1x128xf32>
      %16 = vector.broadcast %15 : vector<1x128xf32> to vector<16x128xf32>
      %17 = arith.addf %14, %16 : vector<16x128xf32>
      %c0_15 = arith.constant 0 : index
      %c0_16 = arith.constant 0 : index
      %18 = vector.load %arg6[%c0_15, %c0_16] : memref<16x128xf32, #tpu.memory_space<vmem>>, vector<16x128xf32>
      tpu.vector_store %arg6[%c0_15, %c0_16], %17 {strides = array<i32>} : memref<16x128xf32, #tpu.memory_space<vmem>>, vector<16x128xf32>,
    } else {
    }
    return
  }
  func.func @transform_0(%arg0: i32, %arg1: i32, %arg2: i32) -> (i32, i32) {
    %c0_i32 = arith.constant 0 : i32
    return %arg0, %arg2 : i32, i32
  }
  func.func @transform_1(%arg0: i32, %arg1: i32, %arg2: i32) -> (i32, i32) {
    %c0_i32 = arith.constant 0 : i32
    return %arg2, %arg1 : i32, i32
  }
  func.func @transform_2(%arg0: i32, %arg1: i32, %arg2: i32) -> (i32, i32) {
    %c0_i32 = arith.constant 0 : i32
    %c0_i32_0 = arith.constant 0 : i32
    return %c0_i32, %arg1 : i32, i32
  }
  func.func @transform_3(%arg0: i32, %arg1: i32, %arg2: i32) -> (i32, i32) {
    %c0_i32 = arith.constant 0 : i32
    return %arg0, %arg1 : i32, i32
  }
}

module attributes {stable_mosaic.version = 11 : i64} {
  func.func @_matmul_act_kernel(%arg0: i32, %arg1: i32, %arg2: i32, %arg3: memref<16x1024xbf16, #tpu.memory_space<vmem>>, %arg4: memref<1024x128xbf16, #tpu.memory_space<vmem>>, %arg5: memref<1x128xf32, #tpu.memory_space<vmem>>, %arg6: memref<16x128xf32, #tpu.memory_space<vmem>>, %arg7: memref<16x128xf32, #tpu.memory_space<vmem>>) attributes {dimension_semantics = [#tpu.dimension_semantics<parallel>, #tpu.dimension_semantics<parallel>, #tpu.dimension_semantics<arbitrary>], iteration_bounds = array<i64: 1, 1, 1>, scalar_prefetch = 0 : i64, scratch_operands = 1 : i64, tpu.core_type = #tpu.core_type<tc>, window_params = [{transform_indices = @transform_0, window_bounds = array<i64: 16, 1024>}, {transform_indices = @transform_1, window_bounds = array<i64: 1024, 128>}, {transform_indices = @transform_2, window_bounds = array<i64: 1, 128>}, {transform_indices = @transform_3, window_bounds = array<i64: 16, 128>}]} {
    %c0_i32 = arith.constant 0 : i32
    %0 = arith.cmpi eq, %arg2, %c0_i32 : i32
    %1 = arith.extui %0 : i1 to i32
    %c0_i32_0 = arith.constant 0 : i32
    %2 = arith.cmpi ne, %1, %c0_i32_0 : i32
    scf.if %2 {
      %cst_11 = arith.constant 0.000000e+00 : f32
      %14 = vector.broadcast %cst_11 : f32 to vector<16x128xf32>
      %c0_12 = arith.constant 0 : index
      %c0_13 = arith.constant 0 : index
      %15 = vector.load %arg7[%c0_12, %c0_13] : memref<16x128xf32, #tpu.memory_space<vmem>>, vector<16x128xf32>
      tpu.vector_store %arg7[%c0_12, %c0_13], %14 {strides = array<i32>} : memref<16x128xf32, #tpu.memory_space<vmem>>, vector<16x128xf32>,
    } else {
    }
    %c0 = arith.constant 0 : index
    %c0_1 = arith.constant 0 : index
    %3 = vector.load %arg3[%c0, %c0_1] : memref<16x1024xbf16, #tpu.memory_space<vmem>>, vector<16x1024xbf16>
    %cst = arith.constant 0.000000e+00 : bf16
    %4 = vector.broadcast %cst : bf16 to vector<16x1024xbf16>
    %5 = arith.maximumf %3, %4 : vector<16x1024xbf16>
    %c0_2 = arith.constant 0 : index
    %c0_3 = arith.constant 0 : index
    %6 = vector.load %arg7[%c0_2, %c0_3] : memref<16x128xf32, #tpu.memory_space<vmem>>, vector<16x128xf32>
    %c0_4 = arith.constant 0 : index
    %c0_5 = arith.constant 0 : index
    %7 = vector.load %arg4[%c0_4, %c0_5] : memref<1024x128xbf16, #tpu.memory_space<vmem>>, vector<1024x128xbf16>
    %cst_6 = arith.constant dense<0.000000e+00> : vector<16x128xf32>
    %8 = tpu.matmul %5, %7, %cst_6 {dimension_numbers = #tpu.dot_dimension_numbers<[1], [0], [0], [1], [0, 0, 1, 1], [], []>} : vector<16x1024xbf16>, vector<1024x128xbf16>, vector<16x128xf32> -> vector<16x128xf32>
    %9 = arith.addf %6, %8 : vector<16x128xf32>
    %c0_7 = arith.constant 0 : index
    %c0_8 = arith.constant 0 : index
    %10 = vector.load %arg7[%c0_7, %c0_8] : memref<16x128xf32, #tpu.memory_space<vmem>>, vector<16x128xf32>
    tpu.vector_store %arg7[%c0_7, %c0_8], %9 {strides = array<i32>} : memref<16x128xf32, #tpu.memory_space<vmem>>, vector<16x128xf32>,
    %c0_i32_9 = arith.constant 0 : i32
    %11 = arith.cmpi eq, %arg2, %c0_i32_9 : i32
    %12 = arith.extui %11 : i1 to i32
    %c0_i32_10 = arith.constant 0 : i32
    %13 = arith.cmpi ne, %12, %c0_i32_10 : i32
    scf.if %13 {
      %c0_11 = arith.constant 0 : index
      %c0_12 = arith.constant 0 : index
      %14 = vector.load %arg7[%c0_11, %c0_12] : memref<16x128xf32, #tpu.memory_space<vmem>>, vector<16x128xf32>
      %c0_13 = arith.constant 0 : index
      %c0_14 = arith.constant 0 : index
      %15 = vector.load %arg5[%c0_13, %c0_14] : memref<1x128xf32, #tpu.memory_space<vmem>>, vector<1x128xf32>
      %16 = vector.broadcast %15 : vector<1x128xf32> to vector<16x128xf32>
      %17 = arith.addf %14, %16 : vector<16x128xf32>
      %c0_15 = arith.constant 0 : index
      %c0_16 = arith.constant 0 : index
      %18 = vector.load %arg6[%c0_15, %c0_16] : memref<16x128xf32, #tpu.memory_space<vmem>>, vector<16x128xf32>
      tpu.vector_store %arg6[%c0_15, %c0_16], %17 {strides = array<i32>} : memref<16x128xf32, #tpu.memory_space<vmem>>, vector<16x128xf32>,
    } else {
    }
    return
  }
  func.func @transform_0(%arg0: i32, %arg1: i32, %arg2: i32) -> (i32, i32) {
    %c0_i32 = arith.constant 0 : i32
    return %arg0, %arg2 : i32, i32
  }
  func.func @transform_1(%arg0: i32, %arg1: i32, %arg2: i32) -> (i32, i32) {
    %c0_i32 = arith.constant 0 : i32
    return %arg2, %arg1 : i32, i32
  }
  func.func @transform_2(%arg0: i32, %arg1: i32, %arg2: i32) -> (i32, i32) {
    %c0_i32 = arith.constant 0 : i32
    %c0_i32_0 = arith.constant 0 : i32
    return %c0_i32, %arg1 : i32, i32
  }
  func.func @transform_3(%arg0: i32, %arg1: i32, %arg2: i32) -> (i32, i32) {
    %c0_i32 = arith.constant 0 : i32
    return %arg0, %arg1 : i32, i32
  }
}

module attributes {stable_mosaic.version = 11 : i64} {
  func.func @_matmul_act_kernel(%arg0: i32, %arg1: i32, %arg2: i32, %arg3: memref<32x512xbf16, #tpu.memory_space<vmem>>, %arg4: memref<512x128xbf16, #tpu.memory_space<vmem>>, %arg5: memref<1x128xf32, #tpu.memory_space<vmem>>, %arg6: memref<32x128xf32, #tpu.memory_space<vmem>>, %arg7: memref<32x128xf32, #tpu.memory_space<vmem>>) attributes {dimension_semantics = [#tpu.dimension_semantics<parallel>, #tpu.dimension_semantics<parallel>, #tpu.dimension_semantics<arbitrary>], iteration_bounds = array<i64: 1, 1, 1>, scalar_prefetch = 0 : i64, scratch_operands = 1 : i64, tpu.core_type = #tpu.core_type<tc>, window_params = [{transform_indices = @transform_0, window_bounds = array<i64: 32, 512>}, {transform_indices = @transform_1, window_bounds = array<i64: 512, 128>}, {transform_indices = @transform_2, window_bounds = array<i64: 1, 128>}, {transform_indices = @transform_3, window_bounds = array<i64: 32, 128>}]} {
    %c0_i32 = arith.constant 0 : i32
    %0 = arith.cmpi eq, %arg2, %c0_i32 : i32
    %1 = arith.extui %0 : i1 to i32
    %c0_i32_0 = arith.constant 0 : i32
    %2 = arith.cmpi ne, %1, %c0_i32_0 : i32
    scf.if %2 {
      %cst_11 = arith.constant 0.000000e+00 : f32
      %14 = vector.broadcast %cst_11 : f32 to vector<32x128xf32>
      %c0_12 = arith.constant 0 : index
      %c0_13 = arith.constant 0 : index
      %15 = vector.load %arg7[%c0_12, %c0_13] : memref<32x128xf32, #tpu.memory_space<vmem>>, vector<32x128xf32>
      tpu.vector_store %arg7[%c0_12, %c0_13], %14 {strides = array<i32>} : memref<32x128xf32, #tpu.memory_space<vmem>>, vector<32x128xf32>,
    } else {
    }
    %c0 = arith.constant 0 : index
    %c0_1 = arith.constant 0 : index
    %3 = vector.load %arg3[%c0, %c0_1] : memref<32x512xbf16, #tpu.memory_space<vmem>>, vector<32x512xbf16>
    %cst = arith.constant 0.000000e+00 : bf16
    %4 = vector.broadcast %cst : bf16 to vector<32x512xbf16>
    %5 = arith.maximumf %3, %4 : vector<32x512xbf16>
    %c0_2 = arith.constant 0 : index
    %c0_3 = arith.constant 0 : index
    %6 = vector.load %arg7[%c0_2, %c0_3] : memref<32x128xf32, #tpu.memory_space<vmem>>, vector<32x128xf32>
    %c0_4 = arith.constant 0 : index
    %c0_5 = arith.constant 0 : index
    %7 = vector.load %arg4[%c0_4, %c0_5] : memref<512x128xbf16, #tpu.memory_space<vmem>>, vector<512x128xbf16>
    %cst_6 = arith.constant dense<0.000000e+00> : vector<32x128xf32>
    %8 = tpu.matmul %5, %7, %cst_6 {dimension_numbers = #tpu.dot_dimension_numbers<[1], [0], [0], [1], [0, 0, 1, 1], [], []>} : vector<32x512xbf16>, vector<512x128xbf16>, vector<32x128xf32> -> vector<32x128xf32>
    %9 = arith.addf %6, %8 : vector<32x128xf32>
    %c0_7 = arith.constant 0 : index
    %c0_8 = arith.constant 0 : index
    %10 = vector.load %arg7[%c0_7, %c0_8] : memref<32x128xf32, #tpu.memory_space<vmem>>, vector<32x128xf32>
    tpu.vector_store %arg7[%c0_7, %c0_8], %9 {strides = array<i32>} : memref<32x128xf32, #tpu.memory_space<vmem>>, vector<32x128xf32>,
    %c0_i32_9 = arith.constant 0 : i32
    %11 = arith.cmpi eq, %arg2, %c0_i32_9 : i32
    %12 = arith.extui %11 : i1 to i32
    %c0_i32_10 = arith.constant 0 : i32
    %13 = arith.cmpi ne, %12, %c0_i32_10 : i32
    scf.if %13 {
      %c0_11 = arith.constant 0 : index
      %c0_12 = arith.constant 0 : index
      %14 = vector.load %arg7[%c0_11, %c0_12] : memref<32x128xf32, #tpu.memory_space<vmem>>, vector<32x128xf32>
      %c0_13 = arith.constant 0 : index
      %c0_14 = arith.constant 0 : index
      %15 = vector.load %arg5[%c0_13, %c0_14] : memref<1x128xf32, #tpu.memory_space<vmem>>, vector<1x128xf32>
      %16 = vector.broadcast %15 : vector<1x128xf32> to vector<32x128xf32>
      %17 = arith.addf %14, %16 : vector<32x128xf32>
      %c0_15 = arith.constant 0 : index
      %c0_16 = arith.constant 0 : index
      %18 = vector.load %arg6[%c0_15, %c0_16] : memref<32x128xf32, #tpu.memory_space<vmem>>, vector<32x128xf32>
      tpu.vector_store %arg6[%c0_15, %c0_16], %17 {strides = array<i32>} : memref<32x128xf32, #tpu.memory_space<vmem>>, vector<32x128xf32>,
    } else {
    }
    return
  }
  func.func @transform_0(%arg0: i32, %arg1: i32, %arg2: i32) -> (i32, i32) {
    %c0_i32 = arith.constant 0 : i32
    return %arg0, %arg2 : i32, i32
  }
  func.func @transform_1(%arg0: i32, %arg1: i32, %arg2: i32) -> (i32, i32) {
    %c0_i32 = arith.constant 0 : i32
    return %arg2, %arg1 : i32, i32
  }
  func.func @transform_2(%arg0: i32, %arg1: i32, %arg2: i32) -> (i32, i32) {
    %c0_i32 = arith.constant 0 : i32
    %c0_i32_0 = arith.constant 0 : i32
    return %c0_i32, %arg1 : i32, i32
  }
  func.func @transform_3(%arg0: i32, %arg1: i32, %arg2: i32) -> (i32, i32) {
    %c0_i32 = arith.constant 0 : i32
    return %arg0, %arg1 : i32, i32
  }
}

module attributes {stable_mosaic.version = 11 : i64} {
  func.func @_matmul_act_kernel(%arg0: i32, %arg1: i32, %arg2: i32, %arg3: memref<128x256xbf16, #tpu.memory_space<vmem>>, %arg4: memref<256x128xbf16, #tpu.memory_space<vmem>>, %arg5: memref<1x128xf32, #tpu.memory_space<vmem>>, %arg6: memref<128x128xf32, #tpu.memory_space<vmem>>, %arg7: memref<128x128xf32, #tpu.memory_space<vmem>>) attributes {dimension_semantics = [#tpu.dimension_semantics<parallel>, #tpu.dimension_semantics<parallel>, #tpu.dimension_semantics<arbitrary>], iteration_bounds = array<i64: 1, 1, 1>, scalar_prefetch = 0 : i64, scratch_operands = 1 : i64, tpu.core_type = #tpu.core_type<tc>, window_params = [{transform_indices = @transform_0, window_bounds = array<i64: 128, 256>}, {transform_indices = @transform_1, window_bounds = array<i64: 256, 128>}, {transform_indices = @transform_2, window_bounds = array<i64: 1, 128>}, {transform_indices = @transform_3, window_bounds = array<i64: 128, 128>}]} {
    %c0_i32 = arith.constant 0 : i32
    %0 = arith.cmpi eq, %arg2, %c0_i32 : i32
    %1 = arith.extui %0 : i1 to i32
    %c0_i32_0 = arith.constant 0 : i32
    %2 = arith.cmpi ne, %1, %c0_i32_0 : i32
    scf.if %2 {
      %cst_11 = arith.constant 0.000000e+00 : f32
      %14 = vector.broadcast %cst_11 : f32 to vector<128x128xf32>
      %c0_12 = arith.constant 0 : index
      %c0_13 = arith.constant 0 : index
      %15 = vector.load %arg7[%c0_12, %c0_13] : memref<128x128xf32, #tpu.memory_space<vmem>>, vector<128x128xf32>
      tpu.vector_store %arg7[%c0_12, %c0_13], %14 {strides = array<i32>} : memref<128x128xf32, #tpu.memory_space<vmem>>, vector<128x128xf32>,
    } else {
    }
    %c0 = arith.constant 0 : index
    %c0_1 = arith.constant 0 : index
    %3 = vector.load %arg3[%c0, %c0_1] : memref<128x256xbf16, #tpu.memory_space<vmem>>, vector<128x256xbf16>
    %cst = arith.constant 0.000000e+00 : bf16
    %4 = vector.broadcast %cst : bf16 to vector<128x256xbf16>
    %5 = arith.maximumf %3, %4 : vector<128x256xbf16>
    %c0_2 = arith.constant 0 : index
    %c0_3 = arith.constant 0 : index
    %6 = vector.load %arg7[%c0_2, %c0_3] : memref<128x128xf32, #tpu.memory_space<vmem>>, vector<128x128xf32>
    %c0_4 = arith.constant 0 : index
    %c0_5 = arith.constant 0 : index
    %7 = vector.load %arg4[%c0_4, %c0_5] : memref<256x128xbf16, #tpu.memory_space<vmem>>, vector<256x128xbf16>
    %cst_6 = arith.constant dense<0.000000e+00> : vector<128x128xf32>
    %8 = tpu.matmul %5, %7, %cst_6 {dimension_numbers = #tpu.dot_dimension_numbers<[1], [0], [0], [1], [0, 0, 1, 1], [], []>} : vector<128x256xbf16>, vector<256x128xbf16>, vector<128x128xf32> -> vector<128x128xf32>
    %9 = arith.addf %6, %8 : vector<128x128xf32>
    %c0_7 = arith.constant 0 : index
    %c0_8 = arith.constant 0 : index
    %10 = vector.load %arg7[%c0_7, %c0_8] : memref<128x128xf32, #tpu.memory_space<vmem>>, vector<128x128xf32>
    tpu.vector_store %arg7[%c0_7, %c0_8], %9 {strides = array<i32>} : memref<128x128xf32, #tpu.memory_space<vmem>>, vector<128x128xf32>,
    %c0_i32_9 = arith.constant 0 : i32
    %11 = arith.cmpi eq, %arg2, %c0_i32_9 : i32
    %12 = arith.extui %11 : i1 to i32
    %c0_i32_10 = arith.constant 0 : i32
    %13 = arith.cmpi ne, %12, %c0_i32_10 : i32
    scf.if %13 {
      %c0_11 = arith.constant 0 : index
      %c0_12 = arith.constant 0 : index
      %14 = vector.load %arg7[%c0_11, %c0_12] : memref<128x128xf32, #tpu.memory_space<vmem>>, vector<128x128xf32>
      %c0_13 = arith.constant 0 : index
      %c0_14 = arith.constant 0 : index
      %15 = vector.load %arg5[%c0_13, %c0_14] : memref<1x128xf32, #tpu.memory_space<vmem>>, vector<1x128xf32>
      %16 = vector.broadcast %15 : vector<1x128xf32> to vector<128x128xf32>
      %17 = arith.addf %14, %16 : vector<128x128xf32>
      %c0_15 = arith.constant 0 : index
      %c0_16 = arith.constant 0 : index
      %18 = vector.load %arg6[%c0_15, %c0_16] : memref<128x128xf32, #tpu.memory_space<vmem>>, vector<128x128xf32>
      tpu.vector_store %arg6[%c0_15, %c0_16], %17 {strides = array<i32>} : memref<128x128xf32, #tpu.memory_space<vmem>>, vector<128x128xf32>,
    } else {
    }
    return
  }
  func.func @transform_0(%arg0: i32, %arg1: i32, %arg2: i32) -> (i32, i32) {
    %c0_i32 = arith.constant 0 : i32
    return %arg0, %arg2 : i32, i32
  }
  func.func @transform_1(%arg0: i32, %arg1: i32, %arg2: i32) -> (i32, i32) {
    %c0_i32 = arith.constant 0 : i32
    return %arg2, %arg1 : i32, i32
  }
  func.func @transform_2(%arg0: i32, %arg1: i32, %arg2: i32) -> (i32, i32) {
    %c0_i32 = arith.constant 0 : i32
    %c0_i32_0 = arith.constant 0 : i32
    return %c0_i32, %arg1 : i32, i32
  }
  func.func @transform_3(%arg0: i32, %arg1: i32, %arg2: i32) -> (i32, i32) {
    %c0_i32 = arith.constant 0 : i32
    return %arg0, %arg1 : i32, i32
  }
}

module attributes {stable_mosaic.version = 11 : i64} {
  func.func @_bn_stats_kernel(%arg0: i32, %arg1: memref<512x16xf32, #tpu.memory_space<vmem>>, %arg2: memref<1x16xf32, #tpu.memory_space<vmem>>, %arg3: memref<1x16xf32, #tpu.memory_space<vmem>>) attributes {dimension_semantics = [#tpu.dimension_semantics<arbitrary>], iteration_bounds = array<i64: 1>, scalar_prefetch = 0 : i64, scratch_operands = 0 : i64, tpu.core_type = #tpu.core_type<tc>, window_params = [{transform_indices = @transform_0, window_bounds = array<i64: 512, 16>}, {pipeline_mode = #tpu.pipeline_mode<synchronous>, transform_indices = @transform_1, window_bounds = array<i64: 1, 16>}, {pipeline_mode = #tpu.pipeline_mode<synchronous>, transform_indices = @transform_2, window_bounds = array<i64: 1, 16>}]} {
    %c0_i32 = arith.constant 0 : i32
    %0 = arith.cmpi eq, %arg0, %c0_i32 : i32
    %1 = arith.extui %0 : i1 to i32
    %c0_i32_0 = arith.constant 0 : i32
    %2 = arith.cmpi ne, %1, %c0_i32_0 : i32
    scf.if %2 {
      %cst_11 = arith.constant 0.000000e+00 : f32
      %15 = vector.broadcast %cst_11 : f32 to vector<1x16xf32>
      %c0_12 = arith.constant 0 : index
      %c0_13 = arith.constant 0 : index
      %16 = vector.load %arg2[%c0_12, %c0_13] : memref<1x16xf32, #tpu.memory_space<vmem>>, vector<1x16xf32>
      tpu.vector_store %arg2[%c0_12, %c0_13], %15 {strides = array<i32>} : memref<1x16xf32, #tpu.memory_space<vmem>>, vector<1x16xf32>,
      %cst_14 = arith.constant 0.000000e+00 : f32
      %17 = vector.broadcast %cst_14 : f32 to vector<1x16xf32>
      %c0_15 = arith.constant 0 : index
      %c0_16 = arith.constant 0 : index
      %18 = vector.load %arg3[%c0_15, %c0_16] : memref<1x16xf32, #tpu.memory_space<vmem>>, vector<1x16xf32>
      tpu.vector_store %arg3[%c0_15, %c0_16], %17 {strides = array<i32>} : memref<1x16xf32, #tpu.memory_space<vmem>>, vector<1x16xf32>,
    } else {
    }
    %c0 = arith.constant 0 : index
    %c0_1 = arith.constant 0 : index
    %3 = vector.load %arg1[%c0, %c0_1] : memref<512x16xf32, #tpu.memory_space<vmem>>, vector<512x16xf32>
    %c0_2 = arith.constant 0 : index
    %c0_3 = arith.constant 0 : index
    %4 = vector.load %arg2[%c0_2, %c0_3] : memref<1x16xf32, #tpu.memory_space<vmem>>, vector<1x16xf32>
    %cst = arith.constant dense<0.000000e+00> : vector<16xf32>
    %5 = vector.multi_reduction <add>, %3, %cst [0] : vector<512x16xf32> to vector<16xf32>
    %6 = vector.shape_cast %5 : vector<16xf32> to vector<1x16xf32>
    %7 = arith.addf %4, %6 : vector<1x16xf32>
    %c0_4 = arith.constant 0 : index
    %c0_5 = arith.constant 0 : index
    %8 = vector.load %arg2[%c0_4, %c0_5] : memref<1x16xf32, #tpu.memory_space<vmem>>, vector<1x16xf32>
    tpu.vector_store %arg2[%c0_4, %c0_5], %7 {strides = array<i32>} : memref<1x16xf32, #tpu.memory_space<vmem>>, vector<1x16xf32>,
    %c0_6 = arith.constant 0 : index
    %c0_7 = arith.constant 0 : index
    %9 = vector.load %arg3[%c0_6, %c0_7] : memref<1x16xf32, #tpu.memory_space<vmem>>, vector<1x16xf32>
    %10 = arith.mulf %3, %3 : vector<512x16xf32>
    %cst_8 = arith.constant dense<0.000000e+00> : vector<16xf32>
    %11 = vector.multi_reduction <add>, %10, %cst_8 [0] : vector<512x16xf32> to vector<16xf32>
    %12 = vector.shape_cast %11 : vector<16xf32> to vector<1x16xf32>
    %13 = arith.addf %9, %12 : vector<1x16xf32>
    %c0_9 = arith.constant 0 : index
    %c0_10 = arith.constant 0 : index
    %14 = vector.load %arg3[%c0_9, %c0_10] : memref<1x16xf32, #tpu.memory_space<vmem>>, vector<1x16xf32>
    tpu.vector_store %arg3[%c0_9, %c0_10], %13 {strides = array<i32>} : memref<1x16xf32, #tpu.memory_space<vmem>>, vector<1x16xf32>,
    return
  }
  func.func @transform_0(%arg0: i32) -> (i32, i32) {
    %c0_i32 = arith.constant 0 : i32
    %c0_i32_0 = arith.constant 0 : i32
    return %arg0, %c0_i32 : i32, i32
  }
  func.func @transform_1(%arg0: i32) -> (i32, i32) {
    %c0_i32 = arith.constant 0 : i32
    %c0_i32_0 = arith.constant 0 : i32
    %c0_i32_1 = arith.constant 0 : i32
    return %c0_i32, %c0_i32_0 : i32, i32
  }
  func.func @transform_2(%arg0: i32) -> (i32, i32) {
    %c0_i32 = arith.constant 0 : i32
    %c0_i32_0 = arith.constant 0 : i32
    %c0_i32_1 = arith.constant 0 : i32
    return %c0_i32, %c0_i32_0 : i32, i32
  }
}

module attributes {stable_mosaic.version = 11 : i64} {
  func.func @_bn_apply_kernel(%arg0: i32, %arg1: memref<512x16xf32, #tpu.memory_space<vmem>>, %arg2: memref<1x16xf32, #tpu.memory_space<vmem>>, %arg3: memref<1x16xf32, #tpu.memory_space<vmem>>, %arg4: memref<512x16xf32, #tpu.memory_space<vmem>>) attributes {dimension_semantics = [#tpu.dimension_semantics<parallel>], iteration_bounds = array<i64: 1>, scalar_prefetch = 0 : i64, scratch_operands = 0 : i64, tpu.core_type = #tpu.core_type<tc>, window_params = [{transform_indices = @transform_0, window_bounds = array<i64: 512, 16>}, {pipeline_mode = #tpu.pipeline_mode<synchronous>, transform_indices = @transform_1, window_bounds = array<i64: 1, 16>}, {pipeline_mode = #tpu.pipeline_mode<synchronous>, transform_indices = @transform_2, window_bounds = array<i64: 1, 16>}, {transform_indices = @transform_3, window_bounds = array<i64: 512, 16>}]} {
    %c0 = arith.constant 0 : index
    %c0_0 = arith.constant 0 : index
    %0 = vector.load %arg1[%c0, %c0_0] : memref<512x16xf32, #tpu.memory_space<vmem>>, vector<512x16xf32>
    %c0_1 = arith.constant 0 : index
    %c0_2 = arith.constant 0 : index
    %1 = vector.load %arg2[%c0_1, %c0_2] : memref<1x16xf32, #tpu.memory_space<vmem>>, vector<1x16xf32>
    %cst = arith.constant 0.001953125 : f32
    %2 = vector.broadcast %cst : f32 to vector<1x16xf32>
    %3 = arith.mulf %1, %2 : vector<1x16xf32>
    %c0_3 = arith.constant 0 : index
    %c0_4 = arith.constant 0 : index
    %4 = vector.load %arg3[%c0_3, %c0_4] : memref<1x16xf32, #tpu.memory_space<vmem>>, vector<1x16xf32>
    %cst_5 = arith.constant 0.001953125 : f32
    %5 = vector.broadcast %cst_5 : f32 to vector<1x16xf32>
    %6 = arith.mulf %4, %5 : vector<1x16xf32>
    %7 = arith.mulf %3, %3 : vector<1x16xf32>
    %8 = arith.subf %6, %7 : vector<1x16xf32>
    %9 = vector.broadcast %3 : vector<1x16xf32> to vector<512x16xf32>
    %10 = arith.subf %0, %9 : vector<512x16xf32>
    %cst_6 = arith.constant 9.99999974E-6 : f32
    %11 = vector.broadcast %cst_6 : f32 to vector<1x16xf32>
    %12 = arith.addf %8, %11 : vector<1x16xf32>
    %13 = math.rsqrt %12 : vector<1x16xf32>
    %14 = vector.broadcast %13 : vector<1x16xf32> to vector<512x16xf32>
    %15 = arith.mulf %10, %14 : vector<512x16xf32>
    %c0_7 = arith.constant 0 : index
    %c0_8 = arith.constant 0 : index
    %16 = vector.load %arg4[%c0_7, %c0_8] : memref<512x16xf32, #tpu.memory_space<vmem>>, vector<512x16xf32>
    tpu.vector_store %arg4[%c0_7, %c0_8], %15 {strides = array<i32>} : memref<512x16xf32, #tpu.memory_space<vmem>>, vector<512x16xf32>,
    return
  }
  func.func @transform_0(%arg0: i32) -> (i32, i32) {
    %c0_i32 = arith.constant 0 : i32
    %c0_i32_0 = arith.constant 0 : i32
    return %arg0, %c0_i32 : i32, i32
  }
  func.func @transform_1(%arg0: i32) -> (i32, i32) {
    %c0_i32 = arith.constant 0 : i32
    %c0_i32_0 = arith.constant 0 : i32
    %c0_i32_1 = arith.constant 0 : i32
    return %c0_i32, %c0_i32_0 : i32, i32
  }
  func.func @transform_2(%arg0: i32) -> (i32, i32) {
    %c0_i32 = arith.constant 0 : i32
    %c0_i32_0 = arith.constant 0 : i32
    %c0_i32_1 = arith.constant 0 : i32
    return %c0_i32, %c0_i32_0 : i32, i32
  }
  func.func @transform_3(%arg0: i32) -> (i32, i32) {
    %c0_i32 = arith.constant 0 : i32
    %c0_i32_0 = arith.constant 0 : i32
    return %arg0, %c0_i32 : i32, i32
  }
}

module attributes {stable_mosaic.version = 11 : i64} {
  func.func @_matmul_act_kernel(%arg0: i32, %arg1: i32, %arg2: i32, %arg3: memref<512x128xbf16, #tpu.memory_space<vmem>>, %arg4: memref<128x128xbf16, #tpu.memory_space<vmem>>, %arg5: memref<1x128xf32, #tpu.memory_space<vmem>>, %arg6: memref<512x128xf32, #tpu.memory_space<vmem>>, %arg7: memref<512x128xf32, #tpu.memory_space<vmem>>) attributes {dimension_semantics = [#tpu.dimension_semantics<parallel>, #tpu.dimension_semantics<parallel>, #tpu.dimension_semantics<arbitrary>], iteration_bounds = array<i64: 1, 1, 1>, scalar_prefetch = 0 : i64, scratch_operands = 1 : i64, tpu.core_type = #tpu.core_type<tc>, window_params = [{transform_indices = @transform_0, window_bounds = array<i64: 512, 128>}, {transform_indices = @transform_1, window_bounds = array<i64: 128, 128>}, {transform_indices = @transform_2, window_bounds = array<i64: 1, 128>}, {transform_indices = @transform_3, window_bounds = array<i64: 512, 128>}]} {
    %c0_i32 = arith.constant 0 : i32
    %0 = arith.cmpi eq, %arg2, %c0_i32 : i32
    %1 = arith.extui %0 : i1 to i32
    %c0_i32_0 = arith.constant 0 : i32
    %2 = arith.cmpi ne, %1, %c0_i32_0 : i32
    scf.if %2 {
      %cst_11 = arith.constant 0.000000e+00 : f32
      %14 = vector.broadcast %cst_11 : f32 to vector<512x128xf32>
      %c0_12 = arith.constant 0 : index
      %c0_13 = arith.constant 0 : index
      %15 = vector.load %arg7[%c0_12, %c0_13] : memref<512x128xf32, #tpu.memory_space<vmem>>, vector<512x128xf32>
      tpu.vector_store %arg7[%c0_12, %c0_13], %14 {strides = array<i32>} : memref<512x128xf32, #tpu.memory_space<vmem>>, vector<512x128xf32>,
    } else {
    }
    %c0 = arith.constant 0 : index
    %c0_1 = arith.constant 0 : index
    %3 = vector.load %arg3[%c0, %c0_1] : memref<512x128xbf16, #tpu.memory_space<vmem>>, vector<512x128xbf16>
    %cst = arith.constant 0.000000e+00 : bf16
    %4 = vector.broadcast %cst : bf16 to vector<512x128xbf16>
    %5 = arith.maximumf %3, %4 : vector<512x128xbf16>
    %c0_2 = arith.constant 0 : index
    %c0_3 = arith.constant 0 : index
    %6 = vector.load %arg7[%c0_2, %c0_3] : memref<512x128xf32, #tpu.memory_space<vmem>>, vector<512x128xf32>
    %c0_4 = arith.constant 0 : index
    %c0_5 = arith.constant 0 : index
    %7 = vector.load %arg4[%c0_4, %c0_5] : memref<128x128xbf16, #tpu.memory_space<vmem>>, vector<128x128xbf16>
    %cst_6 = arith.constant dense<0.000000e+00> : vector<512x128xf32>
    %8 = tpu.matmul %5, %7, %cst_6 {dimension_numbers = #tpu.dot_dimension_numbers<[1], [0], [0], [1], [0, 0, 1, 1], [], []>} : vector<512x128xbf16>, vector<128x128xbf16>, vector<512x128xf32> -> vector<512x128xf32>
    %9 = arith.addf %6, %8 : vector<512x128xf32>
    %c0_7 = arith.constant 0 : index
    %c0_8 = arith.constant 0 : index
    %10 = vector.load %arg7[%c0_7, %c0_8] : memref<512x128xf32, #tpu.memory_space<vmem>>, vector<512x128xf32>
    tpu.vector_store %arg7[%c0_7, %c0_8], %9 {strides = array<i32>} : memref<512x128xf32, #tpu.memory_space<vmem>>, vector<512x128xf32>,
    %c0_i32_9 = arith.constant 0 : i32
    %11 = arith.cmpi eq, %arg2, %c0_i32_9 : i32
    %12 = arith.extui %11 : i1 to i32
    %c0_i32_10 = arith.constant 0 : i32
    %13 = arith.cmpi ne, %12, %c0_i32_10 : i32
    scf.if %13 {
      %c0_11 = arith.constant 0 : index
      %c0_12 = arith.constant 0 : index
      %14 = vector.load %arg7[%c0_11, %c0_12] : memref<512x128xf32, #tpu.memory_space<vmem>>, vector<512x128xf32>
      %c0_13 = arith.constant 0 : index
      %c0_14 = arith.constant 0 : index
      %15 = vector.load %arg5[%c0_13, %c0_14] : memref<1x128xf32, #tpu.memory_space<vmem>>, vector<1x128xf32>
      %16 = vector.broadcast %15 : vector<1x128xf32> to vector<512x128xf32>
      %17 = arith.addf %14, %16 : vector<512x128xf32>
      %18 = math.tanh %17 : vector<512x128xf32>
      %c0_15 = arith.constant 0 : index
      %c0_16 = arith.constant 0 : index
      %19 = vector.load %arg6[%c0_15, %c0_16] : memref<512x128xf32, #tpu.memory_space<vmem>>, vector<512x128xf32>
      tpu.vector_store %arg6[%c0_15, %c0_16], %18 {strides = array<i32>} : memref<512x128xf32, #tpu.memory_space<vmem>>, vector<512x128xf32>,
    } else {
    }
    return
  }
  func.func @transform_0(%arg0: i32, %arg1: i32, %arg2: i32) -> (i32, i32) {
    %c0_i32 = arith.constant 0 : i32
    return %arg0, %arg2 : i32, i32
  }
  func.func @transform_1(%arg0: i32, %arg1: i32, %arg2: i32) -> (i32, i32) {
    %c0_i32 = arith.constant 0 : i32
    return %arg2, %arg1 : i32, i32
  }
  func.func @transform_2(%arg0: i32, %arg1: i32, %arg2: i32) -> (i32, i32) {
    %c0_i32 = arith.constant 0 : i32
    %c0_i32_0 = arith.constant 0 : i32
    return %c0_i32, %arg1 : i32, i32
  }
  func.func @transform_3(%arg0: i32, %arg1: i32, %arg2: i32) -> (i32, i32) {
    %c0_i32 = arith.constant 0 : i32
    return %arg0, %arg1 : i32, i32
  }
}

</mosaic_0001>

<bundles_post_ra>
// kernel: unet_forward.39
= control target key start
LH: loop header
LB: loop body
LE: loop exit
PB: predicated region body
PF: predicated region fallthrough
CT: control target
= control target key end

     0   :  { %s1592_s1 = inlined_call_operand.vmem [shape: bf16[128,128], index: 1, kind: input, shape index: {}]   ;;  %s1593_s2 = inlined_call_operand.vmem [shape: f32[1,128], index: 2, kind: input, shape index: {}]   ;;  %s1594_s0 = inlined_call_operand.vmem [shape: bf16[512,128], index: 0, kind: input, shape index: {}]   ;;  %s1595_s3 = inlined_call_operand.vmem [shape: f32[512,128], index: 3, kind: output, shape index: {}]  }
   0x1   :  { %v1165_v0 = vld [vmem:[%s1592_s1 + $0x38] sm:$0xff]  ;;  %v1164_v1 = vld [vmem:[%s1592_s1 + $0x30] sm:$0xff]  ;;  %v1163_v2 = vld [vmem:[%s1592_s1 + $0x28] sm:$0xff] }
   0x2   :  { %466 = vmatpush.bf16.msra.mxu0 %v1165_v0  ;;  %1166 = vmatpush.bf16.msra.mxu1 %v1165_v0  ;;  %v1162_v3 = vld [vmem:[%s1592_s1 + $0x20] sm:$0xff]  ;;  %v1161_v4 = vld [vmem:[%s1592_s1 + $0x18] sm:$0xff]  ;;  %v1160_v5 = vld [vmem:[%s1592_s1 + $0x10] sm:$0xff] }
   0x3   :  { %1167 = vmatpush.bf16.msra.mxu2 %v1165_v0  ;;  %1168 = vmatpush.bf16.msra.mxu3 %v1165_v0  ;;  %v1159_v6 = vld [vmem:[%s1592_s1 + $0x8] sm:$0xff]  ;;  %v1158_v7 = vld [vmem:[%s1592_s1] sm:$0xff]  ;;  %v1128_v16 = vld [vmem:[%s1594_s0 + $0x10] sm:$0xff] }
   0x4   :  { %v1126_v8 = vld [vmem:[%s1594_s0] sm:$0xff]  ;;  %v1127_v12 = vld [vmem:[%s1594_s0 + $0x8] sm:$0xff]  ;;  %v1136_v17 = vld [vmem:[%s1594_s0 + $0x50] sm:$0xff] }
   0x5   :  { %v1134_v9 = vld [vmem:[%s1594_s0 + $0x40] sm:$0xff]  ;;  %v1135_v13 = vld [vmem:[%s1594_s0 + $0x48] sm:$0xff]  ;;  %v1144_v18 = vld [vmem:[%s1594_s0 + $0x90] sm:$0xff] }
   0x6   :  { %467 = vmatpush.bf16.msra.mxu0 %v1164_v1  ;;  %1169 = vmatpush.bf16.msra.mxu1 %v1164_v1  ;;  %v1142_v10 = vld [vmem:[%s1594_s0 + $0x80] sm:$0xff]  ;;  %v1143_v14 = vld [vmem:[%s1594_s0 + $0x88] sm:$0xff]  ;;  %v1152_v19 = vld [vmem:[%s1594_s0 + $0xd0] sm:$0xff] }
   0x7   :  { %1170 = vmatpush.bf16.msra.mxu2 %v1164_v1  ;;  %1171 = vmatpush.bf16.msra.mxu3 %v1164_v1  ;;  %v1150_v11 = vld [vmem:[%s1594_s0 + $0xc0] sm:$0xff]  ;;  %v1151_v15 = vld [vmem:[%s1594_s0 + $0xc8] sm:$0xff]  ;;  %v1129_v20 = vld [vmem:[%s1594_s0 + $0x18] sm:$0xff] }
   0x8   :  { %v1137_v21 = vld [vmem:[%s1594_s0 + $0x58] sm:$0xff]  ;;  %v1130_v24 = vld [vmem:[%s1594_s0 + $0x20] sm:$0xff]  ;;  %v1131_v28 = vld [vmem:[%s1594_s0 + $0x28] sm:$0xff] }
   0x9   :  { %v1145_v22 = vld [vmem:[%s1594_s0 + $0x98] sm:$0xff]  ;;  %v1138_v25 = vld [vmem:[%s1594_s0 + $0x60] sm:$0xff]  ;;  %v1139_v29 = vld [vmem:[%s1594_s0 + $0x68] sm:$0xff] }
   0xa   :  { %468 = vmatpush.bf16.msra.mxu0 %v1163_v2  ;;  %1172 = vmatpush.bf16.msra.mxu1 %v1163_v2  ;;  %v1153_v23 = vld [vmem:[%s1594_s0 + $0xd8] sm:$0xff]  ;;  %v1146_v26 = vld [vmem:[%s1594_s0 + $0xa0] sm:$0xff]  ;;  %v1147_v30 = vld [vmem:[%s1594_s0 + $0xa8] sm:$0xff] }
   0xb   :  { %1173 = vmatpush.bf16.msra.mxu2 %v1163_v2  ;;  %1174 = vmatpush.bf16.msra.mxu3 %v1163_v2  ;;  %v1154_v27 = vld [vmem:[%s1594_s0 + $0xe0] sm:$0xff]  ;;  %v1155_v31 = vld [vmem:[%s1594_s0 + $0xe8] sm:$0xff]  ;;  %v1132_v32 = vld [vmem:[%s1594_s0 + $0x30] sm:$0xff] }
   0xc   :  { %v1140_v33 = vld [vmem:[%s1594_s0 + $0x70] sm:$0xff]  ;;  %v1133_v36 = vld [vmem:[%s1594_s0 + $0x38] sm:$0xff]  ;;  %v1334_v40 = vld [vmem:[%s1593_s2] ss:$0 sm:$0xff] }
   0xd   :  { %v1148_v34 = vld [vmem:[%s1594_s0 + $0xb0] sm:$0xff]  ;;  %v1141_v37 = vld [vmem:[%s1594_s0 + $0x78] sm:$0xff] }
   0xe   :  { %469 = vmatpush.bf16.msra.mxu0 %v1162_v3  ;;  %1175 = vmatpush.bf16.msra.mxu1 %v1162_v3  ;;  %v1156_v35 = vld [vmem:[%s1594_s0 + $0xf0] sm:$0xff]  ;;  %v1149_v38 = vld [vmem:[%s1594_s0 + $0xb8] sm:$0xff] }
   0xf   :  { %1176 = vmatpush.bf16.msra.mxu2 %v1162_v3  ;;  %1177 = vmatpush.bf16.msra.mxu3 %v1162_v3  ;;  %v1157_v39 = vld [vmem:[%s1594_s0 + $0xf8] sm:$0xff] }
  0x12   :  { %470 = vmatpush.bf16.msra.mxu0 %v1161_v4  ;;  %1178 = vmatpush.bf16.msra.mxu1 %v1161_v4 }
  0x13   :  { %1179 = vmatpush.bf16.msra.mxu2 %v1161_v4  ;;  %1180 = vmatpush.bf16.msra.mxu3 %v1161_v4 }
  0x16   :  { %471 = vmatpush.bf16.msra.mxu0 %v1160_v5  ;;  %1181 = vmatpush.bf16.msra.mxu1 %v1160_v5 }
  0x17   :  { %1182 = vmatpush.bf16.msra.mxu2 %v1160_v5  ;;  %1183 = vmatpush.bf16.msra.mxu3 %v1160_v5 }
  0x1a   :  { %472 = vmatpush.bf16.msra.mxu0 %v1159_v6  ;;  %1184 = vmatpush.bf16.msra.mxu1 %v1159_v6 }
  0x1b   :  { %1185 = vmatpush.bf16.msra.mxu2 %v1159_v6  ;;  %1186 = vmatpush.bf16.msra.mxu3 %v1159_v6 }
  0x1e   :  { %473 = vmatpush.bf16.msra.mxu0 %v1158_v7  ;;  %1187 = vmatpush.bf16.msra.mxu1 %v1158_v7 }
  0x1f   :  { %1188 = vmatpush.bf16.msra.mxu2 %v1158_v7  ;;  %1189 = vmatpush.bf16.msra.mxu3 %v1158_v7 }
  0x21   :  { %474 = vmatmul.bf16.vlgmr.msra.gmra.mxu0 %v1126_v8  ;;  %514 = vmatmul.bf16.vlgmr.msra.gmra.mxu1 %v1134_v9 }
  0x22   :  { %554 = vmatmul.bf16.vlgmr.msra.gmra.mxu2 %v1142_v10  ;;  %594 = vmatmul.bf16.vlgmr.msra.gmra.mxu3 %v1150_v11 }
  0x31   :  { %479 = vmatmul.bf16.gmra.mxu0 %v1127_v12  ;;  %519 = vmatmul.bf16.gmra.mxu1 %v1135_v13 }
  0x32   :  { %559 = vmatmul.bf16.gmra.mxu2 %v1143_v14  ;;  %599 = vmatmul.bf16.gmra.mxu3 %v1151_v15 }
  0x41   :  { %484 = vmatmul.bf16.gmra.mxu0 %v1128_v16  ;;  %524 = vmatmul.bf16.gmra.mxu1 %v1136_v17 }
  0x42   :  { %564 = vmatmul.bf16.gmra.mxu2 %v1144_v18  ;;  %604 = vmatmul.bf16.gmra.mxu3 %v1152_v19 }
  0x51   :  { %489 = vmatmul.bf16.gmra.mxu0 %v1129_v20  ;;  %529 = vmatmul.bf16.gmra.mxu1 %v1137_v21 }
  0x52   :  { %569 = vmatmul.bf16.gmra.mxu2 %v1145_v22  ;;  %609 = vmatmul.bf16.gmra.mxu3 %v1153_v23 }
  0x61   :  { %494 = vmatmul.bf16.gmra.mxu0 %v1130_v24  ;;  %534 = vmatmul.bf16.gmra.mxu1 %v1138_v25 }
  0x62   :  { %574 = vmatmul.bf16.gmra.mxu2 %v1146_v26  ;;  %614 = vmatmul.bf16.gmra.mxu3 %v1154_v27 }
  0x71   :  { %499 = vmatmul.bf16.gmra.mxu0 %v1131_v28  ;;  %539 = vmatmul.bf16.gmra.mxu1 %v1139_v29 }
  0x72   :  { %579 = vmatmul.bf16.gmra.mxu2 %v1147_v30  ;;  %619 = vmatmul.bf16.gmra.mxu3 %v1155_v31 }
  0x81   :  { %504 = vmatmul.bf16.gmra.mxu0 %v1132_v32  ;;  %544 = vmatmul.bf16.gmra.mxu1 %v1140_v33 }
  0x82   :  { %584 = vmatmul.bf16.gmra.mxu2 %v1148_v34  ;;  %624 = vmatmul.bf16.gmra.mxu3 %v1156_v35 }
  0x91   :  { %509 = vmatmul.bf16.gmra.mxu0 %v1133_v36  ;;  %549 = vmatmul.bf16.gmra.mxu1 %v1141_v37 }
  0x92   :  { %589 = vmatmul.bf16.gmra.mxu2 %v1149_v38  ;;  %629 = vmatmul.bf16.gmra.mxu3 %v1157_v39 }
  0x9e   :  { %v475_v41 = vpop.f32.mrf.mxu0  ;;  %v515_v42 = vpop.f32.mrf.mxu1 }
  0x9f   :  { %v834_v43 = vadd.f32 %v1334_v40, %v475_v41  ;;  %v850_v44 = vadd.f32 %v1334_v40, %v515_v42 }
  0xa1   :  { %898 = vst [vmem:[%s1595_s3] sm:$0xff] %v834_v43 }
  0xa2   :  { %914 = vst [vmem:[%s1595_s3 + $0x80] sm:$0xff] %v850_v44 }
  0xa5   :  { %v555_v45 = vpop.f32.mrf.mxu2  ;;  %v595_v46 = vpop.f32.mrf.mxu3 }
  0xa6   :  { %v866_v47 = vadd.f32 %v1334_v40, %v555_v45  ;;  %v882_v48 = vadd.f32 %v1334_v40, %v595_v46  ;;  %v477_v49 = vpop.f32.mrf.mxu0  ;;  %v517_v50 = vpop.f32.mrf.mxu1 }
  0xa7   :  { %v835_v51 = vadd.f32 %v1334_v40, %v477_v49  ;;  %v851_v52 = vadd.f32 %v1334_v40, %v517_v50 }
  0xa8   :  { %930 = vst [vmem:[%s1595_s3 + $0x100] sm:$0xff] %v866_v47 }
  0xa9   :  { %946 = vst [vmem:[%s1595_s3 + $0x180] sm:$0xff] %v882_v48 }
  0xaa   :  { %899 = vst [vmem:[%s1595_s3 + $0x8] sm:$0xff] %v835_v51 }
  0xab   :  { %915 = vst [vmem:[%s1595_s3 + $0x88] sm:$0xff] %v851_v52 }
  0xad   :  { %v557_v53 = vpop.f32.mrf.mxu2  ;;  %v597_v54 = vpop.f32.mrf.mxu3 }
  0xae   :  { %v867_v55 = vadd.f32 %v1334_v40, %v557_v53  ;;  %v883_v56 = vadd.f32 %v1334_v40, %v597_v54  ;;  %v480_v57 = vpop.f32.mrf.mxu0  ;;  %v520_v58 = vpop.f32.mrf.mxu1 }
  0xaf   :  { %v836_v59 = vadd.f32 %v1334_v40, %v480_v57  ;;  %v852_v60 = vadd.f32 %v1334_v40, %v520_v58 }
  0xb0   :  { %931 = vst [vmem:[%s1595_s3 + $0x108] sm:$0xff] %v867_v55 }
  0xb1   :  { %947 = vst [vmem:[%s1595_s3 + $0x188] sm:$0xff] %v883_v56 }
  0xb2   :  { %900 = vst [vmem:[%s1595_s3 + $0x10] sm:$0xff] %v836_v59 }
  0xb3   :  { %916 = vst [vmem:[%s1595_s3 + $0x90] sm:$0xff] %v852_v60 }
  0xb5   :  { %v560_v61 = vpop.f32.mrf.mxu2  ;;  %v600_v62 = vpop.f32.mrf.mxu3 }
  0xb6   :  { %v868_v63 = vadd.f32 %v1334_v40, %v560_v61  ;;  %v884_v0 = vadd.f32 %v1334_v40, %v600_v62  ;;  %v482_v1 = vpop.f32.mrf.mxu0  ;;  %v522_v2 = vpop.f32.mrf.mxu1 }
  0xb7   :  { %v837_v3 = vadd.f32 %v1334_v40, %v482_v1  ;;  %v853_v4 = vadd.f32 %v1334_v40, %v522_v2 }
  0xb8   :  { %932 = vst [vmem:[%s1595_s3 + $0x110] sm:$0xff] %v868_v63 }
  0xb9   :  { %948 = vst [vmem:[%s1595_s3 + $0x190] sm:$0xff] %v884_v0 }
  0xba   :  { %901 = vst [vmem:[%s1595_s3 + $0x18] sm:$0xff] %v837_v3 }
  0xbb   :  { %917 = vst [vmem:[%s1595_s3 + $0x98] sm:$0xff] %v853_v4 }
  0xbd   :  { %v562_v5 = vpop.f32.mrf.mxu2  ;;  %v602_v6 = vpop.f32.mrf.mxu3 }
  0xbe   :  { %v869_v7 = vadd.f32 %v1334_v40, %v562_v5  ;;  %v885_v8 = vadd.f32 %v1334_v40, %v602_v6  ;;  %v485_v9 = vpop.f32.mrf.mxu0  ;;  %v525_v10 = vpop.f32.mrf.mxu1 }
  0xbf   :  { %v838_v11 = vadd.f32 %v1334_v40, %v485_v9  ;;  %v854_v12 = vadd.f32 %v1334_v40, %v525_v10 }
  0xc0   :  { %933 = vst [vmem:[%s1595_s3 + $0x118] sm:$0xff] %v869_v7 }
  0xc1   :  { %949 = vst [vmem:[%s1595_s3 + $0x198] sm:$0xff] %v885_v8 }
  0xc2   :  { %902 = vst [vmem:[%s1595_s3 + $0x20] sm:$0xff] %v838_v11 }
  0xc3   :  { %918 = vst [vmem:[%s1595_s3 + $0xa0] sm:$0xff] %v854_v12 }
  0xc5   :  { %v565_v13 = vpop.f32.mrf.mxu2  ;;  %v605_v14 = vpop.f32.mrf.mxu3 }
  0xc6   :  { %v870_v15 = vadd.f32 %v1334_v40, %v565_v13  ;;  %v886_v16 = vadd.f32 %v1334_v40, %v605_v14  ;;  %v487_v17 = vpop.f32.mrf.mxu0  ;;  %v527_v18 = vpop.f32.mrf.mxu1 }
  0xc7   :  { %v839_v19 = vadd.f32 %v1334_v40, %v487_v17  ;;  %v855_v20 = vadd.f32 %v1334_v40, %v527_v18 }
  0xc8   :  { %934 = vst [vmem:[%s1595_s3 + $0x120] sm:$0xff] %v870_v15 }
  0xc9   :  { %950 = vst [vmem:[%s1595_s3 + $0x1a0] sm:$0xff] %v886_v16 }
  0xca   :  { %903 = vst [vmem:[%s1595_s3 + $0x28] sm:$0xff] %v839_v19 }
  0xcb   :  { %919 = vst [vmem:[%s1595_s3 + $0xa8] sm:$0xff] %v855_v20 }
  0xcd   :  { %v567_v21 = vpop.f32.mrf.mxu2  ;;  %v607_v22 = vpop.f32.mrf.mxu3 }
  0xce   :  { %v871_v23 = vadd.f32 %v1334_v40, %v567_v21  ;;  %v887_v24 = vadd.f32 %v1334_v40, %v607_v22  ;;  %v490_v25 = vpop.f32.mrf.mxu0  ;;  %v530_v26 = vpop.f32.mrf.mxu1 }
  0xcf   :  { %v840_v27 = vadd.f32 %v1334_v40, %v490_v25  ;;  %v856_v28 = vadd.f32 %v1334_v40, %v530_v26 }
  0xd0   :  { %935 = vst [vmem:[%s1595_s3 + $0x128] sm:$0xff] %v871_v23 }
  0xd1   :  { %951 = vst [vmem:[%s1595_s3 + $0x1a8] sm:$0xff] %v887_v24 }
  0xd2   :  { %904 = vst [vmem:[%s1595_s3 + $0x30] sm:$0xff] %v840_v27 }
  0xd3   :  { %920 = vst [vmem:[%s1595_s3 + $0xb0] sm:$0xff] %v856_v28 }
  0xd5   :  { %v570_v29 = vpop.f32.mrf.mxu2  ;;  %v610_v30 = vpop.f32.mrf.mxu3 }
  0xd6   :  { %v872_v31 = vadd.f32 %v1334_v40, %v570_v29  ;;  %v888_v32 = vadd.f32 %v1334_v40, %v610_v30  ;;  %v492_v33 = vpop.f32.mrf.mxu0  ;;  %v532_v34 = vpop.f32.mrf.mxu1 }
  0xd7   :  { %v841_v35 = vadd.f32 %v1334_v40, %v492_v33  ;;  %v857_v36 = vadd.f32 %v1334_v40, %v532_v34 }
  0xd8   :  { %936 = vst [vmem:[%s1595_s3 + $0x130] sm:$0xff] %v872_v31 }
  0xd9   :  { %952 = vst [vmem:[%s1595_s3 + $0x1b0] sm:$0xff] %v888_v32 }
  0xda   :  { %905 = vst [vmem:[%s1595_s3 + $0x38] sm:$0xff] %v841_v35 }
  0xdb   :  { %921 = vst [vmem:[%s1595_s3 + $0xb8] sm:$0xff] %v857_v36 }
  0xdd   :  { %v572_v37 = vpop.f32.mrf.mxu2  ;;  %v612_v38 = vpop.f32.mrf.mxu3 }
  0xde   :  { %v873_v39 = vadd.f32 %v1334_v40, %v572_v37  ;;  %v889_v41 = vadd.f32 %v1334_v40, %v612_v38  ;;  %v495_v42 = vpop.f32.mrf.mxu0  ;;  %v535_v43 = vpop.f32.mrf.mxu1 }
  0xdf   :  { %v842_v44 = vadd.f32 %v1334_v40, %v495_v42  ;;  %v858_v45 = vadd.f32 %v1334_v40, %v535_v43 }
  0xe0   :  { %937 = vst [vmem:[%s1595_s3 + $0x138] sm:$0xff] %v873_v39 }
  0xe1   :  { %953 = vst [vmem:[%s1595_s3 + $0x1b8] sm:$0xff] %v889_v41 }
  0xe2   :  { %906 = vst [vmem:[%s1595_s3 + $0x40] sm:$0xff] %v842_v44 }
  0xe3   :  { %922 = vst [vmem:[%s1595_s3 + $0xc0] sm:$0xff] %v858_v45 }
  0xe5   :  { %v575_v46 = vpop.f32.mrf.mxu2  ;;  %v615_v47 = vpop.f32.mrf.mxu3 }
  0xe6   :  { %v874_v48 = vadd.f32 %v1334_v40, %v575_v46  ;;  %v890_v49 = vadd.f32 %v1334_v40, %v615_v47  ;;  %v497_v50 = vpop.f32.mrf.mxu0  ;;  %v537_v51 = vpop.f32.mrf.mxu1 }
  0xe7   :  { %v843_v52 = vadd.f32 %v1334_v40, %v497_v50  ;;  %v859_v53 = vadd.f32 %v1334_v40, %v537_v51 }
  0xe8   :  { %938 = vst [vmem:[%s1595_s3 + $0x140] sm:$0xff] %v874_v48 }
  0xe9   :  { %954 = vst [vmem:[%s1595_s3 + $0x1c0] sm:$0xff] %v890_v49 }
  0xea   :  { %907 = vst [vmem:[%s1595_s3 + $0x48] sm:$0xff] %v843_v52 }
  0xeb   :  { %923 = vst [vmem:[%s1595_s3 + $0xc8] sm:$0xff] %v859_v53 }
  0xed   :  { %v577_v54 = vpop.f32.mrf.mxu2  ;;  %v617_v55 = vpop.f32.mrf.mxu3 }
  0xee   :  { %v875_v56 = vadd.f32 %v1334_v40, %v577_v54  ;;  %v891_v57 = vadd.f32 %v1334_v40, %v617_v55  ;;  %v500_v58 = vpop.f32.mrf.mxu0  ;;  %v540_v59 = vpop.f32.mrf.mxu1 }
  0xef   :  { %v844_v60 = vadd.f32 %v1334_v40, %v500_v58  ;;  %v860_v61 = vadd.f32 %v1334_v40, %v540_v59 }
  0xf0   :  { %939 = vst [vmem:[%s1595_s3 + $0x148] sm:$0xff] %v875_v56 }
  0xf1   :  { %955 = vst [vmem:[%s1595_s3 + $0x1c8] sm:$0xff] %v891_v57 }
  0xf2   :  { %908 = vst [vmem:[%s1595_s3 + $0x50] sm:$0xff] %v844_v60 }
  0xf3   :  { %924 = vst [vmem:[%s1595_s3 + $0xd0] sm:$0xff] %v860_v61 }
  0xf5   :  { %v580_v62 = vpop.f32.mrf.mxu2  ;;  %v620_v63 = vpop.f32.mrf.mxu3 }
  0xf6   :  { %v876_v0 = vadd.f32 %v1334_v40, %v580_v62  ;;  %v892_v1 = vadd.f32 %v1334_v40, %v620_v63  ;;  %v502_v2 = vpop.f32.mrf.mxu0  ;;  %v542_v3 = vpop.f32.mrf.mxu1 }
  0xf7   :  { %v845_v4 = vadd.f32 %v1334_v40, %v502_v2  ;;  %v861_v5 = vadd.f32 %v1334_v40, %v542_v3 }
  0xf8   :  { %940 = vst [vmem:[%s1595_s3 + $0x150] sm:$0xff] %v876_v0 }
  0xf9   :  { %956 = vst [vmem:[%s1595_s3 + $0x1d0] sm:$0xff] %v892_v1 }
  0xfa   :  { %909 = vst [vmem:[%s1595_s3 + $0x58] sm:$0xff] %v845_v4 }
  0xfb   :  { %925 = vst [vmem:[%s1595_s3 + $0xd8] sm:$0xff] %v861_v5 }
  0xfd   :  { %v582_v6 = vpop.f32.mrf.mxu2  ;;  %v622_v7 = vpop.f32.mrf.mxu3 }
  0xfe   :  { %v877_v8 = vadd.f32 %v1334_v40, %v582_v6  ;;  %v893_v9 = vadd.f32 %v1334_v40, %v622_v7  ;;  %v505_v10 = vpop.f32.mrf.mxu0  ;;  %v545_v11 = vpop.f32.mrf.mxu1 }
  0xff   :  { %v846_v12 = vadd.f32 %v1334_v40, %v505_v10  ;;  %v862_v13 = vadd.f32 %v1334_v40, %v545_v11 }
 0x100   :  { %941 = vst [vmem:[%s1595_s3 + $0x158] sm:$0xff] %v877_v8 }
 0x101   :  { %957 = vst [vmem:[%s1595_s3 + $0x1d8] sm:$0xff] %v893_v9 }
 0x102   :  { %910 = vst [vmem:[%s1595_s3 + $0x60] sm:$0xff] %v846_v12 }
 0x103   :  { %926 = vst [vmem:[%s1595_s3 + $0xe0] sm:$0xff] %v862_v13 }
 0x105   :  { %v585_v14 = vpop.f32.mrf.mxu2  ;;  %v625_v15 = vpop.f32.mrf.mxu3 }
 0x106   :  { %v878_v16 = vadd.f32 %v1334_v40, %v585_v14  ;;  %v894_v17 = vadd.f32 %v1334_v40, %v625_v15  ;;  %v507_v18 = vpop.f32.mrf.mxu0  ;;  %v547_v19 = vpop.f32.mrf.mxu1 }
 0x107   :  { %v847_v20 = vadd.f32 %v1334_v40, %v507_v18  ;;  %v863_v21 = vadd.f32 %v1334_v40, %v547_v19 }
 0x108   :  { %942 = vst [vmem:[%s1595_s3 + $0x160] sm:$0xff] %v878_v16 }
 0x109   :  { %958 = vst [vmem:[%s1595_s3 + $0x1e0] sm:$0xff] %v894_v17 }
 0x10a   :  { %911 = vst [vmem:[%s1595_s3 + $0x68] sm:$0xff] %v847_v20 }
 0x10b   :  { %927 = vst [vmem:[%s1595_s3 + $0xe8] sm:$0xff] %v863_v21 }
 0x10d   :  { %v587_v22 = vpop.f32.mrf.mxu2  ;;  %v627_v23 = vpop.f32.mrf.mxu3 }
 0x10e   :  { %v879_v24 = vadd.f32 %v1334_v40, %v587_v22  ;;  %v895_v25 = vadd.f32 %v1334_v40, %v627_v23  ;;  %v510_v26 = vpop.f32.mrf.mxu0  ;;  %v550_v27 = vpop.f32.mrf.mxu1 }
 0x10f   :  { %v848_v28 = vadd.f32 %v1334_v40, %v510_v26  ;;  %v864_v29 = vadd.f32 %v1334_v40, %v550_v27 }
 0x110   :  { %943 = vst [vmem:[%s1595_s3 + $0x168] sm:$0xff] %v879_v24 }
 0x111   :  { %959 = vst [vmem:[%s1595_s3 + $0x1e8] sm:$0xff] %v895_v25 }
 0x112   :  { %912 = vst [vmem:[%s1595_s3 + $0x70] sm:$0xff] %v848_v28 }
 0x113   :  { %928 = vst [vmem:[%s1595_s3 + $0xf0] sm:$0xff] %v864_v29 }
 0x115   :  { %v590_v30 = vpop.f32.mrf.mxu2  ;;  %v630_v31 = vpop.f32.mrf.mxu3 }
 0x116   :  { %v880_v32 = vadd.f32 %v1334_v40, %v590_v30  ;;  %v896_v33 = vadd.f32 %v1334_v40, %v630_v31  ;;  %v512_v34 = vpop.f32.mrf.mxu0  ;;  %v552_v35 = vpop.f32.mrf.mxu1 }
 0x117   :  { %v849_v36 = vadd.f32 %v1334_v40, %v512_v34  ;;  %v865_v37 = vadd.f32 %v1334_v40, %v552_v35 }
 0x118   :  { %944 = vst [vmem:[%s1595_s3 + $0x170] sm:$0xff] %v880_v32 }
 0x119   :  { %960 = vst [vmem:[%s1595_s3 + $0x1f0] sm:$0xff] %v896_v33 }
 0x11a   :  { %913 = vst [vmem:[%s1595_s3 + $0x78] sm:$0xff] %v849_v36 }
 0x11b   :  { %929 = vst [vmem:[%s1595_s3 + $0xf8] sm:$0xff] %v865_v37 }
 0x11d   :  { %v592_v38 = vpop.f32.mrf.mxu2  ;;  %v632_v39 = vpop.f32.mrf.mxu3 }
 0x11e   :  { %v881_v41 = vadd.f32 %v1334_v40, %v592_v38  ;;  %v897_v42 = vadd.f32 %v1334_v40, %v632_v39 }
 0x120   :  { %945 = vst [vmem:[%s1595_s3 + $0x178] sm:$0xff] %v881_v41 }
 0x121   :  { %961 = vst [vmem:[%s1595_s3 + $0x1f8] sm:$0xff] %v897_v42 }

// kernel: unet_forward.40
= control target key start
LH: loop header
LB: loop body
LE: loop exit
PB: predicated region body
PF: predicated region fallthrough
CT: control target
= control target key end

     0   :  { %s820_s1 = inlined_call_operand.vmem [shape: bf16[256,128], index: 1, kind: input, shape index: {}]   ;;  %s821_s0 = inlined_call_operand.vmem [shape: bf16[128,256], index: 0, kind: input, shape index: {}]   ;;  %s822_s2 = inlined_call_operand.vmem [shape: f32[1,128], index: 2, kind: input, shape index: {}]   ;;  %s823_s3 = inlined_call_operand.vmem [shape: f32[128,128], index: 3, kind: output, shape index: {}]  }
   0x1   :  { %v598_v0 = vld [vmem:[%s820_s1 + $0x38] sm:$0xff]  ;;  %v597_v2 = vld [vmem:[%s820_s1 + $0x30] sm:$0xff]  ;;  %v596_v4 = vld [vmem:[%s820_s1 + $0x28] sm:$0xff] }
   0x2   :  { %v606_v1 = vld [vmem:[%s820_s1 + $0x78] sm:$0xff]  ;;  %338 = vmatpush.bf16.msra.mxu0 %v598_v0  ;;  %607 = vmatpush.bf16.msra.mxu2 %v598_v0  ;;  %v605_v3 = vld [vmem:[%s820_s1 + $0x70] sm:$0xff]  ;;  %v604_v5 = vld [vmem:[%s820_s1 + $0x68] sm:$0xff] }
   0x3   :  { %387 = vmatpush.bf16.msra.mxu1 %v606_v1  ;;  %615 = vmatpush.bf16.msra.mxu3 %v606_v1  ;;  %v595_v6 = vld [vmem:[%s820_s1 + $0x20] sm:$0xff]  ;;  %v594_v9 = vld [vmem:[%s820_s1 + $0x18] sm:$0xff]  ;;  %v35_v10 = vld [vmem:[%s821_s0 + $0x8] sm:$0xff] }
   0x4   :  { %v603_v7 = vld [vmem:[%s820_s1 + $0x60] sm:$0xff]  ;;  %v602_v12 = vld [vmem:[%s820_s1 + $0x58] sm:$0xff]  ;;  %v43_v13 = vld [vmem:[%s821_s0 + $0x48] sm:$0xff]  ;;  %v52_v15 = vunpack.c.l.bf16 %v35_v10  ;;  %v53_v21 = vunpack.c.h.bf16 %v35_v10 }
   0x5   :  { %v34_v8 = vld [vmem:[%s821_s0] sm:$0xff]  ;;  %v593_v17 = vld [vmem:[%s820_s1 + $0x10] sm:$0xff]  ;;  %v68_v18 = vunpack.c.l.bf16 %v43_v13  ;;  %v69_v23 = vunpack.c.h.bf16 %v43_v13  ;;  %v592_v24 = vld [vmem:[%s820_s1 + $0x8] sm:$0xff] }
   0x6   :  { %339 = vmatpush.bf16.msra.mxu0 %v597_v2  ;;  %608 = vmatpush.bf16.msra.mxu2 %v597_v2  ;;  %v42_v11 = vld [vmem:[%s821_s0 + $0x40] sm:$0xff]  ;;  %v50_v14 = vunpack.c.l.bf16 %v34_v8  ;;  %v51_v19 = vunpack.c.h.bf16 %v34_v8  ;;  %v601_v20 = vld [vmem:[%s820_s1 + $0x50] sm:$0xff]  ;;  %v600_v26 = vld [vmem:[%s820_s1 + $0x48] sm:$0xff]  ;;  %vm84_vm1 = vcmp.ge.f32.partialorder %v52_v15, 0.0  ;;  %v116_v27 = vmul.f32 0.2, %v52_v15 }
   0x7   :  { %388 = vmatpush.bf16.msra.mxu1 %v605_v3  ;;  %616 = vmatpush.bf16.msra.mxu3 %v605_v3  ;;  %v66_v16 = vunpack.c.l.bf16 %v42_v11  ;;  %v67_v22 = vunpack.c.h.bf16 %v42_v11  ;;  %vm100_vm3 = vcmp.ge.f32.partialorder %v68_v18, 0.0  ;;  %v132_v29 = vmul.f32 0.2, %v68_v18  ;;  %v591_v36 = vld [vmem:[%s820_s1] sm:$0xff]  ;;  %v36_v46 = vld [vmem:[%s821_s0 + $0x10] sm:$0xff]  ;;  %v37_v47 = vld [vmem:[%s821_s0 + $0x18] sm:$0xff] }
   0x8   :  { %vm82_vm0 = vcmp.ge.f32.partialorder %v50_v14, 0.0  ;;  %v114_v25 = vmul.f32 0.2, %v50_v14  ;;  %vm83_vm4 = vcmp.ge.f32.partialorder %v51_v19, 0.0  ;;  %v115_v30 = vmul.f32 0.2, %v51_v19 }
   0x9   :  { %vm98_vm2 = vcmp.ge.f32.partialorder %v66_v16, 0.0  ;;  %v130_v28 = vmul.f32 0.2, %v66_v16  ;;  %v117_v31 = vmul.f32 0.2, %v53_v21  ;;  %vm85_vm5 = vcmp.ge.f32.partialorder %v53_v21, 0.0 }
   0xa   :  { %340 = vmatpush.bf16.msra.mxu0 %v596_v4  ;;  %609 = vmatpush.bf16.msra.mxu2 %v596_v4  ;;  %v131_v32 = vmul.f32 0.2, %v67_v22  ;;  %v133_v33 = vmul.f32 0.2, %v69_v23  ;;  %vm99_vm6 = vcmp.ge.f32.partialorder %v67_v22, 0.0  ;;  %vm101_vm7 = vcmp.ge.f32.partialorder %v69_v23, 0.0 }
   0xb   :  { %389 = vmatpush.bf16.msra.mxu1 %v604_v5  ;;  %617 = vmatpush.bf16.msra.mxu3 %v604_v5  ;;  %v146_v34 = vsel %vm82_vm0, %v50_v14, %v114_v25  ;;  %v148_v35 = vsel %vm84_vm1, %v52_v15, %v116_v27  ;;  %v162_v37 = vsel %vm98_vm2, %v66_v16, %v130_v28  ;;  %v599_v40 = vld [vmem:[%s820_s1 + $0x40] sm:$0xff]  ;;  %v44_v50 = vld [vmem:[%s821_s0 + $0x50] sm:$0xff]  ;;  %v45_v51 = vld [vmem:[%s821_s0 + $0x58] sm:$0xff]  ;;  %v54_v52 = vunpack.c.l.bf16 %v36_v46 }
   0xc   :  { %v164_v38 = vsel %vm100_vm3, %v68_v18, %v132_v29  ;;  %v147_v39 = vsel %vm83_vm4, %v51_v19, %v115_v30  ;;  %v149_v41 = vsel %vm85_vm5, %v53_v21, %v117_v31  ;;  %v163_v42 = vsel %vm99_vm6, %v67_v22, %v131_v32  ;;  %v38_v14 = vld [vmem:[%s821_s0 + $0x20] sm:$0xff]  ;;  %v39_v15 = vld [vmem:[%s821_s0 + $0x28] sm:$0xff] }
   0xd   :  { %v165_v43 = vsel %vm101_vm7, %v69_v23, %v133_v33  ;;  %v178_v44 = vpack.c.bf16 %v148_v35, %v146_v34  ;;  %v186_v45 = vpack.c.bf16 %v164_v38, %v162_v37  ;;  %v179_v48 = vpack.c.bf16 %v149_v41, %v147_v39  ;;  %v46_v18 = vld [vmem:[%s821_s0 + $0x60] sm:$0xff]  ;;  %v47_v19 = vld [vmem:[%s821_s0 + $0x68] sm:$0xff] }
   0xe   :  { %341 = vmatpush.bf16.msra.mxu0 %v595_v6  ;;  %610 = vmatpush.bf16.msra.mxu2 %v595_v6  ;;  %v187_v49 = vpack.c.bf16 %v165_v43, %v163_v42  ;;  %v56_v53 = vunpack.c.l.bf16 %v37_v47  ;;  %v70_v54 = vunpack.c.l.bf16 %v44_v50  ;;  %v72_v55 = vunpack.c.l.bf16 %v45_v51 }
   0xf   :  { %390 = vmatpush.bf16.msra.mxu1 %v603_v7  ;;  %618 = vmatpush.bf16.msra.mxu3 %v603_v7  ;;  %v55_v56 = vunpack.c.h.bf16 %v36_v46  ;;  %v57_v57 = vunpack.c.h.bf16 %v37_v47  ;;  %v71_v58 = vunpack.c.h.bf16 %v44_v50  ;;  %v73_v59 = vunpack.c.h.bf16 %v45_v51  ;;  %v40_v46 = vld [vmem:[%s821_s0 + $0x30] sm:$0xff]  ;;  %v41_v47 = vld [vmem:[%s821_s0 + $0x38] sm:$0xff] }
  0x10   :  { %vm86_vm8 = vcmp.ge.f32.partialorder %v54_v52, 0.0  ;;  %vm88_vm9 = vcmp.ge.f32.partialorder %v56_v53, 0.0  ;;  %v118_v60 = vmul.f32 0.2, %v54_v52  ;;  %v120_v61 = vmul.f32 0.2, %v56_v53 }
  0x11   :  { %vm102_vm10 = vcmp.ge.f32.partialorder %v70_v54, 0.0  ;;  %vm104_vm11 = vcmp.ge.f32.partialorder %v72_v55, 0.0  ;;  %v134_v62 = vmul.f32 0.2, %v70_v54  ;;  %v136_v63 = vmul.f32 0.2, %v72_v55 }
  0x12   :  { %342 = vmatpush.bf16.msra.mxu0 %v594_v9  ;;  %611 = vmatpush.bf16.msra.mxu2 %v594_v9  ;;  %v119_v0 = vmul.f32 0.2, %v55_v56  ;;  %v121_v1 = vmul.f32 0.2, %v57_v57  ;;  %v135_v2 = vmul.f32 0.2, %v71_v58  ;;  %v150_v4 = vsel %vm86_vm8, %v54_v52, %v118_v60 }
  0x13   :  { %391 = vmatpush.bf16.msra.mxu1 %v602_v12  ;;  %619 = vmatpush.bf16.msra.mxu3 %v602_v12  ;;  %v137_v3 = vmul.f32 0.2, %v73_v59  ;;  %vm87_vm12 = vcmp.ge.f32.partialorder %v55_v56, 0.0  ;;  %vm89_vm13 = vcmp.ge.f32.partialorder %v57_v57, 0.0  ;;  %vm103_vm14 = vcmp.ge.f32.partialorder %v71_v58, 0.0  ;;  %v48_v50 = vld [vmem:[%s821_s0 + $0x70] sm:$0xff] }
  0x14   :  { %vm105_vm15 = vcmp.ge.f32.partialorder %v73_v59, 0.0  ;;  %v152_v5 = vsel %vm88_vm9, %v56_v53, %v120_v61  ;;  %v166_v6 = vsel %vm102_vm10, %v70_v54, %v134_v62  ;;  %v168_v7 = vsel %vm104_vm11, %v72_v55, %v136_v63  ;;  %v49_v51 = vld [vmem:[%s821_s0 + $0x78] sm:$0xff] }
  0x15   :  { %v151_v8 = vsel %vm87_vm12, %v55_v56, %v119_v0  ;;  %v153_v9 = vsel %vm89_vm13, %v57_v57, %v121_v1  ;;  %v167_v10 = vsel %vm103_vm14, %v71_v58, %v135_v2  ;;  %v169_v11 = vsel %vm105_vm15, %v73_v59, %v137_v3 }
  0x16   :  { %343 = vmatpush.bf16.msra.mxu0 %v593_v17  ;;  %612 = vmatpush.bf16.msra.mxu2 %v593_v17  ;;  %v180_v12 = vpack.c.bf16 %v152_v5, %v150_v4  ;;  %v188_v13 = vpack.c.bf16 %v168_v7, %v166_v6  ;;  %v181_v16 = vpack.c.bf16 %v153_v9, %v151_v8  ;;  %v60_v21 = vunpack.c.l.bf16 %v39_v15 }
  0x17   :  { %392 = vmatpush.bf16.msra.mxu1 %v601_v20  ;;  %620 = vmatpush.bf16.msra.mxu3 %v601_v20  ;;  %v189_v17 = vpack.c.bf16 %v169_v11, %v167_v10  ;;  %v58_v20 = vunpack.c.l.bf16 %v38_v14  ;;  %v74_v22 = vunpack.c.l.bf16 %v46_v18  ;;  %v76_v23 = vunpack.c.l.bf16 %v47_v19 }
  0x18   :  { %v61_v25 = vunpack.c.h.bf16 %v39_v15  ;;  %v77_v27 = vunpack.c.h.bf16 %v47_v19  ;;  %vm92_vm1 = vcmp.ge.f32.partialorder %v60_v21, 0.0  ;;  %v124_v29 = vmul.f32 0.2, %v60_v21 }
  0x19   :  { %vm90_vm0 = vcmp.ge.f32.partialorder %v58_v20, 0.0  ;;  %v122_v28 = vmul.f32 0.2, %v58_v20  ;;  %v138_v30 = vmul.f32 0.2, %v74_v22  ;;  %vm106_vm2 = vcmp.ge.f32.partialorder %v74_v22, 0.0 }
  0x1a   :  { %344 = vmatpush.bf16.msra.mxu0 %v592_v24  ;;  %613 = vmatpush.bf16.msra.mxu2 %v592_v24  ;;  %v59_v24 = vunpack.c.h.bf16 %v38_v14  ;;  %vm108_vm3 = vcmp.ge.f32.partialorder %v76_v23, 0.0  ;;  %v140_v31 = vmul.f32 0.2, %v76_v23  ;;  %v125_v33 = vmul.f32 0.2, %v61_v25 }
  0x1b   :  { %393 = vmatpush.bf16.msra.mxu1 %v600_v26  ;;  %621 = vmatpush.bf16.msra.mxu3 %v600_v26  ;;  %v75_v26 = vunpack.c.h.bf16 %v46_v18  ;;  %v141_v35 = vmul.f32 0.2, %v77_v27  ;;  %vm93_vm5 = vcmp.ge.f32.partialorder %v61_v25, 0.0  ;;  %vm109_vm7 = vcmp.ge.f32.partialorder %v77_v27, 0.0 }
  0x1c   :  { %v123_v32 = vmul.f32 0.2, %v59_v24  ;;  %vm91_vm4 = vcmp.ge.f32.partialorder %v59_v24, 0.0  ;;  %v156_v37 = vsel %vm92_vm1, %v60_v21, %v124_v29  ;;  %v170_v38 = vsel %vm106_vm2, %v74_v22, %v138_v30 }
  0x1d   :  { %v139_v34 = vmul.f32 0.2, %v75_v26  ;;  %vm107_vm6 = vcmp.ge.f32.partialorder %v75_v26, 0.0  ;;  %v172_v39 = vsel %vm108_vm3, %v76_v23, %v140_v31  ;;  %v157_v41 = vsel %vm93_vm5, %v61_v25, %v125_v33 }
  0x1e   :  { %345 = vmatpush.bf16.msra.mxu0 %v591_v36  ;;  %614 = vmatpush.bf16.msra.mxu2 %v591_v36  ;;  %v154_v36 = vsel %vm90_vm0, %v58_v20, %v122_v28  ;;  %v173_v43 = vsel %vm109_vm7, %v77_v27, %v141_v35  ;;  %v62_v52 = vunpack.c.l.bf16 %v40_v46  ;;  %v64_v53 = vunpack.c.l.bf16 %v41_v47 }
  0x1f   :  { %394 = vmatpush.bf16.msra.mxu1 %v599_v40  ;;  %622 = vmatpush.bf16.msra.mxu3 %v599_v40  ;;  %v155_v40 = vsel %vm91_vm4, %v59_v24, %v123_v32  ;;  %v171_v42 = vsel %vm107_vm6, %v75_v26, %v139_v34  ;;  %v78_v54 = vunpack.c.l.bf16 %v48_v50  ;;  %v80_v55 = vunpack.c.l.bf16 %v49_v51 }
  0x20   :  { %v63_v56 = vunpack.c.h.bf16 %v40_v46  ;;  %v65_v57 = vunpack.c.h.bf16 %v41_v47  ;;  %v79_v58 = vunpack.c.h.bf16 %v48_v50  ;;  %v81_v59 = vunpack.c.h.bf16 %v49_v51 }
  0x21   :  { %346 = vmatmul.bf16.vlgmr.msra.gmra.mxu0 %v178_v44  ;;  %366 = vmatmul.bf16.vlgmr.msra.gmra.mxu2 %v186_v45  ;;  %v182_v44 = vpack.c.bf16 %v156_v37, %v154_v36  ;;  %v190_v45 = vpack.c.bf16 %v172_v39, %v170_v38  ;;  %vm94_vm8 = vcmp.ge.f32.partialorder %v62_v52, 0.0  ;;  %vm96_vm9 = vcmp.ge.f32.partialorder %v64_v53, 0.0 }
  0x22   :  { %395 = vmatmul.bf16.vlgmr.msra.gmra.mxu1 %v179_v48  ;;  %415 = vmatmul.bf16.vlgmr.msra.gmra.mxu3 %v187_v49  ;;  %v183_v48 = vpack.c.bf16 %v157_v41, %v155_v40  ;;  %v191_v49 = vpack.c.bf16 %v173_v43, %v171_v42  ;;  %v126_v60 = vmul.f32 0.2, %v62_v52  ;;  %v128_v61 = vmul.f32 0.2, %v64_v53 }
  0x23   :  { %v142_v62 = vmul.f32 0.2, %v78_v54  ;;  %vm110_vm10 = vcmp.ge.f32.partialorder %v78_v54, 0.0  ;;  %vm112_vm11 = vcmp.ge.f32.partialorder %v80_v55, 0.0  ;;  %v144_v63 = vmul.f32 0.2, %v80_v55 }
  0x24   :  { %v127_v0 = vmul.f32 0.2, %v63_v56  ;;  %v129_v1 = vmul.f32 0.2, %v65_v57  ;;  %v143_v2 = vmul.f32 0.2, %v79_v58  ;;  %v158_v4 = vsel %vm94_vm8, %v62_v52, %v126_v60 }
  0x25   :  { %v145_v3 = vmul.f32 0.2, %v81_v59  ;;  %vm95_vm12 = vcmp.ge.f32.partialorder %v63_v56, 0.0  ;;  %vm97_vm13 = vcmp.ge.f32.partialorder %v65_v57, 0.0  ;;  %vm111_vm14 = vcmp.ge.f32.partialorder %v79_v58, 0.0 }
  0x26   :  { %vm113_vm15 = vcmp.ge.f32.partialorder %v81_v59, 0.0  ;;  %v160_v5 = vsel %vm96_vm9, %v64_v53, %v128_v61  ;;  %v174_v6 = vsel %vm110_vm10, %v78_v54, %v142_v62  ;;  %v176_v7 = vsel %vm112_vm11, %v80_v55, %v144_v63 }
  0x27   :  { %v159_v8 = vsel %vm95_vm12, %v63_v56, %v127_v0  ;;  %v161_v9 = vsel %vm97_vm13, %v65_v57, %v129_v1  ;;  %v175_v10 = vsel %vm111_vm14, %v79_v58, %v143_v2  ;;  %v177_v11 = vsel %vm113_vm15, %v81_v59, %v145_v3 }
  0x28   :  { %v185_v14 = vpack.c.bf16 %v161_v9, %v159_v8  ;;  %v193_v15 = vpack.c.bf16 %v177_v11, %v175_v10 }
  0x31   :  { %351 = vmatmul.bf16.gmra.mxu0 %v180_v12  ;;  %371 = vmatmul.bf16.gmra.mxu2 %v188_v13  ;;  %v184_v12 = vpack.c.bf16 %v160_v5, %v158_v4  ;;  %v192_v13 = vpack.c.bf16 %v176_v7, %v174_v6 }
  0x32   :  { %400 = vmatmul.bf16.gmra.mxu1 %v181_v16  ;;  %420 = vmatmul.bf16.gmra.mxu3 %v189_v17  ;;  %v754_v17 = vld [vmem:[%s822_s2] ss:$0 sm:$0xff] }
  0x41   :  { %356 = vmatmul.bf16.gmra.mxu0 %v182_v44  ;;  %376 = vmatmul.bf16.gmra.mxu2 %v190_v45 }
  0x42   :  { %405 = vmatmul.bf16.gmra.mxu1 %v183_v48  ;;  %425 = vmatmul.bf16.gmra.mxu3 %v191_v49 }
  0x51   :  { %361 = vmatmul.bf16.gmra.mxu0 %v184_v12  ;;  %381 = vmatmul.bf16.gmra.mxu2 %v192_v13 }
  0x52   :  { %410 = vmatmul.bf16.gmra.mxu1 %v185_v14  ;;  %430 = vmatmul.bf16.gmra.mxu3 %v193_v15 }
  0x9e   :  { %v347_v16 = vpop.f32.mrf.mxu0 }
  0x9f   :  { %v396_v18 = vpop.f32.mrf.mxu1 }
  0xa0   :  { %v397_v19 = vadd.f32 %v396_v18, %v347_v16 }
  0xa2   :  { %v491_v20 = vadd.f32 %v754_v17, %v397_v19 }
  0xa4   :  { %507 = vst [vmem:[%s823_s3] sm:$0xff] %v491_v20  ;;  %v367_v21 = vpop.f32.mrf.mxu2 }
  0xa5   :  { %v416_v22 = vpop.f32.mrf.mxu3 }
  0xa6   :  { %v417_v23 = vadd.f32 %v416_v22, %v367_v21  ;;  %v349_v24 = vpop.f32.mrf.mxu0 }
  0xa7   :  { %v398_v25 = vpop.f32.mrf.mxu1 }
  0xa8   :  { %v499_v26 = vadd.f32 %v754_v17, %v417_v23  ;;  %v399_v27 = vadd.f32 %v398_v25, %v349_v24 }
  0xaa   :  { %515 = vst [vmem:[%s823_s3 + $0x40] sm:$0xff] %v499_v26  ;;  %v492_v28 = vadd.f32 %v754_v17, %v399_v27 }
  0xac   :  { %508 = vst [vmem:[%s823_s3 + $0x8] sm:$0xff] %v492_v28  ;;  %v369_v29 = vpop.f32.mrf.mxu2 }
  0xad   :  { %v418_v30 = vpop.f32.mrf.mxu3 }
  0xae   :  { %v419_v31 = vadd.f32 %v418_v30, %v369_v29  ;;  %v352_v32 = vpop.f32.mrf.mxu0 }
  0xaf   :  { %v401_v33 = vpop.f32.mrf.mxu1 }
  0xb0   :  { %v500_v34 = vadd.f32 %v754_v17, %v419_v31  ;;  %v402_v35 = vadd.f32 %v401_v33, %v352_v32 }
  0xb2   :  { %516 = vst [vmem:[%s823_s3 + $0x48] sm:$0xff] %v500_v34  ;;  %v493_v36 = vadd.f32 %v754_v17, %v402_v35 }
  0xb4   :  { %509 = vst [vmem:[%s823_s3 + $0x10] sm:$0xff] %v493_v36  ;;  %v372_v37 = vpop.f32.mrf.mxu2 }
  0xb5   :  { %v421_v38 = vpop.f32.mrf.mxu3 }
  0xb6   :  { %v422_v39 = vadd.f32 %v421_v38, %v372_v37  ;;  %v354_v40 = vpop.f32.mrf.mxu0 }
  0xb7   :  { %v403_v41 = vpop.f32.mrf.mxu1 }
  0xb8   :  { %v501_v42 = vadd.f32 %v754_v17, %v422_v39  ;;  %v404_v43 = vadd.f32 %v403_v41, %v354_v40 }
  0xba   :  { %517 = vst [vmem:[%s823_s3 + $0x50] sm:$0xff] %v501_v42  ;;  %v494_v44 = vadd.f32 %v754_v17, %v404_v43 }
  0xbc   :  { %510 = vst [vmem:[%s823_s3 + $0x18] sm:$0xff] %v494_v44  ;;  %v374_v45 = vpop.f32.mrf.mxu2 }
  0xbd   :  { %v423_v46 = vpop.f32.mrf.mxu3 }
  0xbe   :  { %v424_v47 = vadd.f32 %v423_v46, %v374_v45  ;;  %v357_v48 = vpop.f32.mrf.mxu0 }
  0xbf   :  { %v406_v49 = vpop.f32.mrf.mxu1 }
  0xc0   :  { %v502_v50 = vadd.f32 %v754_v17, %v424_v47  ;;  %v407_v51 = vadd.f32 %v406_v49, %v357_v48 }
  0xc2   :  { %518 = vst [vmem:[%s823_s3 + $0x58] sm:$0xff] %v502_v50  ;;  %v495_v52 = vadd.f32 %v754_v17, %v407_v51 }
  0xc4   :  { %511 = vst [vmem:[%s823_s3 + $0x20] sm:$0xff] %v495_v52  ;;  %v377_v53 = vpop.f32.mrf.mxu2 }
  0xc5   :  { %v426_v54 = vpop.f32.mrf.mxu3 }
  0xc6   :  { %v427_v55 = vadd.f32 %v426_v54, %v377_v53  ;;  %v359_v56 = vpop.f32.mrf.mxu0 }
  0xc7   :  { %v408_v57 = vpop.f32.mrf.mxu1 }
  0xc8   :  { %v503_v58 = vadd.f32 %v754_v17, %v427_v55  ;;  %v409_v59 = vadd.f32 %v408_v57, %v359_v56 }
  0xca   :  { %519 = vst [vmem:[%s823_s3 + $0x60] sm:$0xff] %v503_v58  ;;  %v496_v60 = vadd.f32 %v754_v17, %v409_v59 }
  0xcc   :  { %512 = vst [vmem:[%s823_s3 + $0x28] sm:$0xff] %v496_v60  ;;  %v379_v61 = vpop.f32.mrf.mxu2 }
  0xcd   :  { %v428_v62 = vpop.f32.mrf.mxu3 }
  0xce   :  { %v429_v63 = vadd.f32 %v428_v62, %v379_v61  ;;  %v362_v0 = vpop.f32.mrf.mxu0 }
  0xcf   :  { %v411_v1 = vpop.f32.mrf.mxu1 }
  0xd0   :  { %v504_v2 = vadd.f32 %v754_v17, %v429_v63  ;;  %v412_v3 = vadd.f32 %v411_v1, %v362_v0 }
  0xd2   :  { %520 = vst [vmem:[%s823_s3 + $0x68] sm:$0xff] %v504_v2  ;;  %v497_v4 = vadd.f32 %v754_v17, %v412_v3 }
  0xd4   :  { %513 = vst [vmem:[%s823_s3 + $0x30] sm:$0xff] %v497_v4  ;;  %v382_v5 = vpop.f32.mrf.mxu2 }
  0xd5   :  { %v431_v6 = vpop.f32.mrf.mxu3 }
  0xd6   :  { %v432_v7 = vadd.f32 %v431_v6, %v382_v5  ;;  %v364_v8 = vpop.f32.mrf.mxu0 }
  0xd7   :  { %v413_v9 = vpop.f32.mrf.mxu1 }
  0xd8   :  { %v505_v10 = vadd.f32 %v754_v17, %v432_v7  ;;  %v414_v11 = vadd.f32 %v413_v9, %v364_v8 }
  0xda   :  { %521 = vst [vmem:[%s823_s3 + $0x70] sm:$0xff] %v505_v10  ;;  %v498_v12 = vadd.f32 %v754_v17, %v414_v11 }
  0xdc   :  { %514 = vst [vmem:[%s823_s3 + $0x38] sm:$0xff] %v498_v12  ;;  %v384_v13 = vpop.f32.mrf.mxu2 }
  0xdd   :  { %v433_v14 = vpop.f32.mrf.mxu3 }
  0xde   :  { %v434_v15 = vadd.f32 %v433_v14, %v384_v13 }
  0xe0   :  { %v506_v16 = vadd.f32 %v754_v17, %v434_v15 }
  0xe2   :  { %522 = vst [vmem:[%s823_s3 + $0x78] sm:$0xff] %v506_v16 }

// kernel: unet_forward.41
= control target key start
LH: loop header
LB: loop body
LE: loop exit
PB: predicated region body
PF: predicated region fallthrough
CT: control target
= control target key end

     0   :  { %vm14_vm0 = vcmask 253952   ;;  %vm34_vm1 = vcmask 261120   ;;  %v140_v0 = vmov 0.0   ;;  %s258_s0 = inlined_call_operand.vmem [shape: f32[128,32], index: 0, kind: input, shape index: {}]   ;;  %s259_s1 = inlined_call_operand.vmem [shape: f32[1,32], index: 1, kind: output, shape index: {0}]   ;;  %s260_s2 = inlined_call_operand.vmem [shape: f32[1,32], index: 2, kind: output, shape index: {1}]  }
   0x1   :  { %15 = vst.msk [vmem:[%s259_s1] sm:$0x1] %vm14_vm0, %v140_v0  ;;  %v17_v1 = vld [vmem:[%s258_s0] sm:$0xff]  ;;  %v18_v2 = vld [vmem:[%s258_s0 + $0x8] sm:$0xff]  ;;  %v19_v3 = vld [vmem:[%s258_s0 + $0x10] sm:$0xff] }
   0x2   :  { %v35_v4 = vsel %vm34_vm1, %v17_v1, 0.0  ;;  %v36_v5 = vsel %vm34_vm1, %v18_v2, 0.0  ;;  %v38_v6 = vsel %vm34_vm1, %v19_v3, 0.0  ;;  %v20_v7 = vld [vmem:[%s258_s0 + $0x18] sm:$0xff]  ;;  %v21_v10 = vld [vmem:[%s258_s0 + $0x20] sm:$0xff]  ;;  %v22_v13 = vld [vmem:[%s258_s0 + $0x28] sm:$0xff]  ;;  %v76_v15 = vmul.f32 %v17_v1, %v17_v1 }
   0x3   :  { %v37_v8 = vadd.f32 %v36_v5, %v35_v4  ;;  %v40_v9 = vsel %vm34_vm1, %v20_v7, 0.0  ;;  %v42_v12 = vsel %vm34_vm1, %v21_v10, 0.0  ;;  %16 = vst.msk [vmem:[%s260_s2] sm:$0x1] %vm14_vm0, %v140_v0  ;;  %v77_v16 = vmul.f32 %v18_v2, %v18_v2  ;;  %v23_v19 = vld [vmem:[%s258_s0 + $0x30] sm:$0xff]  ;;  %v24_v24 = vld [vmem:[%s258_s0 + $0x38] sm:$0xff] }
   0x4   :  { %v78_v17 = vmul.f32 %v19_v3, %v19_v3  ;;  %v44_v18 = vsel %vm34_vm1, %v22_v13, 0.0  ;;  %v79_v21 = vmul.f32 %v20_v7, %v20_v7  ;;  %v46_v22 = vsel %vm34_vm1, %v23_v19, 0.0  ;;  %v25_v31 = vld [vmem:[%s258_s0 + $0x40] sm:$0xff]  ;;  %v26_v37 = vld [vmem:[%s258_s0 + $0x48] sm:$0xff]  ;;  %v27_v43 = vld [vmem:[%s258_s0 + $0x50] sm:$0xff] }
   0x5   :  { %v39_v11 = vadd.f32 %v38_v6, %v37_v8  ;;  %v80_v23 = vmul.f32 %v21_v10, %v21_v10  ;;  %v92_v26 = vsel %vm34_vm1, %v76_v15, 0.0  ;;  %v93_v27 = vsel %vm34_vm1, %v77_v16, 0.0  ;;  %v28_v49 = vld [vmem:[%s258_s0 + $0x58] sm:$0xff]  ;;  %v29_v55 = vld [vmem:[%s258_s0 + $0x60] sm:$0xff]  ;;  %v30_v61 = vld [vmem:[%s258_s0 + $0x68] sm:$0xff] }
   0x6   :  { %v95_v28 = vsel %vm34_vm1, %v78_v17, 0.0  ;;  %v48_v29 = vsel %vm34_vm1, %v24_v24, 0.0  ;;  %v94_v30 = vadd.f32 %v93_v27, %v92_v26  ;;  %v81_v33 = vmul.f32 %v22_v13, %v22_v13  ;;  %v31_v3 = vld [vmem:[%s258_s0 + $0x70] sm:$0xff] }
   0x7   :  { %v41_v14 = vadd.f32 %v40_v9, %v39_v11  ;;  %v97_v34 = vsel %vm34_vm1, %v79_v21, 0.0  ;;  %v50_v35 = vsel %vm34_vm1, %v25_v31, 0.0  ;;  %v82_v39 = vmul.f32 %v23_v19, %v23_v19  ;;  %v32_v9 = vld [vmem:[%s258_s0 + $0x78] sm:$0xff] }
   0x8   :  { %v96_v36 = vadd.f32 %v95_v28, %v94_v30  ;;  %v99_v40 = vsel %vm34_vm1, %v80_v23, 0.0  ;;  %v52_v41 = vsel %vm34_vm1, %v26_v37, 0.0  ;;  %v83_v45 = vmul.f32 %v24_v24, %v24_v24 }
   0x9   :  { %v43_v20 = vadd.f32 %v42_v12, %v41_v14  ;;  %v101_v46 = vsel %vm34_vm1, %v81_v33, 0.0  ;;  %v54_v47 = vsel %vm34_vm1, %v27_v43, 0.0  ;;  %v84_v51 = vmul.f32 %v25_v31, %v25_v31 }
   0xa   :  { %v98_v42 = vadd.f32 %v97_v34, %v96_v36  ;;  %v103_v52 = vsel %vm34_vm1, %v82_v39, 0.0  ;;  %v56_v53 = vsel %vm34_vm1, %v28_v49, 0.0  ;;  %v85_v57 = vmul.f32 %v26_v37, %v26_v37  ;;  %v33_v36 = vld [vmem:[%s259_s1] sm:$0x1] }
   0xb   :  { %v45_v25 = vadd.f32 %v44_v18, %v43_v20  ;;  %v105_v58 = vsel %vm34_vm1, %v83_v45, 0.0  ;;  %v58_v59 = vsel %vm34_vm1, %v29_v55, 0.0  ;;  %v86_v63 = vmul.f32 %v27_v43, %v27_v43 }
   0xc   :  { %v100_v48 = vadd.f32 %v99_v40, %v98_v42  ;;  %v107_v0 = vsel %vm34_vm1, %v84_v51, 0.0  ;;  %v60_v1 = vsel %vm34_vm1, %v30_v61, 0.0  ;;  %v87_v5 = vmul.f32 %v28_v49, %v28_v49 }
   0xd   :  { %v47_v32 = vadd.f32 %v46_v22, %v45_v25  ;;  %v109_v6 = vsel %vm34_vm1, %v85_v57, 0.0  ;;  %v62_v7 = vsel %vm34_vm1, %v31_v3, 0.0  ;;  %v88_v11 = vmul.f32 %v29_v55, %v29_v55 }
   0xe   :  { %v102_v54 = vadd.f32 %v101_v46, %v100_v48  ;;  %v111_v12 = vsel %vm34_vm1, %v86_v63, 0.0  ;;  %v64_v13 = vsel %vm34_vm1, %v32_v9, 0.0  ;;  %v89_v16 = vmul.f32 %v30_v61, %v30_v61 }
   0xf   :  { %v49_v38 = vadd.f32 %v48_v29, %v47_v32  ;;  %v113_v17 = vsel %vm34_vm1, %v87_v5, 0.0  ;;  %v90_v20 = vmul.f32 %v31_v3, %v31_v3  ;;  %v115_v21 = vsel %vm34_vm1, %v88_v11, 0.0 }
  0x10   :  { %v104_v60 = vadd.f32 %v103_v52, %v102_v54  ;;  %v91_v24 = vmul.f32 %v32_v9, %v32_v9  ;;  %v117_v25 = vsel %vm34_vm1, %v89_v16, 0.0 }
  0x11   :  { %v51_v44 = vadd.f32 %v50_v35, %v49_v38  ;;  %v119_v28 = vsel %vm34_vm1, %v90_v20, 0.0 }
  0x12   :  { %v106_v2 = vadd.f32 %v105_v58, %v104_v60  ;;  %v121_v31 = vsel %vm34_vm1, %v91_v24, 0.0 }
  0x13   :  { %v53_v50 = vadd.f32 %v52_v41, %v51_v44  ;;  %v75_v44 = vld [vmem:[%s260_s2] sm:$0x1] }
  0x14   :  { %v108_v8 = vadd.f32 %v107_v0, %v106_v2 }
  0x15   :  { %v55_v56 = vadd.f32 %v54_v47, %v53_v50 }
  0x16   :  { %v110_v14 = vadd.f32 %v109_v6, %v108_v8 }
  0x17   :  { %v57_v62 = vadd.f32 %v56_v53, %v55_v56 }
  0x18   :  { %v112_v18 = vadd.f32 %v111_v12, %v110_v14 }
  0x19   :  { %v59_v4 = vadd.f32 %v58_v59, %v57_v62 }
  0x1a   :  { %v114_v22 = vadd.f32 %v113_v17, %v112_v18 }
  0x1b   :  { %v61_v10 = vadd.f32 %v60_v1, %v59_v4 }
  0x1c   :  { %v116_v26 = vadd.f32 %v115_v21, %v114_v22 }
  0x1d   :  { %v63_v15 = vadd.f32 %v62_v7, %v61_v10 }
  0x1e   :  { %v118_v29 = vadd.f32 %v117_v25, %v116_v26 }
  0x1f   :  { %v65_v19 = vadd.f32 %v64_v13, %v63_v15 }
  0x20   :  { %v120_v32 = vadd.f32 %v119_v28, %v118_v29 }
  0x21   :  { %v66_v23 = vrot.slane %v65_v19, 4 }
  0x22   :  { %v122_v34 = vadd.f32 %v121_v31, %v120_v32 }
  0x23   :  { %v67_v27 = vadd.f32 %v66_v23, %v65_v19 }
  0x24   :  { %v123_v37 = vrot.slane %v122_v34, 4 }
  0x25   :  { %v68_v30 = vrot.slane %v67_v27, 2 }
  0x26   :  { %v124_v39 = vadd.f32 %v123_v37, %v122_v34 }
  0x27   :  { %v69_v33 = vadd.f32 %v68_v30, %v67_v27 }
  0x28   :  { %v125_v41 = vrot.slane %v124_v39, 2 }
  0x29   :  { %v70_v35 = vrot.slane %v69_v33, 1 }
  0x2a   :  { %v126_v42 = vadd.f32 %v125_v41, %v124_v39 }
  0x2b   :  { %v71_v38 = vadd.f32 %v70_v35, %v69_v33 }
  0x2c   :  { %v127_v43 = vrot.slane %v126_v42, 1 }
  0x2d   :  { %v72_v40 = vadd.f32 %v71_v38, %v33_v36 }
  0x2e   :  { %v128_v45 = vadd.f32 %v127_v43, %v126_v42 }
  0x2f   :  { %74 = vst.msk [vmem:[%s259_s1] sm:$0x1] %vm14_vm0, %v72_v40 }
  0x30   :  { %v129_v46 = vadd.f32 %v128_v45, %v75_v44 }
  0x32   :  { %130 = vst.msk [vmem:[%s260_s2] sm:$0x1] %vm14_vm0, %v129_v46 }

// kernel: unet_forward.42
= control target key start
LH: loop header
LB: loop body
LE: loop exit
PB: predicated region body
PF: predicated region fallthrough
CT: control target
= control target key end

     0   :  { %vm85_vm3 = vcmask 261120   ;;  %s264_s1 = inlined_call_operand.vmem [shape: f32[1,32], index: 1, kind: input, shape index: {}]   ;;  %s265_s2 = inlined_call_operand.vmem [shape: f32[1,32], index: 2, kind: input, shape index: {}]   ;;  %s266_s0 = inlined_call_operand.vmem [shape: f32[128,32], index: 0, kind: input, shape index: {}]   ;;  %s267_s3 = inlined_call_operand.vmem [shape: f32[128,32], index: 3, kind: output, shape index: {}]  }
   0x1   :  { %v30_v0 = vld [vmem:[%s264_s1] sm:$0x1]  ;;  %v15_v14 = vld [vmem:[%s266_s0 + $0x8] sm:$0xff]  ;;  %v16_v15 = vld [vmem:[%s266_s0 + $0x10] sm:$0xff] }
   0x2   :  { %v32_v1 = vld [vmem:[%s265_s2] sm:$0x1]  ;;  %v31_v2 = vmul.f32 0.0078125, %v30_v0  ;;  %v17_v16 = vld [vmem:[%s266_s0 + $0x18] sm:$0xff]  ;;  %v19_v22 = vld [vmem:[%s266_s0 + $0x28] sm:$0xff] }
   0x3   :  { %v33_v3 = vmul.f32 0.0078125, %v32_v1  ;;  %v14_v12 = vld [vmem:[%s266_s0] sm:$0xff]  ;;  %v20_v25 = vld [vmem:[%s266_s0 + $0x30] sm:$0xff]  ;;  %v21_v28 = vld [vmem:[%s266_s0 + $0x38] sm:$0xff] }
   0x4   :  { %v34_v4 = vmul.f32 %v31_v2, %v31_v2  ;;  %v134_v11 = vperm.slane %v31_v2, 0  ;;  %v18_v18 = vld [vmem:[%s266_s0 + $0x20] sm:$0xff]  ;;  %v23_v35 = vld [vmem:[%s266_s0 + $0x48] sm:$0xff]  ;;  %v24_v38 = vld [vmem:[%s266_s0 + $0x50] sm:$0xff] }
   0x5   :  { %v22_v30 = vld [vmem:[%s266_s0 + $0x40] sm:$0xff]  ;;  %v25_v41 = vld [vmem:[%s266_s0 + $0x58] sm:$0xff]  ;;  %v27_v47 = vld [vmem:[%s266_s0 + $0x68] sm:$0xff] }
   0x6   :  { %v35_v5 = vsub.f32 %v33_v3, %v34_v4  ;;  %v39_v19 = vsub.f32 %v14_v12, %v134_v11  ;;  %v40_v20 = vsub.f32 %v15_v14, %v134_v11  ;;  %v41_v21 = vsub.f32 %v16_v15, %v134_v11  ;;  %v26_v44 = vld [vmem:[%s266_s0 + $0x60] sm:$0xff]  ;;  %v28_v50 = vld [vmem:[%s266_s0 + $0x70] sm:$0xff]  ;;  %v29_v53 = vld [vmem:[%s266_s0 + $0x78] sm:$0xff] }
   0x7   :  { %v42_v24 = vsub.f32 %v17_v16, %v134_v11  ;;  %v43_v27 = vsub.f32 %v18_v18, %v134_v11  ;;  %v44_v29 = vsub.f32 %v19_v22, %v134_v11  ;;  %v45_v34 = vsub.f32 %v20_v25, %v134_v11 }
   0x8   :  { %v55_v6 = vadd.f32 1e-05, %v35_v5  ;;  %v46_v37 = vsub.f32 %v21_v28, %v134_v11  ;;  %v47_v40 = vsub.f32 %v22_v30, %v134_v11  ;;  %v48_v43 = vsub.f32 %v23_v35, %v134_v11 }
   0x9   :  { %v49_v46 = vsub.f32 %v24_v38, %v134_v11  ;;  %v50_v49 = vsub.f32 %v25_v41, %v134_v11  ;;  %v51_v52 = vsub.f32 %v26_v44, %v134_v11  ;;  %v52_v55 = vsub.f32 %v27_v47, %v134_v11 }
   0xa   :  { %106 = vrsqrt.f32 %v55_v6  ;;  %vm62_vm0 = vweird.f32 %v55_v6  ;;  %v53_v57 = vsub.f32 %v28_v50, %v134_v11  ;;  %v54_v59 = vsub.f32 %v29_v53, %v134_v11 }
  0x10   :  { %v107_v7 = vpop.eup %106 }
  0x11   :  { %v57_v8 = vmul.f32 %v107_v7, %v55_v6  ;;  %vm63_vm1 = vweird.f32 %v107_v7 }
  0x12   :  { %vm64_vm2 = vmor %vm62_vm0, %vm63_vm1 }
  0x13   :  { %v58_v9 = vmul.f32 %v107_v7, %v57_v8 }
  0x15   :  { %v59_v10 = vmul.f32 0.5, %v58_v9 }
  0x17   :  { %v60_v13 = vsub.f32 1.5, %v59_v10 }
  0x19   :  { %v61_v17 = vmul.f32 %v107_v7, %v60_v13 }
  0x1b   :  { %v65_v23 = vsel %vm64_vm2, %v107_v7, %v61_v17 }
  0x1c   :  { %v67_v26 = vperm.slane %v65_v23, 0 }
  0x1e   :  { %v69_v31 = vmul.f32 %v67_v26, %v39_v19  ;;  %v70_v32 = vmul.f32 %v67_v26, %v40_v20  ;;  %v71_v33 = vmul.f32 %v67_v26, %v41_v21  ;;  %v72_v36 = vmul.f32 %v67_v26, %v42_v24 }
  0x1f   :  { %v73_v39 = vmul.f32 %v67_v26, %v43_v27  ;;  %v74_v42 = vmul.f32 %v67_v26, %v44_v29  ;;  %v75_v45 = vmul.f32 %v67_v26, %v45_v34  ;;  %v76_v48 = vmul.f32 %v67_v26, %v46_v37 }
  0x20   :  { %86 = vst.msk [vmem:[%s267_s3] sm:$0xff] %vm85_vm3, %v69_v31  ;;  %v77_v51 = vmul.f32 %v67_v26, %v47_v40  ;;  %v78_v54 = vmul.f32 %v67_v26, %v48_v43  ;;  %v79_v56 = vmul.f32 %v67_v26, %v49_v46  ;;  %v80_v58 = vmul.f32 %v67_v26, %v50_v49 }
  0x21   :  { %87 = vst.msk [vmem:[%s267_s3 + $0x8] sm:$0xff] %vm85_vm3, %v70_v32  ;;  %v81_v60 = vmul.f32 %v67_v26, %v51_v52  ;;  %v82_v61 = vmul.f32 %v67_v26, %v52_v55  ;;  %v83_v62 = vmul.f32 %v67_v26, %v53_v57  ;;  %v84_v63 = vmul.f32 %v67_v26, %v54_v59 }
  0x22   :  { %88 = vst.msk [vmem:[%s267_s3 + $0x10] sm:$0xff] %vm85_vm3, %v71_v33 }
  0x23   :  { %89 = vst.msk [vmem:[%s267_s3 + $0x18] sm:$0xff] %vm85_vm3, %v72_v36 }
  0x24   :  { %90 = vst.msk [vmem:[%s267_s3 + $0x20] sm:$0xff] %vm85_vm3, %v73_v39 }
  0x25   :  { %91 = vst.msk [vmem:[%s267_s3 + $0x28] sm:$0xff] %vm85_vm3, %v74_v42 }
  0x26   :  { %92 = vst.msk [vmem:[%s267_s3 + $0x30] sm:$0xff] %vm85_vm3, %v75_v45 }
  0x27   :  { %93 = vst.msk [vmem:[%s267_s3 + $0x38] sm:$0xff] %vm85_vm3, %v76_v48 }
  0x28   :  { %94 = vst.msk [vmem:[%s267_s3 + $0x40] sm:$0xff] %vm85_vm3, %v77_v51 }
  0x29   :  { %95 = vst.msk [vmem:[%s267_s3 + $0x48] sm:$0xff] %vm85_vm3, %v78_v54 }
  0x2a   :  { %96 = vst.msk [vmem:[%s267_s3 + $0x50] sm:$0xff] %vm85_vm3, %v79_v56 }
  0x2b   :  { %97 = vst.msk [vmem:[%s267_s3 + $0x58] sm:$0xff] %vm85_vm3, %v80_v58 }
  0x2c   :  { %98 = vst.msk [vmem:[%s267_s3 + $0x60] sm:$0xff] %vm85_vm3, %v81_v60 }
  0x2d   :  { %99 = vst.msk [vmem:[%s267_s3 + $0x68] sm:$0xff] %vm85_vm3, %v82_v61 }
  0x2e   :  { %100 = vst.msk [vmem:[%s267_s3 + $0x70] sm:$0xff] %vm85_vm3, %v83_v62 }
  0x2f   :  { %101 = vst.msk [vmem:[%s267_s3 + $0x78] sm:$0xff] %vm85_vm3, %v84_v63 }

// kernel: unet_forward.44
= control target key start
LH: loop header
LB: loop body
LE: loop exit
PB: predicated region body
PF: predicated region fallthrough
CT: control target
= control target key end

     0   :  { %vm14_vm0 = vcmask 516096   ;;  %vm22_vm1 = vcmask 523264   ;;  %v68_v0 = vmov 0.0   ;;  %s126_s0 = inlined_call_operand.vmem [shape: f32[32,64], index: 0, kind: input, shape index: {}]   ;;  %s127_s1 = inlined_call_operand.vmem [shape: f32[1,64], index: 1, kind: output, shape index: {0}]   ;;  %s128_s2 = inlined_call_operand.vmem [shape: f32[1,64], index: 2, kind: output, shape index: {1}]  }
   0x1   :  { %15 = vst.msk [vmem:[%s127_s1] sm:$0x1] %vm14_vm0, %v68_v0  ;;  %v17_v1 = vld [vmem:[%s126_s0] sm:$0xff]  ;;  %v18_v2 = vld [vmem:[%s126_s0 + $0x8] sm:$0xff]  ;;  %v19_v3 = vld [vmem:[%s126_s0 + $0x10] sm:$0xff] }
   0x2   :  { %v20_v4 = vld [vmem:[%s126_s0 + $0x18] sm:$0xff]  ;;  %v23_v5 = vsel %vm22_vm1, %v17_v1, 0.0  ;;  %v24_v6 = vsel %vm22_vm1, %v18_v2, 0.0  ;;  %v26_v7 = vsel %vm22_vm1, %v19_v3, 0.0  ;;  %16 = vst.msk [vmem:[%s128_s2] sm:$0x1] %vm14_vm0, %v68_v0  ;;  %v40_v8 = vmul.f32 %v17_v1, %v17_v1 }
   0x3   :  { %v25_v9 = vadd.f32 %v24_v6, %v23_v5  ;;  %v41_v10 = vmul.f32 %v18_v2, %v18_v2  ;;  %v42_v11 = vmul.f32 %v19_v3, %v19_v3  ;;  %v28_v12 = vsel %vm22_vm1, %v20_v4, 0.0 }
   0x4   :  { %v43_v13 = vmul.f32 %v20_v4, %v20_v4  ;;  %v44_v14 = vsel %vm22_vm1, %v40_v8, 0.0 }
   0x5   :  { %v27_v15 = vadd.f32 %v26_v7, %v25_v9  ;;  %v45_v16 = vsel %vm22_vm1, %v41_v10, 0.0  ;;  %v47_v17 = vsel %vm22_vm1, %v42_v11, 0.0 }
   0x6   :  { %v46_v18 = vadd.f32 %v45_v16, %v44_v14  ;;  %v49_v20 = vsel %vm22_vm1, %v43_v13, 0.0 }
   0x7   :  { %v29_v19 = vadd.f32 %v28_v12, %v27_v15 }
   0x8   :  { %v48_v21 = vadd.f32 %v47_v17, %v46_v18  ;;  %v21_v31 = vld [vmem:[%s127_s1] sm:$0x1] }
   0x9   :  { %v30_v22 = vrot.slane %v29_v19, 4  ;;  %v39_v36 = vld [vmem:[%s128_s2] sm:$0x1] }
   0xa   :  { %v50_v23 = vadd.f32 %v49_v20, %v48_v21 }
   0xb   :  { %v31_v24 = vadd.f32 %v30_v22, %v29_v19 }
   0xc   :  { %v51_v25 = vrot.slane %v50_v23, 4 }
   0xd   :  { %v32_v26 = vrot.slane %v31_v24, 2 }
   0xe   :  { %v52_v27 = vadd.f32 %v51_v25, %v50_v23 }
   0xf   :  { %v33_v28 = vadd.f32 %v32_v26, %v31_v24 }
  0x10   :  { %v53_v29 = vrot.slane %v52_v27, 2 }
  0x11   :  { %v34_v30 = vrot.slane %v33_v28, 1 }
  0x12   :  { %v54_v32 = vadd.f32 %v53_v29, %v52_v27 }
  0x13   :  { %v35_v33 = vadd.f32 %v34_v30, %v33_v28 }
  0x14   :  { %v55_v34 = vrot.slane %v54_v32, 1 }
  0x15   :  { %v36_v35 = vadd.f32 %v35_v33, %v21_v31 }
  0x16   :  { %v56_v37 = vadd.f32 %v55_v34, %v54_v32 }
  0x17   :  { %38 = vst.msk [vmem:[%s127_s1] sm:$0x1] %vm14_vm0, %v36_v35 }
  0x18   :  { %v57_v38 = vadd.f32 %v56_v37, %v39_v36 }
  0x1a   :  { %58 = vst.msk [vmem:[%s128_s2] sm:$0x1] %vm14_vm0, %v57_v38 }

// kernel: unet_forward.45
= control target key start
LH: loop header
LB: loop body
LE: loop exit
PB: predicated region body
PF: predicated region fallthrough
CT: control target
= control target key end

     0   :  { %vm49_vm3 = vcmask 523264   ;;  %s110_s1 = inlined_call_operand.vmem [shape: f32[1,64], index: 1, kind: input, shape index: {}]   ;;  %s111_s2 = inlined_call_operand.vmem [shape: f32[1,64], index: 2, kind: input, shape index: {}]   ;;  %s112_s0 = inlined_call_operand.vmem [shape: f32[32,64], index: 0, kind: input, shape index: {}]   ;;  %s113_s3 = inlined_call_operand.vmem [shape: f32[32,64], index: 3, kind: output, shape index: {}]  }
   0x1   :  { %v18_v0 = vld [vmem:[%s110_s1] sm:$0x1]  ;;  %v15_v14 = vld [vmem:[%s112_s0 + $0x8] sm:$0xff]  ;;  %v16_v15 = vld [vmem:[%s112_s0 + $0x10] sm:$0xff] }
   0x2   :  { %v20_v1 = vld [vmem:[%s111_s2] sm:$0x1]  ;;  %v19_v2 = vmul.f32 0.03125, %v18_v0  ;;  %v17_v16 = vld [vmem:[%s112_s0 + $0x18] sm:$0xff] }
   0x3   :  { %v21_v3 = vmul.f32 0.03125, %v20_v1  ;;  %v14_v12 = vld [vmem:[%s112_s0] sm:$0xff] }
   0x4   :  { %v22_v4 = vmul.f32 %v19_v2, %v19_v2  ;;  %v25_v11 = vperm.slane %v19_v2, 0 }
   0x6   :  { %v23_v5 = vsub.f32 %v21_v3, %v22_v4  ;;  %v27_v18 = vsub.f32 %v14_v12, %v25_v11  ;;  %v28_v19 = vsub.f32 %v15_v14, %v25_v11  ;;  %v29_v20 = vsub.f32 %v16_v15, %v25_v11 }
   0x7   :  { %v30_v22 = vsub.f32 %v17_v16, %v25_v11 }
   0x8   :  { %v31_v6 = vadd.f32 1e-05, %v23_v5 }
   0xa   :  { %58 = vrsqrt.f32 %v31_v6  ;;  %vm38_vm0 = vweird.f32 %v31_v6 }
  0x10   :  { %v59_v7 = vpop.eup %58 }
  0x11   :  { %v33_v8 = vmul.f32 %v59_v7, %v31_v6  ;;  %vm39_vm1 = vweird.f32 %v59_v7 }
  0x12   :  { %vm40_vm2 = vmor %vm38_vm0, %vm39_vm1 }
  0x13   :  { %v34_v9 = vmul.f32 %v59_v7, %v33_v8 }
  0x15   :  { %v35_v10 = vmul.f32 0.5, %v34_v9 }
  0x17   :  { %v36_v13 = vsub.f32 1.5, %v35_v10 }
  0x19   :  { %v37_v17 = vmul.f32 %v59_v7, %v36_v13 }
  0x1b   :  { %v41_v21 = vsel %vm40_vm2, %v59_v7, %v37_v17 }
  0x1c   :  { %v43_v23 = vperm.slane %v41_v21, 0 }
  0x1e   :  { %v45_v24 = vmul.f32 %v43_v23, %v27_v18  ;;  %v46_v25 = vmul.f32 %v43_v23, %v28_v19  ;;  %v47_v26 = vmul.f32 %v43_v23, %v29_v20  ;;  %v48_v27 = vmul.f32 %v43_v23, %v30_v22 }
  0x20   :  { %50 = vst.msk [vmem:[%s113_s3] sm:$0xff] %vm49_vm3, %v45_v24 }
  0x21   :  { %51 = vst.msk [vmem:[%s113_s3 + $0x8] sm:$0xff] %vm49_vm3, %v46_v25 }
  0x22   :  { %52 = vst.msk [vmem:[%s113_s3 + $0x10] sm:$0xff] %vm49_vm3, %v47_v26 }
  0x23   :  { %53 = vst.msk [vmem:[%s113_s3 + $0x18] sm:$0xff] %vm49_vm3, %v48_v27 }

// kernel: unet_forward.43
= control target key start
LH: loop header
LB: loop body
LE: loop exit
PB: predicated region body
PF: predicated region fallthrough
CT: control target
= control target key end

     0   :  { %s795_s1 = inlined_call_operand.vmem [shape: bf16[512,128], index: 1, kind: input, shape index: {}]   ;;  %s796_s0 = inlined_call_operand.vmem [shape: bf16[32,512], index: 0, kind: input, shape index: {}]   ;;  %s797_s2 = inlined_call_operand.vmem [shape: f32[1,128], index: 2, kind: input, shape index: {}]   ;;  %s798_s3 = inlined_call_operand.vmem [shape: f32[32,128], index: 3, kind: output, shape index: {}]  }
   0x1   :  { %v604_v0 = vld [vmem:[%s795_s1 + $0x38] sm:$0xff]  ;;  %v603_v4 = vld [vmem:[%s795_s1 + $0x30] sm:$0xff]  ;;  %v602_v8 = vld [vmem:[%s795_s1 + $0x28] sm:$0xff] }
   0x2   :  { %v612_v1 = vld [vmem:[%s795_s1 + $0x78] sm:$0xff]  ;;  %362 = vmatpush.bf16.msra.mxu0 %v604_v0  ;;  %v611_v5 = vld [vmem:[%s795_s1 + $0x70] sm:$0xff]  ;;  %v610_v9 = vld [vmem:[%s795_s1 + $0x68] sm:$0xff] }
   0x3   :  { %v620_v2 = vld [vmem:[%s795_s1 + $0xb8] sm:$0xff]  ;;  %381 = vmatpush.bf16.msra.mxu1 %v612_v1  ;;  %v619_v6 = vld [vmem:[%s795_s1 + $0xb0] sm:$0xff]  ;;  %v618_v10 = vld [vmem:[%s795_s1 + $0xa8] sm:$0xff] }
   0x4   :  { %v628_v3 = vld [vmem:[%s795_s1 + $0xf8] sm:$0xff]  ;;  %400 = vmatpush.bf16.msra.mxu2 %v620_v2  ;;  %v627_v7 = vld [vmem:[%s795_s1 + $0xf0] sm:$0xff]  ;;  %v626_v11 = vld [vmem:[%s795_s1 + $0xe8] sm:$0xff] }
   0x5   :  { %419 = vmatpush.bf16.msra.mxu3 %v628_v3  ;;  %v601_v12 = vld [vmem:[%s795_s1 + $0x20] sm:$0xff]  ;;  %v600_v17 = vld [vmem:[%s795_s1 + $0x18] sm:$0xff]  ;;  %v24_v19 = vld [vmem:[%s796_s0 + $0x10] sm:$0xff] }
   0x6   :  { %363 = vmatpush.bf16.msra.mxu0 %v603_v4  ;;  %v609_v13 = vld [vmem:[%s795_s1 + $0x60] sm:$0xff]  ;;  %v608_v18 = vld [vmem:[%s795_s1 + $0x58] sm:$0xff]  ;;  %v23_v22 = vld [vmem:[%s796_s0 + $0x8] sm:$0xff]  ;;  %v34_v25 = vunpack.c.l.bf16 %v24_v19  ;;  %v35_v29 = vunpack.c.h.bf16 %v24_v19 }
   0x7   :  { %382 = vmatpush.bf16.msra.mxu1 %v611_v5  ;;  %v617_v14 = vld [vmem:[%s795_s1 + $0xa0] sm:$0xff]  ;;  %v616_v20 = vld [vmem:[%s795_s1 + $0x98] sm:$0xff]  ;;  %v599_v27 = vld [vmem:[%s795_s1 + $0x10] sm:$0xff]  ;;  %v32_v30 = vunpack.c.l.bf16 %v23_v22  ;;  %v33_v34 = vunpack.c.h.bf16 %v23_v22 }
   0x8   :  { %401 = vmatpush.bf16.msra.mxu2 %v619_v6  ;;  %v625_v15 = vld [vmem:[%s795_s1 + $0xe0] sm:$0xff]  ;;  %v624_v21 = vld [vmem:[%s795_s1 + $0xd8] sm:$0xff]  ;;  %v607_v28 = vld [vmem:[%s795_s1 + $0x50] sm:$0xff]  ;;  %vm50_vm1 = vcmp.ge.f32.partialorder %v34_v25, 0.0  ;;  %v66_v41 = vmul.f32 0.2, %v34_v25 }
   0x9   :  { %420 = vmatpush.bf16.msra.mxu3 %v627_v7  ;;  %v22_v16 = vld [vmem:[%s796_s0] sm:$0xff]  ;;  %v25_v24 = vld [vmem:[%s796_s0 + $0x18] sm:$0xff]  ;;  %v615_v31 = vld [vmem:[%s795_s1 + $0x90] sm:$0xff]  ;;  %vm51_vm3 = vcmp.ge.f32.partialorder %v35_v29, 0.0  ;;  %v67_v43 = vmul.f32 0.2, %v35_v29 }
   0xa   :  { %364 = vmatpush.bf16.msra.mxu0 %v602_v8  ;;  %v30_v23 = vunpack.c.l.bf16 %v22_v16  ;;  %v31_v26 = vunpack.c.h.bf16 %v22_v16  ;;  %v623_v32 = vld [vmem:[%s795_s1 + $0xd0] sm:$0xff]  ;;  %v36_v33 = vunpack.c.l.bf16 %v25_v24  ;;  %v37_v35 = vunpack.c.h.bf16 %v25_v24  ;;  %v598_v36 = vld [vmem:[%s795_s1 + $0x8] sm:$0xff]  ;;  %v597_v50 = vld [vmem:[%s795_s1] sm:$0xff] }
   0xb   :  { %383 = vmatpush.bf16.msra.mxu1 %v610_v9  ;;  %v606_v37 = vld [vmem:[%s795_s1 + $0x48] sm:$0xff]  ;;  %vm48_vm4 = vcmp.ge.f32.partialorder %v32_v30, 0.0  ;;  %v64_v44 = vmul.f32 0.2, %v32_v30  ;;  %v65_v46 = vmul.f32 0.2, %v33_v34  ;;  %v82_v52 = vsel %vm50_vm1, %v34_v25, %v66_v41 }
   0xc   :  { %402 = vmatpush.bf16.msra.mxu2 %v618_v10  ;;  %vm46_vm0 = vcmp.ge.f32.partialorder %v30_v23, 0.0  ;;  %v62_v38 = vmul.f32 0.2, %v30_v23  ;;  %v614_v39 = vld [vmem:[%s795_s1 + $0x88] sm:$0xff]  ;;  %vm47_vm2 = vcmp.ge.f32.partialorder %v31_v26, 0.0  ;;  %vm52_vm5 = vcmp.ge.f32.partialorder %v36_v33, 0.0 }
   0xd   :  { %421 = vmatpush.bf16.msra.mxu3 %v626_v11  ;;  %v622_v40 = vld [vmem:[%s795_s1 + $0xc8] sm:$0xff]  ;;  %v63_v42 = vmul.f32 0.2, %v31_v26  ;;  %v68_v45 = vmul.f32 0.2, %v36_v33  ;;  %vm49_vm6 = vcmp.ge.f32.partialorder %v33_v34, 0.0  ;;  %v83_v53 = vsel %vm51_vm3, %v35_v29, %v67_v43 }
   0xe   :  { %365 = vmatpush.bf16.msra.mxu0 %v601_v12  ;;  %v69_v47 = vmul.f32 0.2, %v37_v35  ;;  %vm53_vm7 = vcmp.ge.f32.partialorder %v37_v35, 0.0  ;;  %v78_v48 = vsel %vm46_vm0, %v30_v23, %v62_v38  ;;  %v605_v51 = vld [vmem:[%s795_s1 + $0x40] sm:$0xff]  ;;  %v80_v54 = vsel %vm48_vm4, %v32_v30, %v64_v44  ;;  %v28_v63 = vld [vmem:[%s796_s0 + $0x30] sm:$0xff]  ;;  %v27_v2 = vld [vmem:[%s796_s0 + $0x28] sm:$0xff] }
   0xf   :  { %384 = vmatpush.bf16.msra.mxu1 %v609_v13  ;;  %v79_v49 = vsel %vm47_vm2, %v31_v26, %v63_v42  ;;  %v613_v55 = vld [vmem:[%s795_s1 + $0x80] sm:$0xff]  ;;  %v84_v57 = vsel %vm52_vm5, %v36_v33, %v68_v45  ;;  %v81_v58 = vsel %vm49_vm6, %v33_v34, %v65_v46  ;;  %v94_v60 = vpack.c.bf16 %v82_v52, %v78_v48  ;;  %v29_v3 = vld [vmem:[%s796_s0 + $0x38] sm:$0xff] }
  0x10   :  { %403 = vmatpush.bf16.msra.mxu2 %v617_v14  ;;  %v621_v56 = vld [vmem:[%s795_s1 + $0xc0] sm:$0xff]  ;;  %v85_v59 = vsel %vm53_vm7, %v37_v35, %v69_v47  ;;  %v95_v61 = vpack.c.bf16 %v83_v53, %v79_v49  ;;  %v96_v0 = vpack.c.bf16 %v84_v57, %v80_v54  ;;  %v42_v5 = vunpack.c.l.bf16 %v28_v63 }
  0x11   :  { %422 = vmatpush.bf16.msra.mxu3 %v625_v15  ;;  %v26_v62 = vld [vmem:[%s796_s0 + $0x20] sm:$0xff]  ;;  %v97_v1 = vpack.c.bf16 %v85_v59, %v81_v58  ;;  %v43_v7 = vunpack.c.h.bf16 %v28_v63  ;;  %v40_v8 = vunpack.c.l.bf16 %v27_v2  ;;  %v44_v9 = vunpack.c.l.bf16 %v29_v3 }
  0x12   :  { %366 = vmatpush.bf16.msra.mxu0 %v600_v17  ;;  %v38_v4 = vunpack.c.l.bf16 %v26_v62  ;;  %v39_v6 = vunpack.c.h.bf16 %v26_v62  ;;  %v41_v10 = vunpack.c.h.bf16 %v27_v2  ;;  %v45_v11 = vunpack.c.h.bf16 %v29_v3  ;;  %v629_v38 = vld [vmem:[%s797_s2] ss:$0 sm:$0xff] }
  0x13   :  { %385 = vmatpush.bf16.msra.mxu1 %v608_v18  ;;  %vm58_vm9 = vcmp.ge.f32.partialorder %v42_v5, 0.0  ;;  %v74_v13 = vmul.f32 0.2, %v42_v5  ;;  %vm59_vm11 = vcmp.ge.f32.partialorder %v43_v7, 0.0  ;;  %v75_v15 = vmul.f32 0.2, %v43_v7 }
  0x14   :  { %404 = vmatpush.bf16.msra.mxu2 %v616_v20  ;;  %vm54_vm8 = vcmp.ge.f32.partialorder %v38_v4, 0.0  ;;  %v70_v12 = vmul.f32 0.2, %v38_v4  ;;  %vm55_vm10 = vcmp.ge.f32.partialorder %v39_v6, 0.0  ;;  %v71_v14 = vmul.f32 0.2, %v39_v6 }
  0x15   :  { %423 = vmatpush.bf16.msra.mxu3 %v624_v21  ;;  %v72_v16 = vmul.f32 0.2, %v40_v8  ;;  %v76_v17 = vmul.f32 0.2, %v44_v9  ;;  %v73_v18 = vmul.f32 0.2, %v41_v10  ;;  %v90_v21 = vsel %vm58_vm9, %v42_v5, %v74_v13 }
  0x16   :  { %367 = vmatpush.bf16.msra.mxu0 %v599_v27  ;;  %v77_v19 = vmul.f32 0.2, %v45_v11  ;;  %vm56_vm12 = vcmp.ge.f32.partialorder %v40_v8, 0.0  ;;  %vm60_vm13 = vcmp.ge.f32.partialorder %v44_v9, 0.0  ;;  %vm57_vm14 = vcmp.ge.f32.partialorder %v41_v10, 0.0 }
  0x17   :  { %386 = vmatpush.bf16.msra.mxu1 %v607_v28  ;;  %vm61_vm15 = vcmp.ge.f32.partialorder %v45_v11, 0.0  ;;  %v86_v20 = vsel %vm54_vm8, %v38_v4, %v70_v12  ;;  %v87_v22 = vsel %vm55_vm10, %v39_v6, %v71_v14  ;;  %v91_v23 = vsel %vm59_vm11, %v43_v7, %v75_v15 }
  0x18   :  { %405 = vmatpush.bf16.msra.mxu2 %v615_v31  ;;  %v88_v24 = vsel %vm56_vm12, %v40_v8, %v72_v16  ;;  %v92_v25 = vsel %vm60_vm13, %v44_v9, %v76_v17  ;;  %v89_v26 = vsel %vm57_vm14, %v41_v10, %v73_v18  ;;  %v93_v27 = vsel %vm61_vm15, %v45_v11, %v77_v19 }
  0x19   :  { %424 = vmatpush.bf16.msra.mxu3 %v623_v32  ;;  %v98_v28 = vpack.c.bf16 %v90_v21, %v86_v20  ;;  %v99_v29 = vpack.c.bf16 %v91_v23, %v87_v22  ;;  %v100_v30 = vpack.c.bf16 %v92_v25, %v88_v24  ;;  %v101_v31 = vpack.c.bf16 %v93_v27, %v89_v26 }
  0x1a   :  { %368 = vmatpush.bf16.msra.mxu0 %v598_v36 }
  0x1b   :  { %387 = vmatpush.bf16.msra.mxu1 %v606_v37 }
  0x1c   :  { %406 = vmatpush.bf16.msra.mxu2 %v614_v39 }
  0x1d   :  { %425 = vmatpush.bf16.msra.mxu3 %v622_v40 }
  0x1e   :  { %369 = vmatpush.bf16.msra.mxu0 %v597_v50 }
  0x1f   :  { %388 = vmatpush.bf16.msra.mxu1 %v605_v51 }
  0x20   :  { %407 = vmatpush.bf16.msra.mxu2 %v613_v55 }
  0x21   :  { %426 = vmatpush.bf16.msra.mxu3 %v621_v56  ;;  %370 = vmatmul.bf16.vlgmr.msra.gmra.mxu0 %v94_v60 }
  0x22   :  { %389 = vmatmul.bf16.vlgmr.msra.gmra.mxu1 %v95_v61 }
  0x23   :  { %408 = vmatmul.bf16.vlgmr.msra.gmra.mxu2 %v96_v0 }
  0x24   :  { %427 = vmatmul.bf16.vlgmr.msra.gmra.mxu3 %v97_v1 }
  0x31   :  { %375 = vmatmul.bf16.gmra.mxu0 %v98_v28 }
  0x32   :  { %394 = vmatmul.bf16.gmra.mxu1 %v99_v29 }
  0x33   :  { %413 = vmatmul.bf16.gmra.mxu2 %v100_v30 }
  0x34   :  { %432 = vmatmul.bf16.gmra.mxu3 %v101_v31 }
  0x9e   :  { %v371_v32 = vpop.f32.mrf.mxu0 }
  0x9f   :  { %v390_v33 = vpop.f32.mrf.mxu1 }
  0xa0   :  { %v391_v34 = vadd.f32 %v390_v33, %v371_v32 }
  0xa6   :  { %v409_v35 = vpop.f32.mrf.mxu2  ;;  %v373_v39 = vpop.f32.mrf.mxu0 }
  0xa7   :  { %v428_v36 = vpop.f32.mrf.mxu3  ;;  %v410_v37 = vadd.f32 %v409_v35, %v391_v34  ;;  %v392_v40 = vpop.f32.mrf.mxu1 }
  0xa8   :  { %v393_v43 = vadd.f32 %v392_v40, %v373_v39 }
  0xa9   :  { %v429_v41 = vadd.f32 %v428_v36, %v410_v37 }
  0xab   :  { %v457_v42 = vadd.f32 %v629_v38, %v429_v41 }
  0xad   :  { %461 = vst [vmem:[%s798_s3] sm:$0xff] %v457_v42 }
  0xae   :  { %v411_v44 = vpop.f32.mrf.mxu2  ;;  %v376_v47 = vpop.f32.mrf.mxu0 }
  0xaf   :  { %v430_v45 = vpop.f32.mrf.mxu3  ;;  %v412_v46 = vadd.f32 %v411_v44, %v393_v43  ;;  %v395_v48 = vpop.f32.mrf.mxu1 }
  0xb0   :  { %v396_v51 = vadd.f32 %v395_v48, %v376_v47 }
  0xb1   :  { %v431_v49 = vadd.f32 %v430_v45, %v412_v46 }
  0xb3   :  { %v458_v50 = vadd.f32 %v629_v38, %v431_v49 }
  0xb5   :  { %462 = vst [vmem:[%s798_s3 + $0x8] sm:$0xff] %v458_v50 }
  0xb6   :  { %v414_v52 = vpop.f32.mrf.mxu2  ;;  %v378_v56 = vpop.f32.mrf.mxu0 }
  0xb7   :  { %v433_v53 = vpop.f32.mrf.mxu3  ;;  %v415_v54 = vadd.f32 %v414_v52, %v396_v51  ;;  %v397_v57 = vpop.f32.mrf.mxu1 }
  0xb8   :  { %v398_v59 = vadd.f32 %v397_v57, %v378_v56 }
  0xb9   :  { %v434_v55 = vadd.f32 %v433_v53, %v415_v54 }
  0xbb   :  { %v459_v58 = vadd.f32 %v629_v38, %v434_v55 }
  0xbd   :  { %463 = vst [vmem:[%s798_s3 + $0x10] sm:$0xff] %v459_v58 }
  0xbe   :  { %v416_v60 = vpop.f32.mrf.mxu2 }
  0xbf   :  { %v417_v61 = vadd.f32 %v416_v60, %v398_v59  ;;  %v435_v62 = vpop.f32.mrf.mxu3 }
  0xc1   :  { %v436_v63 = vadd.f32 %v435_v62, %v417_v61 }
  0xc3   :  { %v460_v0 = vadd.f32 %v629_v38, %v436_v63 }
  0xc5   :  { %464 = vst [vmem:[%s798_s3 + $0x18] sm:$0xff] %v460_v0 }

// kernel: unet_forward.48
= control target key start
LH: loop header
LB: loop body
LE: loop exit
PB: predicated region body
PF: predicated region fallthrough
CT: control target
= control target key end

     0   :  { %s79_s1 = inlined_call_operand.vmem [shape: f32[1,128], index: 1, kind: input, shape index: {}]   ;;  %s80_s2 = inlined_call_operand.vmem [shape: f32[1,128], index: 2, kind: input, shape index: {}]   ;;  %s81_s0 = inlined_call_operand.vmem [shape: f32[8,128], index: 0, kind: input, shape index: {}]   ;;  %s82_s3 = inlined_call_operand.vmem [shape: f32[8,128], index: 3, kind: output, shape index: {}]  }
   0x1   :  { %v15_v0 = vld [vmem:[%s79_s1] sm:$0x1] }
   0x2   :  { %v17_v1 = vld [vmem:[%s80_s2] sm:$0x1]  ;;  %v16_v2 = vmul.f32 0.125, %v15_v0 }
   0x3   :  { %v18_v3 = vmul.f32 0.125, %v17_v1  ;;  %v14_v12 = vld [vmem:[%s81_s0] sm:$0xff] }
   0x4   :  { %v19_v4 = vmul.f32 %v16_v2, %v16_v2  ;;  %v22_v11 = vperm.slane %v16_v2, 0 }
   0x6   :  { %v20_v5 = vsub.f32 %v18_v3, %v19_v4  ;;  %v24_v15 = vsub.f32 %v14_v12, %v22_v11 }
   0x8   :  { %v25_v6 = vadd.f32 1e-05, %v20_v5 }
   0xa   :  { %45 = vrsqrt.f32 %v25_v6  ;;  %vm32_vm0 = vweird.f32 %v25_v6 }
  0x10   :  { %v46_v7 = vpop.eup %45 }
  0x11   :  { %v27_v8 = vmul.f32 %v46_v7, %v25_v6  ;;  %vm33_vm1 = vweird.f32 %v46_v7 }
  0x12   :  { %vm34_vm2 = vmor %vm32_vm0, %vm33_vm1 }
  0x13   :  { %v28_v9 = vmul.f32 %v46_v7, %v27_v8 }
  0x15   :  { %v29_v10 = vmul.f32 0.5, %v28_v9 }
  0x17   :  { %v30_v13 = vsub.f32 1.5, %v29_v10 }
  0x19   :  { %v31_v14 = vmul.f32 %v46_v7, %v30_v13 }
  0x1b   :  { %v35_v16 = vsel %vm34_vm2, %v46_v7, %v31_v14 }
  0x1c   :  { %v37_v17 = vperm.slane %v35_v16, 0 }
  0x1e   :  { %v39_v18 = vmul.f32 %v37_v17, %v24_v15 }
  0x20   :  { %40 = vst [vmem:[%s82_s3] sm:$0xff] %v39_v18 }

// kernel: unet_forward.47
= control target key start
LH: loop header
LB: loop body
LE: loop exit
PB: predicated region body
PF: predicated region fallthrough
CT: control target
= control target key end

     0   :  { %v45_v0 = vmov 0.0   ;;  %s82_s1 = inlined_call_operand.vmem [shape: f32[1,128], index: 1, kind: output, shape index: {0}]   ;;  %s83_s2 = inlined_call_operand.vmem [shape: f32[1,128], index: 2, kind: output, shape index: {1}]   ;;  %s84_s0 = inlined_call_operand.vmem [shape: f32[8,128], index: 0, kind: input, shape index: {}]  }
   0x1   :  { %14 = vst [vmem:[%s82_s1] sm:$0x1] %v45_v0  ;;  %v16_v1 = vld [vmem:[%s84_s0] sm:$0xff] }
   0x2   :  { %15 = vst [vmem:[%s83_s2] sm:$0x1] %v45_v0  ;;  %v18_v2 = vrot.slane %v16_v1, 4  ;;  %v27_v3 = vmul.f32 %v16_v1, %v16_v1 }
   0x4   :  { %v19_v4 = vadd.f32 %v18_v2, %v16_v1  ;;  %v28_v5 = vrot.slane %v27_v3, 4 }
   0x6   :  { %v20_v6 = vrot.slane %v19_v4, 2  ;;  %v29_v7 = vadd.f32 %v28_v5, %v27_v3 }
   0x8   :  { %v21_v8 = vadd.f32 %v20_v6, %v19_v4  ;;  %v30_v9 = vrot.slane %v29_v7, 2  ;;  %v17_v12 = vld [vmem:[%s82_s1] sm:$0x1] }
   0x9   :  { %v26_v15 = vld [vmem:[%s83_s2] sm:$0x1] }
   0xa   :  { %v22_v10 = vrot.slane %v21_v8, 1  ;;  %v31_v11 = vadd.f32 %v30_v9, %v29_v7 }
   0xc   :  { %v23_v13 = vadd.f32 %v22_v10, %v21_v8  ;;  %v32_v14 = vrot.slane %v31_v11, 1 }
   0xe   :  { %v24_v16 = vadd.f32 %v23_v13, %v17_v12  ;;  %v33_v17 = vadd.f32 %v32_v14, %v31_v11 }
  0x10   :  { %25 = vst [vmem:[%s82_s1] sm:$0x1] %v24_v16  ;;  %v34_v18 = vadd.f32 %v33_v17, %v26_v15 }
  0x12   :  { %35 = vst [vmem:[%s83_s2] sm:$0x1] %v34_v18 }

// kernel: unet_forward.46
= control target key start
LH: loop header
LB: loop body
LE: loop exit
PB: predicated region body
PF: predicated region fallthrough
CT: control target
= control target key end

     0   :  { %s1329_s1 = inlined_call_operand.vmem [shape: bf16[1024,128], index: 1, kind: input, shape index: {}]   ;;  %s1330_s0 = inlined_call_operand.vmem [shape: bf16[16,1024], index: 0, kind: input, shape index: {}]   ;;  %s1331_s2 = inlined_call_operand.vmem [shape: f32[1,128], index: 2, kind: input, shape index: {}]   ;;  %s1332_s3 = inlined_call_operand.vmem [shape: f32[16,128], index: 3, kind: output, shape index: {}]  }
   0x1   :  { %v1010_v0 = vld [vmem:[%s1329_s1 + $0x38] sm:$0xff]  ;;  %v1009_v4 = vld [vmem:[%s1329_s1 + $0x30] sm:$0xff]  ;;  %v1008_v8 = vld [vmem:[%s1329_s1 + $0x28] sm:$0xff] }
   0x2   :  { %v1018_v1 = vld [vmem:[%s1329_s1 + $0x78] sm:$0xff]  ;;  %614 = vmatpush.bf16.msra.mxu0 %v1010_v0  ;;  %v1017_v5 = vld [vmem:[%s1329_s1 + $0x70] sm:$0xff]  ;;  %v1016_v9 = vld [vmem:[%s1329_s1 + $0x68] sm:$0xff] }
   0x3   :  { %v1026_v2 = vld [vmem:[%s1329_s1 + $0xb8] sm:$0xff]  ;;  %628 = vmatpush.bf16.msra.mxu1 %v1018_v1  ;;  %v1025_v6 = vld [vmem:[%s1329_s1 + $0xb0] sm:$0xff]  ;;  %v1024_v10 = vld [vmem:[%s1329_s1 + $0xa8] sm:$0xff] }
   0x4   :  { %v1034_v3 = vld [vmem:[%s1329_s1 + $0xf8] sm:$0xff]  ;;  %642 = vmatpush.bf16.msra.mxu2 %v1026_v2  ;;  %v1033_v7 = vld [vmem:[%s1329_s1 + $0xf0] sm:$0xff]  ;;  %v1032_v11 = vld [vmem:[%s1329_s1 + $0xe8] sm:$0xff] }
   0x5   :  { %656 = vmatpush.bf16.msra.mxu3 %v1034_v3  ;;  %v1007_v12 = vld [vmem:[%s1329_s1 + $0x20] sm:$0xff]  ;;  %v1006_v16 = vld [vmem:[%s1329_s1 + $0x18] sm:$0xff]  ;;  %v21_v18 = vld [vmem:[%s1330_s0 + $0x8] sm:$0xff] }
   0x6   :  { %615 = vmatpush.bf16.msra.mxu0 %v1009_v4  ;;  %v1015_v13 = vld [vmem:[%s1329_s1 + $0x60] sm:$0xff]  ;;  %v1014_v17 = vld [vmem:[%s1329_s1 + $0x58] sm:$0xff]  ;;  %v25_v19 = vld [vmem:[%s1330_s0 + $0x28] sm:$0xff]  ;;  %v30_v23 = vunpack.c.l.bf16 %v21_v18  ;;  %v31_v28 = vunpack.c.h.bf16 %v21_v18 }
   0x7   :  { %629 = vmatpush.bf16.msra.mxu1 %v1017_v5  ;;  %v1023_v14 = vld [vmem:[%s1329_s1 + $0xa0] sm:$0xff]  ;;  %v1022_v20 = vld [vmem:[%s1329_s1 + $0x98] sm:$0xff]  ;;  %v38_v24 = vunpack.c.l.bf16 %v25_v19  ;;  %v1005_v26 = vld [vmem:[%s1329_s1 + $0x10] sm:$0xff]  ;;  %v39_v29 = vunpack.c.h.bf16 %v25_v19 }
   0x8   :  { %643 = vmatpush.bf16.msra.mxu2 %v1025_v6  ;;  %v1031_v15 = vld [vmem:[%s1329_s1 + $0xe0] sm:$0xff]  ;;  %v1030_v21 = vld [vmem:[%s1329_s1 + $0xd8] sm:$0xff]  ;;  %v1013_v27 = vld [vmem:[%s1329_s1 + $0x50] sm:$0xff]  ;;  %vm46_vm0 = vcmp.ge.f32.partialorder %v30_v23, 0.0  ;;  %v62_v40 = vmul.f32 0.2, %v30_v23 }
   0x9   :  { %657 = vmatpush.bf16.msra.mxu3 %v1033_v7  ;;  %v20_v22 = vld [vmem:[%s1330_s0] sm:$0xff]  ;;  %v1021_v30 = vld [vmem:[%s1329_s1 + $0x90] sm:$0xff]  ;;  %v1004_v33 = vld [vmem:[%s1329_s1 + $0x8] sm:$0xff]  ;;  %vm54_vm1 = vcmp.ge.f32.partialorder %v38_v24, 0.0  ;;  %v70_v41 = vmul.f32 0.2, %v38_v24 }
   0xa   :  { %616 = vmatpush.bf16.msra.mxu0 %v1008_v8  ;;  %v24_v25 = vld [vmem:[%s1330_s0 + $0x20] sm:$0xff]  ;;  %v1029_v31 = vld [vmem:[%s1329_s1 + $0xd0] sm:$0xff]  ;;  %v28_v32 = vunpack.c.l.bf16 %v20_v22  ;;  %v29_v35 = vunpack.c.h.bf16 %v20_v22  ;;  %v1012_v36 = vld [vmem:[%s1329_s1 + $0x48] sm:$0xff]  ;;  %vm47_vm2 = vcmp.ge.f32.partialorder %v31_v28, 0.0  ;;  %vm55_vm3 = vcmp.ge.f32.partialorder %v39_v29, 0.0 }
   0xb   :  { %630 = vmatpush.bf16.msra.mxu1 %v1016_v9  ;;  %v36_v34 = vunpack.c.l.bf16 %v24_v25  ;;  %v1020_v37 = vld [vmem:[%s1329_s1 + $0x88] sm:$0xff]  ;;  %v37_v39 = vunpack.c.h.bf16 %v24_v25  ;;  %v63_v42 = vmul.f32 0.2, %v31_v28  ;;  %v71_v43 = vmul.f32 0.2, %v39_v29  ;;  %v1003_v48 = vld [vmem:[%s1329_s1] sm:$0xff] }
   0xc   :  { %644 = vmatpush.bf16.msra.mxu2 %v1024_v10  ;;  %v1028_v38 = vld [vmem:[%s1329_s1 + $0xc8] sm:$0xff]  ;;  %v60_v44 = vmul.f32 0.2, %v28_v32  ;;  %v61_v46 = vmul.f32 0.2, %v29_v35  ;;  %vm44_vm4 = vcmp.ge.f32.partialorder %v28_v32, 0.0  ;;  %v78_v50 = vsel %vm46_vm0, %v30_v23, %v62_v40 }
   0xd   :  { %658 = vmatpush.bf16.msra.mxu3 %v1032_v11  ;;  %v68_v45 = vmul.f32 0.2, %v36_v34  ;;  %v69_v47 = vmul.f32 0.2, %v37_v39  ;;  %vm52_vm5 = vcmp.ge.f32.partialorder %v36_v34, 0.0  ;;  %vm45_vm6 = vcmp.ge.f32.partialorder %v29_v35, 0.0 }
   0xe   :  { %617 = vmatpush.bf16.msra.mxu0 %v1007_v12  ;;  %vm53_vm7 = vcmp.ge.f32.partialorder %v37_v39, 0.0  ;;  %v1011_v49 = vld [vmem:[%s1329_s1 + $0x40] sm:$0xff]  ;;  %v86_v53 = vsel %vm54_vm1, %v38_v24, %v70_v41  ;;  %v79_v54 = vsel %vm47_vm2, %v31_v28, %v63_v42  ;;  %v87_v55 = vsel %vm55_vm3, %v39_v29, %v71_v43  ;;  %v1042_v56 = vld [vmem:[%s1329_s1 + $0x138] sm:$0xff]  ;;  %v1041_v4 = vld [vmem:[%s1329_s1 + $0x130] sm:$0xff] }
   0xf   :  { %631 = vmatpush.bf16.msra.mxu1 %v1015_v13  ;;  %v1019_v51 = vld [vmem:[%s1329_s1 + $0x80] sm:$0xff]  ;;  %v1050_v57 = vld [vmem:[%s1329_s1 + $0x178] sm:$0xff]  ;;  %v76_v58 = vsel %vm44_vm4, %v28_v32, %v60_v44  ;;  %v84_v59 = vsel %vm52_vm5, %v36_v34, %v68_v45  ;;  %v77_v60 = vsel %vm45_vm6, %v29_v35, %v61_v46  ;;  %v85_v61 = vsel %vm53_vm7, %v37_v39, %v69_v47  ;;  %v1049_v5 = vld [vmem:[%s1329_s1 + $0x170] sm:$0xff] }
  0x10   :  { %645 = vmatpush.bf16.msra.mxu2 %v1023_v14  ;;  %v1027_v52 = vld [vmem:[%s1329_s1 + $0xc0] sm:$0xff]  ;;  %v1058_v62 = vld [vmem:[%s1329_s1 + $0x1b8] sm:$0xff]  ;;  %v94_v0 = vpack.c.bf16 %v86_v53, %v78_v50  ;;  %v95_v1 = vpack.c.bf16 %v87_v55, %v79_v54  ;;  %v92_v2 = vpack.c.bf16 %v84_v59, %v76_v58  ;;  %v93_v3 = vpack.c.bf16 %v85_v61, %v77_v60  ;;  %v1057_v6 = vld [vmem:[%s1329_s1 + $0x1b0] sm:$0xff] }
  0x11   :  { %659 = vmatpush.bf16.msra.mxu3 %v1031_v15  ;;  %v1066_v63 = vld [vmem:[%s1329_s1 + $0x1f8] sm:$0xff]  ;;  %v1065_v7 = vld [vmem:[%s1329_s1 + $0x1f0] sm:$0xff]  ;;  %v1040_v8 = vld [vmem:[%s1329_s1 + $0x128] sm:$0xff] }
  0x12   :  { %618 = vmatpush.bf16.msra.mxu0 %v1006_v16  ;;  %v1048_v9 = vld [vmem:[%s1329_s1 + $0x168] sm:$0xff]  ;;  %v1039_v12 = vld [vmem:[%s1329_s1 + $0x120] sm:$0xff]  ;;  %v22_v16 = vld [vmem:[%s1330_s0 + $0x10] sm:$0xff] }
  0x13   :  { %632 = vmatpush.bf16.msra.mxu1 %v1014_v17  ;;  %v1056_v10 = vld [vmem:[%s1329_s1 + $0x1a8] sm:$0xff]  ;;  %v1047_v13 = vld [vmem:[%s1329_s1 + $0x160] sm:$0xff]  ;;  %v1038_v17 = vld [vmem:[%s1329_s1 + $0x118] sm:$0xff]  ;;  %v32_v23 = vunpack.c.l.bf16 %v22_v16 }
  0x14   :  { %646 = vmatpush.bf16.msra.mxu2 %v1022_v20  ;;  %v1064_v11 = vld [vmem:[%s1329_s1 + $0x1e8] sm:$0xff]  ;;  %v1055_v14 = vld [vmem:[%s1329_s1 + $0x1a0] sm:$0xff]  ;;  %v1046_v18 = vld [vmem:[%s1329_s1 + $0x158] sm:$0xff] }
  0x15   :  { %660 = vmatpush.bf16.msra.mxu3 %v1030_v21  ;;  %v1063_v15 = vld [vmem:[%s1329_s1 + $0x1e0] sm:$0xff]  ;;  %v26_v19 = vld [vmem:[%s1330_s0 + $0x30] sm:$0xff]  ;;  %v1054_v20 = vld [vmem:[%s1329_s1 + $0x198] sm:$0xff]  ;;  %vm48_vm8 = vcmp.ge.f32.partialorder %v32_v23, 0.0 }
  0x16   :  { %619 = vmatpush.bf16.msra.mxu0 %v1005_v26  ;;  %v1062_v21 = vld [vmem:[%s1329_s1 + $0x1d8] sm:$0xff]  ;;  %v40_v25 = vunpack.c.l.bf16 %v26_v19  ;;  %v33_v26 = vunpack.c.h.bf16 %v22_v16  ;;  %v1045_v28 = vld [vmem:[%s1329_s1 + $0x150] sm:$0xff]  ;;  %v41_v29 = vunpack.c.h.bf16 %v26_v19  ;;  %v1052_v39 = vld [vmem:[%s1329_s1 + $0x188] sm:$0xff] }
  0x17   :  { %633 = vmatpush.bf16.msra.mxu1 %v1013_v27  ;;  %v23_v22 = vld [vmem:[%s1330_s0 + $0x18] sm:$0xff]  ;;  %v1037_v27 = vld [vmem:[%s1329_s1 + $0x110] sm:$0xff]  ;;  %v1060_v40 = vld [vmem:[%s1329_s1 + $0x1c8] sm:$0xff] }
  0x18   :  { %647 = vmatpush.bf16.msra.mxu2 %v1021_v30  ;;  %v27_v24 = vld [vmem:[%s1330_s0 + $0x38] sm:$0xff]  ;;  %v34_v30 = vunpack.c.l.bf16 %v23_v22  ;;  %v1061_v32 = vld [vmem:[%s1329_s1 + $0x1d0] sm:$0xff]  ;;  %v35_v34 = vunpack.c.h.bf16 %v23_v22  ;;  %vm56_vm9 = vcmp.ge.f32.partialorder %v40_v25, 0.0  ;;  %v72_v41 = vmul.f32 0.2, %v40_v25  ;;  %v1035_v50 = vld [vmem:[%s1329_s1 + $0x100] sm:$0xff] }
  0x19   :  { %661 = vmatpush.bf16.msra.mxu3 %v1029_v31  ;;  %v1053_v31 = vld [vmem:[%s1329_s1 + $0x190] sm:$0xff]  ;;  %v43_v35 = vunpack.c.h.bf16 %v27_v24  ;;  %vm49_vm10 = vcmp.ge.f32.partialorder %v33_v26, 0.0  ;;  %v65_v42 = vmul.f32 0.2, %v33_v26  ;;  %vm57_vm11 = vcmp.ge.f32.partialorder %v41_v29, 0.0  ;;  %v1051_v55 = vld [vmem:[%s1329_s1 + $0x180] sm:$0xff] }
  0x1a   :  { %620 = vmatpush.bf16.msra.mxu0 %v1004_v33  ;;  %v42_v33 = vunpack.c.l.bf16 %v27_v24  ;;  %v73_v43 = vmul.f32 0.2, %v41_v29  ;;  %vm50_vm12 = vcmp.ge.f32.partialorder %v34_v30, 0.0  ;;  %v66_v44 = vmul.f32 0.2, %v34_v30 }
  0x1b   :  { %634 = vmatpush.bf16.msra.mxu1 %v1012_v36  ;;  %v1036_v36 = vld [vmem:[%s1329_s1 + $0x108] sm:$0xff]  ;;  %v67_v46 = vmul.f32 0.2, %v35_v34  ;;  %v75_v47 = vmul.f32 0.2, %v43_v35  ;;  %vm51_vm14 = vcmp.ge.f32.partialorder %v35_v34, 0.0 }
  0x1c   :  { %648 = vmatpush.bf16.msra.mxu2 %v1020_v37  ;;  %v1044_v37 = vld [vmem:[%s1329_s1 + $0x148] sm:$0xff]  ;;  %v74_v45 = vmul.f32 0.2, %v42_v33  ;;  %vm58_vm13 = vcmp.ge.f32.partialorder %v42_v33, 0.0  ;;  %vm59_vm15 = vcmp.ge.f32.partialorder %v43_v35, 0.0  ;;  %v89_v53 = vsel %vm57_vm11, %v41_v29, %v73_v43 }
  0x1d   :  { %662 = vmatpush.bf16.msra.mxu3 %v1028_v38  ;;  %v64_v38 = vmul.f32 0.2, %v32_v23  ;;  %v82_v54 = vsel %vm50_vm12, %v34_v30, %v66_v44  ;;  %v83_v58 = vsel %vm51_vm14, %v35_v34, %v67_v46  ;;  %v91_v59 = vsel %vm59_vm15, %v43_v35, %v75_v47 }
  0x1e   :  { %621 = vmatpush.bf16.msra.mxu0 %v1003_v48 }
  0x1f   :  { %635 = vmatpush.bf16.msra.mxu1 %v1011_v49  ;;  %v80_v48 = vsel %vm48_vm8, %v32_v23, %v64_v38  ;;  %v88_v49 = vsel %vm56_vm9, %v40_v25, %v72_v41 }
  0x20   :  { %649 = vmatpush.bf16.msra.mxu2 %v1019_v51  ;;  %v1043_v51 = vld [vmem:[%s1329_s1 + $0x140] sm:$0xff]  ;;  %v96_v60 = vpack.c.bf16 %v88_v49, %v80_v48 }
  0x21   :  { %663 = vmatpush.bf16.msra.mxu3 %v1027_v52  ;;  %622 = vmatmul.bf16.vlgmr.msra.gmra.mxu0 %v92_v2  ;;  %v81_v52 = vsel %vm49_vm10, %v33_v26, %v65_v42 }
  0x22   :  { %670 = vmatpush.bf16.msrb.mxu0 %v1042_v56  ;;  %636 = vmatmul.bf16.vlgmr.msra.gmra.mxu1 %v93_v3  ;;  %v1059_v56 = vld [vmem:[%s1329_s1 + $0x1c0] sm:$0xff]  ;;  %v97_v61 = vpack.c.bf16 %v89_v53, %v81_v52 }
  0x23   :  { %684 = vmatpush.bf16.msrb.mxu1 %v1050_v57  ;;  %650 = vmatmul.bf16.vlgmr.msra.gmra.mxu2 %v94_v0  ;;  %v90_v57 = vsel %vm58_vm13, %v42_v33, %v74_v45 }
  0x24   :  { %698 = vmatpush.bf16.msrb.mxu2 %v1058_v62  ;;  %664 = vmatmul.bf16.vlgmr.msra.gmra.mxu3 %v95_v1  ;;  %v98_v62 = vpack.c.bf16 %v90_v57, %v82_v54 }
  0x25   :  { %712 = vmatpush.bf16.msrb.mxu3 %v1066_v63  ;;  %v99_v63 = vpack.c.bf16 %v91_v59, %v83_v58 }
  0x26   :  { %671 = vmatpush.bf16.msrb.mxu0 %v1041_v4 }
  0x27   :  { %685 = vmatpush.bf16.msrb.mxu1 %v1049_v5 }
  0x28   :  { %699 = vmatpush.bf16.msrb.mxu2 %v1057_v6 }
  0x29   :  { %713 = vmatpush.bf16.msrb.mxu3 %v1065_v7 }
  0x2a   :  { %672 = vmatpush.bf16.msrb.mxu0 %v1040_v8 }
  0x2b   :  { %686 = vmatpush.bf16.msrb.mxu1 %v1048_v9 }
  0x2c   :  { %700 = vmatpush.bf16.msrb.mxu2 %v1056_v10 }
  0x2d   :  { %714 = vmatpush.bf16.msrb.mxu3 %v1064_v11 }
  0x2e   :  { %673 = vmatpush.bf16.msrb.mxu0 %v1039_v12 }
  0x2f   :  { %687 = vmatpush.bf16.msrb.mxu1 %v1047_v13 }
  0x30   :  { %701 = vmatpush.bf16.msrb.mxu2 %v1055_v14 }
  0x31   :  { %715 = vmatpush.bf16.msrb.mxu3 %v1063_v15 }
  0x32   :  { %674 = vmatpush.bf16.msrb.mxu0 %v1038_v17 }
  0x33   :  { %688 = vmatpush.bf16.msrb.mxu1 %v1046_v18 }
  0x34   :  { %702 = vmatpush.bf16.msrb.mxu2 %v1054_v20 }
  0x35   :  { %716 = vmatpush.bf16.msrb.mxu3 %v1062_v21  ;;  %v1067_v21 = vld [vmem:[%s1331_s2] ss:$0 sm:$0xff] }
  0x36   :  { %675 = vmatpush.bf16.msrb.mxu0 %v1037_v27 }
  0x37   :  { %689 = vmatpush.bf16.msrb.mxu1 %v1045_v28 }
  0x38   :  { %703 = vmatpush.bf16.msrb.mxu2 %v1053_v31 }
  0x39   :  { %717 = vmatpush.bf16.msrb.mxu3 %v1061_v32 }
  0x3a   :  { %676 = vmatpush.bf16.msrb.mxu0 %v1036_v36 }
  0x3b   :  { %690 = vmatpush.bf16.msrb.mxu1 %v1044_v37 }
  0x3c   :  { %704 = vmatpush.bf16.msrb.mxu2 %v1052_v39 }
  0x3d   :  { %718 = vmatpush.bf16.msrb.mxu3 %v1060_v40 }
  0x3e   :  { %677 = vmatpush.bf16.msrb.mxu0 %v1035_v50 }
  0x3f   :  { %691 = vmatpush.bf16.msrb.mxu1 %v1043_v51 }
  0x40   :  { %705 = vmatpush.bf16.msrb.mxu2 %v1051_v55 }
  0x41   :  { %719 = vmatpush.bf16.msrb.mxu3 %v1059_v56  ;;  %678 = vmatmul.bf16.vlgmr.msrb.gmra.mxu0 %v96_v60 }
  0x42   :  { %692 = vmatmul.bf16.vlgmr.msrb.gmra.mxu1 %v97_v61 }
  0x43   :  { %706 = vmatmul.bf16.vlgmr.msrb.gmra.mxu2 %v98_v62 }
  0x44   :  { %720 = vmatmul.bf16.vlgmr.msrb.gmra.mxu3 %v99_v63 }
  0x9e   :  { %v623_v0 = vpop.f32.mrf.mxu0 }
  0x9f   :  { %v637_v1 = vpop.f32.mrf.mxu1 }
  0xa0   :  { %v638_v4 = vadd.f32 %v637_v1, %v623_v0 }
  0xa6   :  { %v651_v2 = vpop.f32.mrf.mxu2  ;;  %v625_v5 = vpop.f32.mrf.mxu0 }
  0xa7   :  { %v665_v3 = vpop.f32.mrf.mxu3  ;;  %v639_v6 = vpop.f32.mrf.mxu1  ;;  %v652_v7 = vadd.f32 %v651_v2, %v638_v4 }
  0xa8   :  { %v640_v11 = vadd.f32 %v639_v6, %v625_v5 }
  0xa9   :  { %v666_v10 = vadd.f32 %v665_v3, %v652_v7 }
  0xae   :  { %v653_v8 = vpop.f32.mrf.mxu2 }
  0xaf   :  { %v667_v9 = vpop.f32.mrf.mxu3  ;;  %v654_v15 = vadd.f32 %v653_v8, %v640_v11 }
  0xb1   :  { %v668_v19 = vadd.f32 %v667_v9, %v654_v15 }
  0xbe   :  { %v679_v12 = vpop.f32.mrf.mxu0 }
  0xbf   :  { %v680_v13 = vadd.f32 %v679_v12, %v666_v10  ;;  %v693_v14 = vpop.f32.mrf.mxu1 }
  0xc1   :  { %v694_v16 = vadd.f32 %v693_v14, %v680_v13 }
  0xc6   :  { %v707_v17 = vpop.f32.mrf.mxu2  ;;  %v681_v22 = vpop.f32.mrf.mxu0 }
  0xc7   :  { %v721_v18 = vpop.f32.mrf.mxu3  ;;  %v708_v20 = vadd.f32 %v707_v17, %v694_v16  ;;  %v682_v24 = vadd.f32 %v681_v22, %v668_v19  ;;  %v695_v26 = vpop.f32.mrf.mxu1 }
  0xc9   :  { %v722_v23 = vadd.f32 %v721_v18, %v708_v20  ;;  %v696_v27 = vadd.f32 %v695_v26, %v682_v24 }
  0xcb   :  { %v739_v25 = vadd.f32 %v1067_v21, %v722_v23 }
  0xcd   :  { %741 = vst [vmem:[%s1332_s3] sm:$0xff] %v739_v25 }
  0xce   :  { %v709_v28 = vpop.f32.mrf.mxu2 }
  0xcf   :  { %v710_v29 = vadd.f32 %v709_v28, %v696_v27  ;;  %v723_v30 = vpop.f32.mrf.mxu3 }
  0xd1   :  { %v724_v31 = vadd.f32 %v723_v30, %v710_v29 }
  0xd3   :  { %v740_v32 = vadd.f32 %v1067_v21, %v724_v31 }
  0xd5   :  { %742 = vst [vmem:[%s1332_s3 + $0x8] sm:$0xff] %v740_v32 }

// kernel: unet_forward.49
= control target key start
LH: loop header
LB: loop body
LE: loop exit
PB: predicated region body
PF: predicated region fallthrough
CT: control target
= control target key end

     0   :  { %s1569_s12 = smov 0   ;;  %s1571_s13 = smov 0   ;;  %s1737_s0 = inlined_call_operand.vmem [shape: bf16[16,2048], index: 0, kind: input, shape index: {}]   ;;  %s1738_s1 = inlined_call_operand.vmem [shape: bf16[2048,128], index: 1, kind: input, shape index: {}]   ;;  %s1739_s2 = inlined_call_operand.vmem [shape: f32[1,128], index: 2, kind: input, shape index: {}]   ;;  %s1740_s3 = inlined_call_operand.vmem [shape: f32[16,128], index: 3, kind: output, shape index: {}]  }
   0x1   :  { %s1573_s14 = smov 0   ;;  %s1575_s15 = smov 0  }
   0x2   :  { %s1577_s16 = smov 0  }
   0x3 LB: > { %s25_s17 = sadd.s32 1, %s1542_s15  ;;  %p48_p1 = scmp.ne.s32.totalorder %s1534_s13, %s1530_s12  ;;  %s1546_s16 = sphi %s1577_s16, %s13_s16   ;;  %s1542_s15 = sphi %s1575_s15, %s1744_s15   ;;  %s1538_s14 = sphi %s1573_s14, %s1743_s14   ;;  %s1534_s13 = sphi %s1571_s13, %s1742_s13   ;;  %s1530_s12 = sphi %s1569_s12, %s1741_s12  }
   0x4   : > { %p26_p0 = scmp.ge.s32.totalorder %s25_s17, 2  ;;  %p49_p2 = scmp.eq.s32.totalorder %s1546_s16, 0 }
   0x5   : > { %s41_s19 = sadd.s32 1, %s1534_s13  ;;  %p1131_p5 = scmp.ge.s32.totalorder %s1546_s16, 2 }
   0x6   : > { %s1746_s17 = smov (%p26_p0, %s25_s17), 0  ;;  %p50_p3 = por %p49_p2, %p48_p1 }
   0x7   : > { %s37_s18 = ssub.s32 %s1542_s15, %s1746_s17  ;;  %162 = sbr.rel (%p1131_p5) target bundleno = 24 (0x18), region = 20 }
   0x8   : > { %p39_p4 = scmp.eq.s32.totalorder %s37_s18, 0 }
   0xa   : > { %s1604_s20 = scalar_select %p39_p4, %s1534_s13, %s41_s19  }
   0xc   : > { %165 = sbr.rel (!%p50_p3) target bundleno = 24 (0x18), region = 24  ;;  %s167_s21 = sand.u32 (%p50_p3), 1, %s1534_s13  }
   0xd   : > { %s1401_s22 = sshll.u32 (%p50_p3), %s1542_s15, 5  ;;  %s1132_s23 = sshll.u32 (%p50_p3), %s167_s21, 6 }
   0xe   : > { %s175_s26 = scalar_lea.vmem (%p50_p3), %s1737_s0, %s1401_s22  ;;  %s169_s27 = scalar_lea.vmem (%p50_p3), [#allocation3], %s1132_s23 }
   0xf   : > { %v188_v0 = vld [vmem:[%s175_s26] sm:$0xff] (%p50_p3)  ;;  %v190_v1 = vld [vmem:[%s175_s26 + $0x8] sm:$0xff] (%p50_p3)  ;;  %v192_v2 = vld [vmem:[%s175_s26 + $0x10] sm:$0xff] (%p50_p3) }
  0x10   : > { %189 = vst [vmem:[%s169_s27] sm:$0xff] (%p50_p3), %v188_v0  ;;  %v194_v3 = vld [vmem:[%s175_s26 + $0x18] sm:$0xff] (%p50_p3)  ;;  %v196_v4 = vld [vmem:[%s175_s26 + $0x40] sm:$0xff] (%p50_p3)  ;;  %v198_v5 = vld [vmem:[%s175_s26 + $0x48] sm:$0xff] (%p50_p3) }
  0x11   : > { %191 = vst [vmem:[%s169_s27 + $0x8] sm:$0xff] %v190_v1  ;;  %v200_v6 = vld [vmem:[%s175_s26 + $0x50] sm:$0xff]  ;;  %v202_v7 = vld [vmem:[%s175_s26 + $0x58] sm:$0xff] }
  0x12   : > { %193 = vst [vmem:[%s169_s27 + $0x10] sm:$0xff] %v192_v2 }
  0x13   : > { %195 = vst [vmem:[%s169_s27 + $0x18] sm:$0xff] %v194_v3 }
  0x14   : > { %197 = vst [vmem:[%s169_s27 + $0x20] sm:$0xff] %v196_v4 }
  0x15   : > { %199 = vst [vmem:[%s169_s27 + $0x28] sm:$0xff] %v198_v5 }
  0x16   : > { %201 = vst [vmem:[%s169_s27 + $0x30] sm:$0xff] %v200_v6 }
  0x17   : > { %203 = vst [vmem:[%s169_s27 + $0x38] sm:$0xff] %v202_v7 }
  0x18 PF: > { %p1135_p6 = scmp.ge.s32.totalorder %s1546_s16, 1  ;;  %p220_p7 = scmp.lt.s32.totalorder %s1546_s16, 3 }
  0x1a   : > { %p221_p8 = pnand %p1135_p6, %p220_p7 }
  0x1b   : > { %s227_s28 = sand.u32 (!%p221_p8), 1, %s1530_s12   ;;  %s1137_s29 = sshll.u32 (!%p221_p8), %s1538_s14, 7 }
  0x1c   : > { %224 = sbr.rel (%p221_p8) target bundleno = 264 (0x108), region = 51  ;;  %s1136_s30 = sshll.u32 (!%p221_p8), %s227_s28, 6 }
  0x1d   : > { %p267_p9 = scmp.lt.s32.totalorder (!%p221_p8), %s1137_s29, 255  ;;  %s1621_s8 = scalar_lea.vmem (!%p221_p8), [#allocation3], %s1136_s30 }
  0x1e   : > { %p1139_p10 = scmp.ne.s32.totalorder (!%p221_p8), %s1538_s14, 0 }
  0x21   : > { %s1748_s29 = smov (!%p267_p9, %s1137_s29), 255  ;;  %290 = sbr.rel (%p1139_p10) target bundleno = 41 (0x29), region = 59 }
  0x22   : > { %s1138_s4 = sshll.u32 %s1748_s29, 2 }
  0x23   : > { %s1619_s7 = scalar_lea.vmem %s1738_s1, %s1138_s4 }
  0x26   : > { %v1548_v8 = vmov 0.0  }
  0x27   : > { %291 = vst [vmem:[#allocation2] sm:$0xff] %v1548_v8 }
  0x28   : > { %292 = vst [vmem:[#allocation2 + $0x8] sm:$0xff] %v1548_v8 }
  0x29 PF: > { %v1409_v9 = vld [vmem:[%s1619_s7 + $0x38] sm:$0xff]  ;;  %v1408_v13 = vld [vmem:[%s1619_s7 + $0x30] sm:$0xff]  ;;  %v1407_v17 = vld [vmem:[%s1619_s7 + $0x28] sm:$0xff]  ;;  %p1396_p11 = scmp.ne.s32.totalorder %s1538_s14, 1 }
  0x2a   : > { %v1417_v10 = vld [vmem:[%s1619_s7 + $0x78] sm:$0xff]  ;;  %887 = vmatpush.bf16.msra.mxu0 %v1409_v9  ;;  %v1416_v14 = vld [vmem:[%s1619_s7 + $0x70] sm:$0xff]  ;;  %v1415_v18 = vld [vmem:[%s1619_s7 + $0x68] sm:$0xff] }
  0x2b   : > { %v1425_v11 = vld [vmem:[%s1619_s7 + $0xb8] sm:$0xff]  ;;  %901 = vmatpush.bf16.msra.mxu1 %v1417_v10  ;;  %v1424_v15 = vld [vmem:[%s1619_s7 + $0xb0] sm:$0xff]  ;;  %v1423_v19 = vld [vmem:[%s1619_s7 + $0xa8] sm:$0xff] }
  0x2c   : > { %v1433_v12 = vld [vmem:[%s1619_s7 + $0xf8] sm:$0xff]  ;;  %915 = vmatpush.bf16.msra.mxu2 %v1425_v11  ;;  %v1432_v16 = vld [vmem:[%s1619_s7 + $0xf0] sm:$0xff]  ;;  %v1431_v20 = vld [vmem:[%s1619_s7 + $0xe8] sm:$0xff] }
  0x2d   : > { %929 = vmatpush.bf16.msra.mxu3 %v1433_v12  ;;  %v1406_v21 = vld [vmem:[%s1619_s7 + $0x20] sm:$0xff]  ;;  %v1405_v25 = vld [vmem:[%s1619_s7 + $0x18] sm:$0xff]  ;;  %v293_v31 = vld [vmem:[%s1621_s8] sm:$0xff] }
  0x2e   : > { %888 = vmatpush.bf16.msra.mxu0 %v1408_v13  ;;  %v1414_v22 = vld [vmem:[%s1619_s7 + $0x60] sm:$0xff]  ;;  %v1413_v26 = vld [vmem:[%s1619_s7 + $0x58] sm:$0xff]  ;;  %v297_v34 = vld [vmem:[%s1621_s8 + $0x20] sm:$0xff]  ;;  %v301_v41 = vunpack.c.l.bf16 %v293_v31  ;;  %v302_v44 = vunpack.c.h.bf16 %v293_v31 }
  0x2f   : > { %902 = vmatpush.bf16.msra.mxu1 %v1416_v14  ;;  %v1422_v23 = vld [vmem:[%s1619_s7 + $0xa0] sm:$0xff]  ;;  %v294_v27 = vld [vmem:[%s1621_s8 + $0x8] sm:$0xff]  ;;  %v1404_v35 = vld [vmem:[%s1619_s7 + $0x10] sm:$0xff]  ;;  %v309_v43 = vunpack.c.l.bf16 %v297_v34  ;;  %v310_v48 = vunpack.c.h.bf16 %v297_v34 }
  0x30   : > { %916 = vmatpush.bf16.msra.mxu2 %v1424_v15  ;;  %v1430_v24 = vld [vmem:[%s1619_s7 + $0xe0] sm:$0xff]  ;;  %v298_v28 = vld [vmem:[%s1621_s8 + $0x28] sm:$0xff]  ;;  %v303_v32 = vunpack.c.l.bf16 %v294_v27  ;;  %v1412_v36 = vld [vmem:[%s1619_s7 + $0x50] sm:$0xff]  ;;  %v304_v37 = vunpack.c.h.bf16 %v294_v27  ;;  %v333_v53 = vmul.f32 0.2, %v301_v41  ;;  %vm317_vm4 = vcmp.ge.f32.partialorder %v301_v41, 0.0 }
  0x31   : > { %930 = vmatpush.bf16.msra.mxu3 %v1432_v16  ;;  %v1421_v29 = vld [vmem:[%s1619_s7 + $0x98] sm:$0xff]  ;;  %v311_v33 = vunpack.c.l.bf16 %v298_v28  ;;  %v312_v38 = vunpack.c.h.bf16 %v298_v28  ;;  %v1420_v39 = vld [vmem:[%s1619_s7 + $0x90] sm:$0xff]  ;;  %v1403_v42 = vld [vmem:[%s1619_s7 + $0x8] sm:$0xff]  ;;  %v341_v54 = vmul.f32 0.2, %v309_v43  ;;  %vm325_vm5 = vcmp.ge.f32.partialorder %v309_v43, 0.0 }
  0x32   : > { %889 = vmatpush.bf16.msra.mxu0 %v1407_v17  ;;  %v1429_v30 = vld [vmem:[%s1619_s7 + $0xd8] sm:$0xff]  ;;  %v1428_v40 = vld [vmem:[%s1619_s7 + $0xd0] sm:$0xff]  ;;  %v1411_v45 = vld [vmem:[%s1619_s7 + $0x48] sm:$0xff]  ;;  %vm319_vm0 = vcmp.ge.f32.partialorder %v303_v32, 0.0  ;;  %v335_v49 = vmul.f32 0.2, %v303_v32  ;;  %v349_v3 = vsel %vm317_vm4, %v301_v41, %v333_v53 }
  0x33   : > { %903 = vmatpush.bf16.msra.mxu1 %v1415_v18  ;;  %v1419_v46 = vld [vmem:[%s1619_s7 + $0x88] sm:$0xff]  ;;  %vm327_vm1 = vcmp.ge.f32.partialorder %v311_v33, 0.0  ;;  %v343_v50 = vmul.f32 0.2, %v311_v33  ;;  %vm320_vm2 = vcmp.ge.f32.partialorder %v304_v37, 0.0  ;;  %vm328_vm3 = vcmp.ge.f32.partialorder %v312_v38, 0.0 }
  0x34   : > { %917 = vmatpush.bf16.msra.mxu2 %v1423_v19  ;;  %v1427_v47 = vld [vmem:[%s1619_s7 + $0xc8] sm:$0xff]  ;;  %v336_v51 = vmul.f32 0.2, %v304_v37  ;;  %v344_v52 = vmul.f32 0.2, %v312_v38  ;;  %vm318_vm6 = vcmp.ge.f32.partialorder %v302_v44, 0.0  ;;  %v351_v59 = vsel %vm319_vm0, %v303_v32, %v335_v49 }
  0x35   : > { %931 = vmatpush.bf16.msra.mxu3 %v1431_v20  ;;  %v334_v55 = vmul.f32 0.2, %v302_v44  ;;  %v342_v56 = vmul.f32 0.2, %v310_v48  ;;  %vm326_vm7 = vcmp.ge.f32.partialorder %v310_v48, 0.0  ;;  %v1402_v57 = vld [vmem:[%s1619_s7] sm:$0xff]  ;;  %v359_v62 = vsel %vm327_vm1, %v311_v33, %v343_v50 }
  0x36   : > { %890 = vmatpush.bf16.msra.mxu0 %v1406_v21  ;;  %v1410_v58 = vld [vmem:[%s1619_s7 + $0x40] sm:$0xff]  ;;  %v352_v63 = vsel %vm320_vm2, %v304_v37, %v336_v51  ;;  %v360_v0 = vsel %vm328_vm3, %v312_v38, %v344_v52  ;;  %v1441_v1 = vld [vmem:[%s1619_s7 + $0x138] sm:$0xff]  ;;  %v357_v4 = vsel %vm325_vm5, %v309_v43, %v341_v54  ;;  %v367_v9 = vpack.c.bf16 %v359_v62, %v351_v59  ;;  %v1440_v13 = vld [vmem:[%s1619_s7 + $0x130] sm:$0xff] }
  0x37   : > { %904 = vmatpush.bf16.msra.mxu1 %v1414_v22  ;;  %v1418_v60 = vld [vmem:[%s1619_s7 + $0x80] sm:$0xff]  ;;  %v1449_v2 = vld [vmem:[%s1619_s7 + $0x178] sm:$0xff]  ;;  %v350_v5 = vsel %vm318_vm6, %v302_v44, %v334_v55  ;;  %v358_v6 = vsel %vm326_vm7, %v310_v48, %v342_v56  ;;  %v368_v10 = vpack.c.bf16 %v360_v0, %v352_v63  ;;  %v365_v11 = vpack.c.bf16 %v357_v4, %v349_v3  ;;  %v1448_v14 = vld [vmem:[%s1619_s7 + $0x170] sm:$0xff] }
  0x38   : > { %918 = vmatpush.bf16.msra.mxu2 %v1422_v23  ;;  %v1426_v61 = vld [vmem:[%s1619_s7 + $0xc0] sm:$0xff]  ;;  %v1457_v7 = vld [vmem:[%s1619_s7 + $0x1b8] sm:$0xff]  ;;  %v366_v12 = vpack.c.bf16 %v358_v6, %v350_v5  ;;  %v1456_v15 = vld [vmem:[%s1619_s7 + $0x1b0] sm:$0xff] }
  0x39   : > { %932 = vmatpush.bf16.msra.mxu3 %v1430_v24  ;;  %v1465_v8 = vld [vmem:[%s1619_s7 + $0x1f8] sm:$0xff]  ;;  %v1464_v16 = vld [vmem:[%s1619_s7 + $0x1f0] sm:$0xff]  ;;  %v1439_v17 = vld [vmem:[%s1619_s7 + $0x128] sm:$0xff] }
  0x3a   : > { %891 = vmatpush.bf16.msra.mxu0 %v1405_v25  ;;  %v1447_v18 = vld [vmem:[%s1619_s7 + $0x168] sm:$0xff]  ;;  %v1438_v21 = vld [vmem:[%s1619_s7 + $0x120] sm:$0xff]  ;;  %v1445_v27 = vld [vmem:[%s1619_s7 + $0x158] sm:$0xff] }
  0x3b   : > { %905 = vmatpush.bf16.msra.mxu1 %v1413_v26  ;;  %v1455_v19 = vld [vmem:[%s1619_s7 + $0x1a8] sm:$0xff]  ;;  %v1446_v22 = vld [vmem:[%s1619_s7 + $0x160] sm:$0xff]  ;;  %v1437_v26 = vld [vmem:[%s1619_s7 + $0x118] sm:$0xff] }
  0x3c   : > { %919 = vmatpush.bf16.msra.mxu2 %v1421_v29  ;;  %v1463_v20 = vld [vmem:[%s1619_s7 + $0x1e8] sm:$0xff]  ;;  %v1454_v23 = vld [vmem:[%s1619_s7 + $0x1a0] sm:$0xff]  ;;  %v1453_v29 = vld [vmem:[%s1619_s7 + $0x198] sm:$0xff] }
  0x3d   : > { %933 = vmatpush.bf16.msra.mxu3 %v1429_v30  ;;  %v1462_v24 = vld [vmem:[%s1619_s7 + $0x1e0] sm:$0xff]  ;;  %v1461_v30 = vld [vmem:[%s1619_s7 + $0x1d8] sm:$0xff]  ;;  %v296_v31 = vld [vmem:[%s1621_s8 + $0x18] sm:$0xff] }
  0x3e   : > { %892 = vmatpush.bf16.msra.mxu0 %v1404_v35  ;;  %v295_v25 = vld [vmem:[%s1621_s8 + $0x10] sm:$0xff]  ;;  %v300_v33 = vld [vmem:[%s1621_s8 + $0x38] sm:$0xff]  ;;  %v1444_v37 = vld [vmem:[%s1619_s7 + $0x150] sm:$0xff]  ;;  %v308_v43 = vunpack.c.h.bf16 %v296_v31 }
  0x3f   : > { %906 = vmatpush.bf16.msra.mxu1 %v1412_v36  ;;  %v299_v28 = vld [vmem:[%s1621_s8 + $0x30] sm:$0xff]  ;;  %v305_v32 = vunpack.c.l.bf16 %v295_v25  ;;  %v306_v35 = vunpack.c.h.bf16 %v295_v25  ;;  %v1436_v36 = vld [vmem:[%s1619_s7 + $0x110] sm:$0xff]  ;;  %v316_v44 = vunpack.c.h.bf16 %v300_v33  ;;  %v1451_v48 = vld [vmem:[%s1619_s7 + $0x188] sm:$0xff] }
  0x40   : > { %920 = vmatpush.bf16.msra.mxu2 %v1420_v39  ;;  %v313_v34 = vunpack.c.l.bf16 %v299_v28  ;;  %v314_v38 = vunpack.c.h.bf16 %v299_v28  ;;  %v307_v39 = vunpack.c.l.bf16 %v296_v31  ;;  %v1460_v41 = vld [vmem:[%s1619_s7 + $0x1d0] sm:$0xff]  ;;  %v1459_v49 = vld [vmem:[%s1619_s7 + $0x1c8] sm:$0xff]  ;;  %v340_v55 = vmul.f32 0.2, %v308_v43  ;;  %v1434_v59 = vld [vmem:[%s1619_s7 + $0x100] sm:$0xff] }
  0x41   : > { %934 = vmatpush.bf16.msra.mxu3 %v1428_v40  ;;  %v1452_v40 = vld [vmem:[%s1619_s7 + $0x190] sm:$0xff]  ;;  %vm321_vm8 = vcmp.ge.f32.partialorder %v305_v32, 0.0  ;;  %vm322_vm10 = vcmp.ge.f32.partialorder %v306_v35, 0.0  ;;  %v338_v51 = vmul.f32 0.2, %v306_v35  ;;  %vm324_vm14 = vcmp.ge.f32.partialorder %v308_v43, 0.0 }
  0x42   : > { %893 = vmatpush.bf16.msra.mxu0 %v1403_v42  ;;  %v315_v42 = vunpack.c.l.bf16 %v300_v33  ;;  %vm329_vm9 = vcmp.ge.f32.partialorder %v313_v34, 0.0  ;;  %v345_v50 = vmul.f32 0.2, %v313_v34  ;;  %vm330_vm11 = vcmp.ge.f32.partialorder %v314_v38, 0.0  ;;  %v1450_v0 = vld [vmem:[%s1619_s7 + $0x180] sm:$0xff] }
  0x43   : > { %907 = vmatpush.bf16.msra.mxu1 %v1411_v45  ;;  %v1435_v45 = vld [vmem:[%s1619_s7 + $0x108] sm:$0xff]  ;;  %v346_v52 = vmul.f32 0.2, %v314_v38  ;;  %vm323_vm12 = vcmp.ge.f32.partialorder %v307_v39, 0.0  ;;  %v339_v53 = vmul.f32 0.2, %v307_v39  ;;  %v356_v3 = vsel %vm324_vm14, %v308_v43, %v340_v55 }
  0x44   : > { %921 = vmatpush.bf16.msra.mxu2 %v1419_v46  ;;  %v1443_v46 = vld [vmem:[%s1619_s7 + $0x148] sm:$0xff]  ;;  %v347_v54 = vmul.f32 0.2, %v315_v42  ;;  %v348_v56 = vmul.f32 0.2, %v316_v44  ;;  %vm331_vm13 = vcmp.ge.f32.partialorder %v315_v42, 0.0 }
  0x45   : > { %935 = vmatpush.bf16.msra.mxu3 %v1427_v47  ;;  %v337_v47 = vmul.f32 0.2, %v305_v32  ;;  %vm332_vm15 = vcmp.ge.f32.partialorder %v316_v44, 0.0  ;;  %v362_v62 = vsel %vm330_vm11, %v314_v38, %v346_v52  ;;  %v355_v63 = vsel %vm323_vm12, %v307_v39, %v339_v53  ;;  %v373_v31 = vld [vmem:[#allocation2] sm:$0xff]  ;;  %v374_v39 = vld [vmem:[#allocation2 + $0x8] sm:$0xff] }
  0x46   : > { %894 = vmatpush.bf16.msra.mxu0 %v1402_v57  ;;  %v364_v4 = vsel %vm332_vm15, %v316_v44, %v348_v56 }
  0x47   : > { %908 = vmatpush.bf16.msra.mxu1 %v1410_v58  ;;  %v353_v57 = vsel %vm321_vm8, %v305_v32, %v337_v47  ;;  %v361_v58 = vsel %vm329_vm9, %v313_v34, %v345_v50 }
  0x48   : > { %922 = vmatpush.bf16.msra.mxu2 %v1418_v60  ;;  %v1442_v60 = vld [vmem:[%s1619_s7 + $0x140] sm:$0xff]  ;;  %v369_v5 = vpack.c.bf16 %v361_v58, %v353_v57 }
  0x49   : > { %936 = vmatpush.bf16.msra.mxu3 %v1426_v61  ;;  %895 = vmatmul.bf16.vlgmr.msra.gmra.mxu0 %v365_v11  ;;  %v354_v61 = vsel %vm322_vm10, %v306_v35, %v338_v51 }
  0x4a   : > { %943 = vmatpush.bf16.msrb.mxu0 %v1441_v1  ;;  %909 = vmatmul.bf16.vlgmr.msra.gmra.mxu1 %v366_v12  ;;  %v1458_v1 = vld [vmem:[%s1619_s7 + $0x1c0] sm:$0xff]  ;;  %v370_v6 = vpack.c.bf16 %v362_v62, %v354_v61 }
  0x4b   : > { %957 = vmatpush.bf16.msrb.mxu1 %v1449_v2  ;;  %923 = vmatmul.bf16.vlgmr.msra.gmra.mxu2 %v367_v9  ;;  %v363_v2 = vsel %vm331_vm13, %v315_v42, %v347_v54 }
  0x4c   : > { %971 = vmatpush.bf16.msrb.mxu2 %v1457_v7  ;;  %937 = vmatmul.bf16.vlgmr.msra.gmra.mxu3 %v368_v10  ;;  %v371_v7 = vpack.c.bf16 %v363_v2, %v355_v63 }
  0x4d   : > { %985 = vmatpush.bf16.msrb.mxu3 %v1465_v8  ;;  %v372_v8 = vpack.c.bf16 %v364_v4, %v356_v3 }
  0x4e   : > { %944 = vmatpush.bf16.msrb.mxu0 %v1440_v13 }
  0x4f   : > { %958 = vmatpush.bf16.msrb.mxu1 %v1448_v14 }
  0x50   : > { %972 = vmatpush.bf16.msrb.mxu2 %v1456_v15 }
  0x51   : > { %986 = vmatpush.bf16.msrb.mxu3 %v1464_v16 }
  0x52   : > { %945 = vmatpush.bf16.msrb.mxu0 %v1439_v17 }
  0x53   : > { %959 = vmatpush.bf16.msrb.mxu1 %v1447_v18 }
  0x54   : > { %973 = vmatpush.bf16.msrb.mxu2 %v1455_v19 }
  0x55   : > { %987 = vmatpush.bf16.msrb.mxu3 %v1463_v20 }
  0x56   : > { %946 = vmatpush.bf16.msrb.mxu0 %v1438_v21 }
  0x57   : > { %960 = vmatpush.bf16.msrb.mxu1 %v1446_v22 }
  0x58   : > { %974 = vmatpush.bf16.msrb.mxu2 %v1454_v23 }
  0x59   : > { %988 = vmatpush.bf16.msrb.mxu3 %v1462_v24 }
  0x5a   : > { %947 = vmatpush.bf16.msrb.mxu0 %v1437_v26 }
  0x5b   : > { %961 = vmatpush.bf16.msrb.mxu1 %v1445_v27 }
  0x5c   : > { %975 = vmatpush.bf16.msrb.mxu2 %v1453_v29 }
  0x5d   : > { %989 = vmatpush.bf16.msrb.mxu3 %v1461_v30 }
  0x5e   : > { %948 = vmatpush.bf16.msrb.mxu0 %v1436_v36 }
  0x5f   : > { %962 = vmatpush.bf16.msrb.mxu1 %v1444_v37 }
  0x60   : > { %976 = vmatpush.bf16.msrb.mxu2 %v1452_v40 }
  0x61   : > { %990 = vmatpush.bf16.msrb.mxu3 %v1460_v41 }
  0x62   : > { %949 = vmatpush.bf16.msrb.mxu0 %v1435_v45 }
  0x63   : > { %963 = vmatpush.bf16.msrb.mxu1 %v1443_v46 }
  0x64   : > { %977 = vmatpush.bf16.msrb.mxu2 %v1451_v48 }
  0x65   : > { %991 = vmatpush.bf16.msrb.mxu3 %v1459_v49 }
  0x66   : > { %950 = vmatpush.bf16.msrb.mxu0 %v1434_v59 }
  0x67   : > { %964 = vmatpush.bf16.msrb.mxu1 %v1442_v60 }
  0x68   : > { %978 = vmatpush.bf16.msrb.mxu2 %v1450_v0 }
  0x69   : > { %992 = vmatpush.bf16.msrb.mxu3 %v1458_v1  ;;  %951 = vmatmul.bf16.vlgmr.msrb.gmra.mxu0 %v369_v5 }
  0x6a   : > { %965 = vmatmul.bf16.vlgmr.msrb.gmra.mxu1 %v370_v6 }
  0x6b   : > { %979 = vmatmul.bf16.vlgmr.msrb.gmra.mxu2 %v371_v7 }
  0x6c   : > { %993 = vmatmul.bf16.vlgmr.msrb.gmra.mxu3 %v372_v8 }
  0xc6   : > { %v896_v9 = vpop.f32.mrf.mxu0 }
  0xc7   : > { %v910_v10 = vpop.f32.mrf.mxu1 }
  0xc8   : > { %v911_v13 = vadd.f32 %v910_v10, %v896_v9 }
  0xce   : > { %v924_v11 = vpop.f32.mrf.mxu2  ;;  %v898_v14 = vpop.f32.mrf.mxu0 }
  0xcf   : > { %v938_v12 = vpop.f32.mrf.mxu3  ;;  %v912_v15 = vpop.f32.mrf.mxu1  ;;  %v925_v16 = vadd.f32 %v924_v11, %v911_v13 }
  0xd0   : > { %v913_v20 = vadd.f32 %v912_v15, %v898_v14 }
  0xd1   : > { %v939_v19 = vadd.f32 %v938_v12, %v925_v16 }
  0xd6   : > { %v926_v17 = vpop.f32.mrf.mxu2 }
  0xd7   : > { %v940_v18 = vpop.f32.mrf.mxu3  ;;  %v927_v24 = vadd.f32 %v926_v17, %v913_v20 }
  0xd9   : > { %v941_v28 = vadd.f32 %v940_v18, %v927_v24 }
  0xe6   : > { %v952_v21 = vpop.f32.mrf.mxu0 }
  0xe7   : > { %v953_v22 = vadd.f32 %v952_v21, %v939_v19  ;;  %v966_v23 = vpop.f32.mrf.mxu1 }
  0xe9   : > { %v967_v25 = vadd.f32 %v966_v23, %v953_v22 }
  0xee   : > { %v980_v26 = vpop.f32.mrf.mxu2  ;;  %v954_v30 = vpop.f32.mrf.mxu0 }
  0xef   : > { %v994_v27 = vpop.f32.mrf.mxu3  ;;  %v981_v29 = vadd.f32 %v980_v26, %v967_v25  ;;  %v955_v33 = vadd.f32 %v954_v30, %v941_v28  ;;  %v968_v35 = vpop.f32.mrf.mxu1 }
  0xf1   : > { %v995_v32 = vadd.f32 %v994_v27, %v981_v29  ;;  %v969_v36 = vadd.f32 %v968_v35, %v955_v33 }
  0xf3   : > { %v999_v34 = vadd.f32 %v995_v32, %v373_v31 }
  0xf5   : > { %1001 = vst [vmem:[#allocation2] sm:$0xff] %v999_v34 }
  0xf6   : > { %v982_v37 = vpop.f32.mrf.mxu2 }
  0xf7   : > { %v983_v38 = vadd.f32 %v982_v37, %v969_v36  ;;  %v996_v40 = vpop.f32.mrf.mxu3 }
  0xf9   : > { %v997_v41 = vadd.f32 %v996_v40, %v983_v38  ;;  %1006 = sbr.rel (%p1396_p11) target bundleno = 264 (0x108), region = 63 }
  0xfb   : > { %v1000_v42 = vadd.f32 %v997_v41, %v374_v39 }
  0xfd   : > { %1002 = vst [vmem:[#allocation2 + $0x8] sm:$0xff] %v1000_v42 }
  0xfe   : > { %v1007_v43 = vld [vmem:[#allocation2] sm:$0xff] }
  0xff   : > { %v1507_v44 = vld [vmem:[%s1739_s2] ss:$0 sm:$0xff] }
 0x100   : > { %v1013_v46 = vadd.f32 %v1507_v44, %v1007_v43 }
 0x102   : > { %1015 = vst [vmem:[%s1740_s3] sm:$0xff] %v1013_v46 }
 0x104   : > { %v1008_v45 = vld [vmem:[#allocation2 + $0x8] sm:$0xff] }
 0x105   : > { %v1014_v47 = vadd.f32 %v1507_v44, %v1008_v45 }
 0x107   : > { %1016 = vst [vmem:[%s1740_s3 + $0x8] sm:$0xff] %v1014_v47 }
 0x108 PF: > { %s13_s16 = sadd.s32 1, %s1546_s16   ;;  %s1741_s12 = smov %s1534_s13 }
 0x109   : > { %p10_p12 = scmp.ge.s32.totalorder %s13_s16, 4   ;;  %s1742_s13 = smov %s1604_s20 }
 0x10a   : > { %s1743_s14 = smov %s1542_s15  ;;  %s1744_s15 = smov %s1746_s17 }
 0x10b   :  { %12 = sbr.rel (!%p10_p12) target bundleno = 3 (0x3), region = 104 }

// kernel: unet_forward.50
= control target key start
LH: loop header
LB: loop body
LE: loop exit
PB: predicated region body
PF: predicated region fallthrough
CT: control target
= control target key end

     0   :  { %s832_s1 = inlined_call_operand.vmem [shape: bf16[640,128], index: 1, kind: input, shape index: {}]   ;;  %s833_s0 = inlined_call_operand.vmem [shape: bf16[16,640], index: 0, kind: input, shape index: {}]   ;;  %s834_s2 = inlined_call_operand.vmem [shape: f32[1,128], index: 2, kind: input, shape index: {}]   ;;  %s835_s3 = inlined_call_operand.vmem [shape: f32[16,128], index: 3, kind: output, shape index: {}]  }
   0x1   :  { %v631_v0 = vld [vmem:[%s832_s1 + $0x38] sm:$0xff]  ;;  %v630_v4 = vld [vmem:[%s832_s1 + $0x30] sm:$0xff]  ;;  %v629_v8 = vld [vmem:[%s832_s1 + $0x28] sm:$0xff] }
   0x2   :  { %v647_v1 = vld [vmem:[%s832_s1 + $0xb8] sm:$0xff]  ;;  %373 = vmatpush.bf16.msra.mxu0 %v631_v0  ;;  %v646_v5 = vld [vmem:[%s832_s1 + $0xb0] sm:$0xff]  ;;  %v645_v9 = vld [vmem:[%s832_s1 + $0xa8] sm:$0xff] }
   0x3   :  { %v655_v2 = vld [vmem:[%s832_s1 + $0xf8] sm:$0xff]  ;;  %401 = vmatpush.bf16.msra.mxu2 %v647_v1  ;;  %v654_v6 = vld [vmem:[%s832_s1 + $0xf0] sm:$0xff]  ;;  %v653_v10 = vld [vmem:[%s832_s1 + $0xe8] sm:$0xff] }
   0x4   :  { %v639_v3 = vld [vmem:[%s832_s1 + $0x78] sm:$0xff]  ;;  %415 = vmatpush.bf16.msra.mxu3 %v655_v2  ;;  %v638_v7 = vld [vmem:[%s832_s1 + $0x70] sm:$0xff]  ;;  %v637_v11 = vld [vmem:[%s832_s1 + $0x68] sm:$0xff] }
   0x5   :  { %387 = vmatpush.bf16.msra.mxu1 %v639_v3  ;;  %v628_v12 = vld [vmem:[%s832_s1 + $0x20] sm:$0xff]  ;;  %v627_v16 = vld [vmem:[%s832_s1 + $0x18] sm:$0xff]  ;;  %v626_v20 = vld [vmem:[%s832_s1 + $0x10] sm:$0xff] }
   0x6   :  { %374 = vmatpush.bf16.msra.mxu0 %v630_v4  ;;  %v644_v13 = vld [vmem:[%s832_s1 + $0xa0] sm:$0xff]  ;;  %v643_v17 = vld [vmem:[%s832_s1 + $0x98] sm:$0xff]  ;;  %v642_v21 = vld [vmem:[%s832_s1 + $0x90] sm:$0xff] }
   0x7   :  { %402 = vmatpush.bf16.msra.mxu2 %v646_v5  ;;  %v652_v14 = vld [vmem:[%s832_s1 + $0xe0] sm:$0xff]  ;;  %v651_v18 = vld [vmem:[%s832_s1 + $0xd8] sm:$0xff]  ;;  %v21_v22 = vld [vmem:[%s833_s0 + $0x8] sm:$0xff] }
   0x8   :  { %416 = vmatpush.bf16.msra.mxu3 %v654_v6  ;;  %v636_v15 = vld [vmem:[%s832_s1 + $0x60] sm:$0xff]  ;;  %v635_v19 = vld [vmem:[%s832_s1 + $0x58] sm:$0xff]  ;;  %v650_v26 = vld [vmem:[%s832_s1 + $0xd0] sm:$0xff]  ;;  %v28_v28 = vunpack.c.l.bf16 %v21_v22  ;;  %v29_v34 = vunpack.c.h.bf16 %v21_v22 }
   0x9   :  { %388 = vmatpush.bf16.msra.mxu1 %v638_v7  ;;  %v24_v23 = vld [vmem:[%s833_s0 + $0x1c] sm:$0xff]  ;;  %v23_v25 = vld [vmem:[%s833_s0 + $0x14] sm:$0xff]  ;;  %v625_v32 = vld [vmem:[%s832_s1 + $0x8] sm:$0xff] }
   0xa   :  { %375 = vmatpush.bf16.msra.mxu0 %v629_v8  ;;  %v20_v24 = vld [vmem:[%s833_s0] sm:$0xff]  ;;  %v634_v27 = vld [vmem:[%s832_s1 + $0x50] sm:$0xff]  ;;  %v33_v29 = vunpack.c.l.bf16 %v24_v23  ;;  %v31_v31 = vunpack.c.l.bf16 %v23_v25  ;;  %v641_v33 = vld [vmem:[%s832_s1 + $0x88] sm:$0xff]  ;;  %v34_v35 = vunpack.c.h.bf16 %v24_v23  ;;  %v32_v39 = vunpack.c.h.bf16 %v23_v25 }
   0xb   :  { %403 = vmatpush.bf16.msra.mxu2 %v645_v9  ;;  %v26_v30 = vunpack.c.l.bf16 %v20_v24  ;;  %v649_v36 = vld [vmem:[%s832_s1 + $0xc8] sm:$0xff]  ;;  %v27_v38 = vunpack.c.h.bf16 %v20_v24  ;;  %v38_v40 = vmax.f32 %v28_v28, 0.0  ;;  %v624_v44 = vld [vmem:[%s832_s1] sm:$0xff]  ;;  %v39_v46 = vmax.f32 %v29_v34, 0.0  ;;  %v663_v48 = vld [vmem:[%s832_s1 + $0x138] sm:$0xff] }
   0xc   :  { %417 = vmatpush.bf16.msra.mxu3 %v653_v10  ;;  %v633_v37 = vld [vmem:[%s832_s1 + $0x48] sm:$0xff]  ;;  %v43_v41 = vmax.f32 %v33_v29, 0.0  ;;  %v41_v43 = vmax.f32 %v31_v31, 0.0  ;;  %v640_v45 = vld [vmem:[%s832_s1 + $0x80] sm:$0xff]  ;;  %v44_v47 = vmax.f32 %v34_v35, 0.0  ;;  %v42_v51 = vmax.f32 %v32_v39, 0.0 }
   0xd   :  { %389 = vmatpush.bf16.msra.mxu1 %v637_v11  ;;  %v36_v42 = vmax.f32 %v26_v30, 0.0  ;;  %v648_v49 = vld [vmem:[%s832_s1 + $0xc0] sm:$0xff]  ;;  %v37_v50 = vmax.f32 %v27_v38, 0.0  ;;  %v662_v56 = vld [vmem:[%s832_s1 + $0x130] sm:$0xff]  ;;  %v661_v58 = vld [vmem:[%s832_s1 + $0x128] sm:$0xff] }
   0xe   :  { %376 = vmatpush.bf16.msra.mxu0 %v628_v12  ;;  %v632_v52 = vld [vmem:[%s832_s1 + $0x40] sm:$0xff]  ;;  %v48_v53 = vpack.c.bf16 %v43_v41, %v38_v40  ;;  %v49_v55 = vpack.c.bf16 %v44_v47, %v39_v46  ;;  %v659_v60 = vld [vmem:[%s832_s1 + $0x118] sm:$0xff]  ;;  %v658_v61 = vld [vmem:[%s832_s1 + $0x110] sm:$0xff] }
   0xf   :  { %404 = vmatpush.bf16.msra.mxu2 %v644_v13  ;;  %v46_v54 = vpack.c.bf16 %v41_v43, %v36_v42  ;;  %v47_v57 = vpack.c.bf16 %v42_v51, %v37_v50  ;;  %v660_v59 = vld [vmem:[%s832_s1 + $0x120] sm:$0xff]  ;;  %v22_v62 = vld [vmem:[%s833_s0 + $0x10] sm:$0xf]  ;;  %v657_v2 = vld [vmem:[%s832_s1 + $0x108] sm:$0xff] }
  0x10   :  { %418 = vmatpush.bf16.msra.mxu3 %v652_v14  ;;  %v25_v63 = vld [vmem:[%s833_s0 + $0x24] sm:$0xf]  ;;  %v30_v0 = vunpack.c.l.bf16 %v22_v62 }
  0x11   :  { %390 = vmatpush.bf16.msra.mxu1 %v636_v15  ;;  %v35_v1 = vunpack.c.l.bf16 %v25_v63  ;;  %v656_v5 = vld [vmem:[%s832_s1 + $0x100] sm:$0xff] }
  0x12   :  { %377 = vmatpush.bf16.msra.mxu0 %v627_v16  ;;  %v40_v3 = vmax.f32 %v30_v0, 0.0 }
  0x13   :  { %405 = vmatpush.bf16.msra.mxu2 %v643_v17  ;;  %v45_v4 = vmax.f32 %v35_v1, 0.0  ;;  %v664_v17 = vld [vmem:[%s834_s2] ss:$0 sm:$0xff] }
  0x14   :  { %419 = vmatpush.bf16.msra.mxu3 %v651_v18 }
  0x15   :  { %391 = vmatpush.bf16.msra.mxu1 %v635_v19  ;;  %v50_v6 = vpack.c.bf16 %v45_v4, %v40_v3 }
  0x16   :  { %378 = vmatpush.bf16.msra.mxu0 %v626_v20 }
  0x17   :  { %406 = vmatpush.bf16.msra.mxu2 %v642_v21 }
  0x18   :  { %420 = vmatpush.bf16.msra.mxu3 %v650_v26 }
  0x19   :  { %392 = vmatpush.bf16.msra.mxu1 %v634_v27 }
  0x1a   :  { %379 = vmatpush.bf16.msra.mxu0 %v625_v32 }
  0x1b   :  { %407 = vmatpush.bf16.msra.mxu2 %v641_v33 }
  0x1c   :  { %421 = vmatpush.bf16.msra.mxu3 %v649_v36 }
  0x1d   :  { %393 = vmatpush.bf16.msra.mxu1 %v633_v37 }
  0x1e   :  { %380 = vmatpush.bf16.msra.mxu0 %v624_v44 }
  0x1f   :  { %408 = vmatpush.bf16.msra.mxu2 %v640_v45 }
  0x20   :  { %422 = vmatpush.bf16.msra.mxu3 %v648_v49 }
  0x21   :  { %394 = vmatpush.bf16.msra.mxu1 %v632_v52  ;;  %381 = vmatmul.bf16.vlgmr.msra.gmra.mxu0 %v46_v54 }
  0x22   :  { %429 = vmatpush.bf16.msrb.mxu0 %v663_v48  ;;  %409 = vmatmul.bf16.vlgmr.msra.gmra.mxu2 %v48_v53 }
  0x23   :  { %423 = vmatmul.bf16.vlgmr.msra.gmra.mxu3 %v49_v55 }
  0x24   :  { %395 = vmatmul.bf16.vlgmr.msra.gmra.mxu1 %v47_v57 }
  0x26   :  { %430 = vmatpush.bf16.msrb.mxu0 %v662_v56 }
  0x2a   :  { %431 = vmatpush.bf16.msrb.mxu0 %v661_v58 }
  0x2e   :  { %432 = vmatpush.bf16.msrb.mxu0 %v660_v59 }
  0x32   :  { %433 = vmatpush.bf16.msrb.mxu0 %v659_v60 }
  0x36   :  { %434 = vmatpush.bf16.msrb.mxu0 %v658_v61 }
  0x3a   :  { %435 = vmatpush.bf16.msrb.mxu0 %v657_v2 }
  0x3e   :  { %436 = vmatpush.bf16.msrb.mxu0 %v656_v5 }
  0x41   :  { %437 = vmatmul.bf16.vlgmr.msrb.gmra.mxu0 %v50_v6 }
  0x9e   :  { %v382_v7 = vpop.f32.mrf.mxu0 }
  0xa1   :  { %v396_v8 = vpop.f32.mrf.mxu1 }
  0xa2   :  { %v397_v10 = vadd.f32 %v396_v8, %v382_v7 }
  0xa5   :  { %v410_v9 = vpop.f32.mrf.mxu2 }
  0xa6   :  { %v384_v11 = vpop.f32.mrf.mxu0  ;;  %v424_v12 = vpop.f32.mrf.mxu3  ;;  %v411_v13 = vadd.f32 %v410_v9, %v397_v10 }
  0xa8   :  { %v425_v15 = vadd.f32 %v424_v12, %v411_v13 }
  0xa9   :  { %v398_v14 = vpop.f32.mrf.mxu1 }
  0xaa   :  { %v399_v16 = vadd.f32 %v398_v14, %v384_v11 }
  0xad   :  { %v412_v18 = vpop.f32.mrf.mxu2 }
  0xae   :  { %v413_v21 = vadd.f32 %v412_v18, %v399_v16  ;;  %v426_v23 = vpop.f32.mrf.mxu3 }
  0xb0   :  { %v427_v24 = vadd.f32 %v426_v23, %v413_v21 }
  0xbe   :  { %v438_v19 = vpop.f32.mrf.mxu0 }
  0xbf   :  { %v439_v20 = vadd.f32 %v438_v19, %v425_v15 }
  0xc1   :  { %v456_v22 = vadd.f32 %v664_v17, %v439_v20 }
  0xc3   :  { %458 = vst [vmem:[%s835_s3] sm:$0xff] %v456_v22 }
  0xc6   :  { %v440_v25 = vpop.f32.mrf.mxu0 }
  0xc7   :  { %v441_v26 = vadd.f32 %v440_v25, %v427_v24 }
  0xc9   :  { %v457_v27 = vadd.f32 %v664_v17, %v441_v26 }
  0xcb   :  { %459 = vst [vmem:[%s835_s3 + $0x8] sm:$0xff] %v457_v27 }

// kernel: unet_forward.56
= control target key start
LH: loop header
LB: loop body
LE: loop exit
PB: predicated region body
PF: predicated region fallthrough
CT: control target
= control target key end

     0   :  { %s1281_s1 = inlined_call_operand.vmem [shape: bf16[1024,128], index: 1, kind: input, shape index: {}]   ;;  %s1282_s0 = inlined_call_operand.vmem [shape: bf16[16,1024], index: 0, kind: input, shape index: {}]   ;;  %s1283_s2 = inlined_call_operand.vmem [shape: f32[1,128], index: 2, kind: input, shape index: {}]   ;;  %s1284_s3 = inlined_call_operand.vmem [shape: f32[16,128], index: 3, kind: output, shape index: {}]  }
   0x1   :  { %v978_v0 = vld [vmem:[%s1281_s1 + $0x38] sm:$0xff]  ;;  %v977_v4 = vld [vmem:[%s1281_s1 + $0x30] sm:$0xff]  ;;  %v976_v8 = vld [vmem:[%s1281_s1 + $0x28] sm:$0xff] }
   0x2   :  { %v986_v1 = vld [vmem:[%s1281_s1 + $0x78] sm:$0xff]  ;;  %582 = vmatpush.bf16.msra.mxu0 %v978_v0  ;;  %v985_v5 = vld [vmem:[%s1281_s1 + $0x70] sm:$0xff]  ;;  %v984_v9 = vld [vmem:[%s1281_s1 + $0x68] sm:$0xff] }
   0x3   :  { %v994_v2 = vld [vmem:[%s1281_s1 + $0xb8] sm:$0xff]  ;;  %596 = vmatpush.bf16.msra.mxu1 %v986_v1  ;;  %v993_v6 = vld [vmem:[%s1281_s1 + $0xb0] sm:$0xff]  ;;  %v992_v10 = vld [vmem:[%s1281_s1 + $0xa8] sm:$0xff] }
   0x4   :  { %v1002_v3 = vld [vmem:[%s1281_s1 + $0xf8] sm:$0xff]  ;;  %610 = vmatpush.bf16.msra.mxu2 %v994_v2  ;;  %v1001_v7 = vld [vmem:[%s1281_s1 + $0xf0] sm:$0xff]  ;;  %v1000_v11 = vld [vmem:[%s1281_s1 + $0xe8] sm:$0xff] }
   0x5   :  { %624 = vmatpush.bf16.msra.mxu3 %v1002_v3  ;;  %v975_v12 = vld [vmem:[%s1281_s1 + $0x20] sm:$0xff]  ;;  %v974_v16 = vld [vmem:[%s1281_s1 + $0x18] sm:$0xff]  ;;  %v973_v20 = vld [vmem:[%s1281_s1 + $0x10] sm:$0xff] }
   0x6   :  { %583 = vmatpush.bf16.msra.mxu0 %v977_v4  ;;  %v983_v13 = vld [vmem:[%s1281_s1 + $0x60] sm:$0xff]  ;;  %v982_v17 = vld [vmem:[%s1281_s1 + $0x58] sm:$0xff]  ;;  %v981_v21 = vld [vmem:[%s1281_s1 + $0x50] sm:$0xff] }
   0x7   :  { %597 = vmatpush.bf16.msra.mxu1 %v985_v5  ;;  %v991_v14 = vld [vmem:[%s1281_s1 + $0xa0] sm:$0xff]  ;;  %v990_v18 = vld [vmem:[%s1281_s1 + $0x98] sm:$0xff]  ;;  %v989_v22 = vld [vmem:[%s1281_s1 + $0x90] sm:$0xff] }
   0x8   :  { %611 = vmatpush.bf16.msra.mxu2 %v993_v6  ;;  %v999_v15 = vld [vmem:[%s1281_s1 + $0xe0] sm:$0xff]  ;;  %v998_v19 = vld [vmem:[%s1281_s1 + $0xd8] sm:$0xff]  ;;  %v997_v23 = vld [vmem:[%s1281_s1 + $0xd0] sm:$0xff] }
   0x9   :  { %625 = vmatpush.bf16.msra.mxu3 %v1001_v7  ;;  %v21_v24 = vld [vmem:[%s1282_s0 + $0x8] sm:$0xff]  ;;  %v20_v26 = vld [vmem:[%s1282_s0] sm:$0xff]  ;;  %v1010_v52 = vld [vmem:[%s1281_s1 + $0x138] sm:$0xff] }
   0xa   :  { %584 = vmatpush.bf16.msra.mxu0 %v976_v8  ;;  %v25_v25 = vld [vmem:[%s1282_s0 + $0x28] sm:$0xff]  ;;  %v24_v27 = vld [vmem:[%s1282_s0 + $0x20] sm:$0xff]  ;;  %v30_v30 = vunpack.c.l.bf16 %v21_v24  ;;  %v31_v32 = vunpack.c.h.bf16 %v21_v24  ;;  %v28_v36 = vunpack.c.l.bf16 %v20_v26  ;;  %v29_v38 = vunpack.c.h.bf16 %v20_v26  ;;  %v1018_v53 = vld [vmem:[%s1281_s1 + $0x178] sm:$0xff] }
   0xb   :  { %598 = vmatpush.bf16.msra.mxu1 %v984_v9  ;;  %v972_v28 = vld [vmem:[%s1281_s1 + $0x8] sm:$0xff]  ;;  %v38_v31 = vunpack.c.l.bf16 %v25_v25  ;;  %v39_v33 = vunpack.c.h.bf16 %v25_v25  ;;  %v36_v37 = vunpack.c.l.bf16 %v24_v27  ;;  %v37_v39 = vunpack.c.h.bf16 %v24_v27  ;;  %v971_v40 = vld [vmem:[%s1281_s1] sm:$0xff]  ;;  %v1026_v54 = vld [vmem:[%s1281_s1 + $0x1b8] sm:$0xff] }
   0xc   :  { %612 = vmatpush.bf16.msra.mxu2 %v992_v10  ;;  %v980_v29 = vld [vmem:[%s1281_s1 + $0x48] sm:$0xff]  ;;  %v979_v41 = vld [vmem:[%s1281_s1 + $0x40] sm:$0xff]  ;;  %v46_v42 = vmax.f32 %v30_v30, 0.0  ;;  %v47_v44 = vmax.f32 %v31_v32, 0.0  ;;  %v44_v48 = vmax.f32 %v28_v36, 0.0  ;;  %v45_v50 = vmax.f32 %v29_v38, 0.0 }
   0xd   :  { %626 = vmatpush.bf16.msra.mxu3 %v1000_v11  ;;  %v988_v34 = vld [vmem:[%s1281_s1 + $0x88] sm:$0xff]  ;;  %v54_v43 = vmax.f32 %v38_v31, 0.0  ;;  %v55_v45 = vmax.f32 %v39_v33, 0.0  ;;  %v987_v46 = vld [vmem:[%s1281_s1 + $0x80] sm:$0xff]  ;;  %v52_v49 = vmax.f32 %v36_v37, 0.0  ;;  %v53_v51 = vmax.f32 %v37_v39, 0.0 }
   0xe   :  { %585 = vmatpush.bf16.msra.mxu0 %v975_v12  ;;  %v996_v35 = vld [vmem:[%s1281_s1 + $0xc8] sm:$0xff]  ;;  %v995_v47 = vld [vmem:[%s1281_s1 + $0xc0] sm:$0xff]  ;;  %v1034_v55 = vld [vmem:[%s1281_s1 + $0x1f8] sm:$0xff] }
   0xf   :  { %599 = vmatpush.bf16.msra.mxu1 %v983_v13  ;;  %v62_v56 = vpack.c.bf16 %v54_v43, %v46_v42  ;;  %v63_v57 = vpack.c.bf16 %v55_v45, %v47_v44  ;;  %v60_v58 = vpack.c.bf16 %v52_v49, %v44_v48  ;;  %v61_v59 = vpack.c.bf16 %v53_v51, %v45_v50  ;;  %v1009_v60 = vld [vmem:[%s1281_s1 + $0x130] sm:$0xff]  ;;  %v1008_v0 = vld [vmem:[%s1281_s1 + $0x128] sm:$0xff]  ;;  %v1007_v4 = vld [vmem:[%s1281_s1 + $0x120] sm:$0xff] }
  0x10   :  { %613 = vmatpush.bf16.msra.mxu2 %v991_v14  ;;  %v1017_v61 = vld [vmem:[%s1281_s1 + $0x170] sm:$0xff]  ;;  %v1016_v1 = vld [vmem:[%s1281_s1 + $0x168] sm:$0xff]  ;;  %v1015_v5 = vld [vmem:[%s1281_s1 + $0x160] sm:$0xff] }
  0x11   :  { %627 = vmatpush.bf16.msra.mxu3 %v999_v15  ;;  %v1025_v62 = vld [vmem:[%s1281_s1 + $0x1b0] sm:$0xff]  ;;  %v1024_v2 = vld [vmem:[%s1281_s1 + $0x1a8] sm:$0xff]  ;;  %v1023_v6 = vld [vmem:[%s1281_s1 + $0x1a0] sm:$0xff] }
  0x12   :  { %586 = vmatpush.bf16.msra.mxu0 %v974_v16  ;;  %v1033_v63 = vld [vmem:[%s1281_s1 + $0x1f0] sm:$0xff]  ;;  %v1032_v3 = vld [vmem:[%s1281_s1 + $0x1e8] sm:$0xff]  ;;  %v1031_v7 = vld [vmem:[%s1281_s1 + $0x1e0] sm:$0xff] }
  0x13   :  { %600 = vmatpush.bf16.msra.mxu1 %v982_v17  ;;  %v1006_v8 = vld [vmem:[%s1281_s1 + $0x118] sm:$0xff]  ;;  %v1005_v12 = vld [vmem:[%s1281_s1 + $0x110] sm:$0xff]  ;;  %v1004_v24 = vld [vmem:[%s1281_s1 + $0x108] sm:$0xff] }
  0x14   :  { %614 = vmatpush.bf16.msra.mxu2 %v990_v18  ;;  %v1014_v9 = vld [vmem:[%s1281_s1 + $0x158] sm:$0xff]  ;;  %v1013_v13 = vld [vmem:[%s1281_s1 + $0x150] sm:$0xff]  ;;  %v1012_v25 = vld [vmem:[%s1281_s1 + $0x148] sm:$0xff] }
  0x15   :  { %628 = vmatpush.bf16.msra.mxu3 %v998_v19  ;;  %v1022_v10 = vld [vmem:[%s1281_s1 + $0x198] sm:$0xff]  ;;  %v1021_v14 = vld [vmem:[%s1281_s1 + $0x190] sm:$0xff]  ;;  %v1020_v30 = vld [vmem:[%s1281_s1 + $0x188] sm:$0xff] }
  0x16   :  { %587 = vmatpush.bf16.msra.mxu0 %v973_v20  ;;  %v1030_v11 = vld [vmem:[%s1281_s1 + $0x1d8] sm:$0xff]  ;;  %v22_v15 = vld [vmem:[%s1282_s0 + $0x10] sm:$0xff]  ;;  %v1028_v31 = vld [vmem:[%s1281_s1 + $0x1c8] sm:$0xff] }
  0x17   :  { %601 = vmatpush.bf16.msra.mxu1 %v981_v21  ;;  %v26_v16 = vld [vmem:[%s1282_s0 + $0x30] sm:$0xff]  ;;  %v23_v18 = vld [vmem:[%s1282_s0 + $0x18] sm:$0xff]  ;;  %v32_v20 = vunpack.c.l.bf16 %v22_v15  ;;  %v1003_v36 = vld [vmem:[%s1281_s1 + $0x100] sm:$0xff] }
  0x18   :  { %615 = vmatpush.bf16.msra.mxu2 %v989_v22  ;;  %v1029_v17 = vld [vmem:[%s1281_s1 + $0x1d0] sm:$0xff]  ;;  %v27_v19 = vld [vmem:[%s1282_s0 + $0x38] sm:$0xff]  ;;  %v40_v21 = vunpack.c.l.bf16 %v26_v16  ;;  %v33_v22 = vunpack.c.h.bf16 %v22_v15  ;;  %v34_v26 = vunpack.c.l.bf16 %v23_v18  ;;  %v1011_v37 = vld [vmem:[%s1281_s1 + $0x140] sm:$0xff] }
  0x19   :  { %629 = vmatpush.bf16.msra.mxu3 %v997_v23  ;;  %v41_v23 = vunpack.c.h.bf16 %v26_v16  ;;  %v42_v27 = vunpack.c.l.bf16 %v27_v19  ;;  %v48_v32 = vmax.f32 %v32_v20, 0.0  ;;  %v1019_v42 = vld [vmem:[%s1281_s1 + $0x180] sm:$0xff] }
  0x1a   :  { %588 = vmatpush.bf16.msra.mxu0 %v972_v28  ;;  %v35_v28 = vunpack.c.h.bf16 %v23_v18  ;;  %v56_v33 = vmax.f32 %v40_v21, 0.0  ;;  %v50_v38 = vmax.f32 %v34_v26, 0.0  ;;  %v1027_v43 = vld [vmem:[%s1281_s1 + $0x1c0] sm:$0xff] }
  0x1b   :  { %602 = vmatpush.bf16.msra.mxu1 %v980_v29  ;;  %v43_v29 = vunpack.c.h.bf16 %v27_v19  ;;  %v58_v39 = vmax.f32 %v42_v27, 0.0 }
  0x1c   :  { %616 = vmatpush.bf16.msra.mxu2 %v988_v34  ;;  %v49_v34 = vmax.f32 %v33_v22, 0.0  ;;  %v64_v44 = vpack.c.bf16 %v56_v33, %v48_v32 }
  0x1d   :  { %630 = vmatpush.bf16.msra.mxu3 %v996_v35  ;;  %v57_v35 = vmax.f32 %v41_v23, 0.0 }
  0x1e   :  { %589 = vmatpush.bf16.msra.mxu0 %v971_v40  ;;  %v51_v40 = vmax.f32 %v35_v28, 0.0 }
  0x1f   :  { %603 = vmatpush.bf16.msra.mxu1 %v979_v41  ;;  %v59_v41 = vmax.f32 %v43_v29, 0.0  ;;  %v65_v45 = vpack.c.bf16 %v57_v35, %v49_v34 }
  0x20   :  { %617 = vmatpush.bf16.msra.mxu2 %v987_v46  ;;  %v66_v46 = vpack.c.bf16 %v58_v39, %v50_v38 }
  0x21   :  { %631 = vmatpush.bf16.msra.mxu3 %v995_v47  ;;  %590 = vmatmul.bf16.vlgmr.msra.gmra.mxu0 %v60_v58  ;;  %v67_v47 = vpack.c.bf16 %v59_v41, %v51_v40 }
  0x22   :  { %638 = vmatpush.bf16.msrb.mxu0 %v1010_v52  ;;  %604 = vmatmul.bf16.vlgmr.msra.gmra.mxu1 %v61_v59 }
  0x23   :  { %652 = vmatpush.bf16.msrb.mxu1 %v1018_v53  ;;  %618 = vmatmul.bf16.vlgmr.msra.gmra.mxu2 %v62_v56 }
  0x24   :  { %666 = vmatpush.bf16.msrb.mxu2 %v1026_v54  ;;  %632 = vmatmul.bf16.vlgmr.msra.gmra.mxu3 %v63_v57 }
  0x25   :  { %680 = vmatpush.bf16.msrb.mxu3 %v1034_v55 }
  0x26   :  { %639 = vmatpush.bf16.msrb.mxu0 %v1009_v60 }
  0x27   :  { %653 = vmatpush.bf16.msrb.mxu1 %v1017_v61 }
  0x28   :  { %667 = vmatpush.bf16.msrb.mxu2 %v1025_v62 }
  0x29   :  { %681 = vmatpush.bf16.msrb.mxu3 %v1033_v63 }
  0x2a   :  { %640 = vmatpush.bf16.msrb.mxu0 %v1008_v0 }
  0x2b   :  { %654 = vmatpush.bf16.msrb.mxu1 %v1016_v1 }
  0x2c   :  { %668 = vmatpush.bf16.msrb.mxu2 %v1024_v2 }
  0x2d   :  { %682 = vmatpush.bf16.msrb.mxu3 %v1032_v3 }
  0x2e   :  { %641 = vmatpush.bf16.msrb.mxu0 %v1007_v4 }
  0x2f   :  { %655 = vmatpush.bf16.msrb.mxu1 %v1015_v5  ;;  %v1035_v5 = vld [vmem:[%s1283_s2] ss:$0 sm:$0xff] }
  0x30   :  { %669 = vmatpush.bf16.msrb.mxu2 %v1023_v6 }
  0x31   :  { %683 = vmatpush.bf16.msrb.mxu3 %v1031_v7 }
  0x32   :  { %642 = vmatpush.bf16.msrb.mxu0 %v1006_v8 }
  0x33   :  { %656 = vmatpush.bf16.msrb.mxu1 %v1014_v9 }
  0x34   :  { %670 = vmatpush.bf16.msrb.mxu2 %v1022_v10 }
  0x35   :  { %684 = vmatpush.bf16.msrb.mxu3 %v1030_v11 }
  0x36   :  { %643 = vmatpush.bf16.msrb.mxu0 %v1005_v12 }
  0x37   :  { %657 = vmatpush.bf16.msrb.mxu1 %v1013_v13 }
  0x38   :  { %671 = vmatpush.bf16.msrb.mxu2 %v1021_v14 }
  0x39   :  { %685 = vmatpush.bf16.msrb.mxu3 %v1029_v17 }
  0x3a   :  { %644 = vmatpush.bf16.msrb.mxu0 %v1004_v24 }
  0x3b   :  { %658 = vmatpush.bf16.msrb.mxu1 %v1012_v25 }
  0x3c   :  { %672 = vmatpush.bf16.msrb.mxu2 %v1020_v30 }
  0x3d   :  { %686 = vmatpush.bf16.msrb.mxu3 %v1028_v31 }
  0x3e   :  { %645 = vmatpush.bf16.msrb.mxu0 %v1003_v36 }
  0x3f   :  { %659 = vmatpush.bf16.msrb.mxu1 %v1011_v37 }
  0x40   :  { %673 = vmatpush.bf16.msrb.mxu2 %v1019_v42 }
  0x41   :  { %687 = vmatpush.bf16.msrb.mxu3 %v1027_v43  ;;  %646 = vmatmul.bf16.vlgmr.msrb.gmra.mxu0 %v64_v44 }
  0x42   :  { %660 = vmatmul.bf16.vlgmr.msrb.gmra.mxu1 %v65_v45 }
  0x43   :  { %674 = vmatmul.bf16.vlgmr.msrb.gmra.mxu2 %v66_v46 }
  0x44   :  { %688 = vmatmul.bf16.vlgmr.msrb.gmra.mxu3 %v67_v47 }
  0x9e   :  { %v591_v48 = vpop.f32.mrf.mxu0 }
  0x9f   :  { %v605_v49 = vpop.f32.mrf.mxu1 }
  0xa0   :  { %v606_v52 = vadd.f32 %v605_v49, %v591_v48 }
  0xa6   :  { %v619_v50 = vpop.f32.mrf.mxu2  ;;  %v593_v53 = vpop.f32.mrf.mxu0 }
  0xa7   :  { %v633_v51 = vpop.f32.mrf.mxu3  ;;  %v607_v54 = vpop.f32.mrf.mxu1  ;;  %v620_v55 = vadd.f32 %v619_v50, %v606_v52 }
  0xa8   :  { %v608_v59 = vadd.f32 %v607_v54, %v593_v53 }
  0xa9   :  { %v634_v58 = vadd.f32 %v633_v51, %v620_v55 }
  0xae   :  { %v621_v56 = vpop.f32.mrf.mxu2 }
  0xaf   :  { %v635_v57 = vpop.f32.mrf.mxu3  ;;  %v622_v63 = vadd.f32 %v621_v56, %v608_v59 }
  0xb1   :  { %v636_v3 = vadd.f32 %v635_v57, %v622_v63 }
  0xbe   :  { %v647_v60 = vpop.f32.mrf.mxu0 }
  0xbf   :  { %v648_v61 = vadd.f32 %v647_v60, %v634_v58  ;;  %v661_v62 = vpop.f32.mrf.mxu1 }
  0xc1   :  { %v662_v0 = vadd.f32 %v661_v62, %v648_v61 }
  0xc6   :  { %v675_v1 = vpop.f32.mrf.mxu2  ;;  %v649_v6 = vpop.f32.mrf.mxu0 }
  0xc7   :  { %v689_v2 = vpop.f32.mrf.mxu3  ;;  %v676_v4 = vadd.f32 %v675_v1, %v662_v0  ;;  %v650_v8 = vadd.f32 %v649_v6, %v636_v3  ;;  %v663_v10 = vpop.f32.mrf.mxu1 }
  0xc9   :  { %v690_v7 = vadd.f32 %v689_v2, %v676_v4  ;;  %v664_v11 = vadd.f32 %v663_v10, %v650_v8 }
  0xcb   :  { %v707_v9 = vadd.f32 %v1035_v5, %v690_v7 }
  0xcd   :  { %709 = vst [vmem:[%s1284_s3] sm:$0xff] %v707_v9 }
  0xce   :  { %v677_v12 = vpop.f32.mrf.mxu2 }
  0xcf   :  { %v678_v13 = vadd.f32 %v677_v12, %v664_v11  ;;  %v691_v14 = vpop.f32.mrf.mxu3 }
  0xd1   :  { %v692_v15 = vadd.f32 %v691_v14, %v678_v13 }
  0xd3   :  { %v708_v16 = vadd.f32 %v1035_v5, %v692_v15 }
  0xd5   :  { %710 = vst [vmem:[%s1284_s3 + $0x8] sm:$0xff] %v708_v16 }

// kernel: unet_forward.62
= control target key start
LH: loop header
LB: loop body
LE: loop exit
PB: predicated region body
PF: predicated region fallthrough
CT: control target
= control target key end

     0   :  { %s753_s1 = inlined_call_operand.vmem [shape: bf16[512,128], index: 1, kind: input, shape index: {}]   ;;  %s754_s0 = inlined_call_operand.vmem [shape: bf16[32,512], index: 0, kind: input, shape index: {}]   ;;  %s755_s2 = inlined_call_operand.vmem [shape: f32[1,128], index: 2, kind: input, shape index: {}]   ;;  %s756_s3 = inlined_call_operand.vmem [shape: f32[32,128], index: 3, kind: output, shape index: {}]  }
   0x1   :  { %v572_v0 = vld [vmem:[%s753_s1 + $0x38] sm:$0xff]  ;;  %v571_v4 = vld [vmem:[%s753_s1 + $0x30] sm:$0xff]  ;;  %v570_v8 = vld [vmem:[%s753_s1 + $0x28] sm:$0xff] }
   0x2   :  { %v580_v1 = vld [vmem:[%s753_s1 + $0x78] sm:$0xff]  ;;  %330 = vmatpush.bf16.msra.mxu0 %v572_v0  ;;  %v579_v5 = vld [vmem:[%s753_s1 + $0x70] sm:$0xff]  ;;  %v578_v9 = vld [vmem:[%s753_s1 + $0x68] sm:$0xff] }
   0x3   :  { %v588_v2 = vld [vmem:[%s753_s1 + $0xb8] sm:$0xff]  ;;  %349 = vmatpush.bf16.msra.mxu1 %v580_v1  ;;  %v587_v6 = vld [vmem:[%s753_s1 + $0xb0] sm:$0xff]  ;;  %v586_v10 = vld [vmem:[%s753_s1 + $0xa8] sm:$0xff] }
   0x4   :  { %v596_v3 = vld [vmem:[%s753_s1 + $0xf8] sm:$0xff]  ;;  %368 = vmatpush.bf16.msra.mxu2 %v588_v2  ;;  %v595_v7 = vld [vmem:[%s753_s1 + $0xf0] sm:$0xff]  ;;  %v594_v11 = vld [vmem:[%s753_s1 + $0xe8] sm:$0xff] }
   0x5   :  { %387 = vmatpush.bf16.msra.mxu3 %v596_v3  ;;  %v569_v12 = vld [vmem:[%s753_s1 + $0x20] sm:$0xff]  ;;  %v568_v16 = vld [vmem:[%s753_s1 + $0x18] sm:$0xff]  ;;  %v567_v20 = vld [vmem:[%s753_s1 + $0x10] sm:$0xff] }
   0x6   :  { %331 = vmatpush.bf16.msra.mxu0 %v571_v4  ;;  %v577_v13 = vld [vmem:[%s753_s1 + $0x60] sm:$0xff]  ;;  %v576_v17 = vld [vmem:[%s753_s1 + $0x58] sm:$0xff]  ;;  %v575_v21 = vld [vmem:[%s753_s1 + $0x50] sm:$0xff] }
   0x7   :  { %350 = vmatpush.bf16.msra.mxu1 %v579_v5  ;;  %v585_v14 = vld [vmem:[%s753_s1 + $0xa0] sm:$0xff]  ;;  %v584_v18 = vld [vmem:[%s753_s1 + $0x98] sm:$0xff]  ;;  %v583_v22 = vld [vmem:[%s753_s1 + $0x90] sm:$0xff] }
   0x8   :  { %369 = vmatpush.bf16.msra.mxu2 %v587_v6  ;;  %v593_v15 = vld [vmem:[%s753_s1 + $0xe0] sm:$0xff]  ;;  %v592_v19 = vld [vmem:[%s753_s1 + $0xd8] sm:$0xff]  ;;  %v24_v24 = vld [vmem:[%s754_s0 + $0x10] sm:$0xff] }
   0x9   :  { %388 = vmatpush.bf16.msra.mxu3 %v595_v7  ;;  %v22_v23 = vld [vmem:[%s754_s0] sm:$0xff]  ;;  %v591_v25 = vld [vmem:[%s753_s1 + $0xd0] sm:$0xff]  ;;  %v23_v26 = vld [vmem:[%s754_s0 + $0x8] sm:$0xff]  ;;  %v34_v29 = vunpack.c.l.bf16 %v24_v24  ;;  %v35_v31 = vunpack.c.h.bf16 %v24_v24 }
   0xa   :  { %332 = vmatpush.bf16.msra.mxu0 %v570_v8  ;;  %v25_v27 = vld [vmem:[%s754_s0 + $0x18] sm:$0xff]  ;;  %v30_v28 = vunpack.c.l.bf16 %v22_v23  ;;  %v31_v30 = vunpack.c.h.bf16 %v22_v23  ;;  %v566_v32 = vld [vmem:[%s753_s1 + $0x8] sm:$0xff]  ;;  %v32_v34 = vunpack.c.l.bf16 %v23_v26  ;;  %v33_v36 = vunpack.c.h.bf16 %v23_v26  ;;  %v565_v44 = vld [vmem:[%s753_s1] sm:$0xff] }
   0xb   :  { %351 = vmatpush.bf16.msra.mxu1 %v578_v9  ;;  %v574_v33 = vld [vmem:[%s753_s1 + $0x48] sm:$0xff]  ;;  %v36_v35 = vunpack.c.l.bf16 %v25_v27  ;;  %v37_v37 = vunpack.c.h.bf16 %v25_v27  ;;  %v50_v41 = vmax.f32 %v34_v29, 0.0  ;;  %v51_v43 = vmax.f32 %v35_v31, 0.0  ;;  %v573_v45 = vld [vmem:[%s753_s1 + $0x40] sm:$0xff]  ;;  %v28_v57 = vld [vmem:[%s754_s0 + $0x30] sm:$0xff] }
   0xc   :  { %370 = vmatpush.bf16.msra.mxu2 %v586_v10  ;;  %v582_v38 = vld [vmem:[%s753_s1 + $0x88] sm:$0xff]  ;;  %v46_v40 = vmax.f32 %v30_v28, 0.0  ;;  %v47_v42 = vmax.f32 %v31_v30, 0.0  ;;  %v48_v46 = vmax.f32 %v32_v34, 0.0  ;;  %v49_v48 = vmax.f32 %v33_v36, 0.0  ;;  %v581_v50 = vld [vmem:[%s753_s1 + $0x80] sm:$0xff] }
   0xd   :  { %389 = vmatpush.bf16.msra.mxu3 %v594_v11  ;;  %v590_v39 = vld [vmem:[%s753_s1 + $0xc8] sm:$0xff]  ;;  %v52_v47 = vmax.f32 %v36_v35, 0.0  ;;  %v53_v49 = vmax.f32 %v37_v37, 0.0  ;;  %v589_v51 = vld [vmem:[%s753_s1 + $0xc0] sm:$0xff]  ;;  %v29_v59 = vld [vmem:[%s754_s0 + $0x38] sm:$0xff]  ;;  %v42_v61 = vunpack.c.l.bf16 %v28_v57  ;;  %v43_v63 = vunpack.c.h.bf16 %v28_v57 }
   0xe   :  { %333 = vmatpush.bf16.msra.mxu0 %v569_v12  ;;  %v62_v52 = vpack.c.bf16 %v50_v41, %v46_v40  ;;  %v63_v53 = vpack.c.bf16 %v51_v43, %v47_v42  ;;  %v26_v56 = vld [vmem:[%s754_s0 + $0x20] sm:$0xff]  ;;  %v27_v58 = vld [vmem:[%s754_s0 + $0x28] sm:$0xff]  ;;  %v44_v1 = vunpack.c.l.bf16 %v29_v59  ;;  %v45_v3 = vunpack.c.h.bf16 %v29_v59 }
   0xf   :  { %352 = vmatpush.bf16.msra.mxu1 %v577_v13  ;;  %v64_v54 = vpack.c.bf16 %v52_v47, %v48_v46  ;;  %v65_v55 = vpack.c.bf16 %v53_v49, %v49_v48  ;;  %v38_v60 = vunpack.c.l.bf16 %v26_v56  ;;  %v39_v62 = vunpack.c.h.bf16 %v26_v56 }
  0x10   :  { %371 = vmatpush.bf16.msra.mxu2 %v585_v14  ;;  %v40_v0 = vunpack.c.l.bf16 %v27_v58  ;;  %v41_v2 = vunpack.c.h.bf16 %v27_v58  ;;  %v58_v5 = vmax.f32 %v42_v61, 0.0  ;;  %v59_v7 = vmax.f32 %v43_v63, 0.0 }
  0x11   :  { %390 = vmatpush.bf16.msra.mxu3 %v593_v15  ;;  %v54_v4 = vmax.f32 %v38_v60, 0.0  ;;  %v55_v6 = vmax.f32 %v39_v62, 0.0  ;;  %v60_v9 = vmax.f32 %v44_v1, 0.0  ;;  %v61_v11 = vmax.f32 %v45_v3, 0.0 }
  0x12   :  { %334 = vmatpush.bf16.msra.mxu0 %v568_v16  ;;  %v56_v8 = vmax.f32 %v40_v0, 0.0  ;;  %v57_v10 = vmax.f32 %v41_v2, 0.0 }
  0x13   :  { %353 = vmatpush.bf16.msra.mxu1 %v576_v17  ;;  %v66_v12 = vpack.c.bf16 %v58_v5, %v54_v4  ;;  %v67_v13 = vpack.c.bf16 %v59_v7, %v55_v6 }
  0x14   :  { %372 = vmatpush.bf16.msra.mxu2 %v584_v18  ;;  %v68_v14 = vpack.c.bf16 %v60_v9, %v56_v8  ;;  %v69_v15 = vpack.c.bf16 %v61_v11, %v57_v10 }
  0x15   :  { %391 = vmatpush.bf16.msra.mxu3 %v592_v19 }
  0x16   :  { %335 = vmatpush.bf16.msra.mxu0 %v567_v20 }
  0x17   :  { %354 = vmatpush.bf16.msra.mxu1 %v575_v21 }
  0x18   :  { %373 = vmatpush.bf16.msra.mxu2 %v583_v22  ;;  %v597_v22 = vld [vmem:[%s755_s2] ss:$0 sm:$0xff] }
  0x19   :  { %392 = vmatpush.bf16.msra.mxu3 %v591_v25 }
  0x1a   :  { %336 = vmatpush.bf16.msra.mxu0 %v566_v32 }
  0x1b   :  { %355 = vmatpush.bf16.msra.mxu1 %v574_v33 }
  0x1c   :  { %374 = vmatpush.bf16.msra.mxu2 %v582_v38 }
  0x1d   :  { %393 = vmatpush.bf16.msra.mxu3 %v590_v39 }
  0x1e   :  { %337 = vmatpush.bf16.msra.mxu0 %v565_v44 }
  0x1f   :  { %356 = vmatpush.bf16.msra.mxu1 %v573_v45 }
  0x20   :  { %375 = vmatpush.bf16.msra.mxu2 %v581_v50 }
  0x21   :  { %394 = vmatpush.bf16.msra.mxu3 %v589_v51  ;;  %338 = vmatmul.bf16.vlgmr.msra.gmra.mxu0 %v62_v52 }
  0x22   :  { %357 = vmatmul.bf16.vlgmr.msra.gmra.mxu1 %v63_v53 }
  0x23   :  { %376 = vmatmul.bf16.vlgmr.msra.gmra.mxu2 %v64_v54 }
  0x24   :  { %395 = vmatmul.bf16.vlgmr.msra.gmra.mxu3 %v65_v55 }
  0x31   :  { %343 = vmatmul.bf16.gmra.mxu0 %v66_v12 }
  0x32   :  { %362 = vmatmul.bf16.gmra.mxu1 %v67_v13 }
  0x33   :  { %381 = vmatmul.bf16.gmra.mxu2 %v68_v14 }
  0x34   :  { %400 = vmatmul.bf16.gmra.mxu3 %v69_v15 }
  0x9e   :  { %v339_v16 = vpop.f32.mrf.mxu0 }
  0x9f   :  { %v358_v17 = vpop.f32.mrf.mxu1 }
  0xa0   :  { %v359_v18 = vadd.f32 %v358_v17, %v339_v16 }
  0xa6   :  { %v377_v19 = vpop.f32.mrf.mxu2  ;;  %v341_v23 = vpop.f32.mrf.mxu0 }
  0xa7   :  { %v396_v20 = vpop.f32.mrf.mxu3  ;;  %v378_v21 = vadd.f32 %v377_v19, %v359_v18  ;;  %v360_v24 = vpop.f32.mrf.mxu1 }
  0xa8   :  { %v361_v27 = vadd.f32 %v360_v24, %v341_v23 }
  0xa9   :  { %v397_v25 = vadd.f32 %v396_v20, %v378_v21 }
  0xab   :  { %v425_v26 = vadd.f32 %v597_v22, %v397_v25 }
  0xad   :  { %429 = vst [vmem:[%s756_s3] sm:$0xff] %v425_v26 }
  0xae   :  { %v379_v28 = vpop.f32.mrf.mxu2  ;;  %v344_v31 = vpop.f32.mrf.mxu0 }
  0xaf   :  { %v398_v29 = vpop.f32.mrf.mxu3  ;;  %v380_v30 = vadd.f32 %v379_v28, %v361_v27  ;;  %v363_v32 = vpop.f32.mrf.mxu1 }
  0xb0   :  { %v364_v35 = vadd.f32 %v363_v32, %v344_v31 }
  0xb1   :  { %v399_v33 = vadd.f32 %v398_v29, %v380_v30 }
  0xb3   :  { %v426_v34 = vadd.f32 %v597_v22, %v399_v33 }
  0xb5   :  { %430 = vst [vmem:[%s756_s3 + $0x8] sm:$0xff] %v426_v34 }
  0xb6   :  { %v382_v36 = vpop.f32.mrf.mxu2  ;;  %v346_v40 = vpop.f32.mrf.mxu0 }
  0xb7   :  { %v401_v37 = vpop.f32.mrf.mxu3  ;;  %v383_v38 = vadd.f32 %v382_v36, %v364_v35  ;;  %v365_v41 = vpop.f32.mrf.mxu1 }
  0xb8   :  { %v366_v43 = vadd.f32 %v365_v41, %v346_v40 }
  0xb9   :  { %v402_v39 = vadd.f32 %v401_v37, %v383_v38 }
  0xbb   :  { %v427_v42 = vadd.f32 %v597_v22, %v402_v39 }
  0xbd   :  { %431 = vst [vmem:[%s756_s3 + $0x10] sm:$0xff] %v427_v42 }
  0xbe   :  { %v384_v44 = vpop.f32.mrf.mxu2 }
  0xbf   :  { %v385_v45 = vadd.f32 %v384_v44, %v366_v43  ;;  %v403_v46 = vpop.f32.mrf.mxu3 }
  0xc1   :  { %v404_v47 = vadd.f32 %v403_v46, %v385_v45 }
  0xc3   :  { %v428_v48 = vadd.f32 %v597_v22, %v404_v47 }
  0xc5   :  { %432 = vst [vmem:[%s756_s3 + $0x18] sm:$0xff] %v428_v48 }

// kernel: unet_forward.68
= control target key start
LH: loop header
LB: loop body
LE: loop exit
PB: predicated region body
PF: predicated region fallthrough
CT: control target
= control target key end

     0   :  { %s745_s1 = inlined_call_operand.vmem [shape: bf16[256,128], index: 1, kind: input, shape index: {}]   ;;  %s746_s0 = inlined_call_operand.vmem [shape: bf16[128,256], index: 0, kind: input, shape index: {}]   ;;  %s747_s2 = inlined_call_operand.vmem [shape: f32[1,128], index: 2, kind: input, shape index: {}]   ;;  %s748_s3 = inlined_call_operand.vmem [shape: f32[128,128], index: 3, kind: output, shape index: {}]  }
   0x1   :  { %v534_v0 = vld [vmem:[%s745_s1 + $0x38] sm:$0xff]  ;;  %v533_v2 = vld [vmem:[%s745_s1 + $0x30] sm:$0xff]  ;;  %v532_v4 = vld [vmem:[%s745_s1 + $0x28] sm:$0xff] }
   0x2   :  { %v542_v1 = vld [vmem:[%s745_s1 + $0x78] sm:$0xff]  ;;  %274 = vmatpush.bf16.msra.mxu0 %v534_v0  ;;  %543 = vmatpush.bf16.msra.mxu2 %v534_v0  ;;  %v541_v3 = vld [vmem:[%s745_s1 + $0x70] sm:$0xff]  ;;  %v540_v5 = vld [vmem:[%s745_s1 + $0x68] sm:$0xff] }
   0x3   :  { %323 = vmatpush.bf16.msra.mxu1 %v542_v1  ;;  %551 = vmatpush.bf16.msra.mxu3 %v542_v1  ;;  %v531_v6 = vld [vmem:[%s745_s1 + $0x20] sm:$0xff]  ;;  %v530_v8 = vld [vmem:[%s745_s1 + $0x18] sm:$0xff]  ;;  %v529_v10 = vld [vmem:[%s745_s1 + $0x10] sm:$0xff] }
   0x4   :  { %v539_v7 = vld [vmem:[%s745_s1 + $0x60] sm:$0xff]  ;;  %v538_v9 = vld [vmem:[%s745_s1 + $0x58] sm:$0xff]  ;;  %v35_v12 = vld [vmem:[%s746_s0 + $0x8] sm:$0xff] }
   0x5   :  { %v34_v11 = vld [vmem:[%s746_s0] sm:$0xff]  ;;  %v43_v14 = vld [vmem:[%s746_s0 + $0x48] sm:$0xff]  ;;  %v537_v15 = vld [vmem:[%s745_s1 + $0x50] sm:$0xff]  ;;  %v52_v17 = vunpack.c.l.bf16 %v35_v12  ;;  %v53_v22 = vunpack.c.h.bf16 %v35_v12 }
   0x6   :  { %275 = vmatpush.bf16.msra.mxu0 %v533_v2  ;;  %544 = vmatpush.bf16.msra.mxu2 %v533_v2  ;;  %v42_v13 = vld [vmem:[%s746_s0 + $0x40] sm:$0xff]  ;;  %v50_v16 = vunpack.c.l.bf16 %v34_v11  ;;  %v68_v19 = vunpack.c.l.bf16 %v43_v14  ;;  %v528_v20 = vld [vmem:[%s745_s1 + $0x8] sm:$0xff]  ;;  %v51_v21 = vunpack.c.h.bf16 %v34_v11  ;;  %v69_v24 = vunpack.c.h.bf16 %v43_v14  ;;  %v36_v40 = vld [vmem:[%s746_s0 + $0x10] sm:$0xff] }
   0x7   :  { %324 = vmatpush.bf16.msra.mxu1 %v541_v3  ;;  %552 = vmatpush.bf16.msra.mxu3 %v541_v3  ;;  %v66_v18 = vunpack.c.l.bf16 %v42_v13  ;;  %v67_v23 = vunpack.c.h.bf16 %v42_v13  ;;  %v536_v25 = vld [vmem:[%s745_s1 + $0x48] sm:$0xff]  ;;  %v84_v27 = vmax.f32 %v52_v17, 0.0  ;;  %v527_v30 = vld [vmem:[%s745_s1] sm:$0xff]  ;;  %v85_v32 = vmax.f32 %v53_v22, 0.0  ;;  %v37_v41 = vld [vmem:[%s746_s0 + $0x18] sm:$0xff] }
   0x8   :  { %v82_v26 = vmax.f32 %v50_v16, 0.0  ;;  %v100_v29 = vmax.f32 %v68_v19, 0.0  ;;  %v83_v31 = vmax.f32 %v51_v21, 0.0  ;;  %v101_v34 = vmax.f32 %v69_v24, 0.0  ;;  %v535_v35 = vld [vmem:[%s745_s1 + $0x40] sm:$0xff]  ;;  %v44_v42 = vld [vmem:[%s746_s0 + $0x50] sm:$0xff] }
   0x9   :  { %v98_v28 = vmax.f32 %v66_v18, 0.0  ;;  %v99_v33 = vmax.f32 %v67_v23, 0.0  ;;  %v45_v43 = vld [vmem:[%s746_s0 + $0x58] sm:$0xff]  ;;  %v54_v44 = vunpack.c.l.bf16 %v36_v40  ;;  %v56_v45 = vunpack.c.l.bf16 %v37_v41  ;;  %v38_v0 = vld [vmem:[%s746_s0 + $0x20] sm:$0xff]  ;;  %v39_v1 = vld [vmem:[%s746_s0 + $0x28] sm:$0xff] }
   0xa   :  { %276 = vmatpush.bf16.msra.mxu0 %v532_v4  ;;  %545 = vmatpush.bf16.msra.mxu2 %v532_v4  ;;  %v114_v36 = vpack.c.bf16 %v84_v27, %v82_v26  ;;  %v115_v38 = vpack.c.bf16 %v85_v32, %v83_v31  ;;  %v70_v46 = vunpack.c.l.bf16 %v44_v42  ;;  %v72_v47 = vunpack.c.l.bf16 %v45_v43  ;;  %v46_v2 = vld [vmem:[%s746_s0 + $0x60] sm:$0xff]  ;;  %v47_v3 = vld [vmem:[%s746_s0 + $0x68] sm:$0xff]  ;;  %v40_v24 = vld [vmem:[%s746_s0 + $0x30] sm:$0xff] }
   0xb   :  { %325 = vmatpush.bf16.msra.mxu1 %v540_v5  ;;  %553 = vmatpush.bf16.msra.mxu3 %v540_v5  ;;  %v122_v37 = vpack.c.bf16 %v100_v29, %v98_v28  ;;  %v123_v39 = vpack.c.bf16 %v101_v34, %v99_v33  ;;  %v55_v48 = vunpack.c.h.bf16 %v36_v40  ;;  %v57_v49 = vunpack.c.h.bf16 %v37_v41  ;;  %v48_v26 = vld [vmem:[%s746_s0 + $0x70] sm:$0xff]  ;;  %v49_v27 = vld [vmem:[%s746_s0 + $0x78] sm:$0xff] }
   0xc   :  { %v71_v50 = vunpack.c.h.bf16 %v44_v42  ;;  %v73_v51 = vunpack.c.h.bf16 %v45_v43  ;;  %v86_v52 = vmax.f32 %v54_v44, 0.0  ;;  %v88_v53 = vmax.f32 %v56_v45, 0.0 }
   0xd   :  { %v102_v54 = vmax.f32 %v70_v46, 0.0  ;;  %v104_v55 = vmax.f32 %v72_v47, 0.0  ;;  %v87_v56 = vmax.f32 %v55_v48, 0.0  ;;  %v89_v57 = vmax.f32 %v57_v49, 0.0  ;;  %v679_v49 = vld [vmem:[%s747_s2] ss:$0 sm:$0xff] }
   0xe   :  { %277 = vmatpush.bf16.msra.mxu0 %v531_v6  ;;  %546 = vmatpush.bf16.msra.mxu2 %v531_v6  ;;  %v103_v58 = vmax.f32 %v71_v50, 0.0  ;;  %v105_v59 = vmax.f32 %v73_v51, 0.0  ;;  %v116_v60 = vpack.c.bf16 %v88_v53, %v86_v52  ;;  %v58_v4 = vunpack.c.l.bf16 %v38_v0 }
   0xf   :  { %326 = vmatpush.bf16.msra.mxu1 %v539_v7  ;;  %554 = vmatpush.bf16.msra.mxu3 %v539_v7  ;;  %v124_v61 = vpack.c.bf16 %v104_v55, %v102_v54  ;;  %v117_v62 = vpack.c.bf16 %v89_v57, %v87_v56  ;;  %v60_v5 = vunpack.c.l.bf16 %v39_v1  ;;  %v74_v6 = vunpack.c.l.bf16 %v46_v2 }
  0x10   :  { %v125_v63 = vpack.c.bf16 %v105_v59, %v103_v58  ;;  %v76_v7 = vunpack.c.l.bf16 %v47_v3  ;;  %v77_v11 = vunpack.c.h.bf16 %v47_v3  ;;  %v90_v12 = vmax.f32 %v58_v4, 0.0 }
  0x11   :  { %v92_v13 = vmax.f32 %v60_v5, 0.0  ;;  %v106_v14 = vmax.f32 %v74_v6, 0.0  ;;  %v62_v28 = vunpack.c.l.bf16 %v40_v24  ;;  %v80_v31 = vunpack.c.l.bf16 %v49_v27 }
  0x12   :  { %278 = vmatpush.bf16.msra.mxu0 %v530_v8  ;;  %547 = vmatpush.bf16.msra.mxu2 %v530_v8  ;;  %v59_v8 = vunpack.c.h.bf16 %v38_v0  ;;  %v109_v19 = vmax.f32 %v77_v11, 0.0  ;;  %v63_v32 = vunpack.c.h.bf16 %v40_v24  ;;  %v79_v34 = vunpack.c.h.bf16 %v48_v26 }
  0x13   :  { %327 = vmatpush.bf16.msra.mxu1 %v538_v9  ;;  %555 = vmatpush.bf16.msra.mxu3 %v538_v9  ;;  %v61_v9 = vunpack.c.h.bf16 %v39_v1 }
  0x14   :  { %v91_v16 = vmax.f32 %v59_v8, 0.0  ;;  %v95_v40 = vmax.f32 %v63_v32, 0.0  ;;  %v111_v42 = vmax.f32 %v79_v34, 0.0 }
  0x15   :  { %v93_v17 = vmax.f32 %v61_v9, 0.0 }
  0x16   :  { %279 = vmatpush.bf16.msra.mxu0 %v529_v10  ;;  %548 = vmatpush.bf16.msra.mxu2 %v529_v10  ;;  %v75_v10 = vunpack.c.h.bf16 %v46_v2 }
  0x17   :  { %328 = vmatpush.bf16.msra.mxu1 %v537_v15  ;;  %556 = vmatpush.bf16.msra.mxu3 %v537_v15  ;;  %v108_v15 = vmax.f32 %v76_v7, 0.0  ;;  %v119_v22 = vpack.c.bf16 %v93_v17, %v91_v16 }
  0x18   :  { %v107_v18 = vmax.f32 %v75_v10, 0.0 }
  0x19   :  { %v126_v21 = vpack.c.bf16 %v108_v15, %v106_v14 }
  0x1a   :  { %280 = vmatpush.bf16.msra.mxu0 %v528_v20  ;;  %549 = vmatpush.bf16.msra.mxu2 %v528_v20  ;;  %v118_v20 = vpack.c.bf16 %v92_v13, %v90_v12  ;;  %v127_v23 = vpack.c.bf16 %v109_v19, %v107_v18 }
  0x1b   :  { %329 = vmatpush.bf16.msra.mxu1 %v536_v25  ;;  %557 = vmatpush.bf16.msra.mxu3 %v536_v25  ;;  %v41_v25 = vld [vmem:[%s746_s0 + $0x38] sm:$0xff] }
  0x1c   :  { %v64_v29 = vunpack.c.l.bf16 %v41_v25  ;;  %v65_v33 = vunpack.c.h.bf16 %v41_v25 }
  0x1e   :  { %281 = vmatpush.bf16.msra.mxu0 %v527_v30  ;;  %550 = vmatpush.bf16.msra.mxu2 %v527_v30  ;;  %v78_v30 = vunpack.c.l.bf16 %v48_v26  ;;  %v97_v41 = vmax.f32 %v65_v33, 0.0 }
  0x1f   :  { %330 = vmatpush.bf16.msra.mxu1 %v535_v35  ;;  %558 = vmatpush.bf16.msra.mxu3 %v535_v35  ;;  %v81_v35 = vunpack.c.h.bf16 %v49_v27 }
  0x20   :  { %v121_v46 = vpack.c.bf16 %v97_v41, %v95_v40 }
  0x21   :  { %282 = vmatmul.bf16.vlgmr.msra.gmra.mxu0 %v114_v36  ;;  %302 = vmatmul.bf16.vlgmr.msra.gmra.mxu2 %v122_v37  ;;  %v94_v36 = vmax.f32 %v62_v28, 0.0  ;;  %v96_v37 = vmax.f32 %v64_v29, 0.0  ;;  %v113_v43 = vmax.f32 %v81_v35, 0.0 }
  0x22   :  { %331 = vmatmul.bf16.vlgmr.msra.gmra.mxu1 %v115_v38  ;;  %351 = vmatmul.bf16.vlgmr.msra.gmra.mxu3 %v123_v39  ;;  %v110_v38 = vmax.f32 %v78_v30, 0.0  ;;  %v112_v39 = vmax.f32 %v80_v31, 0.0 }
  0x23   :  { %v120_v44 = vpack.c.bf16 %v96_v37, %v94_v36  ;;  %v129_v47 = vpack.c.bf16 %v113_v43, %v111_v42 }
  0x24   :  { %v128_v45 = vpack.c.bf16 %v112_v39, %v110_v38 }
  0x31   :  { %287 = vmatmul.bf16.gmra.mxu0 %v116_v60  ;;  %307 = vmatmul.bf16.gmra.mxu2 %v124_v61 }
  0x32   :  { %336 = vmatmul.bf16.gmra.mxu1 %v117_v62  ;;  %356 = vmatmul.bf16.gmra.mxu3 %v125_v63 }
  0x41   :  { %292 = vmatmul.bf16.gmra.mxu0 %v118_v20  ;;  %312 = vmatmul.bf16.gmra.mxu2 %v126_v21 }
  0x42   :  { %341 = vmatmul.bf16.gmra.mxu1 %v119_v22  ;;  %361 = vmatmul.bf16.gmra.mxu3 %v127_v23 }
  0x51   :  { %297 = vmatmul.bf16.gmra.mxu0 %v120_v44  ;;  %317 = vmatmul.bf16.gmra.mxu2 %v128_v45 }
  0x52   :  { %346 = vmatmul.bf16.gmra.mxu1 %v121_v46  ;;  %366 = vmatmul.bf16.gmra.mxu3 %v129_v47 }
  0x9e   :  { %v283_v48 = vpop.f32.mrf.mxu0 }
  0x9f   :  { %v332_v50 = vpop.f32.mrf.mxu1 }
  0xa0   :  { %v333_v51 = vadd.f32 %v332_v50, %v283_v48 }
  0xa2   :  { %v427_v52 = vadd.f32 %v679_v49, %v333_v51 }
  0xa4   :  { %443 = vst [vmem:[%s748_s3] sm:$0xff] %v427_v52  ;;  %v303_v53 = vpop.f32.mrf.mxu2 }
  0xa5   :  { %v352_v54 = vpop.f32.mrf.mxu3 }
  0xa6   :  { %v353_v55 = vadd.f32 %v352_v54, %v303_v53  ;;  %v285_v56 = vpop.f32.mrf.mxu0 }
  0xa7   :  { %v334_v57 = vpop.f32.mrf.mxu1 }
  0xa8   :  { %v435_v58 = vadd.f32 %v679_v49, %v353_v55  ;;  %v335_v59 = vadd.f32 %v334_v57, %v285_v56 }
  0xaa   :  { %451 = vst [vmem:[%s748_s3 + $0x40] sm:$0xff] %v435_v58  ;;  %v428_v60 = vadd.f32 %v679_v49, %v335_v59 }
  0xac   :  { %444 = vst [vmem:[%s748_s3 + $0x8] sm:$0xff] %v428_v60  ;;  %v305_v61 = vpop.f32.mrf.mxu2 }
  0xad   :  { %v354_v62 = vpop.f32.mrf.mxu3 }
  0xae   :  { %v355_v63 = vadd.f32 %v354_v62, %v305_v61  ;;  %v288_v0 = vpop.f32.mrf.mxu0 }
  0xaf   :  { %v337_v1 = vpop.f32.mrf.mxu1 }
  0xb0   :  { %v436_v2 = vadd.f32 %v679_v49, %v355_v63  ;;  %v338_v3 = vadd.f32 %v337_v1, %v288_v0 }
  0xb2   :  { %452 = vst [vmem:[%s748_s3 + $0x48] sm:$0xff] %v436_v2  ;;  %v429_v4 = vadd.f32 %v679_v49, %v338_v3 }
  0xb4   :  { %445 = vst [vmem:[%s748_s3 + $0x10] sm:$0xff] %v429_v4  ;;  %v308_v5 = vpop.f32.mrf.mxu2 }
  0xb5   :  { %v357_v6 = vpop.f32.mrf.mxu3 }
  0xb6   :  { %v358_v7 = vadd.f32 %v357_v6, %v308_v5  ;;  %v290_v8 = vpop.f32.mrf.mxu0 }
  0xb7   :  { %v339_v9 = vpop.f32.mrf.mxu1 }
  0xb8   :  { %v437_v10 = vadd.f32 %v679_v49, %v358_v7  ;;  %v340_v11 = vadd.f32 %v339_v9, %v290_v8 }
  0xba   :  { %453 = vst [vmem:[%s748_s3 + $0x50] sm:$0xff] %v437_v10  ;;  %v430_v12 = vadd.f32 %v679_v49, %v340_v11 }
  0xbc   :  { %446 = vst [vmem:[%s748_s3 + $0x18] sm:$0xff] %v430_v12  ;;  %v310_v13 = vpop.f32.mrf.mxu2 }
  0xbd   :  { %v359_v14 = vpop.f32.mrf.mxu3 }
  0xbe   :  { %v360_v15 = vadd.f32 %v359_v14, %v310_v13  ;;  %v293_v16 = vpop.f32.mrf.mxu0 }
  0xbf   :  { %v342_v17 = vpop.f32.mrf.mxu1 }
  0xc0   :  { %v438_v18 = vadd.f32 %v679_v49, %v360_v15  ;;  %v343_v19 = vadd.f32 %v342_v17, %v293_v16 }
  0xc2   :  { %454 = vst [vmem:[%s748_s3 + $0x58] sm:$0xff] %v438_v18  ;;  %v431_v20 = vadd.f32 %v679_v49, %v343_v19 }
  0xc4   :  { %447 = vst [vmem:[%s748_s3 + $0x20] sm:$0xff] %v431_v20  ;;  %v313_v21 = vpop.f32.mrf.mxu2 }
  0xc5   :  { %v362_v22 = vpop.f32.mrf.mxu3 }
  0xc6   :  { %v363_v23 = vadd.f32 %v362_v22, %v313_v21  ;;  %v295_v24 = vpop.f32.mrf.mxu0 }
  0xc7   :  { %v344_v25 = vpop.f32.mrf.mxu1 }
  0xc8   :  { %v439_v26 = vadd.f32 %v679_v49, %v363_v23  ;;  %v345_v27 = vadd.f32 %v344_v25, %v295_v24 }
  0xca   :  { %455 = vst [vmem:[%s748_s3 + $0x60] sm:$0xff] %v439_v26  ;;  %v432_v28 = vadd.f32 %v679_v49, %v345_v27 }
  0xcc   :  { %448 = vst [vmem:[%s748_s3 + $0x28] sm:$0xff] %v432_v28  ;;  %v315_v29 = vpop.f32.mrf.mxu2 }
  0xcd   :  { %v364_v30 = vpop.f32.mrf.mxu3 }
  0xce   :  { %v365_v31 = vadd.f32 %v364_v30, %v315_v29  ;;  %v298_v32 = vpop.f32.mrf.mxu0 }
  0xcf   :  { %v347_v33 = vpop.f32.mrf.mxu1 }
  0xd0   :  { %v440_v34 = vadd.f32 %v679_v49, %v365_v31  ;;  %v348_v35 = vadd.f32 %v347_v33, %v298_v32 }
  0xd2   :  { %456 = vst [vmem:[%s748_s3 + $0x68] sm:$0xff] %v440_v34  ;;  %v433_v36 = vadd.f32 %v679_v49, %v348_v35 }
  0xd4   :  { %449 = vst [vmem:[%s748_s3 + $0x30] sm:$0xff] %v433_v36  ;;  %v318_v37 = vpop.f32.mrf.mxu2 }
  0xd5   :  { %v367_v38 = vpop.f32.mrf.mxu3 }
  0xd6   :  { %v368_v39 = vadd.f32 %v367_v38, %v318_v37  ;;  %v300_v40 = vpop.f32.mrf.mxu0 }
  0xd7   :  { %v349_v41 = vpop.f32.mrf.mxu1 }
  0xd8   :  { %v441_v42 = vadd.f32 %v679_v49, %v368_v39  ;;  %v350_v43 = vadd.f32 %v349_v41, %v300_v40 }
  0xda   :  { %457 = vst [vmem:[%s748_s3 + $0x70] sm:$0xff] %v441_v42  ;;  %v434_v44 = vadd.f32 %v679_v49, %v350_v43 }
  0xdc   :  { %450 = vst [vmem:[%s748_s3 + $0x38] sm:$0xff] %v434_v44  ;;  %v320_v45 = vpop.f32.mrf.mxu2 }
  0xdd   :  { %v369_v46 = vpop.f32.mrf.mxu3 }
  0xde   :  { %v370_v47 = vadd.f32 %v369_v46, %v320_v45 }
  0xe0   :  { %v442_v48 = vadd.f32 %v679_v49, %v370_v47 }
  0xe2   :  { %458 = vst [vmem:[%s748_s3 + $0x78] sm:$0xff] %v442_v48 }

// kernel: unet_forward.72
= control target key start
LH: loop header
LB: loop body
LE: loop exit
PB: predicated region body
PF: predicated region fallthrough
CT: control target
= control target key end

     0   :  { %vm14_vm0 = vcmask 122880   ;;  %vm82_vm1 = vcmask 130048   ;;  %v428_v0 = vmov 0.0   ;;  %s786_s0 = inlined_call_operand.vmem [shape: f32[512,16], index: 0, kind: input, shape index: {}]   ;;  %s787_s1 = inlined_call_operand.vmem [shape: f32[1,16], index: 1, kind: output, shape index: {0}]   ;;  %s788_s2 = inlined_call_operand.vmem [shape: f32[1,16], index: 2, kind: output, shape index: {1}]  }
   0x1   :  { %15 = vst.msk [vmem:[%s787_s1] sm:$0x1] %vm14_vm0, %v428_v0  ;;  %v17_v1 = vld [vmem:[%s786_s0] sm:$0xff]  ;;  %v18_v2 = vld [vmem:[%s786_s0 + $0x8] sm:$0xff]  ;;  %v19_v3 = vld [vmem:[%s786_s0 + $0x10] sm:$0xff] }
   0x2   :  { %16 = vst.msk [vmem:[%s788_s2] sm:$0x1] %vm14_vm0, %v428_v0  ;;  %v83_v4 = vsel %vm82_vm1, %v17_v1, 0.0  ;;  %v84_v5 = vsel %vm82_vm1, %v18_v2, 0.0  ;;  %v86_v6 = vsel %vm82_vm1, %v19_v3, 0.0  ;;  %v20_v7 = vld [vmem:[%s786_s0 + $0x18] sm:$0xff]  ;;  %v220_v19 = vmul.f32 %v17_v1, %v17_v1 }
   0x3   :  { %v85_v8 = vadd.f32 %v84_v5, %v83_v4  ;;  %v88_v9 = vsel %vm82_vm1, %v20_v7, 0.0  ;;  %v21_v10 = vld [vmem:[%s786_s0 + $0x20] sm:$0xff]  ;;  %v22_v13 = vld [vmem:[%s786_s0 + $0x28] sm:$0xff]  ;;  %v23_v16 = vld [vmem:[%s786_s0 + $0x30] sm:$0xff]  ;;  %v221_v20 = vmul.f32 %v18_v2, %v18_v2  ;;  %v222_v24 = vmul.f32 %v19_v3, %v19_v3 }
   0x4   :  { %v90_v12 = vsel %vm82_vm1, %v21_v10, 0.0  ;;  %v92_v15 = vsel %vm82_vm1, %v22_v13, 0.0  ;;  %v94_v18 = vsel %vm82_vm1, %v23_v16, 0.0  ;;  %v24_v21 = vld [vmem:[%s786_s0 + $0x38] sm:$0xff]  ;;  %v223_v25 = vmul.f32 %v20_v7, %v20_v7  ;;  %v25_v26 = vld [vmem:[%s786_s0 + $0x40] sm:$0xff]  ;;  %v26_v32 = vld [vmem:[%s786_s0 + $0x48] sm:$0xff] }
   0x5   :  { %v87_v11 = vadd.f32 %v86_v6, %v85_v8  ;;  %v96_v23 = vsel %vm82_vm1, %v24_v21, 0.0  ;;  %v98_v28 = vsel %vm82_vm1, %v25_v26, 0.0  ;;  %v224_v29 = vmul.f32 %v21_v10, %v21_v10  ;;  %v27_v39 = vld [vmem:[%s786_s0 + $0x50] sm:$0xff]  ;;  %v28_v45 = vld [vmem:[%s786_s0 + $0x58] sm:$0xff]  ;;  %v29_v51 = vld [vmem:[%s786_s0 + $0x60] sm:$0xff] }
   0x6   :  { %v284_v30 = vsel %vm82_vm1, %v220_v19, 0.0  ;;  %v285_v31 = vsel %vm82_vm1, %v221_v20, 0.0  ;;  %v100_v35 = vsel %vm82_vm1, %v26_v32, 0.0  ;;  %v225_v36 = vmul.f32 %v22_v13, %v22_v13  ;;  %v30_v57 = vld [vmem:[%s786_s0 + $0x68] sm:$0xff]  ;;  %v31_v63 = vld [vmem:[%s786_s0 + $0x70] sm:$0xff]  ;;  %v32_v5 = vld [vmem:[%s786_s0 + $0x78] sm:$0xff] }
   0x7   :  { %v89_v14 = vadd.f32 %v88_v9, %v87_v11  ;;  %v286_v34 = vadd.f32 %v285_v31, %v284_v30  ;;  %v287_v37 = vsel %vm82_vm1, %v222_v24, 0.0  ;;  %v289_v38 = vsel %vm82_vm1, %v223_v25, 0.0  ;;  %v33_v11 = vld [vmem:[%s786_s0 + $0x80] sm:$0xff] }
   0x8   :  { %v102_v42 = vsel %vm82_vm1, %v27_v39, 0.0  ;;  %v226_v43 = vmul.f32 %v23_v16, %v23_v16  ;;  %v291_v44 = vsel %vm82_vm1, %v224_v29, 0.0  ;;  %v104_v48 = vsel %vm82_vm1, %v28_v45, 0.0  ;;  %v36_v29 = vld [vmem:[%s786_s0 + $0x98] sm:$0xff] }
   0x9   :  { %v91_v17 = vadd.f32 %v90_v12, %v89_v14  ;;  %v288_v41 = vadd.f32 %v287_v37, %v286_v34  ;;  %v227_v49 = vmul.f32 %v24_v21, %v24_v21  ;;  %v293_v50 = vsel %vm82_vm1, %v225_v36, 0.0 }
   0xa   :  { %v106_v54 = vsel %vm82_vm1, %v29_v51, 0.0  ;;  %v228_v55 = vmul.f32 %v25_v26, %v25_v26  ;;  %v295_v56 = vsel %vm82_vm1, %v226_v43, 0.0  ;;  %v108_v60 = vsel %vm82_vm1, %v30_v57, 0.0 }
   0xb   :  { %v93_v22 = vadd.f32 %v92_v15, %v91_v17  ;;  %v290_v47 = vadd.f32 %v289_v38, %v288_v41  ;;  %v229_v61 = vmul.f32 %v26_v32, %v26_v32  ;;  %v297_v62 = vsel %vm82_vm1, %v227_v49, 0.0  ;;  %v34_v17 = vld [vmem:[%s786_s0 + $0x88] sm:$0xff] }
   0xc   :  { %v110_v2 = vsel %vm82_vm1, %v31_v63, 0.0  ;;  %v230_v3 = vmul.f32 %v27_v39, %v27_v39  ;;  %v299_v4 = vsel %vm82_vm1, %v228_v55, 0.0  ;;  %v112_v8 = vsel %vm82_vm1, %v32_v5, 0.0  ;;  %v38_v41 = vld [vmem:[%s786_s0 + $0xa8] sm:$0xff] }
   0xd   :  { %v95_v27 = vadd.f32 %v94_v18, %v93_v22  ;;  %v292_v53 = vadd.f32 %v291_v44, %v290_v47  ;;  %v231_v9 = vmul.f32 %v28_v45, %v28_v45  ;;  %v301_v10 = vsel %vm82_vm1, %v229_v61, 0.0  ;;  %v39_v47 = vld [vmem:[%s786_s0 + $0xb0] sm:$0xff] }
   0xe   :  { %v114_v14 = vsel %vm82_vm1, %v33_v11, 0.0  ;;  %v232_v15 = vmul.f32 %v29_v51, %v29_v51  ;;  %v303_v16 = vsel %vm82_vm1, %v230_v3, 0.0  ;;  %v116_v20 = vsel %vm82_vm1, %v34_v17, 0.0 }
   0xf   :  { %v97_v33 = vadd.f32 %v96_v23, %v95_v27  ;;  %v294_v59 = vadd.f32 %v293_v50, %v292_v53  ;;  %v233_v21 = vmul.f32 %v30_v57, %v30_v57  ;;  %v305_v22 = vsel %vm82_vm1, %v231_v9, 0.0  ;;  %v35_v23 = vld [vmem:[%s786_s0 + $0x90] sm:$0xff]  ;;  %v40_v53 = vld [vmem:[%s786_s0 + $0xb8] sm:$0xff] }
  0x10   :  { %v118_v26 = vsel %vm82_vm1, %v35_v23, 0.0  ;;  %v234_v27 = vmul.f32 %v31_v63, %v31_v63  ;;  %v120_v32 = vsel %vm82_vm1, %v36_v29, 0.0  ;;  %v236_v39 = vmul.f32 %v33_v11, %v33_v11 }
  0x11   :  { %v99_v40 = vadd.f32 %v98_v28, %v97_v33  ;;  %v296_v1 = vadd.f32 %v295_v56, %v294_v59  ;;  %v307_v28 = vsel %vm82_vm1, %v232_v15, 0.0  ;;  %v235_v33 = vmul.f32 %v32_v5, %v32_v5  ;;  %v41_v59 = vld [vmem:[%s786_s0 + $0xc0] sm:$0xff] }
  0x12   :  { %v309_v34 = vsel %vm82_vm1, %v233_v21, 0.0  ;;  %v124_v44 = vsel %vm82_vm1, %v38_v41, 0.0  ;;  %v237_v45 = vmul.f32 %v34_v17, %v34_v17  ;;  %v126_v50 = vsel %vm82_vm1, %v39_v47, 0.0 }
  0x13   :  { %v101_v46 = vadd.f32 %v100_v35, %v99_v40  ;;  %v298_v7 = vadd.f32 %v297_v62, %v296_v1  ;;  %v37_v35 = vld [vmem:[%s786_s0 + $0xa0] sm:$0xff]  ;;  %v311_v40 = vsel %vm82_vm1, %v234_v27, 0.0  ;;  %v238_v51 = vmul.f32 %v35_v23, %v35_v23  ;;  %v42_v1 = vld [vmem:[%s786_s0 + $0xc8] sm:$0xff] }
  0x14   :  { %v122_v38 = vsel %vm82_vm1, %v37_v35, 0.0  ;;  %v128_v56 = vsel %vm82_vm1, %v40_v53, 0.0  ;;  %v239_v57 = vmul.f32 %v36_v29, %v36_v29  ;;  %v130_v62 = vsel %vm82_vm1, %v41_v59, 0.0 }
  0x15   :  { %v103_v52 = vadd.f32 %v102_v42, %v101_v46  ;;  %v300_v13 = vadd.f32 %v299_v4, %v298_v7  ;;  %v313_v46 = vsel %vm82_vm1, %v235_v33, 0.0  ;;  %v240_v63 = vmul.f32 %v37_v35, %v37_v35  ;;  %v43_v7 = vld [vmem:[%s786_s0 + $0xd0] sm:$0xff] }
  0x16   :  { %v132_v4 = vsel %vm82_vm1, %v42_v1, 0.0  ;;  %v241_v5 = vmul.f32 %v38_v41, %v38_v41  ;;  %v242_v11 = vmul.f32 %v39_v47, %v39_v47  ;;  %v243_v17 = vmul.f32 %v40_v53, %v40_v53 }
  0x17   :  { %v105_v58 = vadd.f32 %v104_v48, %v103_v52  ;;  %v302_v19 = vadd.f32 %v301_v10, %v300_v13  ;;  %v315_v52 = vsel %vm82_vm1, %v236_v39, 0.0  ;;  %v134_v10 = vsel %vm82_vm1, %v43_v7, 0.0  ;;  %v44_v13 = vld [vmem:[%s786_s0 + $0xd8] sm:$0xff] }
  0x18   :  { %v244_v23 = vmul.f32 %v41_v59, %v41_v59  ;;  %v245_v29 = vmul.f32 %v42_v1, %v42_v1  ;;  %v246_v35 = vmul.f32 %v43_v7, %v43_v7  ;;  %v247_v41 = vmul.f32 %v44_v13, %v44_v13 }
  0x19   :  { %v107_v0 = vadd.f32 %v106_v54, %v105_v58  ;;  %v304_v25 = vadd.f32 %v303_v16, %v302_v19  ;;  %v317_v58 = vsel %vm82_vm1, %v237_v45, 0.0  ;;  %v136_v16 = vsel %vm82_vm1, %v44_v13, 0.0  ;;  %v45_v19 = vld [vmem:[%s786_s0 + $0xe0] sm:$0xff] }
  0x1a   :  { %v248_v47 = vmul.f32 %v45_v19, %v45_v19 }
  0x1b   :  { %v109_v6 = vadd.f32 %v108_v60, %v107_v0  ;;  %v306_v31 = vadd.f32 %v305_v22, %v304_v25  ;;  %v319_v0 = vsel %vm82_vm1, %v238_v51, 0.0  ;;  %v138_v22 = vsel %vm82_vm1, %v45_v19, 0.0  ;;  %v46_v25 = vld [vmem:[%s786_s0 + $0xe8] sm:$0xff] }
  0x1c   :  { %v249_v53 = vmul.f32 %v46_v25, %v46_v25 }
  0x1d   :  { %v111_v12 = vadd.f32 %v110_v2, %v109_v6  ;;  %v308_v37 = vadd.f32 %v307_v28, %v306_v31  ;;  %v321_v6 = vsel %vm82_vm1, %v239_v57, 0.0  ;;  %v140_v28 = vsel %vm82_vm1, %v46_v25, 0.0  ;;  %v47_v31 = vld [vmem:[%s786_s0 + $0xf0] sm:$0xff] }
  0x1e   :  { %v250_v59 = vmul.f32 %v47_v31, %v47_v31 }
  0x1f   :  { %v113_v18 = vadd.f32 %v112_v8, %v111_v12  ;;  %v310_v43 = vadd.f32 %v309_v34, %v308_v37  ;;  %v323_v12 = vsel %vm82_vm1, %v240_v63, 0.0  ;;  %v142_v34 = vsel %vm82_vm1, %v47_v31, 0.0  ;;  %v48_v37 = vld [vmem:[%s786_s0 + $0xf8] sm:$0xff] }
  0x20   :  { %v251_v1 = vmul.f32 %v48_v37, %v48_v37 }
  0x21   :  { %v115_v24 = vadd.f32 %v114_v14, %v113_v18  ;;  %v312_v49 = vadd.f32 %v311_v40, %v310_v43  ;;  %v325_v18 = vsel %vm82_vm1, %v241_v5, 0.0  ;;  %v144_v40 = vsel %vm82_vm1, %v48_v37, 0.0  ;;  %v49_v43 = vld [vmem:[%s786_s0 + $0x100] sm:$0xff] }
  0x22   :  { %v252_v7 = vmul.f32 %v49_v43, %v49_v43 }
  0x23   :  { %v117_v30 = vadd.f32 %v116_v20, %v115_v24  ;;  %v314_v55 = vadd.f32 %v313_v46, %v312_v49  ;;  %v327_v24 = vsel %vm82_vm1, %v242_v11, 0.0  ;;  %v146_v46 = vsel %vm82_vm1, %v49_v43, 0.0  ;;  %v50_v49 = vld [vmem:[%s786_s0 + $0x108] sm:$0xff] }
  0x24   :  { %v253_v13 = vmul.f32 %v50_v49, %v50_v49 }
  0x25   :  { %v119_v36 = vadd.f32 %v118_v26, %v117_v30  ;;  %v316_v61 = vadd.f32 %v315_v52, %v314_v55  ;;  %v329_v30 = vsel %vm82_vm1, %v243_v17, 0.0  ;;  %v148_v52 = vsel %vm82_vm1, %v50_v49, 0.0  ;;  %v51_v55 = vld [vmem:[%s786_s0 + $0x110] sm:$0xff] }
  0x26   :  { %v254_v19 = vmul.f32 %v51_v55, %v51_v55 }
  0x27   :  { %v121_v42 = vadd.f32 %v120_v32, %v119_v36  ;;  %v318_v3 = vadd.f32 %v317_v58, %v316_v61  ;;  %v331_v36 = vsel %vm82_vm1, %v244_v23, 0.0  ;;  %v150_v58 = vsel %vm82_vm1, %v51_v55, 0.0  ;;  %v52_v61 = vld [vmem:[%s786_s0 + $0x118] sm:$0xff] }
  0x28   :  { %v255_v25 = vmul.f32 %v52_v61, %v52_v61 }
  0x29   :  { %v123_v48 = vadd.f32 %v122_v38, %v121_v42  ;;  %v320_v9 = vadd.f32 %v319_v0, %v318_v3  ;;  %v333_v42 = vsel %vm82_vm1, %v245_v29, 0.0  ;;  %v152_v0 = vsel %vm82_vm1, %v52_v61, 0.0  ;;  %v53_v3 = vld [vmem:[%s786_s0 + $0x120] sm:$0xff] }
  0x2a   :  { %v256_v31 = vmul.f32 %v53_v3, %v53_v3 }
  0x2b   :  { %v125_v54 = vadd.f32 %v124_v44, %v123_v48  ;;  %v322_v15 = vadd.f32 %v321_v6, %v320_v9  ;;  %v335_v48 = vsel %vm82_vm1, %v246_v35, 0.0  ;;  %v154_v6 = vsel %vm82_vm1, %v53_v3, 0.0  ;;  %v54_v9 = vld [vmem:[%s786_s0 + $0x128] sm:$0xff] }
  0x2c   :  { %v257_v37 = vmul.f32 %v54_v9, %v54_v9 }
  0x2d   :  { %v127_v60 = vadd.f32 %v126_v50, %v125_v54  ;;  %v324_v21 = vadd.f32 %v323_v12, %v322_v15  ;;  %v337_v54 = vsel %vm82_vm1, %v247_v41, 0.0  ;;  %v156_v12 = vsel %vm82_vm1, %v54_v9, 0.0  ;;  %v55_v15 = vld [vmem:[%s786_s0 + $0x130] sm:$0xff] }
  0x2e   :  { %v258_v43 = vmul.f32 %v55_v15, %v55_v15 }
  0x2f   :  { %v129_v2 = vadd.f32 %v128_v56, %v127_v60  ;;  %v326_v27 = vadd.f32 %v325_v18, %v324_v21  ;;  %v339_v60 = vsel %vm82_vm1, %v248_v47, 0.0  ;;  %v158_v18 = vsel %vm82_vm1, %v55_v15, 0.0  ;;  %v56_v21 = vld [vmem:[%s786_s0 + $0x138] sm:$0xff] }
  0x30   :  { %v259_v49 = vmul.f32 %v56_v21, %v56_v21 }
  0x31   :  { %v131_v8 = vadd.f32 %v130_v62, %v129_v2  ;;  %v328_v33 = vadd.f32 %v327_v24, %v326_v27  ;;  %v341_v2 = vsel %vm82_vm1, %v249_v53, 0.0  ;;  %v160_v24 = vsel %vm82_vm1, %v56_v21, 0.0  ;;  %v57_v27 = vld [vmem:[%s786_s0 + $0x140] sm:$0xff] }
  0x32   :  { %v260_v55 = vmul.f32 %v57_v27, %v57_v27 }
  0x33   :  { %v133_v14 = vadd.f32 %v132_v4, %v131_v8  ;;  %v330_v39 = vadd.f32 %v329_v30, %v328_v33  ;;  %v343_v8 = vsel %vm82_vm1, %v250_v59, 0.0  ;;  %v162_v30 = vsel %vm82_vm1, %v57_v27, 0.0  ;;  %v58_v33 = vld [vmem:[%s786_s0 + $0x148] sm:$0xff] }
  0x34   :  { %v261_v61 = vmul.f32 %v58_v33, %v58_v33 }
  0x35   :  { %v135_v20 = vadd.f32 %v134_v10, %v133_v14  ;;  %v332_v45 = vadd.f32 %v331_v36, %v330_v39  ;;  %v345_v14 = vsel %vm82_vm1, %v251_v1, 0.0  ;;  %v164_v36 = vsel %vm82_vm1, %v58_v33, 0.0  ;;  %v59_v39 = vld [vmem:[%s786_s0 + $0x150] sm:$0xff] }
  0x36   :  { %v262_v3 = vmul.f32 %v59_v39, %v59_v39 }
  0x37   :  { %v137_v26 = vadd.f32 %v136_v16, %v135_v20  ;;  %v334_v51 = vadd.f32 %v333_v42, %v332_v45  ;;  %v347_v20 = vsel %vm82_vm1, %v252_v7, 0.0  ;;  %v166_v42 = vsel %vm82_vm1, %v59_v39, 0.0  ;;  %v60_v45 = vld [vmem:[%s786_s0 + $0x158] sm:$0xff] }
  0x38   :  { %v263_v9 = vmul.f32 %v60_v45, %v60_v45 }
  0x39   :  { %v139_v32 = vadd.f32 %v138_v22, %v137_v26  ;;  %v336_v57 = vadd.f32 %v335_v48, %v334_v51  ;;  %v349_v26 = vsel %vm82_vm1, %v253_v13, 0.0  ;;  %v168_v48 = vsel %vm82_vm1, %v60_v45, 0.0  ;;  %v61_v51 = vld [vmem:[%s786_s0 + $0x160] sm:$0xff] }
  0x3a   :  { %v264_v15 = vmul.f32 %v61_v51, %v61_v51 }
  0x3b   :  { %v141_v38 = vadd.f32 %v140_v28, %v139_v32  ;;  %v338_v63 = vadd.f32 %v337_v54, %v336_v57  ;;  %v351_v32 = vsel %vm82_vm1, %v254_v19, 0.0  ;;  %v170_v54 = vsel %vm82_vm1, %v61_v51, 0.0  ;;  %v62_v57 = vld [vmem:[%s786_s0 + $0x168] sm:$0xff] }
  0x3c   :  { %v265_v21 = vmul.f32 %v62_v57, %v62_v57 }
  0x3d   :  { %v143_v44 = vadd.f32 %v142_v34, %v141_v38  ;;  %v340_v5 = vadd.f32 %v339_v60, %v338_v63  ;;  %v353_v38 = vsel %vm82_vm1, %v255_v25, 0.0  ;;  %v172_v60 = vsel %vm82_vm1, %v62_v57, 0.0  ;;  %v63_v63 = vld [vmem:[%s786_s0 + $0x170] sm:$0xff] }
  0x3e   :  { %v266_v27 = vmul.f32 %v63_v63, %v63_v63 }
  0x3f   :  { %v145_v50 = vadd.f32 %v144_v40, %v143_v44  ;;  %v342_v11 = vadd.f32 %v341_v2, %v340_v5  ;;  %v355_v44 = vsel %vm82_vm1, %v256_v31, 0.0  ;;  %v174_v2 = vsel %vm82_vm1, %v63_v63, 0.0  ;;  %v64_v5 = vld [vmem:[%s786_s0 + $0x178] sm:$0xff] }
  0x40   :  { %v267_v33 = vmul.f32 %v64_v5, %v64_v5 }
  0x41   :  { %v147_v56 = vadd.f32 %v146_v46, %v145_v50  ;;  %v344_v17 = vadd.f32 %v343_v8, %v342_v11  ;;  %v357_v50 = vsel %vm82_vm1, %v257_v37, 0.0  ;;  %v176_v8 = vsel %vm82_vm1, %v64_v5, 0.0  ;;  %v65_v11 = vld [vmem:[%s786_s0 + $0x180] sm:$0xff] }
  0x42   :  { %v268_v39 = vmul.f32 %v65_v11, %v65_v11 }
  0x43   :  { %v149_v62 = vadd.f32 %v148_v52, %v147_v56  ;;  %v346_v23 = vadd.f32 %v345_v14, %v344_v17  ;;  %v359_v56 = vsel %vm82_vm1, %v258_v43, 0.0  ;;  %v178_v14 = vsel %vm82_vm1, %v65_v11, 0.0  ;;  %v66_v17 = vld [vmem:[%s786_s0 + $0x188] sm:$0xff] }
  0x44   :  { %v269_v45 = vmul.f32 %v66_v17, %v66_v17 }
  0x45   :  { %v151_v4 = vadd.f32 %v150_v58, %v149_v62  ;;  %v348_v29 = vadd.f32 %v347_v20, %v346_v23  ;;  %v361_v62 = vsel %vm82_vm1, %v259_v49, 0.0  ;;  %v180_v20 = vsel %vm82_vm1, %v66_v17, 0.0  ;;  %v67_v23 = vld [vmem:[%s786_s0 + $0x190] sm:$0xff] }
  0x46   :  { %v270_v51 = vmul.f32 %v67_v23, %v67_v23 }
  0x47   :  { %v153_v10 = vadd.f32 %v152_v0, %v151_v4  ;;  %v350_v35 = vadd.f32 %v349_v26, %v348_v29  ;;  %v363_v4 = vsel %vm82_vm1, %v260_v55, 0.0  ;;  %v182_v26 = vsel %vm82_vm1, %v67_v23, 0.0  ;;  %v68_v29 = vld [vmem:[%s786_s0 + $0x198] sm:$0xff] }
  0x48   :  { %v271_v57 = vmul.f32 %v68_v29, %v68_v29 }
  0x49   :  { %v155_v16 = vadd.f32 %v154_v6, %v153_v10  ;;  %v352_v41 = vadd.f32 %v351_v32, %v350_v35  ;;  %v365_v10 = vsel %vm82_vm1, %v261_v61, 0.0  ;;  %v184_v32 = vsel %vm82_vm1, %v68_v29, 0.0  ;;  %v69_v35 = vld [vmem:[%s786_s0 + $0x1a0] sm:$0xff] }
  0x4a   :  { %v272_v63 = vmul.f32 %v69_v35, %v69_v35 }
  0x4b   :  { %v157_v22 = vadd.f32 %v156_v12, %v155_v16  ;;  %v354_v47 = vadd.f32 %v353_v38, %v352_v41  ;;  %v367_v16 = vsel %vm82_vm1, %v262_v3, 0.0  ;;  %v186_v38 = vsel %vm82_vm1, %v69_v35, 0.0  ;;  %v70_v41 = vld [vmem:[%s786_s0 + $0x1a8] sm:$0xff] }
  0x4c   :  { %v273_v5 = vmul.f32 %v70_v41, %v70_v41 }
  0x4d   :  { %v159_v28 = vadd.f32 %v158_v18, %v157_v22  ;;  %v356_v53 = vadd.f32 %v355_v44, %v354_v47  ;;  %v369_v22 = vsel %vm82_vm1, %v263_v9, 0.0  ;;  %v188_v44 = vsel %vm82_vm1, %v70_v41, 0.0  ;;  %v71_v47 = vld [vmem:[%s786_s0 + $0x1b0] sm:$0xff] }
  0x4e   :  { %v274_v11 = vmul.f32 %v71_v47, %v71_v47 }
  0x4f   :  { %v161_v34 = vadd.f32 %v160_v24, %v159_v28  ;;  %v358_v59 = vadd.f32 %v357_v50, %v356_v53  ;;  %v371_v28 = vsel %vm82_vm1, %v264_v15, 0.0  ;;  %v190_v50 = vsel %vm82_vm1, %v71_v47, 0.0  ;;  %v72_v53 = vld [vmem:[%s786_s0 + $0x1b8] sm:$0xff] }
  0x50   :  { %v275_v17 = vmul.f32 %v72_v53, %v72_v53 }
  0x51   :  { %v163_v40 = vadd.f32 %v162_v30, %v161_v34  ;;  %v360_v1 = vadd.f32 %v359_v56, %v358_v59  ;;  %v373_v34 = vsel %vm82_vm1, %v265_v21, 0.0  ;;  %v192_v56 = vsel %vm82_vm1, %v72_v53, 0.0  ;;  %v73_v59 = vld [vmem:[%s786_s0 + $0x1c0] sm:$0xff] }
  0x52   :  { %v276_v23 = vmul.f32 %v73_v59, %v73_v59 }
  0x53   :  { %v165_v46 = vadd.f32 %v164_v36, %v163_v40  ;;  %v362_v7 = vadd.f32 %v361_v62, %v360_v1  ;;  %v375_v40 = vsel %vm82_vm1, %v266_v27, 0.0  ;;  %v194_v62 = vsel %vm82_vm1, %v73_v59, 0.0  ;;  %v74_v1 = vld [vmem:[%s786_s0 + $0x1c8] sm:$0xff] }
  0x54   :  { %v277_v29 = vmul.f32 %v74_v1, %v74_v1 }
  0x55   :  { %v167_v52 = vadd.f32 %v166_v42, %v165_v46  ;;  %v364_v13 = vadd.f32 %v363_v4, %v362_v7  ;;  %v377_v46 = vsel %vm82_vm1, %v267_v33, 0.0  ;;  %v196_v4 = vsel %vm82_vm1, %v74_v1, 0.0  ;;  %v75_v7 = vld [vmem:[%s786_s0 + $0x1d0] sm:$0xff] }
  0x56   :  { %v278_v35 = vmul.f32 %v75_v7, %v75_v7 }
  0x57   :  { %v169_v58 = vadd.f32 %v168_v48, %v167_v52  ;;  %v366_v19 = vadd.f32 %v365_v10, %v364_v13  ;;  %v379_v52 = vsel %vm82_vm1, %v268_v39, 0.0  ;;  %v198_v10 = vsel %vm82_vm1, %v75_v7, 0.0  ;;  %v76_v13 = vld [vmem:[%s786_s0 + $0x1d8] sm:$0xff] }
  0x58   :  { %v279_v41 = vmul.f32 %v76_v13, %v76_v13 }
  0x59   :  { %v171_v0 = vadd.f32 %v170_v54, %v169_v58  ;;  %v368_v25 = vadd.f32 %v367_v16, %v366_v19  ;;  %v381_v58 = vsel %vm82_vm1, %v269_v45, 0.0  ;;  %v200_v16 = vsel %vm82_vm1, %v76_v13, 0.0  ;;  %v77_v19 = vld [vmem:[%s786_s0 + $0x1e0] sm:$0xff] }
  0x5a   :  { %v280_v45 = vmul.f32 %v77_v19, %v77_v19 }
  0x5b   :  { %v173_v6 = vadd.f32 %v172_v60, %v171_v0  ;;  %v370_v31 = vadd.f32 %v369_v22, %v368_v25  ;;  %v383_v0 = vsel %vm82_vm1, %v270_v51, 0.0  ;;  %v202_v22 = vsel %vm82_vm1, %v77_v19, 0.0  ;;  %v78_v25 = vld [vmem:[%s786_s0 + $0x1e8] sm:$0xff] }
  0x5d   :  { %v175_v12 = vadd.f32 %v174_v2, %v173_v6  ;;  %v372_v37 = vadd.f32 %v371_v28, %v370_v31  ;;  %v385_v6 = vsel %vm82_vm1, %v271_v57, 0.0  ;;  %v204_v28 = vsel %vm82_vm1, %v78_v25, 0.0  ;;  %v79_v31 = vld [vmem:[%s786_s0 + $0x1f0] sm:$0xff] }
  0x5e   :  { %v282_v53 = vmul.f32 %v79_v31, %v79_v31 }
  0x5f   :  { %v177_v18 = vadd.f32 %v176_v8, %v175_v12  ;;  %v374_v43 = vadd.f32 %v373_v34, %v372_v37  ;;  %v387_v12 = vsel %vm82_vm1, %v272_v63, 0.0  ;;  %v206_v34 = vsel %vm82_vm1, %v79_v31, 0.0  ;;  %v80_v37 = vld [vmem:[%s786_s0 + $0x1f8] sm:$0xff] }
  0x60   :  { %v283_v57 = vmul.f32 %v80_v37, %v80_v37 }
  0x61   :  { %v179_v24 = vadd.f32 %v178_v14, %v177_v18  ;;  %v376_v49 = vadd.f32 %v375_v40, %v374_v43  ;;  %v389_v18 = vsel %vm82_vm1, %v273_v5, 0.0  ;;  %v208_v40 = vsel %vm82_vm1, %v80_v37, 0.0 }
  0x63   :  { %v181_v30 = vadd.f32 %v180_v20, %v179_v24  ;;  %v378_v55 = vadd.f32 %v377_v46, %v376_v49  ;;  %v391_v24 = vsel %vm82_vm1, %v274_v11, 0.0  ;;  %v399_v46 = vsel %vm82_vm1, %v278_v35, 0.0 }
  0x64   :  { %v281_v49 = vmul.f32 %v78_v25, %v78_v25 }
  0x65   :  { %v183_v36 = vadd.f32 %v182_v26, %v181_v30  ;;  %v380_v61 = vadd.f32 %v379_v52, %v378_v55  ;;  %v393_v30 = vsel %vm82_vm1, %v275_v17, 0.0 }
  0x67   :  { %v185_v42 = vadd.f32 %v184_v32, %v183_v36  ;;  %v382_v3 = vadd.f32 %v381_v58, %v380_v61  ;;  %v395_v36 = vsel %vm82_vm1, %v276_v23, 0.0  ;;  %v405_v58 = vsel %vm82_vm1, %v281_v49, 0.0 }
  0x68   :  { %v407_v61 = vsel %vm82_vm1, %v282_v53, 0.0 }
  0x69   :  { %v187_v48 = vadd.f32 %v186_v38, %v185_v42  ;;  %v384_v9 = vadd.f32 %v383_v0, %v382_v3  ;;  %v397_v42 = vsel %vm82_vm1, %v277_v29, 0.0  ;;  %v409_v0 = vsel %vm82_vm1, %v283_v57, 0.0  ;;  %v81_v3 = vld [vmem:[%s787_s1] sm:$0x1] }
  0x6b   :  { %v189_v54 = vadd.f32 %v188_v44, %v187_v48  ;;  %v386_v15 = vadd.f32 %v385_v6, %v384_v9 }
  0x6d   :  { %v191_v60 = vadd.f32 %v190_v50, %v189_v54  ;;  %v388_v21 = vadd.f32 %v387_v12, %v386_v15  ;;  %v401_v50 = vsel %vm82_vm1, %v279_v41, 0.0  ;;  %v403_v54 = vsel %vm82_vm1, %v280_v45, 0.0  ;;  %v219_v12 = vld [vmem:[%s788_s2] sm:$0x1] }
  0x6f   :  { %v193_v2 = vadd.f32 %v192_v56, %v191_v60  ;;  %v390_v27 = vadd.f32 %v389_v18, %v388_v21 }
  0x71   :  { %v195_v8 = vadd.f32 %v194_v62, %v193_v2  ;;  %v392_v33 = vadd.f32 %v391_v24, %v390_v27 }
  0x73   :  { %v197_v14 = vadd.f32 %v196_v4, %v195_v8  ;;  %v394_v39 = vadd.f32 %v393_v30, %v392_v33 }
  0x75   :  { %v199_v20 = vadd.f32 %v198_v10, %v197_v14  ;;  %v396_v44 = vadd.f32 %v395_v36, %v394_v39 }
  0x77   :  { %v201_v26 = vadd.f32 %v200_v16, %v199_v20  ;;  %v398_v48 = vadd.f32 %v397_v42, %v396_v44 }
  0x79   :  { %v203_v32 = vadd.f32 %v202_v22, %v201_v26  ;;  %v400_v52 = vadd.f32 %v399_v46, %v398_v48 }
  0x7b   :  { %v205_v38 = vadd.f32 %v204_v28, %v203_v32  ;;  %v402_v56 = vadd.f32 %v401_v50, %v400_v52 }
  0x7d   :  { %v207_v43 = vadd.f32 %v206_v34, %v205_v38  ;;  %v404_v60 = vadd.f32 %v403_v54, %v402_v56 }
  0x7f   :  { %v209_v47 = vadd.f32 %v208_v40, %v207_v43  ;;  %v406_v63 = vadd.f32 %v405_v58, %v404_v60 }
  0x81   :  { %v210_v51 = vrot.slane %v209_v47, 4  ;;  %v408_v2 = vadd.f32 %v407_v61, %v406_v63 }
  0x83   :  { %v211_v55 = vadd.f32 %v210_v51, %v209_v47  ;;  %v410_v5 = vadd.f32 %v409_v0, %v408_v2 }
  0x85   :  { %v212_v59 = vrot.slane %v211_v55, 2  ;;  %v411_v7 = vrot.slane %v410_v5, 4 }
  0x87   :  { %v213_v62 = vadd.f32 %v212_v59, %v211_v55  ;;  %v412_v8 = vadd.f32 %v411_v7, %v410_v5 }
  0x89   :  { %v214_v1 = vrot.slane %v213_v62, 1  ;;  %v413_v9 = vrot.slane %v412_v8, 2 }
  0x8b   :  { %v215_v4 = vadd.f32 %v214_v1, %v213_v62  ;;  %v414_v10 = vadd.f32 %v413_v9, %v412_v8 }
  0x8d   :  { %v216_v6 = vadd.f32 %v215_v4, %v81_v3  ;;  %v415_v11 = vrot.slane %v414_v10, 1 }
  0x8f   :  { %218 = vst.msk [vmem:[%s787_s1] sm:$0x1] %vm14_vm0, %v216_v6  ;;  %v416_v13 = vadd.f32 %v415_v11, %v414_v10 }
  0x91   :  { %v417_v14 = vadd.f32 %v416_v13, %v219_v12 }
  0x93   :  { %418 = vst.msk [vmem:[%s788_s2] sm:$0x1] %vm14_vm0, %v417_v14 }

// kernel: unet_forward.73
= control target key start
LH: loop header
LB: loop body
LE: loop exit
PB: predicated region body
PF: predicated region fallthrough
CT: control target
= control target key end

     0   :  { %vm229_vm3 = vcmask 130048   ;;  %s909_s1 = inlined_call_operand.vmem [shape: f32[1,16], index: 1, kind: input, shape index: {}]   ;;  %s910_s2 = inlined_call_operand.vmem [shape: f32[1,16], index: 2, kind: input, shape index: {}]   ;;  %s911_s0 = inlined_call_operand.vmem [shape: f32[512,16], index: 0, kind: input, shape index: {}]   ;;  %s912_s3 = inlined_call_operand.vmem [shape: f32[512,16], index: 3, kind: output, shape index: {}]  }
   0x1   :  { %v78_v0 = vld [vmem:[%s909_s1] sm:$0x1]  ;;  %v15_v14 = vld [vmem:[%s911_s0 + $0x8] sm:$0xff]  ;;  %v16_v15 = vld [vmem:[%s911_s0 + $0x10] sm:$0xff] }
   0x2   :  { %v80_v1 = vld [vmem:[%s910_s2] sm:$0x1]  ;;  %v79_v2 = vmul.f32 0.001953125, %v78_v0  ;;  %v17_v16 = vld [vmem:[%s911_s0 + $0x18] sm:$0xff]  ;;  %v19_v22 = vld [vmem:[%s911_s0 + $0x28] sm:$0xff] }
   0x3   :  { %v81_v3 = vmul.f32 0.001953125, %v80_v1  ;;  %v14_v12 = vld [vmem:[%s911_s0] sm:$0xff]  ;;  %v20_v25 = vld [vmem:[%s911_s0 + $0x30] sm:$0xff]  ;;  %v21_v28 = vld [vmem:[%s911_s0 + $0x38] sm:$0xff] }
   0x4   :  { %v82_v4 = vmul.f32 %v79_v2, %v79_v2  ;;  %v326_v11 = vperm.slane %v79_v2, 0  ;;  %v18_v18 = vld [vmem:[%s911_s0 + $0x20] sm:$0xff]  ;;  %v23_v35 = vld [vmem:[%s911_s0 + $0x48] sm:$0xff]  ;;  %v24_v38 = vld [vmem:[%s911_s0 + $0x50] sm:$0xff] }
   0x5   :  { %v22_v30 = vld [vmem:[%s911_s0 + $0x40] sm:$0xff]  ;;  %v25_v41 = vld [vmem:[%s911_s0 + $0x58] sm:$0xff]  ;;  %v27_v47 = vld [vmem:[%s911_s0 + $0x68] sm:$0xff] }
   0x6   :  { %v83_v5 = vsub.f32 %v81_v3, %v82_v4  ;;  %v87_v19 = vsub.f32 %v14_v12, %v326_v11  ;;  %v88_v20 = vsub.f32 %v15_v14, %v326_v11  ;;  %v89_v21 = vsub.f32 %v16_v15, %v326_v11  ;;  %v26_v44 = vld [vmem:[%s911_s0 + $0x60] sm:$0xff]  ;;  %v28_v50 = vld [vmem:[%s911_s0 + $0x70] sm:$0xff]  ;;  %v29_v53 = vld [vmem:[%s911_s0 + $0x78] sm:$0xff] }
   0x7   :  { %v90_v24 = vsub.f32 %v17_v16, %v326_v11  ;;  %v91_v27 = vsub.f32 %v18_v18, %v326_v11  ;;  %v92_v29 = vsub.f32 %v19_v22, %v326_v11  ;;  %v93_v34 = vsub.f32 %v20_v25, %v326_v11  ;;  %v30_v56 = vld [vmem:[%s911_s0 + $0x80] sm:$0xff]  ;;  %v31_v59 = vld [vmem:[%s911_s0 + $0x88] sm:$0xff]  ;;  %v32_v62 = vld [vmem:[%s911_s0 + $0x90] sm:$0xff] }
   0x8   :  { %v151_v6 = vadd.f32 1e-05, %v83_v5  ;;  %v94_v37 = vsub.f32 %v21_v28, %v326_v11  ;;  %v95_v40 = vsub.f32 %v22_v30, %v326_v11  ;;  %v96_v43 = vsub.f32 %v23_v35, %v326_v11  ;;  %v33_v1 = vld [vmem:[%s911_s0 + $0x98] sm:$0xff]  ;;  %v34_v4 = vld [vmem:[%s911_s0 + $0xa0] sm:$0xff] }
   0x9   :  { %v97_v46 = vsub.f32 %v24_v38, %v326_v11  ;;  %v98_v49 = vsub.f32 %v25_v41, %v326_v11  ;;  %v99_v52 = vsub.f32 %v26_v44, %v326_v11  ;;  %v100_v55 = vsub.f32 %v27_v47, %v326_v11  ;;  %v37_v14 = vld [vmem:[%s911_s0 + $0xb8] sm:$0xff]  ;;  %v42_v30 = vld [vmem:[%s911_s0 + $0xe0] sm:$0xff] }
   0xa   :  { %298 = vrsqrt.f32 %v151_v6  ;;  %vm158_vm0 = vweird.f32 %v151_v6  ;;  %v101_v58 = vsub.f32 %v28_v50, %v326_v11  ;;  %v102_v61 = vsub.f32 %v29_v53, %v326_v11 }
   0xb   :  { %v103_v0 = vsub.f32 %v30_v56, %v326_v11  ;;  %v104_v3 = vsub.f32 %v31_v59, %v326_v11  ;;  %v110_v22 = vsub.f32 %v37_v14, %v326_v11  ;;  %v115_v38 = vsub.f32 %v42_v30, %v326_v11 }
  0x10   :  { %v299_v7 = vpop.eup %298 }
  0x11   :  { %v153_v8 = vmul.f32 %v299_v7, %v151_v6  ;;  %vm159_vm1 = vweird.f32 %v299_v7  ;;  %v105_v6 = vsub.f32 %v32_v62, %v326_v11  ;;  %v52_v62 = vld [vmem:[%s911_s0 + $0x130] sm:$0xff] }
  0x12   :  { %vm160_vm2 = vmor %vm158_vm0, %vm159_vm1 }
  0x13   :  { %v154_v9 = vmul.f32 %v299_v7, %v153_v8 }
  0x15   :  { %v155_v10 = vmul.f32 0.5, %v154_v9  ;;  %v106_v9 = vsub.f32 %v33_v1, %v326_v11  ;;  %v53_v1 = vld [vmem:[%s911_s0 + $0x138] sm:$0xff] }
  0x17   :  { %v156_v13 = vsub.f32 1.5, %v155_v10  ;;  %v36_v10 = vld [vmem:[%s911_s0 + $0xb0] sm:$0xff] }
  0x19   :  { %v157_v17 = vmul.f32 %v299_v7, %v156_v13  ;;  %v107_v13 = vsub.f32 %v34_v4, %v326_v11 }
  0x1b   :  { %v161_v23 = vsel %vm160_vm2, %v299_v7, %v157_v17  ;;  %v35_v7 = vld [vmem:[%s911_s0 + $0xa8] sm:$0xff]  ;;  %v38_v17 = vld [vmem:[%s911_s0 + $0xc0] sm:$0xff] }
  0x1c   :  { %v353_v26 = vperm.slane %v161_v23, 0  ;;  %v108_v16 = vsub.f32 %v35_v7, %v326_v11  ;;  %v40_v23 = vld [vmem:[%s911_s0 + $0xd0] sm:$0xff]  ;;  %v111_v25 = vsub.f32 %v38_v17, %v326_v11  ;;  %v125_v7 = vsub.f32 %v52_v62, %v326_v11 }
  0x1e   :  { %v165_v31 = vmul.f32 %v353_v26, %v87_v19  ;;  %v166_v32 = vmul.f32 %v353_v26, %v88_v20  ;;  %v167_v33 = vmul.f32 %v353_v26, %v89_v21  ;;  %v168_v36 = vmul.f32 %v353_v26, %v90_v24  ;;  %v39_v20 = vld [vmem:[%s911_s0 + $0xc8] sm:$0xff] }
  0x1f   :  { %v169_v39 = vmul.f32 %v353_v26, %v91_v27  ;;  %v170_v42 = vmul.f32 %v353_v26, %v92_v29  ;;  %v171_v45 = vmul.f32 %v353_v26, %v93_v34  ;;  %v172_v48 = vmul.f32 %v353_v26, %v94_v37  ;;  %v41_v27 = vld [vmem:[%s911_s0 + $0xd8] sm:$0xff] }
  0x20   :  { %230 = vst.msk [vmem:[%s912_s3] sm:$0xff] %vm229_vm3, %v165_v31  ;;  %v173_v51 = vmul.f32 %v353_v26, %v95_v40  ;;  %v174_v54 = vmul.f32 %v353_v26, %v96_v43  ;;  %v175_v57 = vmul.f32 %v353_v26, %v97_v46  ;;  %v176_v60 = vmul.f32 %v353_v26, %v98_v49 }
  0x21   :  { %231 = vst.msk [vmem:[%s912_s3 + $0x8] sm:$0xff] %vm229_vm3, %v166_v32  ;;  %v177_v63 = vmul.f32 %v353_v26, %v99_v52  ;;  %v178_v2 = vmul.f32 %v353_v26, %v100_v55  ;;  %v179_v5 = vmul.f32 %v353_v26, %v101_v58  ;;  %v180_v8 = vmul.f32 %v353_v26, %v102_v61  ;;  %v77_v55 = vld [vmem:[%s911_s0 + $0x1f8] sm:$0xff]  ;;  %v51_v58 = vld [vmem:[%s911_s0 + $0x128] sm:$0xff] }
  0x22   :  { %232 = vst.msk [vmem:[%s912_s3 + $0x10] sm:$0xff] %vm229_vm3, %v167_v33  ;;  %v181_v12 = vmul.f32 %v353_v26, %v103_v0  ;;  %v182_v15 = vmul.f32 %v353_v26, %v104_v3  ;;  %v183_v18 = vmul.f32 %v353_v26, %v105_v6  ;;  %v109_v19 = vsub.f32 %v36_v10, %v326_v11  ;;  %v43_v33 = vld [vmem:[%s911_s0 + $0xe8] sm:$0xff] }
  0x23   :  { %233 = vst.msk [vmem:[%s912_s3 + $0x18] sm:$0xff] %vm229_vm3, %v168_v36  ;;  %v184_v21 = vmul.f32 %v353_v26, %v106_v9  ;;  %v185_v24 = vmul.f32 %v353_v26, %v107_v13  ;;  %v186_v28 = vmul.f32 %v353_v26, %v108_v16  ;;  %v112_v29 = vsub.f32 %v39_v20, %v326_v11  ;;  %v44_v36 = vld [vmem:[%s911_s0 + $0xf0] sm:$0xff] }
  0x24   :  { %234 = vst.msk [vmem:[%s912_s3 + $0x20] sm:$0xff] %vm229_vm3, %v169_v39  ;;  %v187_v31 = vmul.f32 %v353_v26, %v109_v19  ;;  %v113_v32 = vsub.f32 %v40_v23, %v326_v11  ;;  %v188_v34 = vmul.f32 %v353_v26, %v110_v22  ;;  %v114_v35 = vsub.f32 %v41_v27, %v326_v11  ;;  %v45_v39 = vld [vmem:[%s911_s0 + $0xf8] sm:$0xff] }
  0x25   :  { %235 = vst.msk [vmem:[%s912_s3 + $0x28] sm:$0xff] %vm229_vm3, %v170_v42  ;;  %v189_v37 = vmul.f32 %v353_v26, %v111_v25  ;;  %v190_v40 = vmul.f32 %v353_v26, %v112_v29  ;;  %v116_v41 = vsub.f32 %v43_v33, %v326_v11  ;;  %v46_v42 = vld [vmem:[%s911_s0 + $0x100] sm:$0xff]  ;;  %v117_v44 = vsub.f32 %v44_v36, %v326_v11 }
  0x26   :  { %236 = vst.msk [vmem:[%s912_s3 + $0x30] sm:$0xff] %vm229_vm3, %v171_v45  ;;  %v191_v43 = vmul.f32 %v353_v26, %v113_v32  ;;  %v47_v45 = vld [vmem:[%s911_s0 + $0x108] sm:$0xff]  ;;  %v192_v46 = vmul.f32 %v353_v26, %v114_v35  ;;  %v118_v47 = vsub.f32 %v45_v39, %v326_v11  ;;  %v193_v49 = vmul.f32 %v353_v26, %v115_v38 }
  0x27   :  { %237 = vst.msk [vmem:[%s912_s3 + $0x38] sm:$0xff] %vm229_vm3, %v172_v48  ;;  %v48_v48 = vld [vmem:[%s911_s0 + $0x110] sm:$0xff]  ;;  %v119_v50 = vsub.f32 %v46_v42, %v326_v11  ;;  %v194_v52 = vmul.f32 %v353_v26, %v116_v41  ;;  %v120_v53 = vsub.f32 %v47_v45, %v326_v11  ;;  %v195_v56 = vmul.f32 %v353_v26, %v117_v44 }
  0x28   :  { %238 = vst.msk [vmem:[%s912_s3 + $0x40] sm:$0xff] %vm229_vm3, %v173_v51  ;;  %v49_v51 = vld [vmem:[%s911_s0 + $0x118] sm:$0xff]  ;;  %v150_v59 = vsub.f32 %v77_v55, %v326_v11  ;;  %v124_v4 = vsub.f32 %v51_v58, %v326_v11  ;;  %v126_v10 = vsub.f32 %v53_v1, %v326_v11  ;;  %v203_v19 = vmul.f32 %v353_v26, %v125_v7  ;;  %v70_v55 = vld [vmem:[%s911_s0 + $0x1c0] sm:$0xff]  ;;  %v71_v58 = vld [vmem:[%s911_s0 + $0x1c8] sm:$0xff] }
  0x29   :  { %239 = vst.msk [vmem:[%s912_s3 + $0x48] sm:$0xff] %vm229_vm3, %v174_v54  ;;  %v50_v54 = vld [vmem:[%s911_s0 + $0x120] sm:$0xff]  ;;  %v122_v61 = vsub.f32 %v49_v51, %v326_v11  ;;  %v198_v3 = vmul.f32 %v353_v26, %v120_v53  ;;  %v75_v7 = vld [vmem:[%s911_s0 + $0x1e8] sm:$0xff] }
  0x2a   :  { %240 = vst.msk [vmem:[%s912_s3 + $0x50] sm:$0xff] %vm229_vm3, %v175_v57  ;;  %v121_v57 = vsub.f32 %v48_v48, %v326_v11  ;;  %v123_v0 = vsub.f32 %v50_v54, %v326_v11  ;;  %v202_v16 = vmul.f32 %v353_v26, %v124_v4  ;;  %v204_v22 = vmul.f32 %v353_v26, %v126_v10  ;;  %v74_v4 = vld [vmem:[%s911_s0 + $0x1e0] sm:$0xff]  ;;  %v76_v10 = vld [vmem:[%s911_s0 + $0x1f0] sm:$0xff] }
  0x2b   :  { %241 = vst.msk [vmem:[%s912_s3 + $0x58] sm:$0xff] %vm229_vm3, %v176_v60  ;;  %v196_v60 = vmul.f32 %v353_v26, %v118_v47  ;;  %v200_v9 = vmul.f32 %v353_v26, %v122_v61  ;;  %v72_v61 = vld [vmem:[%s911_s0 + $0x1d0] sm:$0xff] }
  0x2c   :  { %242 = vst.msk [vmem:[%s912_s3 + $0x60] sm:$0xff] %vm229_vm3, %v177_v63  ;;  %v197_v63 = vmul.f32 %v353_v26, %v119_v50  ;;  %v199_v6 = vmul.f32 %v353_v26, %v121_v57  ;;  %v201_v13 = vmul.f32 %v353_v26, %v123_v0  ;;  %v73_v0 = vld [vmem:[%s911_s0 + $0x1d8] sm:$0xff] }
  0x2d   :  { %243 = vst.msk [vmem:[%s912_s3 + $0x68] sm:$0xff] %vm229_vm3, %v178_v2  ;;  %v641_v2 = vmul.f32 %v353_v26, %v150_v59 }
  0x2e   :  { %244 = vst.msk [vmem:[%s912_s3 + $0x70] sm:$0xff] %vm229_vm3, %v179_v5  ;;  %v54_v5 = vld [vmem:[%s911_s0 + $0x140] sm:$0xff] }
  0x2f   :  { %245 = vst.msk [vmem:[%s912_s3 + $0x78] sm:$0xff] %vm229_vm3, %v180_v8  ;;  %v55_v8 = vld [vmem:[%s911_s0 + $0x148] sm:$0xff]  ;;  %v127_v14 = vsub.f32 %v54_v5, %v326_v11 }
  0x30   :  { %246 = vst.msk [vmem:[%s912_s3 + $0x80] sm:$0xff] %vm229_vm3, %v181_v12  ;;  %v56_v12 = vld [vmem:[%s911_s0 + $0x150] sm:$0xff]  ;;  %v128_v17 = vsub.f32 %v55_v8, %v326_v11 }
  0x31   :  { %247 = vst.msk [vmem:[%s912_s3 + $0x88] sm:$0xff] %vm229_vm3, %v182_v15  ;;  %v57_v15 = vld [vmem:[%s911_s0 + $0x158] sm:$0xff]  ;;  %v129_v20 = vsub.f32 %v56_v12, %v326_v11  ;;  %v205_v25 = vmul.f32 %v353_v26, %v127_v14 }
  0x32   :  { %248 = vst.msk [vmem:[%s912_s3 + $0x90] sm:$0xff] %vm229_vm3, %v183_v18  ;;  %v58_v18 = vld [vmem:[%s911_s0 + $0x160] sm:$0xff]  ;;  %v130_v23 = vsub.f32 %v57_v15, %v326_v11  ;;  %v206_v29 = vmul.f32 %v353_v26, %v128_v17  ;;  %v148_v15 = vsub.f32 %v75_v7, %v326_v11  ;;  %v149_v17 = vsub.f32 %v76_v10, %v326_v11 }
  0x33   :  { %249 = vst.msk [vmem:[%s912_s3 + $0x98] sm:$0xff] %vm229_vm3, %v184_v21  ;;  %v59_v21 = vld [vmem:[%s911_s0 + $0x168] sm:$0xff]  ;;  %v131_v27 = vsub.f32 %v58_v18, %v326_v11  ;;  %v207_v32 = vmul.f32 %v353_v26, %v129_v20 }
  0x34   :  { %250 = vst.msk [vmem:[%s912_s3 + $0xa0] sm:$0xff] %vm229_vm3, %v185_v24  ;;  %v60_v24 = vld [vmem:[%s911_s0 + $0x170] sm:$0xff]  ;;  %v132_v30 = vsub.f32 %v59_v21, %v326_v11  ;;  %v208_v35 = vmul.f32 %v353_v26, %v130_v23  ;;  %v227_v20 = vmul.f32 %v353_v26, %v149_v17 }
  0x35   :  { %251 = vst.msk [vmem:[%s912_s3 + $0xa8] sm:$0xff] %vm229_vm3, %v186_v28  ;;  %v61_v28 = vld [vmem:[%s911_s0 + $0x178] sm:$0xff]  ;;  %v133_v33 = vsub.f32 %v60_v24, %v326_v11  ;;  %v209_v38 = vmul.f32 %v353_v26, %v131_v27 }
  0x36   :  { %252 = vst.msk [vmem:[%s912_s3 + $0xb0] sm:$0xff] %vm229_vm3, %v187_v31  ;;  %v62_v31 = vld [vmem:[%s911_s0 + $0x180] sm:$0xff]  ;;  %v134_v36 = vsub.f32 %v61_v28, %v326_v11  ;;  %v210_v41 = vmul.f32 %v353_v26, %v132_v30 }
  0x37   :  { %253 = vst.msk [vmem:[%s912_s3 + $0xb8] sm:$0xff] %vm229_vm3, %v188_v34  ;;  %v63_v34 = vld [vmem:[%s911_s0 + $0x188] sm:$0xff]  ;;  %v135_v39 = vsub.f32 %v62_v31, %v326_v11  ;;  %v211_v44 = vmul.f32 %v353_v26, %v133_v33 }
  0x38   :  { %254 = vst.msk [vmem:[%s912_s3 + $0xc0] sm:$0xff] %vm229_vm3, %v189_v37  ;;  %v64_v37 = vld [vmem:[%s911_s0 + $0x190] sm:$0xff]  ;;  %v136_v42 = vsub.f32 %v63_v34, %v326_v11  ;;  %v212_v47 = vmul.f32 %v353_v26, %v134_v36 }
  0x39   :  { %255 = vst.msk [vmem:[%s912_s3 + $0xc8] sm:$0xff] %vm229_vm3, %v190_v40  ;;  %v65_v40 = vld [vmem:[%s911_s0 + $0x198] sm:$0xff]  ;;  %v137_v45 = vsub.f32 %v64_v37, %v326_v11  ;;  %v213_v50 = vmul.f32 %v353_v26, %v135_v39 }
  0x3a   :  { %256 = vst.msk [vmem:[%s912_s3 + $0xd0] sm:$0xff] %vm229_vm3, %v191_v43  ;;  %v66_v43 = vld [vmem:[%s911_s0 + $0x1a0] sm:$0xff]  ;;  %v138_v48 = vsub.f32 %v65_v40, %v326_v11  ;;  %v214_v53 = vmul.f32 %v353_v26, %v136_v42 }
  0x3b   :  { %257 = vst.msk [vmem:[%s912_s3 + $0xd8] sm:$0xff] %vm229_vm3, %v192_v46  ;;  %v67_v46 = vld [vmem:[%s911_s0 + $0x1a8] sm:$0xff]  ;;  %v139_v51 = vsub.f32 %v66_v43, %v326_v11 }
  0x3c   :  { %258 = vst.msk [vmem:[%s912_s3 + $0xe0] sm:$0xff] %vm229_vm3, %v193_v49  ;;  %v68_v49 = vld [vmem:[%s911_s0 + $0x1b0] sm:$0xff]  ;;  %v140_v54 = vsub.f32 %v67_v46, %v326_v11  ;;  %v216_v59 = vmul.f32 %v353_v26, %v138_v48 }
  0x3d   :  { %259 = vst.msk [vmem:[%s912_s3 + $0xe8] sm:$0xff] %vm229_vm3, %v194_v52  ;;  %v69_v52 = vld [vmem:[%s911_s0 + $0x1b8] sm:$0xff]  ;;  %v141_v57 = vsub.f32 %v68_v49, %v326_v11  ;;  %v217_v62 = vmul.f32 %v353_v26, %v139_v51 }
  0x3e   :  { %260 = vst.msk [vmem:[%s912_s3 + $0xf0] sm:$0xff] %vm229_vm3, %v195_v56  ;;  %v215_v56 = vmul.f32 %v353_v26, %v137_v45  ;;  %v218_v1 = vmul.f32 %v353_v26, %v140_v54 }
  0x3f   :  { %261 = vst.msk [vmem:[%s912_s3 + $0xf8] sm:$0xff] %vm229_vm3, %v196_v60  ;;  %v142_v60 = vsub.f32 %v69_v52, %v326_v11  ;;  %v219_v5 = vmul.f32 %v353_v26, %v141_v57 }
  0x40   :  { %262 = vst.msk [vmem:[%s912_s3 + $0x100] sm:$0xff] %vm229_vm3, %v197_v63  ;;  %v143_v63 = vsub.f32 %v70_v55, %v326_v11 }
  0x41   :  { %263 = vst.msk [vmem:[%s912_s3 + $0x108] sm:$0xff] %vm229_vm3, %v198_v3  ;;  %v144_v3 = vsub.f32 %v71_v58, %v326_v11  ;;  %v220_v8 = vmul.f32 %v353_v26, %v142_v60 }
  0x42   :  { %264 = vst.msk [vmem:[%s912_s3 + $0x110] sm:$0xff] %vm229_vm3, %v199_v6  ;;  %v145_v6 = vsub.f32 %v72_v61, %v326_v11  ;;  %v221_v12 = vmul.f32 %v353_v26, %v143_v63 }
  0x43   :  { %265 = vst.msk [vmem:[%s912_s3 + $0x118] sm:$0xff] %vm229_vm3, %v200_v9  ;;  %v146_v9 = vsub.f32 %v73_v0, %v326_v11  ;;  %v222_v14 = vmul.f32 %v353_v26, %v144_v3 }
  0x44   :  { %266 = vst.msk [vmem:[%s912_s3 + $0x120] sm:$0xff] %vm229_vm3, %v201_v13  ;;  %v147_v13 = vsub.f32 %v74_v4, %v326_v11  ;;  %v226_v11 = vmul.f32 %v353_v26, %v148_v15 }
  0x45   :  { %267 = vst.msk [vmem:[%s912_s3 + $0x128] sm:$0xff] %vm229_vm3, %v202_v16  ;;  %v223_v16 = vmul.f32 %v353_v26, %v145_v6  ;;  %v224_v18 = vmul.f32 %v353_v26, %v146_v9 }
  0x46   :  { %268 = vst.msk [vmem:[%s912_s3 + $0x130] sm:$0xff] %vm229_vm3, %v203_v19  ;;  %v225_v19 = vmul.f32 %v353_v26, %v147_v13 }
  0x47   :  { %269 = vst.msk [vmem:[%s912_s3 + $0x138] sm:$0xff] %vm229_vm3, %v204_v22 }
  0x48   :  { %270 = vst.msk [vmem:[%s912_s3 + $0x140] sm:$0xff] %vm229_vm3, %v205_v25 }
  0x49   :  { %271 = vst.msk [vmem:[%s912_s3 + $0x148] sm:$0xff] %vm229_vm3, %v206_v29 }
  0x4a   :  { %272 = vst.msk [vmem:[%s912_s3 + $0x150] sm:$0xff] %vm229_vm3, %v207_v32 }
  0x4b   :  { %273 = vst.msk [vmem:[%s912_s3 + $0x158] sm:$0xff] %vm229_vm3, %v208_v35 }
  0x4c   :  { %274 = vst.msk [vmem:[%s912_s3 + $0x160] sm:$0xff] %vm229_vm3, %v209_v38 }
  0x4d   :  { %275 = vst.msk [vmem:[%s912_s3 + $0x168] sm:$0xff] %vm229_vm3, %v210_v41 }
  0x4e   :  { %276 = vst.msk [vmem:[%s912_s3 + $0x170] sm:$0xff] %vm229_vm3, %v211_v44 }
  0x4f   :  { %277 = vst.msk [vmem:[%s912_s3 + $0x178] sm:$0xff] %vm229_vm3, %v212_v47 }
  0x50   :  { %278 = vst.msk [vmem:[%s912_s3 + $0x180] sm:$0xff] %vm229_vm3, %v213_v50 }
  0x51   :  { %279 = vst.msk [vmem:[%s912_s3 + $0x188] sm:$0xff] %vm229_vm3, %v214_v53 }
  0x52   :  { %280 = vst.msk [vmem:[%s912_s3 + $0x190] sm:$0xff] %vm229_vm3, %v215_v56 }
  0x53   :  { %281 = vst.msk [vmem:[%s912_s3 + $0x198] sm:$0xff] %vm229_vm3, %v216_v59 }
  0x54   :  { %282 = vst.msk [vmem:[%s912_s3 + $0x1a0] sm:$0xff] %vm229_vm3, %v217_v62 }
  0x55   :  { %283 = vst.msk [vmem:[%s912_s3 + $0x1a8] sm:$0xff] %vm229_vm3, %v218_v1 }
  0x56   :  { %284 = vst.msk [vmem:[%s912_s3 + $0x1b0] sm:$0xff] %vm229_vm3, %v219_v5 }
  0x57   :  { %285 = vst.msk [vmem:[%s912_s3 + $0x1b8] sm:$0xff] %vm229_vm3, %v220_v8 }
  0x58   :  { %286 = vst.msk [vmem:[%s912_s3 + $0x1c0] sm:$0xff] %vm229_vm3, %v221_v12 }
  0x59   :  { %287 = vst.msk [vmem:[%s912_s3 + $0x1c8] sm:$0xff] %vm229_vm3, %v222_v14 }
  0x5a   :  { %288 = vst.msk [vmem:[%s912_s3 + $0x1d0] sm:$0xff] %vm229_vm3, %v223_v16 }
  0x5b   :  { %289 = vst.msk [vmem:[%s912_s3 + $0x1d8] sm:$0xff] %vm229_vm3, %v224_v18 }
  0x5c   :  { %290 = vst.msk [vmem:[%s912_s3 + $0x1e0] sm:$0xff] %vm229_vm3, %v225_v19 }
  0x5d   :  { %291 = vst.msk [vmem:[%s912_s3 + $0x1e8] sm:$0xff] %vm229_vm3, %v226_v11 }
  0x5e   :  { %292 = vst.msk [vmem:[%s912_s3 + $0x1f0] sm:$0xff] %vm229_vm3, %v227_v20 }
  0x5f   :  { %293 = vst.msk [vmem:[%s912_s3 + $0x1f8] sm:$0xff] %vm229_vm3, %v641_v2 }

// kernel: unet_forward.74
= control target key start
LH: loop header
LB: loop body
LE: loop exit
PB: predicated region body
PF: predicated region fallthrough
CT: control target
= control target key end

     0   :  { %s1751_s1 = inlined_call_operand.vmem [shape: bf16[128,128], index: 1, kind: input, shape index: {}]   ;;  %s1752_s0 = inlined_call_operand.vmem [shape: bf16[512,128], index: 0, kind: input, shape index: {}]   ;;  %s1753_s2 = inlined_call_operand.vmem [shape: f32[1,128], index: 2, kind: input, shape index: {}]   ;;  %s1754_s3 = inlined_call_operand.vmem [shape: f32[512,128], index: 3, kind: output, shape index: {}]  }
   0x1   :  { %v1037_v0 = vld [vmem:[%s1751_s1 + $0x38] sm:$0xff]  ;;  %v1036_v1 = vld [vmem:[%s1751_s1 + $0x30] sm:$0xff]  ;;  %v1035_v2 = vld [vmem:[%s1751_s1 + $0x28] sm:$0xff] }
   0x2   :  { %434 = vmatpush.bf16.msra.mxu0 %v1037_v0  ;;  %1197 = vmatpush.bf16.msra.mxu1 %v1037_v0  ;;  %v1034_v3 = vld [vmem:[%s1751_s1 + $0x20] sm:$0xff]  ;;  %v1033_v4 = vld [vmem:[%s1751_s1 + $0x18] sm:$0xff]  ;;  %v1032_v5 = vld [vmem:[%s1751_s1 + $0x10] sm:$0xff] }
   0x3   :  { %1198 = vmatpush.bf16.msra.mxu2 %v1037_v0  ;;  %1199 = vmatpush.bf16.msra.mxu3 %v1037_v0  ;;  %v1039_v6 = vld [vmem:[%s1752_s0] sm:$0xff]   ;;  %v1031_v14 = vld [vmem:[%s1751_s1 + $0x8] sm:$0xff]  ;;  %v1167_v56 = vld [vmem:[%s1752_s0 + $0x10] sm:$0xff]  }
   0x4   :  { %v1173_v7 = vld [vmem:[%s1752_s0 + $0x40] sm:$0xff]   ;;  %v1040_v10 = vunpack.c.l.bf16 %v1039_v6  ;;  %v1041_v11 = vunpack.c.h.bf16 %v1039_v6  ;;  %v1166_v32 = vld [vmem:[%s1752_s0 + $0x8] sm:$0xff]   ;;  %v1175_v57 = vld [vmem:[%s1752_s0 + $0x50] sm:$0xff]   ;;  %v1048_v60 = vunpack.c.l.bf16 %v1167_v56  ;;  %v1049_v61 = vunpack.c.h.bf16 %v1167_v56 }
   0x5   :  { %v1181_v8 = vld [vmem:[%s1752_s0 + $0x80] sm:$0xff]   ;;  %v1072_v12 = vunpack.c.l.bf16 %v1173_v7  ;;  %v1073_v13 = vunpack.c.h.bf16 %v1173_v7  ;;  %v1174_v33 = vld [vmem:[%s1752_s0 + $0x48] sm:$0xff]   ;;  %v1044_v36 = vunpack.c.l.bf16 %v1166_v32  ;;  %v1045_v37 = vunpack.c.h.bf16 %v1166_v32  ;;  %v1183_v58 = vld [vmem:[%s1752_s0 + $0x90] sm:$0xff]  }
   0x6   :  { %435 = vmatpush.bf16.msra.mxu0 %v1036_v1  ;;  %1200 = vmatpush.bf16.msra.mxu1 %v1036_v1  ;;  %v1189_v9 = vld [vmem:[%s1752_s0 + $0xc0] sm:$0xff]   ;;  %v1104_v15 = vunpack.c.l.bf16 %v1181_v8  ;;  %v1105_v16 = vunpack.c.h.bf16 %v1181_v8  ;;  %v210_v19 = vmax.f32 %v1040_v10, 0.0  ;;  %v211_v20 = vmax.f32 %v1041_v11, 0.0  ;;  %v1182_v34 = vld [vmem:[%s1752_s0 + $0x88] sm:$0xff]   ;;  %v1191_v59 = vld [vmem:[%s1752_s0 + $0xd0] sm:$0xff]  }
   0x7   :  { %1201 = vmatpush.bf16.msra.mxu2 %v1036_v1  ;;  %1202 = vmatpush.bf16.msra.mxu3 %v1036_v1  ;;  %v1136_v17 = vunpack.c.l.bf16 %v1189_v9  ;;  %v1137_v18 = vunpack.c.h.bf16 %v1189_v9  ;;  %v226_v21 = vmax.f32 %v1072_v12, 0.0  ;;  %v227_v22 = vmax.f32 %v1073_v13, 0.0  ;;  %v1030_v23 = vld [vmem:[%s1751_s1] sm:$0xff]  ;;  %v1190_v35 = vld [vmem:[%s1752_s0 + $0xc8] sm:$0xff]  }
   0x8   :  { %v242_v24 = vmax.f32 %v1104_v15, 0.0  ;;  %v243_v25 = vmax.f32 %v1105_v16, 0.0  ;;  %v274_v28 = vpack.c.bf16 %v211_v20, %v210_v19  ;;  %v1076_v38 = vunpack.c.l.bf16 %v1174_v33  ;;  %v1168_v16 = vld [vmem:[%s1752_s0 + $0x18] sm:$0xff]  }
   0x9   :  { %v258_v26 = vmax.f32 %v1136_v17, 0.0  ;;  %v259_v27 = vmax.f32 %v1137_v18, 0.0  ;;  %v282_v29 = vpack.c.bf16 %v227_v22, %v226_v21  ;;  %v1077_v39 = vunpack.c.h.bf16 %v1174_v33  ;;  %v1176_v17 = vld [vmem:[%s1752_s0 + $0x58] sm:$0xff]  }
   0xa   :  { %436 = vmatpush.bf16.msra.mxu0 %v1035_v2  ;;  %1203 = vmatpush.bf16.msra.mxu1 %v1035_v2  ;;  %v290_v30 = vpack.c.bf16 %v243_v25, %v242_v24  ;;  %v1108_v40 = vunpack.c.l.bf16 %v1182_v34  ;;  %v1109_v41 = vunpack.c.h.bf16 %v1182_v34  ;;  %v1140_v42 = vunpack.c.l.bf16 %v1190_v35  ;;  %v1184_v18 = vld [vmem:[%s1752_s0 + $0x98] sm:$0xff]  }
   0xb   :  { %1204 = vmatpush.bf16.msra.mxu2 %v1035_v2  ;;  %1205 = vmatpush.bf16.msra.mxu3 %v1035_v2  ;;  %v298_v31 = vpack.c.bf16 %v259_v27, %v258_v26  ;;  %v1141_v43 = vunpack.c.h.bf16 %v1190_v35  ;;  %v212_v44 = vmax.f32 %v1044_v36, 0.0  ;;  %v213_v45 = vmax.f32 %v1045_v37, 0.0  ;;  %v1192_v19 = vld [vmem:[%s1752_s0 + $0xd8] sm:$0xff]  }
   0xc   :  { %v228_v46 = vmax.f32 %v1076_v38, 0.0  ;;  %v229_v47 = vmax.f32 %v1077_v39, 0.0  ;;  %v244_v48 = vmax.f32 %v1108_v40, 0.0  ;;  %v245_v49 = vmax.f32 %v1109_v41, 0.0  ;;  %v1169_v40 = vld [vmem:[%s1752_s0 + $0x20] sm:$0xff]  }
   0xd   :  { %v260_v50 = vmax.f32 %v1140_v42, 0.0  ;;  %v261_v51 = vmax.f32 %v1141_v43, 0.0  ;;  %v275_v52 = vpack.c.bf16 %v213_v45, %v212_v44  ;;  %v1080_v62 = vunpack.c.l.bf16 %v1175_v57  ;;  %v1177_v41 = vld [vmem:[%s1752_s0 + $0x60] sm:$0xff]  }
   0xe   :  { %437 = vmatpush.bf16.msra.mxu0 %v1034_v3  ;;  %1206 = vmatpush.bf16.msra.mxu1 %v1034_v3  ;;  %v283_v53 = vpack.c.bf16 %v229_v47, %v228_v46  ;;  %v291_v54 = vpack.c.bf16 %v245_v49, %v244_v48  ;;  %v1081_v63 = vunpack.c.h.bf16 %v1175_v57  ;;  %v1112_v0 = vunpack.c.l.bf16 %v1183_v58  ;;  %v1185_v42 = vld [vmem:[%s1752_s0 + $0xa0] sm:$0xff]  }
   0xf   :  { %1207 = vmatpush.bf16.msra.mxu2 %v1034_v3  ;;  %1208 = vmatpush.bf16.msra.mxu3 %v1034_v3  ;;  %v299_v55 = vpack.c.bf16 %v261_v51, %v260_v50  ;;  %v1113_v1 = vunpack.c.h.bf16 %v1183_v58  ;;  %v1144_v2 = vunpack.c.l.bf16 %v1191_v59  ;;  %v1145_v3 = vunpack.c.h.bf16 %v1191_v59  ;;  %v1193_v43 = vld [vmem:[%s1752_s0 + $0xe0] sm:$0xff]  }
  0x10   :  { %v230_v6 = vmax.f32 %v1080_v62, 0.0  ;;  %v231_v7 = vmax.f32 %v1081_v63, 0.0  ;;  %v246_v8 = vmax.f32 %v1112_v0, 0.0  ;;  %v1052_v20 = vunpack.c.l.bf16 %v1168_v16  ;;  %v1170_v0 = vld [vmem:[%s1752_s0 + $0x28] sm:$0xff]  }
  0x11   :  { %v247_v9 = vmax.f32 %v1113_v1, 0.0  ;;  %v262_v10 = vmax.f32 %v1144_v2, 0.0  ;;  %v263_v11 = vmax.f32 %v1145_v3, 0.0  ;;  %v1053_v21 = vunpack.c.h.bf16 %v1168_v16  ;;  %v1178_v1 = vld [vmem:[%s1752_s0 + $0x68] sm:$0xff]  }
  0x12   :  { %438 = vmatpush.bf16.msra.mxu0 %v1033_v4  ;;  %1209 = vmatpush.bf16.msra.mxu1 %v1033_v4  ;;  %v284_v13 = vpack.c.bf16 %v231_v7, %v230_v6  ;;  %v1084_v22 = vunpack.c.l.bf16 %v1176_v17  ;;  %v1116_v24 = vunpack.c.l.bf16 %v1184_v18  ;;  %v1117_v25 = vunpack.c.h.bf16 %v1184_v18  ;;  %v1186_v2 = vld [vmem:[%s1752_s0 + $0xa8] sm:$0xff]  }
  0x13   :  { %1210 = vmatpush.bf16.msra.mxu2 %v1033_v4  ;;  %1211 = vmatpush.bf16.msra.mxu3 %v1033_v4  ;;  %v214_v4 = vmax.f32 %v1048_v60, 0.0  ;;  %v300_v15 = vpack.c.bf16 %v263_v11, %v262_v10  ;;  %v1148_v26 = vunpack.c.l.bf16 %v1192_v19  ;;  %v1149_v27 = vunpack.c.h.bf16 %v1192_v19  ;;  %v1194_v3 = vld [vmem:[%s1752_s0 + $0xe8] sm:$0xff]  }
  0x14   :  { %v248_v32 = vmax.f32 %v1116_v24, 0.0  ;;  %v249_v33 = vmax.f32 %v1117_v25, 0.0  ;;  %v1056_v44 = vunpack.c.l.bf16 %v1169_v40  ;;  %v1057_v45 = vunpack.c.h.bf16 %v1169_v40  ;;  %v1171_v24 = vld [vmem:[%s1752_s0 + $0x30] sm:$0xff]  }
  0x15   :  { %v264_v34 = vmax.f32 %v1148_v26, 0.0  ;;  %v265_v35 = vmax.f32 %v1149_v27, 0.0  ;;  %v1088_v46 = vunpack.c.l.bf16 %v1177_v41  ;;  %v1089_v47 = vunpack.c.h.bf16 %v1177_v41  ;;  %v1179_v25 = vld [vmem:[%s1752_s0 + $0x70] sm:$0xff]  }
  0x16   :  { %439 = vmatpush.bf16.msra.mxu0 %v1032_v5  ;;  %1212 = vmatpush.bf16.msra.mxu1 %v1032_v5  ;;  %v293_v38 = vpack.c.bf16 %v249_v33, %v248_v32  ;;  %v1120_v48 = vunpack.c.l.bf16 %v1185_v42  ;;  %v1121_v49 = vunpack.c.h.bf16 %v1185_v42  ;;  %v1152_v50 = vunpack.c.l.bf16 %v1193_v43  ;;  %v1187_v26 = vld [vmem:[%s1752_s0 + $0xb0] sm:$0xff]  }
  0x17   :  { %1213 = vmatpush.bf16.msra.mxu2 %v1032_v5  ;;  %1214 = vmatpush.bf16.msra.mxu3 %v1032_v5  ;;  %v215_v5 = vmax.f32 %v1049_v61, 0.0  ;;  %v301_v39 = vpack.c.bf16 %v265_v35, %v264_v34  ;;  %v1153_v51 = vunpack.c.h.bf16 %v1193_v43  ;;  %v1092_v6 = vunpack.c.l.bf16 %v1178_v1  ;;  %v1195_v27 = vld [vmem:[%s1752_s0 + $0xf0] sm:$0xff]  }
  0x18   :  { %v250_v56 = vmax.f32 %v1120_v48, 0.0  ;;  %v251_v57 = vmax.f32 %v1121_v49, 0.0  ;;  %v266_v58 = vmax.f32 %v1152_v50, 0.0  ;;  %v1093_v7 = vunpack.c.h.bf16 %v1178_v1  ;;  %v1172_v48 = vld [vmem:[%s1752_s0 + $0x38] sm:$0xff]  }
  0x19   :  { %v276_v12 = vpack.c.bf16 %v215_v5, %v214_v4  ;;  %v267_v59 = vmax.f32 %v1153_v51, 0.0  ;;  %v1060_v4 = vunpack.c.l.bf16 %v1170_v0  ;;  %v1061_v5 = vunpack.c.h.bf16 %v1170_v0  ;;  %v1180_v49 = vld [vmem:[%s1752_s0 + $0x78] sm:$0xff]  }
  0x1a   :  { %440 = vmatpush.bf16.msra.mxu0 %v1031_v14  ;;  %1215 = vmatpush.bf16.msra.mxu1 %v1031_v14  ;;  %v294_v62 = vpack.c.bf16 %v251_v57, %v250_v56  ;;  %v1156_v10 = vunpack.c.l.bf16 %v1194_v3  ;;  %v1157_v11 = vunpack.c.h.bf16 %v1194_v3  ;;  %v1128_v32 = vunpack.c.l.bf16 %v1187_v26  ;;  %v1188_v50 = vld [vmem:[%s1752_s0 + $0xb8] sm:$0xff]  }
  0x1b   :  { %1216 = vmatpush.bf16.msra.mxu2 %v1031_v14  ;;  %1217 = vmatpush.bf16.msra.mxu3 %v1031_v14  ;;  %v292_v14 = vpack.c.bf16 %v247_v9, %v246_v8  ;;  %v302_v63 = vpack.c.bf16 %v267_v59, %v266_v58  ;;  %v1124_v8 = vunpack.c.l.bf16 %v1186_v2  ;;  %v1125_v9 = vunpack.c.h.bf16 %v1186_v2  ;;  %v1196_v51 = vld [vmem:[%s1752_s0 + $0xf8] sm:$0xff]  }
  0x1c   :  { %v268_v18 = vmax.f32 %v1156_v10, 0.0  ;;  %v269_v19 = vmax.f32 %v1157_v11, 0.0  ;;  %v1129_v33 = vunpack.c.h.bf16 %v1187_v26  ;;  %v1160_v34 = vunpack.c.l.bf16 %v1195_v27 }
  0x1d   :  { %v252_v16 = vmax.f32 %v1124_v8, 0.0  ;;  %v1161_v35 = vunpack.c.h.bf16 %v1195_v27  ;;  %v254_v40 = vmax.f32 %v1128_v32, 0.0  ;;  %v1132_v56 = vunpack.c.l.bf16 %v1188_v50  ;;  %v1493_v8 = vld [vmem:[%s1753_s2] ss:$0 sm:$0xff] }
  0x1e   :  { %441 = vmatpush.bf16.msra.mxu0 %v1030_v23  ;;  %1218 = vmatpush.bf16.msra.mxu1 %v1030_v23  ;;  %v255_v41 = vmax.f32 %v1129_v33, 0.0  ;;  %v270_v42 = vmax.f32 %v1160_v34, 0.0  ;;  %v1133_v57 = vunpack.c.h.bf16 %v1188_v50  ;;  %v1164_v58 = vunpack.c.l.bf16 %v1196_v51 }
  0x1f   :  { %1219 = vmatpush.bf16.msra.mxu2 %v1030_v23  ;;  %1220 = vmatpush.bf16.msra.mxu3 %v1030_v23  ;;  %v1085_v23 = vunpack.c.h.bf16 %v1176_v17  ;;  %v253_v17 = vmax.f32 %v1125_v9, 0.0  ;;  %v271_v43 = vmax.f32 %v1161_v35, 0.0  ;;  %v1165_v59 = vunpack.c.h.bf16 %v1196_v51 }
  0x20   :  { %v256_v0 = vmax.f32 %v1132_v56, 0.0  ;;  %v257_v1 = vmax.f32 %v1133_v57, 0.0  ;;  %v272_v2 = vmax.f32 %v1164_v58, 0.0 }
  0x21   :  { %442 = vmatmul.bf16.vlgmr.msra.gmra.mxu0 %v274_v28  ;;  %482 = vmatmul.bf16.vlgmr.msra.gmra.mxu1 %v282_v29  ;;  %v216_v28 = vmax.f32 %v1052_v20, 0.0  ;;  %v217_v29 = vmax.f32 %v1053_v21, 0.0  ;;  %v273_v3 = vmax.f32 %v1165_v59, 0.0 }
  0x22   :  { %522 = vmatmul.bf16.vlgmr.msra.gmra.mxu2 %v290_v30  ;;  %562 = vmatmul.bf16.vlgmr.msra.gmra.mxu3 %v298_v31  ;;  %v232_v30 = vmax.f32 %v1084_v22, 0.0  ;;  %v233_v31 = vmax.f32 %v1085_v23, 0.0  ;;  %v295_v22 = vpack.c.bf16 %v253_v17, %v252_v16  ;;  %v303_v23 = vpack.c.bf16 %v269_v19, %v268_v18 }
  0x23   :  { %v277_v36 = vpack.c.bf16 %v217_v29, %v216_v28  ;;  %v1064_v28 = vunpack.c.l.bf16 %v1171_v24  ;;  %v1065_v29 = vunpack.c.h.bf16 %v1171_v24 }
  0x24   :  { %v285_v37 = vpack.c.bf16 %v233_v31, %v232_v30  ;;  %v1096_v30 = vunpack.c.l.bf16 %v1179_v25  ;;  %v1097_v31 = vunpack.c.h.bf16 %v1179_v25 }
  0x31   :  { %447 = vmatmul.bf16.gmra.mxu0 %v275_v52  ;;  %487 = vmatmul.bf16.gmra.mxu1 %v283_v53  ;;  %v218_v52 = vmax.f32 %v1056_v44, 0.0  ;;  %v219_v53 = vmax.f32 %v1057_v45, 0.0 }
  0x32   :  { %527 = vmatmul.bf16.gmra.mxu2 %v291_v54  ;;  %567 = vmatmul.bf16.gmra.mxu3 %v299_v55  ;;  %v234_v54 = vmax.f32 %v1088_v46, 0.0  ;;  %v235_v55 = vmax.f32 %v1089_v47, 0.0  ;;  %v296_v46 = vpack.c.bf16 %v255_v41, %v254_v40  ;;  %v304_v47 = vpack.c.bf16 %v271_v43, %v270_v42 }
  0x33   :  { %v278_v60 = vpack.c.bf16 %v219_v53, %v218_v52  ;;  %v1068_v52 = vunpack.c.l.bf16 %v1172_v48  ;;  %v1069_v53 = vunpack.c.h.bf16 %v1172_v48 }
  0x34   :  { %v286_v61 = vpack.c.bf16 %v235_v55, %v234_v54  ;;  %v1100_v54 = vunpack.c.l.bf16 %v1180_v49  ;;  %v1101_v55 = vunpack.c.h.bf16 %v1180_v49 }
  0x41   :  { %452 = vmatmul.bf16.gmra.mxu0 %v276_v12  ;;  %492 = vmatmul.bf16.gmra.mxu1 %v284_v13  ;;  %v220_v12 = vmax.f32 %v1060_v4, 0.0  ;;  %v221_v13 = vmax.f32 %v1061_v5, 0.0 }
  0x42   :  { %532 = vmatmul.bf16.gmra.mxu2 %v292_v14  ;;  %572 = vmatmul.bf16.gmra.mxu3 %v300_v15  ;;  %v236_v14 = vmax.f32 %v1092_v6, 0.0  ;;  %v237_v15 = vmax.f32 %v1093_v7, 0.0  ;;  %v297_v6 = vpack.c.bf16 %v257_v1, %v256_v0  ;;  %v305_v7 = vpack.c.bf16 %v273_v3, %v272_v2 }
  0x43   :  { %v279_v20 = vpack.c.bf16 %v221_v13, %v220_v12 }
  0x44   :  { %v287_v21 = vpack.c.bf16 %v237_v15, %v236_v14 }
  0x51   :  { %457 = vmatmul.bf16.gmra.mxu0 %v277_v36  ;;  %497 = vmatmul.bf16.gmra.mxu1 %v285_v37  ;;  %v222_v36 = vmax.f32 %v1064_v28, 0.0  ;;  %v223_v37 = vmax.f32 %v1065_v29, 0.0 }
  0x52   :  { %537 = vmatmul.bf16.gmra.mxu2 %v293_v38  ;;  %577 = vmatmul.bf16.gmra.mxu3 %v301_v39  ;;  %v238_v38 = vmax.f32 %v1096_v30, 0.0  ;;  %v239_v39 = vmax.f32 %v1097_v31, 0.0 }
  0x53   :  { %v280_v44 = vpack.c.bf16 %v223_v37, %v222_v36 }
  0x54   :  { %v288_v45 = vpack.c.bf16 %v239_v39, %v238_v38 }
  0x61   :  { %462 = vmatmul.bf16.gmra.mxu0 %v278_v60  ;;  %502 = vmatmul.bf16.gmra.mxu1 %v286_v61  ;;  %v224_v60 = vmax.f32 %v1068_v52, 0.0  ;;  %v225_v61 = vmax.f32 %v1069_v53, 0.0 }
  0x62   :  { %542 = vmatmul.bf16.gmra.mxu2 %v294_v62  ;;  %582 = vmatmul.bf16.gmra.mxu3 %v302_v63  ;;  %v240_v62 = vmax.f32 %v1100_v54, 0.0  ;;  %v241_v63 = vmax.f32 %v1101_v55, 0.0 }
  0x63   :  { %v281_v4 = vpack.c.bf16 %v225_v61, %v224_v60 }
  0x64   :  { %v289_v5 = vpack.c.bf16 %v241_v63, %v240_v62 }
  0x71   :  { %467 = vmatmul.bf16.gmra.mxu0 %v279_v20  ;;  %507 = vmatmul.bf16.gmra.mxu1 %v287_v21 }
  0x72   :  { %547 = vmatmul.bf16.gmra.mxu2 %v295_v22  ;;  %587 = vmatmul.bf16.gmra.mxu3 %v303_v23 }
  0x81   :  { %472 = vmatmul.bf16.gmra.mxu0 %v280_v44  ;;  %512 = vmatmul.bf16.gmra.mxu1 %v288_v45 }
  0x82   :  { %552 = vmatmul.bf16.gmra.mxu2 %v296_v46  ;;  %592 = vmatmul.bf16.gmra.mxu3 %v304_v47 }
  0x91   :  { %477 = vmatmul.bf16.gmra.mxu0 %v281_v4  ;;  %517 = vmatmul.bf16.gmra.mxu1 %v289_v5 }
  0x92   :  { %557 = vmatmul.bf16.gmra.mxu2 %v297_v6  ;;  %597 = vmatmul.bf16.gmra.mxu3 %v305_v7 }
  0x9e   :  { %v443_v9 = vpop.f32.mrf.mxu0  ;;  %v483_v10 = vpop.f32.mrf.mxu1 }
  0x9f   :  { %v802_v11 = vadd.f32 %v1493_v8, %v443_v9  ;;  %v818_v12 = vadd.f32 %v1493_v8, %v483_v10 }
  0xa1   :  { %1222 = vtanh.f32 %v802_v11 }
  0xa2   :  { %1224 = vtanh.f32 %v818_v12 }
  0xa5   :  { %v523_v13 = vpop.f32.mrf.mxu2  ;;  %v563_v14 = vpop.f32.mrf.mxu3 }
  0xa6   :  { %v834_v15 = vadd.f32 %v1493_v8, %v523_v13  ;;  %v850_v16 = vadd.f32 %v1493_v8, %v563_v14  ;;  %v445_v17 = vpop.f32.mrf.mxu0  ;;  %v485_v18 = vpop.f32.mrf.mxu1 }
  0xa7   :  { %v1223_v19 = vpop.eup %1222  ;;  %v803_v20 = vadd.f32 %v1493_v8, %v445_v17  ;;  %v819_v21 = vadd.f32 %v1493_v8, %v485_v18 }
  0xa8   :  { %v1225_v22 = vpop.eup %1224  ;;  %930 = vst [vmem:[%s1754_s3] sm:$0xff] %v1223_v19  ;;  %1226 = vtanh.f32 %v834_v15 }
  0xa9   :  { %946 = vst [vmem:[%s1754_s3 + $0x80] sm:$0xff] %v1225_v22  ;;  %1228 = vtanh.f32 %v850_v16 }
  0xaa   :  { %1230 = vtanh.f32 %v803_v20 }
  0xab   :  { %1232 = vtanh.f32 %v819_v21 }
  0xad   :  { %v525_v23 = vpop.f32.mrf.mxu2  ;;  %v565_v24 = vpop.f32.mrf.mxu3 }
  0xae   :  { %v1227_v25 = vpop.eup %1226  ;;  %v835_v26 = vadd.f32 %v1493_v8, %v525_v23  ;;  %v851_v27 = vadd.f32 %v1493_v8, %v565_v24  ;;  %v448_v28 = vpop.f32.mrf.mxu0 }
  0xaf   :  { %v488_v29 = vpop.f32.mrf.mxu1  ;;  %v1229_v30 = vpop.eup %1228  ;;  %962 = vst [vmem:[%s1754_s3 + $0x100] sm:$0xff] %v1227_v25  ;;  %v804_v31 = vadd.f32 %v1493_v8, %v448_v28 }
  0xb0   :  { %v820_v32 = vadd.f32 %v1493_v8, %v488_v29  ;;  %v1231_v33 = vpop.eup %1230  ;;  %978 = vst [vmem:[%s1754_s3 + $0x180] sm:$0xff] %v1229_v30  ;;  %1234 = vtanh.f32 %v835_v26 }
  0xb1   :  { %v1233_v34 = vpop.eup %1232  ;;  %931 = vst [vmem:[%s1754_s3 + $0x8] sm:$0xff] %v1231_v33  ;;  %1236 = vtanh.f32 %v851_v27 }
  0xb2   :  { %947 = vst [vmem:[%s1754_s3 + $0x88] sm:$0xff] %v1233_v34  ;;  %1238 = vtanh.f32 %v804_v31 }
  0xb3   :  { %1240 = vtanh.f32 %v820_v32 }
  0xb5   :  { %v528_v35 = vpop.f32.mrf.mxu2  ;;  %v568_v36 = vpop.f32.mrf.mxu3 }
  0xb6   :  { %v1235_v37 = vpop.eup %1234  ;;  %v836_v38 = vadd.f32 %v1493_v8, %v528_v35  ;;  %v852_v39 = vadd.f32 %v1493_v8, %v568_v36  ;;  %v450_v40 = vpop.f32.mrf.mxu0 }
  0xb7   :  { %v490_v41 = vpop.f32.mrf.mxu1  ;;  %v1237_v42 = vpop.eup %1236  ;;  %963 = vst [vmem:[%s1754_s3 + $0x108] sm:$0xff] %v1235_v37  ;;  %v805_v43 = vadd.f32 %v1493_v8, %v450_v40 }
  0xb8   :  { %v821_v44 = vadd.f32 %v1493_v8, %v490_v41  ;;  %v1239_v45 = vpop.eup %1238  ;;  %979 = vst [vmem:[%s1754_s3 + $0x188] sm:$0xff] %v1237_v42  ;;  %1242 = vtanh.f32 %v836_v38 }
  0xb9   :  { %v1241_v46 = vpop.eup %1240  ;;  %932 = vst [vmem:[%s1754_s3 + $0x10] sm:$0xff] %v1239_v45  ;;  %1244 = vtanh.f32 %v852_v39 }
  0xba   :  { %948 = vst [vmem:[%s1754_s3 + $0x90] sm:$0xff] %v1241_v46  ;;  %1246 = vtanh.f32 %v805_v43 }
  0xbb   :  { %1248 = vtanh.f32 %v821_v44 }
  0xbd   :  { %v530_v47 = vpop.f32.mrf.mxu2  ;;  %v570_v48 = vpop.f32.mrf.mxu3 }
  0xbe   :  { %v1243_v49 = vpop.eup %1242  ;;  %v837_v50 = vadd.f32 %v1493_v8, %v530_v47  ;;  %v853_v51 = vadd.f32 %v1493_v8, %v570_v48  ;;  %v453_v52 = vpop.f32.mrf.mxu0 }
  0xbf   :  { %v493_v53 = vpop.f32.mrf.mxu1  ;;  %v1245_v54 = vpop.eup %1244  ;;  %964 = vst [vmem:[%s1754_s3 + $0x110] sm:$0xff] %v1243_v49  ;;  %v806_v55 = vadd.f32 %v1493_v8, %v453_v52 }
  0xc0   :  { %v822_v56 = vadd.f32 %v1493_v8, %v493_v53  ;;  %v1247_v57 = vpop.eup %1246  ;;  %980 = vst [vmem:[%s1754_s3 + $0x190] sm:$0xff] %v1245_v54  ;;  %1250 = vtanh.f32 %v837_v50 }
  0xc1   :  { %v1249_v58 = vpop.eup %1248  ;;  %933 = vst [vmem:[%s1754_s3 + $0x18] sm:$0xff] %v1247_v57  ;;  %1252 = vtanh.f32 %v853_v51 }
  0xc2   :  { %949 = vst [vmem:[%s1754_s3 + $0x98] sm:$0xff] %v1249_v58  ;;  %1254 = vtanh.f32 %v806_v55 }
  0xc3   :  { %1256 = vtanh.f32 %v822_v56 }
  0xc5   :  { %v533_v59 = vpop.f32.mrf.mxu2  ;;  %v573_v60 = vpop.f32.mrf.mxu3 }
  0xc6   :  { %v1251_v61 = vpop.eup %1250  ;;  %v838_v62 = vadd.f32 %v1493_v8, %v533_v59  ;;  %v854_v63 = vadd.f32 %v1493_v8, %v573_v60  ;;  %v455_v0 = vpop.f32.mrf.mxu0 }
  0xc7   :  { %v495_v1 = vpop.f32.mrf.mxu1  ;;  %v1253_v2 = vpop.eup %1252  ;;  %965 = vst [vmem:[%s1754_s3 + $0x118] sm:$0xff] %v1251_v61  ;;  %v807_v3 = vadd.f32 %v1493_v8, %v455_v0 }
  0xc8   :  { %v823_v4 = vadd.f32 %v1493_v8, %v495_v1  ;;  %v1255_v5 = vpop.eup %1254  ;;  %981 = vst [vmem:[%s1754_s3 + $0x198] sm:$0xff] %v1253_v2  ;;  %1258 = vtanh.f32 %v838_v62 }
  0xc9   :  { %v1257_v6 = vpop.eup %1256  ;;  %934 = vst [vmem:[%s1754_s3 + $0x20] sm:$0xff] %v1255_v5  ;;  %1260 = vtanh.f32 %v854_v63 }
  0xca   :  { %950 = vst [vmem:[%s1754_s3 + $0xa0] sm:$0xff] %v1257_v6  ;;  %1262 = vtanh.f32 %v807_v3 }
  0xcb   :  { %1264 = vtanh.f32 %v823_v4 }
  0xcd   :  { %v535_v7 = vpop.f32.mrf.mxu2  ;;  %v575_v9 = vpop.f32.mrf.mxu3 }
  0xce   :  { %v1259_v10 = vpop.eup %1258  ;;  %v839_v11 = vadd.f32 %v1493_v8, %v535_v7  ;;  %v855_v12 = vadd.f32 %v1493_v8, %v575_v9  ;;  %v458_v13 = vpop.f32.mrf.mxu0 }
  0xcf   :  { %v498_v14 = vpop.f32.mrf.mxu1  ;;  %v1261_v15 = vpop.eup %1260  ;;  %966 = vst [vmem:[%s1754_s3 + $0x120] sm:$0xff] %v1259_v10  ;;  %v808_v16 = vadd.f32 %v1493_v8, %v458_v13 }
  0xd0   :  { %v824_v17 = vadd.f32 %v1493_v8, %v498_v14  ;;  %v1263_v18 = vpop.eup %1262  ;;  %982 = vst [vmem:[%s1754_s3 + $0x1a0] sm:$0xff] %v1261_v15  ;;  %1266 = vtanh.f32 %v839_v11 }
  0xd1   :  { %v1265_v19 = vpop.eup %1264  ;;  %935 = vst [vmem:[%s1754_s3 + $0x28] sm:$0xff] %v1263_v18  ;;  %1268 = vtanh.f32 %v855_v12 }
  0xd2   :  { %951 = vst [vmem:[%s1754_s3 + $0xa8] sm:$0xff] %v1265_v19  ;;  %1270 = vtanh.f32 %v808_v16 }
  0xd3   :  { %1272 = vtanh.f32 %v824_v17 }
  0xd5   :  { %v538_v20 = vpop.f32.mrf.mxu2  ;;  %v578_v21 = vpop.f32.mrf.mxu3 }
  0xd6   :  { %v1267_v22 = vpop.eup %1266  ;;  %v840_v23 = vadd.f32 %v1493_v8, %v538_v20  ;;  %v856_v24 = vadd.f32 %v1493_v8, %v578_v21  ;;  %v460_v25 = vpop.f32.mrf.mxu0 }
  0xd7   :  { %v500_v26 = vpop.f32.mrf.mxu1  ;;  %v1269_v27 = vpop.eup %1268  ;;  %967 = vst [vmem:[%s1754_s3 + $0x128] sm:$0xff] %v1267_v22  ;;  %v809_v28 = vadd.f32 %v1493_v8, %v460_v25 }
  0xd8   :  { %v825_v29 = vadd.f32 %v1493_v8, %v500_v26  ;;  %v1271_v30 = vpop.eup %1270  ;;  %983 = vst [vmem:[%s1754_s3 + $0x1a8] sm:$0xff] %v1269_v27  ;;  %1274 = vtanh.f32 %v840_v23 }
  0xd9   :  { %v1273_v31 = vpop.eup %1272  ;;  %936 = vst [vmem:[%s1754_s3 + $0x30] sm:$0xff] %v1271_v30  ;;  %1276 = vtanh.f32 %v856_v24 }
  0xda   :  { %952 = vst [vmem:[%s1754_s3 + $0xb0] sm:$0xff] %v1273_v31  ;;  %1278 = vtanh.f32 %v809_v28 }
  0xdb   :  { %1280 = vtanh.f32 %v825_v29 }
  0xdd   :  { %v540_v32 = vpop.f32.mrf.mxu2  ;;  %v580_v33 = vpop.f32.mrf.mxu3 }
  0xde   :  { %v1275_v34 = vpop.eup %1274  ;;  %v841_v35 = vadd.f32 %v1493_v8, %v540_v32  ;;  %v857_v36 = vadd.f32 %v1493_v8, %v580_v33  ;;  %v463_v37 = vpop.f32.mrf.mxu0 }
  0xdf   :  { %v503_v38 = vpop.f32.mrf.mxu1  ;;  %v1277_v39 = vpop.eup %1276  ;;  %968 = vst [vmem:[%s1754_s3 + $0x130] sm:$0xff] %v1275_v34  ;;  %v810_v40 = vadd.f32 %v1493_v8, %v463_v37 }
  0xe0   :  { %v826_v41 = vadd.f32 %v1493_v8, %v503_v38  ;;  %v1279_v42 = vpop.eup %1278  ;;  %984 = vst [vmem:[%s1754_s3 + $0x1b0] sm:$0xff] %v1277_v39  ;;  %1282 = vtanh.f32 %v841_v35 }
  0xe1   :  { %v1281_v43 = vpop.eup %1280  ;;  %937 = vst [vmem:[%s1754_s3 + $0x38] sm:$0xff] %v1279_v42  ;;  %1284 = vtanh.f32 %v857_v36 }
  0xe2   :  { %953 = vst [vmem:[%s1754_s3 + $0xb8] sm:$0xff] %v1281_v43  ;;  %1286 = vtanh.f32 %v810_v40 }
  0xe3   :  { %1288 = vtanh.f32 %v826_v41 }
  0xe5   :  { %v543_v44 = vpop.f32.mrf.mxu2  ;;  %v583_v45 = vpop.f32.mrf.mxu3 }
  0xe6   :  { %v1283_v46 = vpop.eup %1282  ;;  %v842_v47 = vadd.f32 %v1493_v8, %v543_v44  ;;  %v858_v48 = vadd.f32 %v1493_v8, %v583_v45  ;;  %v465_v49 = vpop.f32.mrf.mxu0 }
  0xe7   :  { %v505_v50 = vpop.f32.mrf.mxu1  ;;  %v1285_v51 = vpop.eup %1284  ;;  %969 = vst [vmem:[%s1754_s3 + $0x138] sm:$0xff] %v1283_v46  ;;  %v811_v52 = vadd.f32 %v1493_v8, %v465_v49 }
  0xe8   :  { %v827_v53 = vadd.f32 %v1493_v8, %v505_v50  ;;  %v1287_v54 = vpop.eup %1286  ;;  %985 = vst [vmem:[%s1754_s3 + $0x1b8] sm:$0xff] %v1285_v51  ;;  %1290 = vtanh.f32 %v842_v47 }
  0xe9   :  { %v1289_v55 = vpop.eup %1288  ;;  %938 = vst [vmem:[%s1754_s3 + $0x40] sm:$0xff] %v1287_v54  ;;  %1292 = vtanh.f32 %v858_v48 }
  0xea   :  { %954 = vst [vmem:[%s1754_s3 + $0xc0] sm:$0xff] %v1289_v55  ;;  %1294 = vtanh.f32 %v811_v52 }
  0xeb   :  { %1296 = vtanh.f32 %v827_v53 }
  0xed   :  { %v545_v56 = vpop.f32.mrf.mxu2  ;;  %v585_v57 = vpop.f32.mrf.mxu3 }
  0xee   :  { %v1291_v58 = vpop.eup %1290  ;;  %v843_v59 = vadd.f32 %v1493_v8, %v545_v56  ;;  %v859_v60 = vadd.f32 %v1493_v8, %v585_v57  ;;  %v468_v61 = vpop.f32.mrf.mxu0 }
  0xef   :  { %v508_v62 = vpop.f32.mrf.mxu1  ;;  %v1293_v63 = vpop.eup %1292  ;;  %970 = vst [vmem:[%s1754_s3 + $0x140] sm:$0xff] %v1291_v58  ;;  %v812_v0 = vadd.f32 %v1493_v8, %v468_v61 }
  0xf0   :  { %v828_v1 = vadd.f32 %v1493_v8, %v508_v62  ;;  %v1295_v2 = vpop.eup %1294  ;;  %986 = vst [vmem:[%s1754_s3 + $0x1c0] sm:$0xff] %v1293_v63  ;;  %1298 = vtanh.f32 %v843_v59 }
  0xf1   :  { %v1297_v3 = vpop.eup %1296  ;;  %939 = vst [vmem:[%s1754_s3 + $0x48] sm:$0xff] %v1295_v2  ;;  %1300 = vtanh.f32 %v859_v60 }
  0xf2   :  { %955 = vst [vmem:[%s1754_s3 + $0xc8] sm:$0xff] %v1297_v3  ;;  %1302 = vtanh.f32 %v812_v0 }
  0xf3   :  { %1304 = vtanh.f32 %v828_v1 }
  0xf5   :  { %v548_v4 = vpop.f32.mrf.mxu2  ;;  %v588_v5 = vpop.f32.mrf.mxu3 }
  0xf6   :  { %v1299_v6 = vpop.eup %1298  ;;  %v844_v7 = vadd.f32 %v1493_v8, %v548_v4  ;;  %v860_v9 = vadd.f32 %v1493_v8, %v588_v5  ;;  %v470_v10 = vpop.f32.mrf.mxu0 }
  0xf7   :  { %v510_v11 = vpop.f32.mrf.mxu1  ;;  %v1301_v12 = vpop.eup %1300  ;;  %971 = vst [vmem:[%s1754_s3 + $0x148] sm:$0xff] %v1299_v6  ;;  %v813_v13 = vadd.f32 %v1493_v8, %v470_v10 }
  0xf8   :  { %v829_v14 = vadd.f32 %v1493_v8, %v510_v11  ;;  %v1303_v15 = vpop.eup %1302  ;;  %987 = vst [vmem:[%s1754_s3 + $0x1c8] sm:$0xff] %v1301_v12  ;;  %1306 = vtanh.f32 %v844_v7 }
  0xf9   :  { %v1305_v16 = vpop.eup %1304  ;;  %940 = vst [vmem:[%s1754_s3 + $0x50] sm:$0xff] %v1303_v15  ;;  %1308 = vtanh.f32 %v860_v9 }
  0xfa   :  { %956 = vst [vmem:[%s1754_s3 + $0xd0] sm:$0xff] %v1305_v16  ;;  %1310 = vtanh.f32 %v813_v13 }
  0xfb   :  { %1312 = vtanh.f32 %v829_v14 }
  0xfd   :  { %v550_v17 = vpop.f32.mrf.mxu2  ;;  %v590_v18 = vpop.f32.mrf.mxu3 }
  0xfe   :  { %v1307_v19 = vpop.eup %1306  ;;  %v845_v20 = vadd.f32 %v1493_v8, %v550_v17  ;;  %v861_v21 = vadd.f32 %v1493_v8, %v590_v18  ;;  %v473_v22 = vpop.f32.mrf.mxu0 }
  0xff   :  { %v513_v23 = vpop.f32.mrf.mxu1  ;;  %v1309_v24 = vpop.eup %1308  ;;  %972 = vst [vmem:[%s1754_s3 + $0x150] sm:$0xff] %v1307_v19  ;;  %v814_v25 = vadd.f32 %v1493_v8, %v473_v22 }
 0x100   :  { %v830_v26 = vadd.f32 %v1493_v8, %v513_v23  ;;  %v1311_v27 = vpop.eup %1310  ;;  %988 = vst [vmem:[%s1754_s3 + $0x1d0] sm:$0xff] %v1309_v24  ;;  %1314 = vtanh.f32 %v845_v20 }
 0x101   :  { %v1313_v28 = vpop.eup %1312  ;;  %941 = vst [vmem:[%s1754_s3 + $0x58] sm:$0xff] %v1311_v27  ;;  %1316 = vtanh.f32 %v861_v21 }
 0x102   :  { %957 = vst [vmem:[%s1754_s3 + $0xd8] sm:$0xff] %v1313_v28  ;;  %1318 = vtanh.f32 %v814_v25 }
 0x103   :  { %1320 = vtanh.f32 %v830_v26 }
 0x105   :  { %v553_v29 = vpop.f32.mrf.mxu2  ;;  %v593_v30 = vpop.f32.mrf.mxu3 }
 0x106   :  { %v1315_v31 = vpop.eup %1314  ;;  %v846_v32 = vadd.f32 %v1493_v8, %v553_v29  ;;  %v862_v33 = vadd.f32 %v1493_v8, %v593_v30  ;;  %v475_v34 = vpop.f32.mrf.mxu0 }
 0x107   :  { %v515_v35 = vpop.f32.mrf.mxu1  ;;  %v1317_v36 = vpop.eup %1316  ;;  %973 = vst [vmem:[%s1754_s3 + $0x158] sm:$0xff] %v1315_v31  ;;  %v815_v37 = vadd.f32 %v1493_v8, %v475_v34 }
 0x108   :  { %v831_v38 = vadd.f32 %v1493_v8, %v515_v35  ;;  %v1319_v39 = vpop.eup %1318  ;;  %989 = vst [vmem:[%s1754_s3 + $0x1d8] sm:$0xff] %v1317_v36  ;;  %1322 = vtanh.f32 %v846_v32 }
 0x109   :  { %v1321_v40 = vpop.eup %1320  ;;  %942 = vst [vmem:[%s1754_s3 + $0x60] sm:$0xff] %v1319_v39  ;;  %1324 = vtanh.f32 %v862_v33 }
 0x10a   :  { %958 = vst [vmem:[%s1754_s3 + $0xe0] sm:$0xff] %v1321_v40  ;;  %1326 = vtanh.f32 %v815_v37 }
 0x10b   :  { %1328 = vtanh.f32 %v831_v38 }
 0x10d   :  { %v555_v41 = vpop.f32.mrf.mxu2  ;;  %v595_v42 = vpop.f32.mrf.mxu3 }
 0x10e   :  { %v1323_v43 = vpop.eup %1322  ;;  %v847_v44 = vadd.f32 %v1493_v8, %v555_v41  ;;  %v863_v45 = vadd.f32 %v1493_v8, %v595_v42  ;;  %v478_v46 = vpop.f32.mrf.mxu0 }
 0x10f   :  { %v518_v47 = vpop.f32.mrf.mxu1  ;;  %v1325_v48 = vpop.eup %1324  ;;  %974 = vst [vmem:[%s1754_s3 + $0x160] sm:$0xff] %v1323_v43  ;;  %v816_v49 = vadd.f32 %v1493_v8, %v478_v46 }
 0x110   :  { %v832_v50 = vadd.f32 %v1493_v8, %v518_v47  ;;  %v1327_v51 = vpop.eup %1326  ;;  %990 = vst [vmem:[%s1754_s3 + $0x1e0] sm:$0xff] %v1325_v48  ;;  %1330 = vtanh.f32 %v847_v44 }
 0x111   :  { %v1329_v52 = vpop.eup %1328  ;;  %943 = vst [vmem:[%s1754_s3 + $0x68] sm:$0xff] %v1327_v51  ;;  %1332 = vtanh.f32 %v863_v45 }
 0x112   :  { %959 = vst [vmem:[%s1754_s3 + $0xe8] sm:$0xff] %v1329_v52  ;;  %1334 = vtanh.f32 %v816_v49 }
 0x113   :  { %1336 = vtanh.f32 %v832_v50 }
 0x115   :  { %v558_v53 = vpop.f32.mrf.mxu2  ;;  %v598_v54 = vpop.f32.mrf.mxu3 }
 0x116   :  { %v1331_v55 = vpop.eup %1330  ;;  %v848_v56 = vadd.f32 %v1493_v8, %v558_v53  ;;  %v864_v57 = vadd.f32 %v1493_v8, %v598_v54  ;;  %v480_v58 = vpop.f32.mrf.mxu0 }
 0x117   :  { %v520_v59 = vpop.f32.mrf.mxu1  ;;  %v1333_v60 = vpop.eup %1332  ;;  %975 = vst [vmem:[%s1754_s3 + $0x168] sm:$0xff] %v1331_v55  ;;  %v817_v61 = vadd.f32 %v1493_v8, %v480_v58 }
 0x118   :  { %v833_v62 = vadd.f32 %v1493_v8, %v520_v59  ;;  %v1335_v63 = vpop.eup %1334  ;;  %991 = vst [vmem:[%s1754_s3 + $0x1e8] sm:$0xff] %v1333_v60  ;;  %1338 = vtanh.f32 %v848_v56 }
 0x119   :  { %v1337_v0 = vpop.eup %1336  ;;  %944 = vst [vmem:[%s1754_s3 + $0x70] sm:$0xff] %v1335_v63  ;;  %1340 = vtanh.f32 %v864_v57 }
 0x11a   :  { %960 = vst [vmem:[%s1754_s3 + $0xf0] sm:$0xff] %v1337_v0  ;;  %1342 = vtanh.f32 %v817_v61 }
 0x11b   :  { %1344 = vtanh.f32 %v833_v62 }
 0x11d   :  { %v560_v1 = vpop.f32.mrf.mxu2  ;;  %v600_v2 = vpop.f32.mrf.mxu3 }
 0x11e   :  { %v1339_v3 = vpop.eup %1338  ;;  %v849_v4 = vadd.f32 %v1493_v8, %v560_v1  ;;  %v865_v5 = vadd.f32 %v1493_v8, %v600_v2 }
 0x11f   :  { %v1341_v6 = vpop.eup %1340  ;;  %976 = vst [vmem:[%s1754_s3 + $0x170] sm:$0xff] %v1339_v3 }
 0x120   :  { %v1343_v7 = vpop.eup %1342  ;;  %992 = vst [vmem:[%s1754_s3 + $0x1f0] sm:$0xff] %v1341_v6  ;;  %1346 = vtanh.f32 %v849_v4 }
 0x121   :  { %v1345_v9 = vpop.eup %1344  ;;  %945 = vst [vmem:[%s1754_s3 + $0x78] sm:$0xff] %v1343_v7  ;;  %1348 = vtanh.f32 %v865_v5 }
 0x122   :  { %961 = vst [vmem:[%s1754_s3 + $0xf8] sm:$0xff] %v1345_v9 }
 0x126   :  { %v1347_v8 = vpop.eup %1346 }
 0x127   :  { %v1349_v10 = vpop.eup %1348  ;;  %977 = vst [vmem:[%s1754_s3 + $0x178] sm:$0xff] %v1347_v8 }
 0x128   :  { %993 = vst [vmem:[%s1754_s3 + $0x1f8] sm:$0xff] %v1349_v10 }

</bundles_post_ra>
